<compile_context>
chip_gen: v7x
topology: tpu7x:2x2x1
jax: 0.10.0
libtpu: 0.0.40
codegen_flags: <defaults>
</compile_context>

<pallas_src>
import functools

import jax
import jax.numpy as jnp
import numpy as np
from jax.experimental import pallas as pl
from jax.experimental.pallas import tpu as pltpu


# ------------------------------- helpers ------------------------------------

def _fs(shape):
    """BlockSpec covering the whole array (block == full array shape)."""
    n = len(shape)
    return pl.BlockSpec(tuple(shape), lambda i: (0,) * n)


def _pad_to(a, shape):
    """Zero-pad `a` up to `shape` (runs once, at init time)."""
    out = jnp.zeros(shape, jnp.float32)
    return out.at[tuple(slice(0, s) for s in a.shape)].set(a.astype(jnp.float32))


# ----------------------------- Pallas kernels -------------------------------

def _prior_kernel(y_ref, e_ref, w1a_ref, w1b_ref, b1_ref, w2_ref, b2_ref,
                  w3mu_ref, b3mu_ref, w3ls_ref, b3ls_ref, mu_ref, ls_ref):
    # Lambdaf_prior: Linear(2,50) ; Linear(50,50) ; ReLU ; Linear(50,20)
    # K=2 first layer is done on the VPU as two rank-1 (broadcast) updates.
    h1 = y_ref[...] * w1a_ref[...] + e_ref[...] * w1b_ref[...] + b1_ref[...]
    h2 = jnp.dot(h1, w2_ref[...], preferred_element_type=jnp.float32) + b2_ref[...]
    h2 = jnp.maximum(h2, 0.0)
    mu_ref[...] = jnp.dot(h2, w3mu_ref[...], preferred_element_type=jnp.float32) + b3mu_ref[...]
    ls_ref[...] = jnp.dot(h2, w3ls_ref[...], preferred_element_type=jnp.float32) + b3ls_ref[...]


def _enc_head_kernel(h_ref, y_ref, e_ref, eps_ref,
                     yw1a_ref, yw1b_ref, yb1_ref, yw2_ref, yb2_ref,
                     mw1x_ref, mw1y_ref, mb1_ref, mw2_ref, mb2_ref,
                     w3mu_ref, b3mu_ref, w3ls_ref, b3ls_ref,
                     mu_ref, ls_ref, z_ref):
    # YEencoder: Linear(2,100) ; Linear(100,100) ; ReLU
    ye1 = y_ref[...] * yw1a_ref[...] + e_ref[...] * yw1b_ref[...] + yb1_ref[...]
    ye2 = jnp.dot(ye1, yw2_ref[...], preferred_element_type=jnp.float32) + yb2_ref[...]
    ye2 = jnp.maximum(ye2, 0.0)
    # XYEmerger: Linear(612,100) ; Linear(100,100) ; ReLU ; Linear(100, 2L)
    # cat(x_flat, ye) @ W1 is computed as x_flat @ W1[:512] + ye @ W1[512:] (no concat).
    m1 = (jnp.dot(h_ref[...], mw1x_ref[...], preferred_element_type=jnp.float32)
          + jnp.dot(ye2, mw1y_ref[...], preferred_element_type=jnp.float32)
          + mb1_ref[...])
    m2 = jnp.dot(m1, mw2_ref[...], preferred_element_type=jnp.float32) + mb2_ref[...]
    m2 = jnp.maximum(m2, 0.0)
    mu = jnp.dot(m2, w3mu_ref[...], preferred_element_type=jnp.float32) + b3mu_ref[...]
    ls = jnp.dot(m2, w3ls_ref[...], preferred_element_type=jnp.float32) + b3ls_ref[...]
    mu_ref[...] = mu
    ls_ref[...] = ls
    # fused ReparameterizedDiagonalGaussian.rsample: z = mu + exp(log_sigma) * eps
    z_ref[...] = mu + jnp.exp(ls) * eps_ref[...]


def _dec_ffn_kernel(z_ref, w1_ref, b1_ref, w2_ref, b2_ref, o_ref):
    # relu(decoderFFN(z)) ; relu(decoderFFN2(.))
    h = jnp.dot(z_ref[...], w1_ref[...], preferred_element_type=jnp.float32) + b1_ref[...]
    h = jnp.maximum(h, 0.0)
    h = jnp.dot(h, w2_ref[...], preferred_element_type=jnp.float32) + b2_ref[...]
    o_ref[...] = jnp.maximum(h, 0.0)


def _conv_mm_kernel(cols_ref, w_ref, b_ref, o_ref, *, relu):
    # One batch element per grid step: (M, K) @ (K, Cout) + bias, fused ReLU.
    acc = jnp.dot(cols_ref[0], w_ref[...], preferred_element_type=jnp.float32) + b_ref[...]
    if relu:
        acc = jnp.maximum(acc, 0.0)
    o_ref[0] = acc


# ----------------------------- kernel wrappers -------------------------------

def _mlp_call(kernel, args, out_shapes):
    """Single-block fused MLP chain: everything (weights + activations) resident in VMEM."""
    return pl.pallas_call(
        kernel,
        out_shape=tuple(jax.ShapeDtypeStruct(s, jnp.float32) for s in out_shapes),
        grid=(1,),
        in_specs=[_fs(a.shape) for a in args],
        out_specs=tuple(_fs(s) for s in out_shapes),
        compiler_params=pltpu.CompilerParams(dimension_semantics=("arbitrary",)),
    )(*args)


def _conv_matmul(cols, w, b, *, relu):
    """(B, M, K) x (K, N) + b with fused ReLU; grid over batch, 'parallel' semantics."""
    B, M, K = cols.shape
    N = w.shape[1]
    return pl.pallas_call(
        functools.partial(_conv_mm_kernel, relu=relu),
        out_shape=jax.ShapeDtypeStruct((B, M, N), jnp.float32),
        grid=(B,),
        in_specs=[
            pl.BlockSpec((1, M, K), lambda i: (i, 0, 0)),
            pl.BlockSpec((K, N), lambda i: (0, 0)),
            pl.BlockSpec((1, N), lambda i: (0, 0)),
        ],
        out_specs=pl.BlockSpec((1, M, N), lambda i: (i, 0, 0)),
        # For large batch / spatial sizes, additionally tile M and size the tiles per
        # chip (v7x: 64 MiB VMEM + 2 TCs + 256-wide panels; v5e/v6e: 128 MiB VMEM).
        compiler_params=pltpu.CompilerParams(dimension_semantics=("parallel",)),
    )(cols, w, b)


# --------------------------- conv glue (NHWC) --------------------------------

def conv2d_nhwc(x, wmat, b, *, stride, pad, relu, k=3):
    """nn.Conv2d on NHWC activations via im2col + batched Pallas matmul.

    Weights are already in (k*k*Cin, Cout) matmul layout (preprocessed at init),
    so no transposes are needed anywhere on the activation path."""
    B, H, W, Cin = x.shape
    Ho = (H + 2 * pad - k) // stride + 1
    Wo = (W + 2 * pad - k) // stride + 1
    xp = jnp.pad(x, ((0, 0), (pad, pad), (pad, pad), (0, 0))) if pad else x
    taps = [xp[:, i:i + stride * Ho:stride, j:j + stride * Wo:stride, :]
            for i in range(k) for j in range(k)]
    cols = jnp.concatenate(taps, axis=-1).reshape(B, Ho * Wo, k * k * Cin)
    out = _conv_matmul(cols, wmat, b, relu=relu)
    return out.reshape(B, Ho, Wo, wmat.shape[1])


def conv_transpose2d_nhwc(x, wmat, b, *, stride, pad, out_pad, relu, k=3):
    """nn.ConvTranspose2d == zero-dilate + pad + stride-1 conv with the pre-flipped
    weight (flip/transpose already folded into `wmat` at init)."""
    assert 0 <= pad <= k - 1, "dilate+pad formulation requires pad <= k-1"
    B, H, W, C = x.shape
    xd = jnp.zeros((B, (H - 1) * stride + 1, (W - 1) * stride + 1, C), x.dtype)
    xd = xd.at[:, ::stride, ::stride, :].set(x)
    lo = k - 1 - pad
    hi = k - 1 - pad + out_pad
    xp = jnp.pad(xd, ((0, 0), (lo, hi), (lo, hi), (0, 0)))
    # TODO(synk): a sub-pixel (phase) decomposition would remove the ~4x MXU work on
    # dilation zeros; negligible at these tiny shapes so the simpler exact path is kept.
    return conv2d_nhwc(xp, wmat, b, stride=1, pad=0, relu=relu, k=k)


# --------------------------- parameters & preprocessing ----------------------

def init_params(key, latent_features):
    """Random parameters in PyTorch layouts (Linear: (in,out); Conv2d: OIHW;
    ConvTranspose2d: (Cin,Cout,k,k))."""
    ks = iter(jax.random.split(key, 32))

    def W(shape, scale=0.05):
        return (scale * jax.random.normal(next(ks), shape)).astype(jnp.float32)

    p = {}
    p["prior_w1"], p["prior_b1"] = W((2, 50)), W((50,))
    p["prior_w2"], p["prior_b2"] = W((50, 50)), W((50,))
    p["prior_w3"], p["prior_b3"] = W((50, 20)), W((20,))
    p["enc_cw1"], p["enc_cb1"] = W((32, 3, 3, 3)), W((32,))
    p["enc_cw2"], p["enc_cb2"] = W((32, 32, 3, 3)), W((32,))
    p["enc_cw3"], p["enc_cb3"] = W((32, 32, 3, 3)), W((32,))
    p["ye_w1"], p["ye_b1"] = W((2, 100)), W((100,))
    p["ye_w2"], p["ye_b2"] = W((100, 100)), W((100,))
    p["m_w1"], p["m_b1"] = W((32 * 4 * 4 + 100, 100)), W((100,))
    p["m_w2"], p["m_b2"] = W((100, 100)), W((100,))
    p["m_w3"], p["m_b3"] = W((100, 2 * latent_features)), W((2 * latent_features,))
    p["dec_w1"], p["dec_b1"] = W((latent_features, 32 * 4 * 4)), W((32 * 4 * 4,))
    p["dec_w2"], p["dec_b2"] = W((32 * 4 * 4, 32 * 4 * 4)), W((32 * 4 * 4,))
    p["dec_cw1"], p["dec_cb1"] = W((32, 32, 3, 3)), W((32,))
    p["dec_cw2"], p["dec_cb2"] = W((32, 32, 3, 3)), W((32,))
    p["dec_cw3"], p["dec_cb3"] = W((32, 3, 3, 3)), W((3,))
    return p


def _conv_w_to_mat(w):
    """Conv2d OIHW (Cout,Cin,k,k) -> (k*k*Cin, Cout), tap-major / channel-minor
    (matches the NHWC im2col column order)."""
    Cout, Cin, k, _ = w.shape
    return jnp.transpose(w, (2, 3, 1, 0)).reshape(k * k * Cin, Cout).astype(jnp.float32)


def _convT_w_to_mat(w):
    """ConvTranspose2d (Cin,Cout,k,k) -> equivalent stride-1 conv matmul layout."""
    w_eff = jnp.transpose(jnp.flip(w, axis=(2, 3)), (1, 0, 2, 3))  # -> OIHW
    return _conv_w_to_mat(w_eff)


def preprocess_params(p, latent_features):
    """One-time weight preprocessing (runs at init, never in the forward pass)."""
    L = latent_features
    # PyTorch (c,h,w)-flatten index -> NHWC (h,w,c)-flatten index permutation
    perm = np.arange(32 * 4 * 4).reshape(32, 4, 4).transpose(1, 2, 0).reshape(-1)
    q = {}
    # Lambdaf prior (hidden 50 padded to 128 lanes; K=2 layer split into two rows)
    q["p_w1a"] = _pad_to(p["prior_w1"][0:1, :], (1, 128))
    q["p_w1b"] = _pad_to(p["prior_w1"][1:2, :], (1, 128))
    q["p_b1"] = _pad_to(p["prior_b1"][None, :], (1, 128))
    q["p_w2"] = _pad_to(p["prior_w2"], (128, 128))
    q["p_b2"] = _pad_to(p["prior_b2"][None, :], (1, 128))
    n_pz = p["prior_w3"].shape[1] // 2
    q["p_w3mu"] = _pad_to(p["prior_w3"][:, :n_pz], (128, n_pz))
    q["p_w3ls"] = _pad_to(p["prior_w3"][:, n_pz:], (128, n_pz))
    q["p_b3mu"] = p["prior_b3"][None, :n_pz].astype(jnp.float32)
    q["p_b3ls"] = p["prior_b3"][None, n_pz:].astype(jnp.float32)
    # YE encoder (hidden 100 padded to 128)
    q["y_w1a"] = _pad_to(p["ye_w1"][0:1, :], (1, 128))
    q["y_w1b"] = _pad_to(p["ye_w1"][1:2, :], (1, 128))
    q["y_b1"] = _pad_to(p["ye_b1"][None, :], (1, 128))
    q["y_w2"] = _pad_to(p["ye_w2"], (128, 128))
    q["y_b2"] = _pad_to(p["ye_b2"][None, :], (1, 128))
    # XYEmerger (first linear split into x-part / ye-part; x rows permuted to NHWC order)
    q["m_w1x"] = _pad_to(p["m_w1"][:512][perm], (512, 128))
    q["m_w1y"] = _pad_to(p["m_w1"][512:], (128, 128))
    q["m_b1"] = _pad_to(p["m_b1"][None, :], (1, 128))
    q["m_w2"] = _pad_to(p["m_w2"], (128, 128))
    q["m_b2"] = _pad_to(p["m_b2"][None, :], (1, 128))
    q["m_w3mu"] = _pad_to(p["m_w3"][:, :L], (128, L))
    q["m_w3ls"] = _pad_to(p["m_w3"][:, L:], (128, L))
    q["m_b3mu"] = p["m_b3"][None, :L].astype(jnp.float32)
    q["m_b3ls"] = p["m_b3"][None, L:].astype(jnp.float32)
    # decoder FFNs (second layer's output columns permuted to NHWC flatten order)
    q["d_w1"] = p["dec_w1"].astype(jnp.float32)
    q["d_b1"] = p["dec_b1"][None, :].astype(jnp.float32)
    q["d_w2"] = p["dec_w2"][:, perm].astype(jnp.float32)
    q["d_b2"] = p["dec_b2"][perm][None, :].astype(jnp.float32)
    # encoder convs / decoder conv-transposes in matmul layout
    q["c1_w"], q["c1_b"] = _conv_w_to_mat(p["enc_cw1"]), p["enc_cb1"][None, :].astype(jnp.float32)
    q["c2_w"], q["c2_b"] = _conv_w_to_mat(p["enc_cw2"]), p["enc_cb2"][None, :].astype(jnp.float32)
    q["c3_w"], q["c3_b"] = _conv_w_to_mat(p["enc_cw3"]), p["enc_cb3"][None, :].astype(jnp.float32)
    q["t1_w"], q["t1_b"] = _convT_w_to_mat(p["dec_cw1"]), p["dec_cb1"][None, :].astype(jnp.float32)
    q["t2_w"], q["t2_b"] = _convT_w_to_mat(p["dec_cw2"]), p["dec_cb2"][None, :].astype(jnp.float32)
    q["t3_w"], q["t3_b"] = _convT_w_to_mat(p["dec_cw3"]), p["dec_cb3"][None, :].astype(jnp.float32)
    return q


# ------------------------------- iVAE forward --------------------------------

def ivae_forward(q, x, y, e, eps_key):
    x = x.astype(jnp.float32)
    y = y.astype(jnp.float32)
    e = e.astype(jnp.float32)
    B = x.shape[0]
    L = q["m_w3mu"].shape[1]

    # ---- encoder CNN stack (NHWC end-to-end) ----
    h = jnp.transpose(x, (0, 2, 3, 1))                                       # NCHW -> NHWC once
    h = conv2d_nhwc(h, q["c1_w"], q["c1_b"], stride=2, pad=1, relu=True)     # (B,14,14,32)
    h = conv2d_nhwc(h, q["c2_w"], q["c2_b"], stride=2, pad=1, relu=True)     # (B, 7, 7,32)
    h = conv2d_nhwc(h, q["c3_w"], q["c3_b"], stride=2, pad=1, relu=True)     # (B, 4, 4,32)
    hflat = h.reshape(B, 32 * 4 * 4)

    # ---- fused YE-encoder + XYEmerger + rsample (posterior q(z|x,y,e)) ----
    eps = jax.random.normal(eps_key, (B, L), dtype=jnp.float32)
    qz_mu, qz_log_sigma, z = _mlp_call(
        _enc_head_kernel,
        (hflat, y, e, eps,
         q["y_w1a"], q["y_w1b"], q["y_b1"], q["y_w2"], q["y_b2"],
         q["m_w1x"], q["m_w1y"], q["m_b1"], q["m_w2"], q["m_b2"],
         q["m_w3mu"], q["m_b3mu"], q["m_w3ls"], q["m_b3ls"]),
        ((B, L), (B, L), (B, L)))

    # ---- fused decoder FFN ----
    (d,) = _mlp_call(_dec_ffn_kernel,
                     (z, q["d_w1"], q["d_b1"], q["d_w2"], q["d_b2"]),
                     ((B, 32 * 4 * 4),))
    d = d.reshape(B, 4, 4, 32)   # columns pre-permuted to NHWC flatten order at init

    # ---- decoder ConvTranspose stack ----
    d = conv_transpose2d_nhwc(d, q["t1_w"], q["t1_b"], stride=2, pad=1, out_pad=0, relu=True)   # (B, 7, 7,32)
    d = conv_transpose2d_nhwc(d, q["t2_w"], q["t2_b"], stride=2, pad=1, out_pad=1, relu=True)   # (B,14,14,32)
    d = conv_transpose2d_nhwc(d, q["t3_w"], q["t3_b"], stride=2, pad=1, out_pad=1, relu=False)  # (B,28,28, 3)
    px_mu = jnp.transpose(d, (0, 3, 1, 2))                                   # NHWC -> NCHW once
    px_log_sigma = jnp.full(px_mu.shape, jnp.log(jnp.sqrt(0.01)), dtype=jnp.float32)

    # ---- prior p(z|y,e): fused 3-linear chain ----
    n_pz = q["p_w3mu"].shape[1]
    pz_mu, pz_log_sigma = _mlp_call(
        _prior_kernel,
        (y, e, q["p_w1a"], q["p_w1b"], q["p_b1"], q["p_w2"], q["p_b2"],
         q["p_w3mu"], q["p_b3mu"], q["p_w3ls"], q["p_b3ls"]),
        ((B, n_pz), (B, n_pz)))

    # TODO(synk): torch.distributions.Distribution objects are returned as their raw
    # (mu, log_sigma) parameter arrays; log_prob / VariationalInference not emitted.
    return {
        "px_mu": px_mu, "px_log_sigma": px_log_sigma,
        "pz_mu": pz_mu, "pz_log_sigma": pz_log_sigma,
        "qz_mu": qz_mu, "qz_log_sigma": qz_log_sigma,
        "z": z,
    }


if __name__ == "__main__":
    key = jax.random.PRNGKey(0)
    pkey, xkey, ykey, ekey, epskey = jax.random.split(key, 5)

    latent_features = 10                 # matches the 20-dim Lambdaf prior output
    input_shape = (3, 28, 28)            # 28 -> 14 -> 7 -> 4 under the three stride-2 convs
    B = 2

    raw_params = init_params(pkey, latent_features)
    params = preprocess_params(raw_params, latent_features)   # one-time, kernel-ready layouts

    x = jax.random.normal(xkey, (B,) + input_shape, dtype=jnp.float32)
    y = jax.random.bernoulli(ykey, 0.5, (B, 1)).astype(jnp.float32)
    e = jax.random.bernoulli(ekey, 0.5, (B, 1)).astype(jnp.float32)

    fwd = jax.jit(ivae_forward)
    out = fwd(params, x, y, e, epskey)
    jax.block_until_ready(out)

    assert out["px_mu"].shape == (B,) + input_shape
    assert out["px_log_sigma"].shape == (B,) + input_shape
    assert out["z"].shape == (B, latent_features)
    assert out["qz_mu"].shape == (B, latent_features)
    assert out["pz_mu"].shape == (B, latent_features)
    print("KERNEL_OK")
</pallas_src>

<mosaic_0001>
module attributes {stable_mosaic.version = 11 : i64} {
  func.func @_conv_mm_kernel(%arg0: i32, %arg1: memref<1x196x27xf32, #tpu.memory_space<vmem>>, %arg2: memref<27x32xf32, #tpu.memory_space<vmem>>, %arg3: memref<1x32xf32, #tpu.memory_space<vmem>>, %arg4: memref<1x196x32xf32, #tpu.memory_space<vmem>>) attributes {dimension_semantics = [#tpu.dimension_semantics<parallel>], iteration_bounds = array<i64: 2>, scalar_prefetch = 0 : i64, scratch_operands = 0 : i64, tpu.core_type = #tpu.core_type<tc>, window_params = [{transform_indices = @transform_0, window_bounds = array<i64: 1, 196, 27>}, {pipeline_mode = #tpu.pipeline_mode<synchronous>, transform_indices = @transform_1, window_bounds = array<i64: 27, 32>}, {pipeline_mode = #tpu.pipeline_mode<synchronous>, transform_indices = @transform_2, window_bounds = array<i64: 1, 32>}, {transform_indices = @transform_3, window_bounds = array<i64: 1, 196, 32>}]} {
    %c0 = arith.constant 0 : index
    %c0_0 = arith.constant 0 : index
    %c0_1 = arith.constant 0 : index
    %0 = vector.load %arg1[%c0, %c0_0, %c0_1] : memref<1x196x27xf32, #tpu.memory_space<vmem>>, vector<1x196x27xf32>
    %1 = vector.shape_cast %0 : vector<1x196x27xf32> to vector<196x27xf32>
    %c0_2 = arith.constant 0 : index
    %c0_3 = arith.constant 0 : index
    %2 = vector.load %arg2[%c0_2, %c0_3] : memref<27x32xf32, #tpu.memory_space<vmem>>, vector<27x32xf32>
    %cst = arith.constant dense<0.000000e+00> : vector<196x32xf32>
    %3 = tpu.matmul %1, %2, %cst {dimension_numbers = #tpu.dot_dimension_numbers<[1], [0], [0], [1], [0, 0, 1, 1], [], []>} : vector<196x27xf32>, vector<27x32xf32>, vector<196x32xf32> -> vector<196x32xf32>
    %c0_4 = arith.constant 0 : index
    %c0_5 = arith.constant 0 : index
    %4 = vector.load %arg3[%c0_4, %c0_5] : memref<1x32xf32, #tpu.memory_space<vmem>>, vector<1x32xf32>
    %5 = vector.broadcast %4 : vector<1x32xf32> to vector<196x32xf32>
    %6 = arith.addf %3, %5 : vector<196x32xf32>
    %cst_6 = arith.constant 0.000000e+00 : f32
    %7 = vector.broadcast %cst_6 : f32 to vector<196x32xf32>
    %8 = arith.maximumf %6, %7 : vector<196x32xf32>
    %c0_7 = arith.constant 0 : index
    %c0_8 = arith.constant 0 : index
    %c0_9 = arith.constant 0 : index
    %9 = vector.load %arg4[%c0_7, %c0_8, %c0_9] : memref<1x196x32xf32, #tpu.memory_space<vmem>>, vector<1x196x32xf32>
    %10 = vector.shape_cast %9 : vector<1x196x32xf32> to vector<196x32xf32>
    %11 = vector.shape_cast %8 : vector<196x32xf32> to vector<1x196x32xf32>
    tpu.vector_store %arg4[%c0_7, %c0_8, %c0_9], %11 {strides = array<i32>} : memref<1x196x32xf32, #tpu.memory_space<vmem>>, vector<1x196x32xf32>,
    return
  }
  func.func @transform_0(%arg0: i32) -> (i32, i32, i32) {
    %c0_i32 = arith.constant 0 : i32
    %c0_i32_0 = arith.constant 0 : i32
    %c0_i32_1 = arith.constant 0 : i32
    return %arg0, %c0_i32, %c0_i32_0 : i32, i32, i32
  }
  func.func @transform_1(%arg0: i32) -> (i32, i32) {
    %c0_i32 = arith.constant 0 : i32
    %c0_i32_0 = arith.constant 0 : i32
    %c0_i32_1 = arith.constant 0 : i32
    return %c0_i32, %c0_i32_0 : i32, i32
  }
  func.func @transform_2(%arg0: i32) -> (i32, i32) {
    %c0_i32 = arith.constant 0 : i32
    %c0_i32_0 = arith.constant 0 : i32
    %c0_i32_1 = arith.constant 0 : i32
    return %c0_i32, %c0_i32_0 : i32, i32
  }
  func.func @transform_3(%arg0: i32) -> (i32, i32, i32) {
    %c0_i32 = arith.constant 0 : i32
    %c0_i32_0 = arith.constant 0 : i32
    %c0_i32_1 = arith.constant 0 : i32
    return %arg0, %c0_i32, %c0_i32_0 : i32, i32, i32
  }
}

module attributes {stable_mosaic.version = 11 : i64} {
  func.func @_conv_mm_kernel(%arg0: i32, %arg1: memref<1x49x288xf32, #tpu.memory_space<vmem>>, %arg2: memref<288x32xf32, #tpu.memory_space<vmem>>, %arg3: memref<1x32xf32, #tpu.memory_space<vmem>>, %arg4: memref<1x49x32xf32, #tpu.memory_space<vmem>>) attributes {dimension_semantics = [#tpu.dimension_semantics<parallel>], iteration_bounds = array<i64: 2>, scalar_prefetch = 0 : i64, scratch_operands = 0 : i64, tpu.core_type = #tpu.core_type<tc>, window_params = [{transform_indices = @transform_0, window_bounds = array<i64: 1, 49, 288>}, {pipeline_mode = #tpu.pipeline_mode<synchronous>, transform_indices = @transform_1, window_bounds = array<i64: 288, 32>}, {pipeline_mode = #tpu.pipeline_mode<synchronous>, transform_indices = @transform_2, window_bounds = array<i64: 1, 32>}, {transform_indices = @transform_3, window_bounds = array<i64: 1, 49, 32>}]} {
    %c0 = arith.constant 0 : index
    %c0_0 = arith.constant 0 : index
    %c0_1 = arith.constant 0 : index
    %0 = vector.load %arg1[%c0, %c0_0, %c0_1] : memref<1x49x288xf32, #tpu.memory_space<vmem>>, vector<1x49x288xf32>
    %1 = vector.shape_cast %0 : vector<1x49x288xf32> to vector<49x288xf32>
    %c0_2 = arith.constant 0 : index
    %c0_3 = arith.constant 0 : index
    %2 = vector.load %arg2[%c0_2, %c0_3] : memref<288x32xf32, #tpu.memory_space<vmem>>, vector<288x32xf32>
    %cst = arith.constant dense<0.000000e+00> : vector<49x32xf32>
    %3 = tpu.matmul %1, %2, %cst {dimension_numbers = #tpu.dot_dimension_numbers<[1], [0], [0], [1], [0, 0, 1, 1], [], []>} : vector<49x288xf32>, vector<288x32xf32>, vector<49x32xf32> -> vector<49x32xf32>
    %c0_4 = arith.constant 0 : index
    %c0_5 = arith.constant 0 : index
    %4 = vector.load %arg3[%c0_4, %c0_5] : memref<1x32xf32, #tpu.memory_space<vmem>>, vector<1x32xf32>
    %5 = vector.broadcast %4 : vector<1x32xf32> to vector<49x32xf32>
    %6 = arith.addf %3, %5 : vector<49x32xf32>
    %cst_6 = arith.constant 0.000000e+00 : f32
    %7 = vector.broadcast %cst_6 : f32 to vector<49x32xf32>
    %8 = arith.maximumf %6, %7 : vector<49x32xf32>
    %c0_7 = arith.constant 0 : index
    %c0_8 = arith.constant 0 : index
    %c0_9 = arith.constant 0 : index
    %9 = vector.load %arg4[%c0_7, %c0_8, %c0_9] : memref<1x49x32xf32, #tpu.memory_space<vmem>>, vector<1x49x32xf32>
    %10 = vector.shape_cast %9 : vector<1x49x32xf32> to vector<49x32xf32>
    %11 = vector.shape_cast %8 : vector<49x32xf32> to vector<1x49x32xf32>
    tpu.vector_store %arg4[%c0_7, %c0_8, %c0_9], %11 {strides = array<i32>} : memref<1x49x32xf32, #tpu.memory_space<vmem>>, vector<1x49x32xf32>,
    return
  }
  func.func @transform_0(%arg0: i32) -> (i32, i32, i32) {
    %c0_i32 = arith.constant 0 : i32
    %c0_i32_0 = arith.constant 0 : i32
    %c0_i32_1 = arith.constant 0 : i32
    return %arg0, %c0_i32, %c0_i32_0 : i32, i32, i32
  }
  func.func @transform_1(%arg0: i32) -> (i32, i32) {
    %c0_i32 = arith.constant 0 : i32
    %c0_i32_0 = arith.constant 0 : i32
    %c0_i32_1 = arith.constant 0 : i32
    return %c0_i32, %c0_i32_0 : i32, i32
  }
  func.func @transform_2(%arg0: i32) -> (i32, i32) {
    %c0_i32 = arith.constant 0 : i32
    %c0_i32_0 = arith.constant 0 : i32
    %c0_i32_1 = arith.constant 0 : i32
    return %c0_i32, %c0_i32_0 : i32, i32
  }
  func.func @transform_3(%arg0: i32) -> (i32, i32, i32) {
    %c0_i32 = arith.constant 0 : i32
    %c0_i32_0 = arith.constant 0 : i32
    %c0_i32_1 = arith.constant 0 : i32
    return %arg0, %c0_i32, %c0_i32_0 : i32, i32, i32
  }
}

module attributes {stable_mosaic.version = 11 : i64} {
  func.func @_conv_mm_kernel(%arg0: i32, %arg1: memref<1x16x288xf32, #tpu.memory_space<vmem>>, %arg2: memref<288x32xf32, #tpu.memory_space<vmem>>, %arg3: memref<1x32xf32, #tpu.memory_space<vmem>>, %arg4: memref<1x16x32xf32, #tpu.memory_space<vmem>>) attributes {dimension_semantics = [#tpu.dimension_semantics<parallel>], iteration_bounds = array<i64: 2>, scalar_prefetch = 0 : i64, scratch_operands = 0 : i64, tpu.core_type = #tpu.core_type<tc>, window_params = [{transform_indices = @transform_0, window_bounds = array<i64: 1, 16, 288>}, {pipeline_mode = #tpu.pipeline_mode<synchronous>, transform_indices = @transform_1, window_bounds = array<i64: 288, 32>}, {pipeline_mode = #tpu.pipeline_mode<synchronous>, transform_indices = @transform_2, window_bounds = array<i64: 1, 32>}, {transform_indices = @transform_3, window_bounds = array<i64: 1, 16, 32>}]} {
    %c0 = arith.constant 0 : index
    %c0_0 = arith.constant 0 : index
    %c0_1 = arith.constant 0 : index
    %0 = vector.load %arg1[%c0, %c0_0, %c0_1] : memref<1x16x288xf32, #tpu.memory_space<vmem>>, vector<1x16x288xf32>
    %1 = vector.shape_cast %0 : vector<1x16x288xf32> to vector<16x288xf32>
    %c0_2 = arith.constant 0 : index
    %c0_3 = arith.constant 0 : index
    %2 = vector.load %arg2[%c0_2, %c0_3] : memref<288x32xf32, #tpu.memory_space<vmem>>, vector<288x32xf32>
    %cst = arith.constant dense<0.000000e+00> : vector<16x32xf32>
    %3 = tpu.matmul %1, %2, %cst {dimension_numbers = #tpu.dot_dimension_numbers<[1], [0], [0], [1], [0, 0, 1, 1], [], []>} : vector<16x288xf32>, vector<288x32xf32>, vector<16x32xf32> -> vector<16x32xf32>
    %c0_4 = arith.constant 0 : index
    %c0_5 = arith.constant 0 : index
    %4 = vector.load %arg3[%c0_4, %c0_5] : memref<1x32xf32, #tpu.memory_space<vmem>>, vector<1x32xf32>
    %5 = vector.broadcast %4 : vector<1x32xf32> to vector<16x32xf32>
    %6 = arith.addf %3, %5 : vector<16x32xf32>
    %cst_6 = arith.constant 0.000000e+00 : f32
    %7 = vector.broadcast %cst_6 : f32 to vector<16x32xf32>
    %8 = arith.maximumf %6, %7 : vector<16x32xf32>
    %c0_7 = arith.constant 0 : index
    %c0_8 = arith.constant 0 : index
    %c0_9 = arith.constant 0 : index
    %9 = vector.load %arg4[%c0_7, %c0_8, %c0_9] : memref<1x16x32xf32, #tpu.memory_space<vmem>>, vector<1x16x32xf32>
    %10 = vector.shape_cast %9 : vector<1x16x32xf32> to vector<16x32xf32>
    %11 = vector.shape_cast %8 : vector<16x32xf32> to vector<1x16x32xf32>
    tpu.vector_store %arg4[%c0_7, %c0_8, %c0_9], %11 {strides = array<i32>} : memref<1x16x32xf32, #tpu.memory_space<vmem>>, vector<1x16x32xf32>,
    return
  }
  func.func @transform_0(%arg0: i32) -> (i32, i32, i32) {
    %c0_i32 = arith.constant 0 : i32
    %c0_i32_0 = arith.constant 0 : i32
    %c0_i32_1 = arith.constant 0 : i32
    return %arg0, %c0_i32, %c0_i32_0 : i32, i32, i32
  }
  func.func @transform_1(%arg0: i32) -> (i32, i32) {
    %c0_i32 = arith.constant 0 : i32
    %c0_i32_0 = arith.constant 0 : i32
    %c0_i32_1 = arith.constant 0 : i32
    return %c0_i32, %c0_i32_0 : i32, i32
  }
  func.func @transform_2(%arg0: i32) -> (i32, i32) {
    %c0_i32 = arith.constant 0 : i32
    %c0_i32_0 = arith.constant 0 : i32
    %c0_i32_1 = arith.constant 0 : i32
    return %c0_i32, %c0_i32_0 : i32, i32
  }
  func.func @transform_3(%arg0: i32) -> (i32, i32, i32) {
    %c0_i32 = arith.constant 0 : i32
    %c0_i32_0 = arith.constant 0 : i32
    %c0_i32_1 = arith.constant 0 : i32
    return %arg0, %c0_i32, %c0_i32_0 : i32, i32, i32
  }
}

module attributes {stable_mosaic.version = 11 : i64} {
  func.func @_enc_head_kernel(%arg0: i32, %arg1: memref<2x512xf32, #tpu.memory_space<vmem>>, %arg2: memref<2x1xf32, #tpu.memory_space<vmem>>, %arg3: memref<2x1xf32, #tpu.memory_space<vmem>>, %arg4: memref<2x10xf32, #tpu.memory_space<vmem>>, %arg5: memref<1x128xf32, #tpu.memory_space<vmem>>, %arg6: memref<1x128xf32, #tpu.memory_space<vmem>>, %arg7: memref<1x128xf32, #tpu.memory_space<vmem>>, %arg8: memref<128x128xf32, #tpu.memory_space<vmem>>, %arg9: memref<1x128xf32, #tpu.memory_space<vmem>>, %arg10: memref<512x128xf32, #tpu.memory_space<vmem>>, %arg11: memref<128x128xf32, #tpu.memory_space<vmem>>, %arg12: memref<1x128xf32, #tpu.memory_space<vmem>>, %arg13: memref<128x128xf32, #tpu.memory_space<vmem>>, %arg14: memref<1x128xf32, #tpu.memory_space<vmem>>, %arg15: memref<128x10xf32, #tpu.memory_space<vmem>>, %arg16: memref<1x10xf32, #tpu.memory_space<vmem>>, %arg17: memref<128x10xf32, #tpu.memory_space<vmem>>, %arg18: memref<1x10xf32, #tpu.memory_space<vmem>>, %arg19: memref<2x10xf32, #tpu.memory_space<vmem>>, %arg20: memref<2x10xf32, #tpu.memory_space<vmem>>, %arg21: memref<2x10xf32, #tpu.memory_space<vmem>>) attributes {dimension_semantics = [#tpu.dimension_semantics<arbitrary>], iteration_bounds = array<i64: 1>, scalar_prefetch = 0 : i64, scratch_operands = 0 : i64, tpu.core_type = #tpu.core_type<tc>, window_params = [{pipeline_mode = #tpu.pipeline_mode<synchronous>, transform_indices = @transform_0, window_bounds = array<i64: 2, 512>}, {pipeline_mode = #tpu.pipeline_mode<synchronous>, transform_indices = @transform_1, window_bounds = array<i64: 2, 1>}, {pipeline_mode = #tpu.pipeline_mode<synchronous>, transform_indices = @transform_2, window_bounds = array<i64: 2, 1>}, {pipeline_mode = #tpu.pipeline_mode<synchronous>, transform_indices = @transform_3, window_bounds = array<i64: 2, 10>}, {pipeline_mode = #tpu.pipeline_mode<synchronous>, transform_indices = @transform_4, window_bounds = array<i64: 1, 128>}, {pipeline_mode = #tpu.pipeline_mode<synchronous>, transform_indices = @transform_5, window_bounds = array<i64: 1, 128>}, {pipeline_mode = #tpu.pipeline_mode<synchronous>, transform_indices = @transform_6, window_bounds = array<i64: 1, 128>}, {pipeline_mode = #tpu.pipeline_mode<synchronous>, transform_indices = @transform_7, window_bounds = array<i64: 128, 128>}, {pipeline_mode = #tpu.pipeline_mode<synchronous>, transform_indices = @transform_8, window_bounds = array<i64: 1, 128>}, {pipeline_mode = #tpu.pipeline_mode<synchronous>, transform_indices = @transform_9, window_bounds = array<i64: 512, 128>}, {pipeline_mode = #tpu.pipeline_mode<synchronous>, transform_indices = @transform_10, window_bounds = array<i64: 128, 128>}, {pipeline_mode = #tpu.pipeline_mode<synchronous>, transform_indices = @transform_11, window_bounds = array<i64: 1, 128>}, {pipeline_mode = #tpu.pipeline_mode<synchronous>, transform_indices = @transform_12, window_bounds = array<i64: 128, 128>}, {pipeline_mode = #tpu.pipeline_mode<synchronous>, transform_indices = @transform_13, window_bounds = array<i64: 1, 128>}, {pipeline_mode = #tpu.pipeline_mode<synchronous>, transform_indices = @transform_14, window_bounds = array<i64: 128, 10>}, {pipeline_mode = #tpu.pipeline_mode<synchronous>, transform_indices = @transform_15, window_bounds = array<i64: 1, 10>}, {pipeline_mode = #tpu.pipeline_mode<synchronous>, transform_indices = @transform_16, window_bounds = array<i64: 128, 10>}, {pipeline_mode = #tpu.pipeline_mode<synchronous>, transform_indices = @transform_17, window_bounds = array<i64: 1, 10>}, {pipeline_mode = #tpu.pipeline_mode<synchronous>, transform_indices = @transform_18, window_bounds = array<i64: 2, 10>}, {pipeline_mode = #tpu.pipeline_mode<synchronous>, transform_indices = @transform_19, window_bounds = array<i64: 2, 10>}, {pipeline_mode = #tpu.pipeline_mode<synchronous>, transform_indices = @transform_20, window_bounds = array<i64: 2, 10>}]} {
    %c0 = arith.constant 0 : index
    %c0_0 = arith.constant 0 : index
    %0 = vector.load %arg2[%c0, %c0_0] : memref<2x1xf32, #tpu.memory_space<vmem>>, vector<2x1xf32>
    %c0_1 = arith.constant 0 : index
    %c0_2 = arith.constant 0 : index
    %1 = vector.load %arg5[%c0_1, %c0_2] : memref<1x128xf32, #tpu.memory_space<vmem>>, vector<1x128xf32>
    %2 = vector.broadcast %0 : vector<2x1xf32> to vector<2x128xf32>
    %3 = vector.broadcast %1 : vector<1x128xf32> to vector<2x128xf32>
    %4 = arith.mulf %2, %3 : vector<2x128xf32>
    %c0_3 = arith.constant 0 : index
    %c0_4 = arith.constant 0 : index
    %5 = vector.load %arg3[%c0_3, %c0_4] : memref<2x1xf32, #tpu.memory_space<vmem>>, vector<2x1xf32>
    %c0_5 = arith.constant 0 : index
    %c0_6 = arith.constant 0 : index
    %6 = vector.load %arg6[%c0_5, %c0_6] : memref<1x128xf32, #tpu.memory_space<vmem>>, vector<1x128xf32>
    %7 = vector.broadcast %5 : vector<2x1xf32> to vector<2x128xf32>
    %8 = vector.broadcast %6 : vector<1x128xf32> to vector<2x128xf32>
    %9 = arith.mulf %7, %8 : vector<2x128xf32>
    %10 = arith.addf %4, %9 : vector<2x128xf32>
    %c0_7 = arith.constant 0 : index
    %c0_8 = arith.constant 0 : index
    %11 = vector.load %arg7[%c0_7, %c0_8] : memref<1x128xf32, #tpu.memory_space<vmem>>, vector<1x128xf32>
    %12 = vector.broadcast %11 : vector<1x128xf32> to vector<2x128xf32>
    %13 = arith.addf %10, %12 : vector<2x128xf32>
    %c0_9 = arith.constant 0 : index
    %c0_10 = arith.constant 0 : index
    %14 = vector.load %arg8[%c0_9, %c0_10] : memref<128x128xf32, #tpu.memory_space<vmem>>, vector<128x128xf32>
    %cst = arith.constant dense<0.000000e+00> : vector<2x128xf32>
    %15 = tpu.matmul %13, %14, %cst {dimension_numbers = #tpu.dot_dimension_numbers<[1], [0], [0], [1], [0, 0, 1, 1], [], []>} : vector<2x128xf32>, vector<128x128xf32>, vector<2x128xf32> -> vector<2x128xf32>
    %c0_11 = arith.constant 0 : index
    %c0_12 = arith.constant 0 : index
    %16 = vector.load %arg9[%c0_11, %c0_12] : memref<1x128xf32, #tpu.memory_space<vmem>>, vector<1x128xf32>
    %17 = vector.broadcast %16 : vector<1x128xf32> to vector<2x128xf32>
    %18 = arith.addf %15, %17 : vector<2x128xf32>
    %cst_13 = arith.constant 0.000000e+00 : f32
    %19 = vector.broadcast %cst_13 : f32 to vector<2x128xf32>
    %20 = arith.maximumf %18, %19 : vector<2x128xf32>
    %c0_14 = arith.constant 0 : index
    %c0_15 = arith.constant 0 : index
    %21 = vector.load %arg1[%c0_14, %c0_15] : memref<2x512xf32, #tpu.memory_space<vmem>>, vector<2x512xf32>
    %c0_16 = arith.constant 0 : index
    %c0_17 = arith.constant 0 : index
    %22 = vector.load %arg10[%c0_16, %c0_17] : memref<512x128xf32, #tpu.memory_space<vmem>>, vector<512x128xf32>
    %cst_18 = arith.constant dense<0.000000e+00> : vector<2x128xf32>
    %23 = tpu.matmul %21, %22, %cst_18 {dimension_numbers = #tpu.dot_dimension_numbers<[1], [0], [0], [1], [0, 0, 1, 1], [], []>} : vector<2x512xf32>, vector<512x128xf32>, vector<2x128xf32> -> vector<2x128xf32>
    %c0_19 = arith.constant 0 : index
    %c0_20 = arith.constant 0 : index
    %24 = vector.load %arg11[%c0_19, %c0_20] : memref<128x128xf32, #tpu.memory_space<vmem>>, vector<128x128xf32>
    %cst_21 = arith.constant dense<0.000000e+00> : vector<2x128xf32>
    %25 = tpu.matmul %20, %24, %cst_21 {dimension_numbers = #tpu.dot_dimension_numbers<[1], [0], [0], [1], [0, 0, 1, 1], [], []>} : vector<2x128xf32>, vector<128x128xf32>, vector<2x128xf32> -> vector<2x128xf32>
    %26 = arith.addf %23, %25 : vector<2x128xf32>
    %c0_22 = arith.constant 0 : index
    %c0_23 = arith.constant 0 : index
    %27 = vector.load %arg12[%c0_22, %c0_23] : memref<1x128xf32, #tpu.memory_space<vmem>>, vector<1x128xf32>
    %28 = vector.broadcast %27 : vector<1x128xf32> to vector<2x128xf32>
    %29 = arith.addf %26, %28 : vector<2x128xf32>
    %c0_24 = arith.constant 0 : index
    %c0_25 = arith.constant 0 : index
    %30 = vector.load %arg13[%c0_24, %c0_25] : memref<128x128xf32, #tpu.memory_space<vmem>>, vector<128x128xf32>
    %cst_26 = arith.constant dense<0.000000e+00> : vector<2x128xf32>
    %31 = tpu.matmul %29, %30, %cst_26 {dimension_numbers = #tpu.dot_dimension_numbers<[1], [0], [0], [1], [0, 0, 1, 1], [], []>} : vector<2x128xf32>, vector<128x128xf32>, vector<2x128xf32> -> vector<2x128xf32>
    %c0_27 = arith.constant 0 : index
    %c0_28 = arith.constant 0 : index
    %32 = vector.load %arg14[%c0_27, %c0_28] : memref<1x128xf32, #tpu.memory_space<vmem>>, vector<1x128xf32>
    %33 = vector.broadcast %32 : vector<1x128xf32> to vector<2x128xf32>
    %34 = arith.addf %31, %33 : vector<2x128xf32>
    %cst_29 = arith.constant 0.000000e+00 : f32
    %35 = vector.broadcast %cst_29 : f32 to vector<2x128xf32>
    %36 = arith.maximumf %34, %35 : vector<2x128xf32>
    %c0_30 = arith.constant 0 : index
    %c0_31 = arith.constant 0 : index
    %37 = vector.load %arg15[%c0_30, %c0_31] : memref<128x10xf32, #tpu.memory_space<vmem>>, vector<128x10xf32>
    %cst_32 = arith.constant dense<0.000000e+00> : vector<2x10xf32>
    %38 = tpu.matmul %36, %37, %cst_32 {dimension_numbers = #tpu.dot_dimension_numbers<[1], [0], [0], [1], [0, 0, 1, 1], [], []>} : vector<2x128xf32>, vector<128x10xf32>, vector<2x10xf32> -> vector<2x10xf32>
    %c0_33 = arith.constant 0 : index
    %c0_34 = arith.constant 0 : index
    %39 = vector.load %arg16[%c0_33, %c0_34] : memref<1x10xf32, #tpu.memory_space<vmem>>, vector<1x10xf32>
    %40 = vector.broadcast %39 : vector<1x10xf32> to vector<2x10xf32>
    %41 = arith.addf %38, %40 : vector<2x10xf32>
    %c0_35 = arith.constant 0 : index
    %c0_36 = arith.constant 0 : index
    %42 = vector.load %arg17[%c0_35, %c0_36] : memref<128x10xf32, #tpu.memory_space<vmem>>, vector<128x10xf32>
    %cst_37 = arith.constant dense<0.000000e+00> : vector<2x10xf32>
    %43 = tpu.matmul %36, %42, %cst_37 {dimension_numbers = #tpu.dot_dimension_numbers<[1], [0], [0], [1], [0, 0, 1, 1], [], []>} : vector<2x128xf32>, vector<128x10xf32>, vector<2x10xf32> -> vector<2x10xf32>
    %c0_38 = arith.constant 0 : index
    %c0_39 = arith.constant 0 : index
    %44 = vector.load %arg18[%c0_38, %c0_39] : memref<1x10xf32, #tpu.memory_space<vmem>>, vector<1x10xf32>
    %45 = vector.broadcast %44 : vector<1x10xf32> to vector<2x10xf32>
    %46 = arith.addf %43, %45 : vector<2x10xf32>
    %c0_40 = arith.constant 0 : index
    %c0_41 = arith.constant 0 : index
    %47 = vector.load %arg19[%c0_40, %c0_41] : memref<2x10xf32, #tpu.memory_space<vmem>>, vector<2x10xf32>
    tpu.vector_store %arg19[%c0_40, %c0_41], %41 {strides = array<i32>} : memref<2x10xf32, #tpu.memory_space<vmem>>, vector<2x10xf32>,
    %c0_42 = arith.constant 0 : index
    %c0_43 = arith.constant 0 : index
    %48 = vector.load %arg20[%c0_42, %c0_43] : memref<2x10xf32, #tpu.memory_space<vmem>>, vector<2x10xf32>
    tpu.vector_store %arg20[%c0_42, %c0_43], %46 {strides = array<i32>} : memref<2x10xf32, #tpu.memory_space<vmem>>, vector<2x10xf32>,
    %49 = math.exp %46 : vector<2x10xf32>
    %c0_44 = arith.constant 0 : index
    %c0_45 = arith.constant 0 : index
    %50 = vector.load %arg4[%c0_44, %c0_45] : memref<2x10xf32, #tpu.memory_space<vmem>>, vector<2x10xf32>
    %51 = arith.mulf %49, %50 : vector<2x10xf32>
    %52 = arith.addf %41, %51 : vector<2x10xf32>
    %c0_46 = arith.constant 0 : index
    %c0_47 = arith.constant 0 : index
    %53 = vector.load %arg21[%c0_46, %c0_47] : memref<2x10xf32, #tpu.memory_space<vmem>>, vector<2x10xf32>
    tpu.vector_store %arg21[%c0_46, %c0_47], %52 {strides = array<i32>} : memref<2x10xf32, #tpu.memory_space<vmem>>, vector<2x10xf32>,
    return
  }
  func.func @transform_0(%arg0: i32) -> (i32, i32) {
    %c0_i32 = arith.constant 0 : i32
    %c0_i32_0 = arith.constant 0 : i32
    %c0_i32_1 = arith.constant 0 : i32
    return %c0_i32, %c0_i32_0 : i32, i32
  }
  func.func @transform_1(%arg0: i32) -> (i32, i32) {
    %c0_i32 = arith.constant 0 : i32
    %c0_i32_0 = arith.constant 0 : i32
    %c0_i32_1 = arith.constant 0 : i32
    return %c0_i32, %c0_i32_0 : i32, i32
  }
  func.func @transform_2(%arg0: i32) -> (i32, i32) {
    %c0_i32 = arith.constant 0 : i32
    %c0_i32_0 = arith.constant 0 : i32
    %c0_i32_1 = arith.constant 0 : i32
    return %c0_i32, %c0_i32_0 : i32, i32
  }
  func.func @transform_3(%arg0: i32) -> (i32, i32) {
    %c0_i32 = arith.constant 0 : i32
    %c0_i32_0 = arith.constant 0 : i32
    %c0_i32_1 = arith.constant 0 : i32
    return %c0_i32, %c0_i32_0 : i32, i32
  }
  func.func @transform_4(%arg0: i32) -> (i32, i32) {
    %c0_i32 = arith.constant 0 : i32
    %c0_i32_0 = arith.constant 0 : i32
    %c0_i32_1 = arith.constant 0 : i32
    return %c0_i32, %c0_i32_0 : i32, i32
  }
  func.func @transform_5(%arg0: i32) -> (i32, i32) {
    %c0_i32 = arith.constant 0 : i32
    %c0_i32_0 = arith.constant 0 : i32
    %c0_i32_1 = arith.constant 0 : i32
    return %c0_i32, %c0_i32_0 : i32, i32
  }
  func.func @transform_6(%arg0: i32) -> (i32, i32) {
    %c0_i32 = arith.constant 0 : i32
    %c0_i32_0 = arith.constant 0 : i32
    %c0_i32_1 = arith.constant 0 : i32
    return %c0_i32, %c0_i32_0 : i32, i32
  }
  func.func @transform_7(%arg0: i32) -> (i32, i32) {
    %c0_i32 = arith.constant 0 : i32
    %c0_i32_0 = arith.constant 0 : i32
    %c0_i32_1 = arith.constant 0 : i32
    return %c0_i32, %c0_i32_0 : i32, i32
  }
  func.func @transform_8(%arg0: i32) -> (i32, i32) {
    %c0_i32 = arith.constant 0 : i32
    %c0_i32_0 = arith.constant 0 : i32
    %c0_i32_1 = arith.constant 0 : i32
    return %c0_i32, %c0_i32_0 : i32, i32
  }
  func.func @transform_9(%arg0: i32) -> (i32, i32) {
    %c0_i32 = arith.constant 0 : i32
    %c0_i32_0 = arith.constant 0 : i32
    %c0_i32_1 = arith.constant 0 : i32
    return %c0_i32, %c0_i32_0 : i32, i32
  }
  func.func @transform_10(%arg0: i32) -> (i32, i32) {
    %c0_i32 = arith.constant 0 : i32
    %c0_i32_0 = arith.constant 0 : i32
    %c0_i32_1 = arith.constant 0 : i32
    return %c0_i32, %c0_i32_0 : i32, i32
  }
  func.func @transform_11(%arg0: i32) -> (i32, i32) {
    %c0_i32 = arith.constant 0 : i32
    %c0_i32_0 = arith.constant 0 : i32
    %c0_i32_1 = arith.constant 0 : i32
    return %c0_i32, %c0_i32_0 : i32, i32
  }
  func.func @transform_12(%arg0: i32) -> (i32, i32) {
    %c0_i32 = arith.constant 0 : i32
    %c0_i32_0 = arith.constant 0 : i32
    %c0_i32_1 = arith.constant 0 : i32
    return %c0_i32, %c0_i32_0 : i32, i32
  }
  func.func @transform_13(%arg0: i32) -> (i32, i32) {
    %c0_i32 = arith.constant 0 : i32
    %c0_i32_0 = arith.constant 0 : i32
    %c0_i32_1 = arith.constant 0 : i32
    return %c0_i32, %c0_i32_0 : i32, i32
  }
  func.func @transform_14(%arg0: i32) -> (i32, i32) {
    %c0_i32 = arith.constant 0 : i32
    %c0_i32_0 = arith.constant 0 : i32
    %c0_i32_1 = arith.constant 0 : i32
    return %c0_i32, %c0_i32_0 : i32, i32
  }
  func.func @transform_15(%arg0: i32) -> (i32, i32) {
    %c0_i32 = arith.constant 0 : i32
    %c0_i32_0 = arith.constant 0 : i32
    %c0_i32_1 = arith.constant 0 : i32
    return %c0_i32, %c0_i32_0 : i32, i32
  }
  func.func @transform_16(%arg0: i32) -> (i32, i32) {
    %c0_i32 = arith.constant 0 : i32
    %c0_i32_0 = arith.constant 0 : i32
    %c0_i32_1 = arith.constant 0 : i32
    return %c0_i32, %c0_i32_0 : i32, i32
  }
  func.func @transform_17(%arg0: i32) -> (i32, i32) {
    %c0_i32 = arith.constant 0 : i32
    %c0_i32_0 = arith.constant 0 : i32
    %c0_i32_1 = arith.constant 0 : i32
    return %c0_i32, %c0_i32_0 : i32, i32
  }
  func.func @transform_18(%arg0: i32) -> (i32, i32) {
    %c0_i32 = arith.constant 0 : i32
    %c0_i32_0 = arith.constant 0 : i32
    %c0_i32_1 = arith.constant 0 : i32
    return %c0_i32, %c0_i32_0 : i32, i32
  }
  func.func @transform_19(%arg0: i32) -> (i32, i32) {
    %c0_i32 = arith.constant 0 : i32
    %c0_i32_0 = arith.constant 0 : i32
    %c0_i32_1 = arith.constant 0 : i32
    return %c0_i32, %c0_i32_0 : i32, i32
  }
  func.func @transform_20(%arg0: i32) -> (i32, i32) {
    %c0_i32 = arith.constant 0 : i32
    %c0_i32_0 = arith.constant 0 : i32
    %c0_i32_1 = arith.constant 0 : i32
    return %c0_i32, %c0_i32_0 : i32, i32
  }
}

module attributes {stable_mosaic.version = 11 : i64} {
  func.func @_dec_ffn_kernel(%arg0: i32, %arg1: memref<2x10xf32, #tpu.memory_space<vmem>>, %arg2: memref<10x512xf32, #tpu.memory_space<vmem>>, %arg3: memref<1x512xf32, #tpu.memory_space<vmem>>, %arg4: memref<512x512xf32, #tpu.memory_space<vmem>>, %arg5: memref<1x512xf32, #tpu.memory_space<vmem>>, %arg6: memref<2x512xf32, #tpu.memory_space<vmem>>) attributes {dimension_semantics = [#tpu.dimension_semantics<arbitrary>], iteration_bounds = array<i64: 1>, scalar_prefetch = 0 : i64, scratch_operands = 0 : i64, tpu.core_type = #tpu.core_type<tc>, window_params = [{pipeline_mode = #tpu.pipeline_mode<synchronous>, transform_indices = @transform_0, window_bounds = array<i64: 2, 10>}, {pipeline_mode = #tpu.pipeline_mode<synchronous>, transform_indices = @transform_1, window_bounds = array<i64: 10, 512>}, {pipeline_mode = #tpu.pipeline_mode<synchronous>, transform_indices = @transform_2, window_bounds = array<i64: 1, 512>}, {pipeline_mode = #tpu.pipeline_mode<synchronous>, transform_indices = @transform_3, window_bounds = array<i64: 512, 512>}, {pipeline_mode = #tpu.pipeline_mode<synchronous>, transform_indices = @transform_4, window_bounds = array<i64: 1, 512>}, {pipeline_mode = #tpu.pipeline_mode<synchronous>, transform_indices = @transform_5, window_bounds = array<i64: 2, 512>}]} {
    %c0 = arith.constant 0 : index
    %c0_0 = arith.constant 0 : index
    %0 = vector.load %arg1[%c0, %c0_0] : memref<2x10xf32, #tpu.memory_space<vmem>>, vector<2x10xf32>
    %c0_1 = arith.constant 0 : index
    %c0_2 = arith.constant 0 : index
    %1 = vector.load %arg2[%c0_1, %c0_2] : memref<10x512xf32, #tpu.memory_space<vmem>>, vector<10x512xf32>
    %cst = arith.constant dense<0.000000e+00> : vector<2x512xf32>
    %2 = tpu.matmul %0, %1, %cst {dimension_numbers = #tpu.dot_dimension_numbers<[1], [0], [0], [1], [0, 0, 1, 1], [], []>} : vector<2x10xf32>, vector<10x512xf32>, vector<2x512xf32> -> vector<2x512xf32>
    %c0_3 = arith.constant 0 : index
    %c0_4 = arith.constant 0 : index
    %3 = vector.load %arg3[%c0_3, %c0_4] : memref<1x512xf32, #tpu.memory_space<vmem>>, vector<1x512xf32>
    %4 = vector.broadcast %3 : vector<1x512xf32> to vector<2x512xf32>
    %5 = arith.addf %2, %4 : vector<2x512xf32>
    %cst_5 = arith.constant 0.000000e+00 : f32
    %6 = vector.broadcast %cst_5 : f32 to vector<2x512xf32>
    %7 = arith.maximumf %5, %6 : vector<2x512xf32>
    %c0_6 = arith.constant 0 : index
    %c0_7 = arith.constant 0 : index
    %8 = vector.load %arg4[%c0_6, %c0_7] : memref<512x512xf32, #tpu.memory_space<vmem>>, vector<512x512xf32>
    %cst_8 = arith.constant dense<0.000000e+00> : vector<2x512xf32>
    %9 = tpu.matmul %7, %8, %cst_8 {dimension_numbers = #tpu.dot_dimension_numbers<[1], [0], [0], [1], [0, 0, 1, 1], [], []>} : vector<2x512xf32>, vector<512x512xf32>, vector<2x512xf32> -> vector<2x512xf32>
    %c0_9 = arith.constant 0 : index
    %c0_10 = arith.constant 0 : index
    %10 = vector.load %arg5[%c0_9, %c0_10] : memref<1x512xf32, #tpu.memory_space<vmem>>, vector<1x512xf32>
    %11 = vector.broadcast %10 : vector<1x512xf32> to vector<2x512xf32>
    %12 = arith.addf %9, %11 : vector<2x512xf32>
    %cst_11 = arith.constant 0.000000e+00 : f32
    %13 = vector.broadcast %cst_11 : f32 to vector<2x512xf32>
    %14 = arith.maximumf %12, %13 : vector<2x512xf32>
    %c0_12 = arith.constant 0 : index
    %c0_13 = arith.constant 0 : index
    %15 = vector.load %arg6[%c0_12, %c0_13] : memref<2x512xf32, #tpu.memory_space<vmem>>, vector<2x512xf32>
    tpu.vector_store %arg6[%c0_12, %c0_13], %14 {strides = array<i32>} : memref<2x512xf32, #tpu.memory_space<vmem>>, vector<2x512xf32>,
    return
  }
  func.func @transform_0(%arg0: i32) -> (i32, i32) {
    %c0_i32 = arith.constant 0 : i32
    %c0_i32_0 = arith.constant 0 : i32
    %c0_i32_1 = arith.constant 0 : i32
    return %c0_i32, %c0_i32_0 : i32, i32
  }
  func.func @transform_1(%arg0: i32) -> (i32, i32) {
    %c0_i32 = arith.constant 0 : i32
    %c0_i32_0 = arith.constant 0 : i32
    %c0_i32_1 = arith.constant 0 : i32
    return %c0_i32, %c0_i32_0 : i32, i32
  }
  func.func @transform_2(%arg0: i32) -> (i32, i32) {
    %c0_i32 = arith.constant 0 : i32
    %c0_i32_0 = arith.constant 0 : i32
    %c0_i32_1 = arith.constant 0 : i32
    return %c0_i32, %c0_i32_0 : i32, i32
  }
  func.func @transform_3(%arg0: i32) -> (i32, i32) {
    %c0_i32 = arith.constant 0 : i32
    %c0_i32_0 = arith.constant 0 : i32
    %c0_i32_1 = arith.constant 0 : i32
    return %c0_i32, %c0_i32_0 : i32, i32
  }
  func.func @transform_4(%arg0: i32) -> (i32, i32) {
    %c0_i32 = arith.constant 0 : i32
    %c0_i32_0 = arith.constant 0 : i32
    %c0_i32_1 = arith.constant 0 : i32
    return %c0_i32, %c0_i32_0 : i32, i32
  }
  func.func @transform_5(%arg0: i32) -> (i32, i32) {
    %c0_i32 = arith.constant 0 : i32
    %c0_i32_0 = arith.constant 0 : i32
    %c0_i32_1 = arith.constant 0 : i32
    return %c0_i32, %c0_i32_0 : i32, i32
  }
}

module attributes {stable_mosaic.version = 11 : i64} {
  func.func @_conv_mm_kernel(%arg0: i32, %arg1: memref<1x196x288xf32, #tpu.memory_space<vmem>>, %arg2: memref<288x32xf32, #tpu.memory_space<vmem>>, %arg3: memref<1x32xf32, #tpu.memory_space<vmem>>, %arg4: memref<1x196x32xf32, #tpu.memory_space<vmem>>) attributes {dimension_semantics = [#tpu.dimension_semantics<parallel>], iteration_bounds = array<i64: 2>, scalar_prefetch = 0 : i64, scratch_operands = 0 : i64, tpu.core_type = #tpu.core_type<tc>, window_params = [{transform_indices = @transform_0, window_bounds = array<i64: 1, 196, 288>}, {pipeline_mode = #tpu.pipeline_mode<synchronous>, transform_indices = @transform_1, window_bounds = array<i64: 288, 32>}, {pipeline_mode = #tpu.pipeline_mode<synchronous>, transform_indices = @transform_2, window_bounds = array<i64: 1, 32>}, {transform_indices = @transform_3, window_bounds = array<i64: 1, 196, 32>}]} {
    %c0 = arith.constant 0 : index
    %c0_0 = arith.constant 0 : index
    %c0_1 = arith.constant 0 : index
    %0 = vector.load %arg1[%c0, %c0_0, %c0_1] : memref<1x196x288xf32, #tpu.memory_space<vmem>>, vector<1x196x288xf32>
    %1 = vector.shape_cast %0 : vector<1x196x288xf32> to vector<196x288xf32>
    %c0_2 = arith.constant 0 : index
    %c0_3 = arith.constant 0 : index
    %2 = vector.load %arg2[%c0_2, %c0_3] : memref<288x32xf32, #tpu.memory_space<vmem>>, vector<288x32xf32>
    %cst = arith.constant dense<0.000000e+00> : vector<196x32xf32>
    %3 = tpu.matmul %1, %2, %cst {dimension_numbers = #tpu.dot_dimension_numbers<[1], [0], [0], [1], [0, 0, 1, 1], [], []>} : vector<196x288xf32>, vector<288x32xf32>, vector<196x32xf32> -> vector<196x32xf32>
    %c0_4 = arith.constant 0 : index
    %c0_5 = arith.constant 0 : index
    %4 = vector.load %arg3[%c0_4, %c0_5] : memref<1x32xf32, #tpu.memory_space<vmem>>, vector<1x32xf32>
    %5 = vector.broadcast %4 : vector<1x32xf32> to vector<196x32xf32>
    %6 = arith.addf %3, %5 : vector<196x32xf32>
    %cst_6 = arith.constant 0.000000e+00 : f32
    %7 = vector.broadcast %cst_6 : f32 to vector<196x32xf32>
    %8 = arith.maximumf %6, %7 : vector<196x32xf32>
    %c0_7 = arith.constant 0 : index
    %c0_8 = arith.constant 0 : index
    %c0_9 = arith.constant 0 : index
    %9 = vector.load %arg4[%c0_7, %c0_8, %c0_9] : memref<1x196x32xf32, #tpu.memory_space<vmem>>, vector<1x196x32xf32>
    %10 = vector.shape_cast %9 : vector<1x196x32xf32> to vector<196x32xf32>
    %11 = vector.shape_cast %8 : vector<196x32xf32> to vector<1x196x32xf32>
    tpu.vector_store %arg4[%c0_7, %c0_8, %c0_9], %11 {strides = array<i32>} : memref<1x196x32xf32, #tpu.memory_space<vmem>>, vector<1x196x32xf32>,
    return
  }
  func.func @transform_0(%arg0: i32) -> (i32, i32, i32) {
    %c0_i32 = arith.constant 0 : i32
    %c0_i32_0 = arith.constant 0 : i32
    %c0_i32_1 = arith.constant 0 : i32
    return %arg0, %c0_i32, %c0_i32_0 : i32, i32, i32
  }
  func.func @transform_1(%arg0: i32) -> (i32, i32) {
    %c0_i32 = arith.constant 0 : i32
    %c0_i32_0 = arith.constant 0 : i32
    %c0_i32_1 = arith.constant 0 : i32
    return %c0_i32, %c0_i32_0 : i32, i32
  }
  func.func @transform_2(%arg0: i32) -> (i32, i32) {
    %c0_i32 = arith.constant 0 : i32
    %c0_i32_0 = arith.constant 0 : i32
    %c0_i32_1 = arith.constant 0 : i32
    return %c0_i32, %c0_i32_0 : i32, i32
  }
  func.func @transform_3(%arg0: i32) -> (i32, i32, i32) {
    %c0_i32 = arith.constant 0 : i32
    %c0_i32_0 = arith.constant 0 : i32
    %c0_i32_1 = arith.constant 0 : i32
    return %arg0, %c0_i32, %c0_i32_0 : i32, i32, i32
  }
}

module attributes {stable_mosaic.version = 11 : i64} {
  func.func @_conv_mm_kernel(%arg0: i32, %arg1: memref<1x784x288xf32, #tpu.memory_space<vmem>>, %arg2: memref<288x3xf32, #tpu.memory_space<vmem>>, %arg3: memref<1x3xf32, #tpu.memory_space<vmem>>, %arg4: memref<1x784x3xf32, #tpu.memory_space<vmem>>) attributes {dimension_semantics = [#tpu.dimension_semantics<parallel>], iteration_bounds = array<i64: 2>, scalar_prefetch = 0 : i64, scratch_operands = 0 : i64, tpu.core_type = #tpu.core_type<tc>, window_params = [{transform_indices = @transform_0, window_bounds = array<i64: 1, 784, 288>}, {pipeline_mode = #tpu.pipeline_mode<synchronous>, transform_indices = @transform_1, window_bounds = array<i64: 288, 3>}, {pipeline_mode = #tpu.pipeline_mode<synchronous>, transform_indices = @transform_2, window_bounds = array<i64: 1, 3>}, {transform_indices = @transform_3, window_bounds = array<i64: 1, 784, 3>}]} {
    %c0 = arith.constant 0 : index
    %c0_0 = arith.constant 0 : index
    %c0_1 = arith.constant 0 : index
    %0 = vector.load %arg1[%c0, %c0_0, %c0_1] : memref<1x784x288xf32, #tpu.memory_space<vmem>>, vector<1x784x288xf32>
    %1 = vector.shape_cast %0 : vector<1x784x288xf32> to vector<784x288xf32>
    %c0_2 = arith.constant 0 : index
    %c0_3 = arith.constant 0 : index
    %2 = vector.load %arg2[%c0_2, %c0_3] : memref<288x3xf32, #tpu.memory_space<vmem>>, vector<288x3xf32>
    %cst = arith.constant dense<0.000000e+00> : vector<784x3xf32>
    %3 = tpu.matmul %1, %2, %cst {dimension_numbers = #tpu.dot_dimension_numbers<[1], [0], [0], [1], [0, 0, 1, 1], [], []>} : vector<784x288xf32>, vector<288x3xf32>, vector<784x3xf32> -> vector<784x3xf32>
    %c0_4 = arith.constant 0 : index
    %c0_5 = arith.constant 0 : index
    %4 = vector.load %arg3[%c0_4, %c0_5] : memref<1x3xf32, #tpu.memory_space<vmem>>, vector<1x3xf32>
    %5 = vector.broadcast %4 : vector<1x3xf32> to vector<784x3xf32>
    %6 = arith.addf %3, %5 : vector<784x3xf32>
    %c0_6 = arith.constant 0 : index
    %c0_7 = arith.constant 0 : index
    %c0_8 = arith.constant 0 : index
    %7 = vector.load %arg4[%c0_6, %c0_7, %c0_8] : memref<1x784x3xf32, #tpu.memory_space<vmem>>, vector<1x784x3xf32>
    %8 = vector.shape_cast %7 : vector<1x784x3xf32> to vector<784x3xf32>
    %9 = vector.shape_cast %6 : vector<784x3xf32> to vector<1x784x3xf32>
    tpu.vector_store %arg4[%c0_6, %c0_7, %c0_8], %9 {strides = array<i32>} : memref<1x784x3xf32, #tpu.memory_space<vmem>>, vector<1x784x3xf32>,
    return
  }
  func.func @transform_0(%arg0: i32) -> (i32, i32, i32) {
    %c0_i32 = arith.constant 0 : i32
    %c0_i32_0 = arith.constant 0 : i32
    %c0_i32_1 = arith.constant 0 : i32
    return %arg0, %c0_i32, %c0_i32_0 : i32, i32, i32
  }
  func.func @transform_1(%arg0: i32) -> (i32, i32) {
    %c0_i32 = arith.constant 0 : i32
    %c0_i32_0 = arith.constant 0 : i32
    %c0_i32_1 = arith.constant 0 : i32
    return %c0_i32, %c0_i32_0 : i32, i32
  }
  func.func @transform_2(%arg0: i32) -> (i32, i32) {
    %c0_i32 = arith.constant 0 : i32
    %c0_i32_0 = arith.constant 0 : i32
    %c0_i32_1 = arith.constant 0 : i32
    return %c0_i32, %c0_i32_0 : i32, i32
  }
  func.func @transform_3(%arg0: i32) -> (i32, i32, i32) {
    %c0_i32 = arith.constant 0 : i32
    %c0_i32_0 = arith.constant 0 : i32
    %c0_i32_1 = arith.constant 0 : i32
    return %arg0, %c0_i32, %c0_i32_0 : i32, i32, i32
  }
}

module attributes {stable_mosaic.version = 11 : i64} {
  func.func @_prior_kernel(%arg0: i32, %arg1: memref<2x1xf32, #tpu.memory_space<vmem>>, %arg2: memref<2x1xf32, #tpu.memory_space<vmem>>, %arg3: memref<1x128xf32, #tpu.memory_space<vmem>>, %arg4: memref<1x128xf32, #tpu.memory_space<vmem>>, %arg5: memref<1x128xf32, #tpu.memory_space<vmem>>, %arg6: memref<128x128xf32, #tpu.memory_space<vmem>>, %arg7: memref<1x128xf32, #tpu.memory_space<vmem>>, %arg8: memref<128x10xf32, #tpu.memory_space<vmem>>, %arg9: memref<1x10xf32, #tpu.memory_space<vmem>>, %arg10: memref<128x10xf32, #tpu.memory_space<vmem>>, %arg11: memref<1x10xf32, #tpu.memory_space<vmem>>, %arg12: memref<2x10xf32, #tpu.memory_space<vmem>>, %arg13: memref<2x10xf32, #tpu.memory_space<vmem>>) attributes {dimension_semantics = [#tpu.dimension_semantics<arbitrary>], iteration_bounds = array<i64: 1>, scalar_prefetch = 0 : i64, scratch_operands = 0 : i64, tpu.core_type = #tpu.core_type<tc>, window_params = [{pipeline_mode = #tpu.pipeline_mode<synchronous>, transform_indices = @transform_0, window_bounds = array<i64: 2, 1>}, {pipeline_mode = #tpu.pipeline_mode<synchronous>, transform_indices = @transform_1, window_bounds = array<i64: 2, 1>}, {pipeline_mode = #tpu.pipeline_mode<synchronous>, transform_indices = @transform_2, window_bounds = array<i64: 1, 128>}, {pipeline_mode = #tpu.pipeline_mode<synchronous>, transform_indices = @transform_3, window_bounds = array<i64: 1, 128>}, {pipeline_mode = #tpu.pipeline_mode<synchronous>, transform_indices = @transform_4, window_bounds = array<i64: 1, 128>}, {pipeline_mode = #tpu.pipeline_mode<synchronous>, transform_indices = @transform_5, window_bounds = array<i64: 128, 128>}, {pipeline_mode = #tpu.pipeline_mode<synchronous>, transform_indices = @transform_6, window_bounds = array<i64: 1, 128>}, {pipeline_mode = #tpu.pipeline_mode<synchronous>, transform_indices = @transform_7, window_bounds = array<i64: 128, 10>}, {pipeline_mode = #tpu.pipeline_mode<synchronous>, transform_indices = @transform_8, window_bounds = array<i64: 1, 10>}, {pipeline_mode = #tpu.pipeline_mode<synchronous>, transform_indices = @transform_9, window_bounds = array<i64: 128, 10>}, {pipeline_mode = #tpu.pipeline_mode<synchronous>, transform_indices = @transform_10, window_bounds = array<i64: 1, 10>}, {pipeline_mode = #tpu.pipeline_mode<synchronous>, transform_indices = @transform_11, window_bounds = array<i64: 2, 10>}, {pipeline_mode = #tpu.pipeline_mode<synchronous>, transform_indices = @transform_12, window_bounds = array<i64: 2, 10>}]} {
    %c0 = arith.constant 0 : index
    %c0_0 = arith.constant 0 : index
    %0 = vector.load %arg1[%c0, %c0_0] : memref<2x1xf32, #tpu.memory_space<vmem>>, vector<2x1xf32>
    %c0_1 = arith.constant 0 : index
    %c0_2 = arith.constant 0 : index
    %1 = vector.load %arg3[%c0_1, %c0_2] : memref<1x128xf32, #tpu.memory_space<vmem>>, vector<1x128xf32>
    %2 = vector.broadcast %0 : vector<2x1xf32> to vector<2x128xf32>
    %3 = vector.broadcast %1 : vector<1x128xf32> to vector<2x128xf32>
    %4 = arith.mulf %2, %3 : vector<2x128xf32>
    %c0_3 = arith.constant 0 : index
    %c0_4 = arith.constant 0 : index
    %5 = vector.load %arg2[%c0_3, %c0_4] : memref<2x1xf32, #tpu.memory_space<vmem>>, vector<2x1xf32>
    %c0_5 = arith.constant 0 : index
    %c0_6 = arith.constant 0 : index
    %6 = vector.load %arg4[%c0_5, %c0_6] : memref<1x128xf32, #tpu.memory_space<vmem>>, vector<1x128xf32>
    %7 = vector.broadcast %5 : vector<2x1xf32> to vector<2x128xf32>
    %8 = vector.broadcast %6 : vector<1x128xf32> to vector<2x128xf32>
    %9 = arith.mulf %7, %8 : vector<2x128xf32>
    %10 = arith.addf %4, %9 : vector<2x128xf32>
    %c0_7 = arith.constant 0 : index
    %c0_8 = arith.constant 0 : index
    %11 = vector.load %arg5[%c0_7, %c0_8] : memref<1x128xf32, #tpu.memory_space<vmem>>, vector<1x128xf32>
    %12 = vector.broadcast %11 : vector<1x128xf32> to vector<2x128xf32>
    %13 = arith.addf %10, %12 : vector<2x128xf32>
    %c0_9 = arith.constant 0 : index
    %c0_10 = arith.constant 0 : index
    %14 = vector.load %arg6[%c0_9, %c0_10] : memref<128x128xf32, #tpu.memory_space<vmem>>, vector<128x128xf32>
    %cst = arith.constant dense<0.000000e+00> : vector<2x128xf32>
    %15 = tpu.matmul %13, %14, %cst {dimension_numbers = #tpu.dot_dimension_numbers<[1], [0], [0], [1], [0, 0, 1, 1], [], []>} : vector<2x128xf32>, vector<128x128xf32>, vector<2x128xf32> -> vector<2x128xf32>
    %c0_11 = arith.constant 0 : index
    %c0_12 = arith.constant 0 : index
    %16 = vector.load %arg7[%c0_11, %c0_12] : memref<1x128xf32, #tpu.memory_space<vmem>>, vector<1x128xf32>
    %17 = vector.broadcast %16 : vector<1x128xf32> to vector<2x128xf32>
    %18 = arith.addf %15, %17 : vector<2x128xf32>
    %cst_13 = arith.constant 0.000000e+00 : f32
    %19 = vector.broadcast %cst_13 : f32 to vector<2x128xf32>
    %20 = arith.maximumf %18, %19 : vector<2x128xf32>
    %c0_14 = arith.constant 0 : index
    %c0_15 = arith.constant 0 : index
    %21 = vector.load %arg8[%c0_14, %c0_15] : memref<128x10xf32, #tpu.memory_space<vmem>>, vector<128x10xf32>
    %cst_16 = arith.constant dense<0.000000e+00> : vector<2x10xf32>
    %22 = tpu.matmul %20, %21, %cst_16 {dimension_numbers = #tpu.dot_dimension_numbers<[1], [0], [0], [1], [0, 0, 1, 1], [], []>} : vector<2x128xf32>, vector<128x10xf32>, vector<2x10xf32> -> vector<2x10xf32>
    %c0_17 = arith.constant 0 : index
    %c0_18 = arith.constant 0 : index
    %23 = vector.load %arg9[%c0_17, %c0_18] : memref<1x10xf32, #tpu.memory_space<vmem>>, vector<1x10xf32>
    %24 = vector.broadcast %23 : vector<1x10xf32> to vector<2x10xf32>
    %25 = arith.addf %22, %24 : vector<2x10xf32>
    %c0_19 = arith.constant 0 : index
    %c0_20 = arith.constant 0 : index
    %26 = vector.load %arg12[%c0_19, %c0_20] : memref<2x10xf32, #tpu.memory_space<vmem>>, vector<2x10xf32>
    tpu.vector_store %arg12[%c0_19, %c0_20], %25 {strides = array<i32>} : memref<2x10xf32, #tpu.memory_space<vmem>>, vector<2x10xf32>,
    %c0_21 = arith.constant 0 : index
    %c0_22 = arith.constant 0 : index
    %27 = vector.load %arg10[%c0_21, %c0_22] : memref<128x10xf32, #tpu.memory_space<vmem>>, vector<128x10xf32>
    %cst_23 = arith.constant dense<0.000000e+00> : vector<2x10xf32>
    %28 = tpu.matmul %20, %27, %cst_23 {dimension_numbers = #tpu.dot_dimension_numbers<[1], [0], [0], [1], [0, 0, 1, 1], [], []>} : vector<2x128xf32>, vector<128x10xf32>, vector<2x10xf32> -> vector<2x10xf32>
    %c0_24 = arith.constant 0 : index
    %c0_25 = arith.constant 0 : index
    %29 = vector.load %arg11[%c0_24, %c0_25] : memref<1x10xf32, #tpu.memory_space<vmem>>, vector<1x10xf32>
    %30 = vector.broadcast %29 : vector<1x10xf32> to vector<2x10xf32>
    %31 = arith.addf %28, %30 : vector<2x10xf32>
    %c0_26 = arith.constant 0 : index
    %c0_27 = arith.constant 0 : index
    %32 = vector.load %arg13[%c0_26, %c0_27] : memref<2x10xf32, #tpu.memory_space<vmem>>, vector<2x10xf32>
    tpu.vector_store %arg13[%c0_26, %c0_27], %31 {strides = array<i32>} : memref<2x10xf32, #tpu.memory_space<vmem>>, vector<2x10xf32>,
    return
  }
  func.func @transform_0(%arg0: i32) -> (i32, i32) {
    %c0_i32 = arith.constant 0 : i32
    %c0_i32_0 = arith.constant 0 : i32
    %c0_i32_1 = arith.constant 0 : i32
    return %c0_i32, %c0_i32_0 : i32, i32
  }
  func.func @transform_1(%arg0: i32) -> (i32, i32) {
    %c0_i32 = arith.constant 0 : i32
    %c0_i32_0 = arith.constant 0 : i32
    %c0_i32_1 = arith.constant 0 : i32
    return %c0_i32, %c0_i32_0 : i32, i32
  }
  func.func @transform_2(%arg0: i32) -> (i32, i32) {
    %c0_i32 = arith.constant 0 : i32
    %c0_i32_0 = arith.constant 0 : i32
    %c0_i32_1 = arith.constant 0 : i32
    return %c0_i32, %c0_i32_0 : i32, i32
  }
  func.func @transform_3(%arg0: i32) -> (i32, i32) {
    %c0_i32 = arith.constant 0 : i32
    %c0_i32_0 = arith.constant 0 : i32
    %c0_i32_1 = arith.constant 0 : i32
    return %c0_i32, %c0_i32_0 : i32, i32
  }
  func.func @transform_4(%arg0: i32) -> (i32, i32) {
    %c0_i32 = arith.constant 0 : i32
    %c0_i32_0 = arith.constant 0 : i32
    %c0_i32_1 = arith.constant 0 : i32
    return %c0_i32, %c0_i32_0 : i32, i32
  }
  func.func @transform_5(%arg0: i32) -> (i32, i32) {
    %c0_i32 = arith.constant 0 : i32
    %c0_i32_0 = arith.constant 0 : i32
    %c0_i32_1 = arith.constant 0 : i32
    return %c0_i32, %c0_i32_0 : i32, i32
  }
  func.func @transform_6(%arg0: i32) -> (i32, i32) {
    %c0_i32 = arith.constant 0 : i32
    %c0_i32_0 = arith.constant 0 : i32
    %c0_i32_1 = arith.constant 0 : i32
    return %c0_i32, %c0_i32_0 : i32, i32
  }
  func.func @transform_7(%arg0: i32) -> (i32, i32) {
    %c0_i32 = arith.constant 0 : i32
    %c0_i32_0 = arith.constant 0 : i32
    %c0_i32_1 = arith.constant 0 : i32
    return %c0_i32, %c0_i32_0 : i32, i32
  }
  func.func @transform_8(%arg0: i32) -> (i32, i32) {
    %c0_i32 = arith.constant 0 : i32
    %c0_i32_0 = arith.constant 0 : i32
    %c0_i32_1 = arith.constant 0 : i32
    return %c0_i32, %c0_i32_0 : i32, i32
  }
  func.func @transform_9(%arg0: i32) -> (i32, i32) {
    %c0_i32 = arith.constant 0 : i32
    %c0_i32_0 = arith.constant 0 : i32
    %c0_i32_1 = arith.constant 0 : i32
    return %c0_i32, %c0_i32_0 : i32, i32
  }
  func.func @transform_10(%arg0: i32) -> (i32, i32) {
    %c0_i32 = arith.constant 0 : i32
    %c0_i32_0 = arith.constant 0 : i32
    %c0_i32_1 = arith.constant 0 : i32
    return %c0_i32, %c0_i32_0 : i32, i32
  }
  func.func @transform_11(%arg0: i32) -> (i32, i32) {
    %c0_i32 = arith.constant 0 : i32
    %c0_i32_0 = arith.constant 0 : i32
    %c0_i32_1 = arith.constant 0 : i32
    return %c0_i32, %c0_i32_0 : i32, i32
  }
  func.func @transform_12(%arg0: i32) -> (i32, i32) {
    %c0_i32 = arith.constant 0 : i32
    %c0_i32_0 = arith.constant 0 : i32
    %c0_i32_1 = arith.constant 0 : i32
    return %c0_i32, %c0_i32_0 : i32, i32
  }
}

</mosaic_0001>

<bundles_post_ra>
// kernel: ivae_forward.9
= control target key start
LH: loop header
LB: loop body
LE: loop exit
PB: predicated region body
PF: predicated region fallthrough
CT: control target
= control target key end

     0   :  { %s788_s12 = smov 0   ;;  %s1008_s0 = inlined_call_operand.vmem [shape: f32[2,196,27], index: 0, kind: input, shape index: {}]   ;;  %s1009_s1 = inlined_call_operand.vmem [shape: f32[27,32], index: 1, kind: input, shape index: {}]   ;;  %s1010_s2 = inlined_call_operand.vmem [shape: f32[1,32], index: 2, kind: input, shape index: {}]   ;;  %s1011_s3 = inlined_call_operand.vmem [shape: f32[2,196,32], index: 3, kind: output, shape index: {}]  }
   0x1 LB: > { %s584_s13 = sadd.s32 4294967295, %s762_s12   ;;  %p588_p0 = scmp.ge.s32.totalorder %s762_s12, 1  ;;  %s762_s12 = sphi %s788_s12, %s13_s12  }
   0x2   : > { %p137_p1 = scmp.lt.s32.totalorder %s762_s12, 3 }
   0x4   : > { %p138_p2 = pnand %p588_p0, %p137_p1 }
   0x5   : > { %v196_v0 = vld [vmem:[%s1009_s1] sm:$0xff] (!%p138_p2)  ;;  %v197_v1 = vld [vmem:[%s1009_s1 + $0x8] sm:$0xff] (!%p138_p2)  ;;  %v198_v2 = vld [vmem:[%s1009_s1 + $0x10] sm:$0xff] (!%p138_p2)  ;;  %vm283_vm0 = vcmask (!%p138_p2), 1042432   ;;  %v764_v3 = vmov (!%p138_p2), 0.0|0.0   ;;  %p161_p3 = scmp.lt.s32.totalorder (!%p138_p2), %s584_s13, 1 }
   0x6   : > { %141 = sbr.rel (%p138_p2) target bundleno = 283 (0x11b), region = 32  ;;  %732 = vmatprep.subr.bf16.mxu0 (!%p138_p2), %v764_v3  ;;  %v733_v4 = vpack.c.bf16 (!%p138_p2), %v197_v1, %v196_v0  ;;  %739 = vmatprep.subr.bf16.mxu1 (!%p138_p2), %v764_v3  ;;  %v199_v5 = vld [vmem:[%s1009_s1 + $0x18] sm:$0x7] (!%p138_p2)  ;;  %vm765_vm1 = vmmov (!%p138_p2), 0   ;;  %v766_v6 = vmov (!%p138_p2), 0.0   ;;  %vm767_vm2 = vmmov (!%p138_p2), 1  }
   0x7   : > { %657 = vmatprep.mubr.msk.f32.mxu0 (!%p138_p2), %vm765_vm1, %v766_v6  ;;  %696 = vmatprep.mubr.msk.f32.mxu1 (!%p138_p2), %vm765_vm1, %v766_v6  ;;  %v736_v7 = vpack.c.bf16 (!%p138_p2), %v199_v5, %v198_v2  ;;  %vm737_vm3 = vmpackc.low (!%p138_p2), %vm283_vm0, %vm767_vm2  ;;  %vm207_vm4 = vcmask (!%p138_p2), 220160   ;;  %v922_v33 = vld [vmem:[%s1010_s2] ss:$0 sm:$0xff] (!%p138_p2)  ;;  %vm502_vm5 = vcmask (!%p138_p2), 261120   ;;  %vm527_vm6 = vcmask (!%p138_p2), 257024  }
   0x8   : > { %734 = vmatpush3.bf16.msra.mxu0 (!%p138_p2), %v733_v4  ;;  %741 = vmatpush3.bf16.msra.mxu1 (!%p138_p2), %v733_v4 }
   0x9   : > { %735 = vmatprep.subr.bf16.mxu0 (!%p138_p2), %v764_v3  ;;  %740 = vmatprep.subr.bf16.mxu1 (!%p138_p2), %v764_v3 }
   0xc   : > { %738 = vmatpush3.bf16.msk.msra.mxu0 (!%p138_p2), %vm737_vm3, %v736_v7  ;;  %742 = vmatpush3.bf16.msk.msra.mxu1 (!%p138_p2), %vm737_vm3, %v736_v7 }
   0xd   : > { %s1013_s13 = smov (!%p161_p3, %s584_s13), 1 }
   0xe   : > { %s743_s22 = smul.u32 200, %s1013_s13 }
  0x10   : > { %s821_s25 = scalar_lea.vmem %s1008_s0, %s743_s22  ;;  %s931_s30 = scalar_lea.vmem %s1011_s3, %s743_s22 }
  0x11   : > { %v171_v8 = vld [vmem:[%s821_s25] sm:$0xff]  ;;  %v184_v9 = vld [vmem:[%s821_s25 + $0x68] sm:$0xff]  ;;  %v185_v11 = vld [vmem:[%s821_s25 + $0x70] sm:$0xff] }
  0x12   : > { %658 = vmatmul.mubr.msk.f32.vlgmr.msra.gmra.mrb[0].mxu0 %vm207_vm4, %v171_v8  ;;  %697 = vmatmul.mubr.msk.f32.vlgmr.msra.gmra.mrb[0].mxu1 %vm207_vm4, %v184_v9  ;;  %v172_v10 = vld [vmem:[%s821_s25 + $0x8] sm:$0xff]  ;;  %v173_v12 = vld [vmem:[%s821_s25 + $0x10] sm:$0xff]  ;;  %v186_v13 = vld [vmem:[%s821_s25 + $0x78] sm:$0xff] }
  0x13   : > { %660 = vmatprep.mubr.msk.f32.mxu0 %vm765_vm1, %v766_v6  ;;  %699 = vmatprep.mubr.msk.f32.mxu1 %vm765_vm1, %v766_v6  ;;  %v174_v14 = vld [vmem:[%s821_s25 + $0x18] sm:$0xff]  ;;  %v187_v15 = vld [vmem:[%s821_s25 + $0x80] sm:$0xff]  ;;  %v188_v17 = vld [vmem:[%s821_s25 + $0x88] sm:$0xff] }
  0x14   : > { %v175_v16 = vld [vmem:[%s821_s25 + $0x20] sm:$0xff]  ;;  %v176_v18 = vld [vmem:[%s821_s25 + $0x28] sm:$0xff]  ;;  %v189_v19 = vld [vmem:[%s821_s25 + $0x90] sm:$0xff] }
  0x15   : > { %v177_v20 = vld [vmem:[%s821_s25 + $0x30] sm:$0xff]  ;;  %v190_v21 = vld [vmem:[%s821_s25 + $0x98] sm:$0xff]  ;;  %v191_v23 = vld [vmem:[%s821_s25 + $0xa0] sm:$0xff] }
  0x16   : > { %661 = vmatmul.mubr.msk.f32.gmra.mrb[2].mxu0 %vm207_vm4, %v172_v10  ;;  %700 = vmatmul.mubr.msk.f32.gmra.mrb[2].mxu1 %vm207_vm4, %v185_v11  ;;  %v178_v22 = vld [vmem:[%s821_s25 + $0x38] sm:$0xff]  ;;  %v179_v24 = vld [vmem:[%s821_s25 + $0x40] sm:$0xff]  ;;  %v192_v25 = vld [vmem:[%s821_s25 + $0xa8] sm:$0xff] }
  0x17   : > { %663 = vmatprep.mubr.msk.f32.mxu0 %vm765_vm1, %v766_v6  ;;  %702 = vmatprep.mubr.msk.f32.mxu1 %vm765_vm1, %v766_v6  ;;  %v180_v26 = vld [vmem:[%s821_s25 + $0x48] sm:$0xff]  ;;  %v193_v27 = vld [vmem:[%s821_s25 + $0xb0] sm:$0xff]  ;;  %v194_v29 = vld [vmem:[%s821_s25 + $0xb8] sm:$0xff] }
  0x18   : > { %v181_v28 = vld [vmem:[%s821_s25 + $0x50] sm:$0xff]  ;;  %v182_v30 = vld [vmem:[%s821_s25 + $0x58] sm:$0xff]  ;;  %v195_v31 = vld [vmem:[%s821_s25 + $0xc0] sm:$0xf] }
  0x19   : > { %v183_v32 = vld [vmem:[%s821_s25 + $0x60] sm:$0xff] }
  0x1a   : > { %664 = vmatmul.mubr.msk.f32.gmra.mrb[4].mxu0 %vm207_vm4, %v173_v12  ;;  %703 = vmatmul.mubr.msk.f32.gmra.mrb[4].mxu1 %vm207_vm4, %v186_v13 }
  0x1b   : > { %666 = vmatprep.mubr.msk.f32.mxu0 %vm765_vm1, %v766_v6  ;;  %705 = vmatprep.mubr.msk.f32.mxu1 %vm765_vm1, %v766_v6 }
  0x1e   : > { %667 = vmatmul.mubr.msk.f32.gmra.mrb[6].mxu0 %vm207_vm4, %v174_v14  ;;  %706 = vmatmul.mubr.msk.f32.gmra.mrb[6].mxu1 %vm207_vm4, %v187_v15 }
  0x1f   : > { %669 = vmatprep.mubr.msk.f32.mxu0 %vm765_vm1, %v766_v6  ;;  %708 = vmatprep.mubr.msk.f32.mxu1 %vm765_vm1, %v766_v6 }
  0x22   : > { %670 = vmatmul.mubr.msk.f32.gmra.mrb[8].mxu0 %vm207_vm4, %v175_v16  ;;  %709 = vmatmul.mubr.msk.f32.gmra.mrb[8].mxu1 %vm207_vm4, %v188_v17 }
  0x23   : > { %672 = vmatprep.mubr.msk.f32.mxu0 %vm765_vm1, %v766_v6  ;;  %711 = vmatprep.mubr.msk.f32.mxu1 %vm765_vm1, %v766_v6 }
  0x26   : > { %673 = vmatmul.mubr.msk.f32.gmra.mrb[10].mxu0 %vm207_vm4, %v176_v18  ;;  %712 = vmatmul.mubr.msk.f32.gmra.mrb[10].mxu1 %vm207_vm4, %v189_v19 }
  0x27   : > { %675 = vmatprep.mubr.msk.f32.mxu0 %vm765_vm1, %v766_v6  ;;  %714 = vmatprep.mubr.msk.f32.mxu1 %vm765_vm1, %v766_v6 }
  0x2a   : > { %676 = vmatmul.mubr.msk.f32.gmra.mrb[12].mxu0 %vm207_vm4, %v177_v20  ;;  %715 = vmatmul.mubr.msk.f32.gmra.mrb[12].mxu1 %vm207_vm4, %v190_v21 }
  0x2b   : > { %678 = vmatprep.mubr.msk.f32.mxu0 %vm765_vm1, %v766_v6  ;;  %717 = vmatprep.mubr.msk.f32.mxu1 %vm765_vm1, %v766_v6 }
  0x2e   : > { %679 = vmatmul.mubr.msk.f32.gmra.mrb[14].mxu0 %vm207_vm4, %v178_v22  ;;  %718 = vmatmul.mubr.msk.f32.gmra.mrb[14].mxu1 %vm207_vm4, %v191_v23 }
  0x2f   : > { %681 = vmatprep.mubr.msk.f32.mxu0 %vm765_vm1, %v766_v6  ;;  %720 = vmatprep.mubr.msk.f32.mxu1 %vm765_vm1, %v766_v6 }
  0x32   : > { %682 = vmatmul.mubr.msk.f32.gmra.mrb[16].mxu0 %vm207_vm4, %v179_v24  ;;  %721 = vmatmul.mubr.msk.f32.gmra.mrb[16].mxu1 %vm207_vm4, %v192_v25 }
  0x33   : > { %684 = vmatprep.mubr.msk.f32.mxu0 %vm765_vm1, %v766_v6  ;;  %723 = vmatprep.mubr.msk.f32.mxu1 %vm765_vm1, %v766_v6 }
  0x36   : > { %685 = vmatmul.mubr.msk.f32.gmra.mrb[18].mxu0 %vm207_vm4, %v180_v26  ;;  %724 = vmatmul.mubr.msk.f32.gmra.mrb[18].mxu1 %vm207_vm4, %v193_v27 }
  0x37   : > { %687 = vmatprep.mubr.msk.f32.mxu0 %vm765_vm1, %v766_v6  ;;  %726 = vmatprep.mubr.msk.f32.mxu1 %vm765_vm1, %v766_v6 }
  0x3a   : > { %688 = vmatmul.mubr.msk.f32.gmra.mrb[20].mxu0 %vm207_vm4, %v181_v28  ;;  %727 = vmatmul.mubr.msk.f32.gmra.mrb[20].mxu1 %vm207_vm4, %v194_v29 }
  0x3b   : > { %690 = vmatprep.mubr.msk.f32.mxu0 %vm765_vm1, %v766_v6  ;;  %729 = vmatprep.mubr.msk.f32.mxu1 %vm765_vm1, %v766_v6 }
  0x3e   : > { %691 = vmatmul.mubr.msk.f32.gmra.mrb[22].mxu0 %vm207_vm4, %v182_v30  ;;  %730 = vmatmul.mubr.msk.f32.gmra.mrb[22].mxu1 %vm207_vm4, %v195_v31 }
  0x3f   : > { %693 = vmatprep.mubr.msk.f32.mxu0 %vm765_vm1, %v766_v6 }
  0x42   : > { %694 = vmatmul.mubr.msk.f32.gmra.mrb[24].mxu0 %vm207_vm4, %v183_v32 }
  0xe5   : > { %v353_v34 = vpop.f32.mrb[0].mxu0  ;;  %v418_v35 = vpop.f32.mrb[0].mxu1 }
  0xe6   : > { %v354_v36 = vadd.f32 %v922_v33, %v353_v34  ;;  %v659_v37 = vpop.f32.mrb[1].mxu0  ;;  %v419_v38 = vadd.f32 %v922_v33, %v418_v35  ;;  %v698_v39 = vpop.f32.mrb[1].mxu1 }
  0xe8   : > { %v477_v40 = vmax.f32 %v354_v36, 0.0  ;;  %v490_v41 = vmax.f32 %v419_v38, 0.0 }
  0xe9   : > { %v358_v42 = vpop.f32.mrb[2].mxu0  ;;  %v423_v43 = vpop.f32.mrb[2].mxu1 }
  0xea   : > { %503 = vst.msk [vmem:[%s931_s30] sm:$0xff] %vm502_vm5, %v477_v40  ;;  %516 = vst.msk [vmem:[%s931_s30 + $0x68] sm:$0xff] %vm502_vm5, %v490_v41  ;;  %v359_v44 = vadd.f32 %v922_v33, %v358_v42  ;;  %v662_v45 = vpop.f32.mrb[3].mxu0  ;;  %v424_v46 = vadd.f32 %v922_v33, %v423_v43  ;;  %v701_v47 = vpop.f32.mrb[3].mxu1 }
  0xec   : > { %v478_v48 = vmax.f32 %v359_v44, 0.0  ;;  %v491_v49 = vmax.f32 %v424_v46, 0.0 }
  0xed   : > { %v363_v50 = vpop.f32.mrb[4].mxu0  ;;  %v428_v51 = vpop.f32.mrb[4].mxu1 }
  0xee   : > { %504 = vst.msk [vmem:[%s931_s30 + $0x8] sm:$0xff] %vm502_vm5, %v478_v48  ;;  %517 = vst.msk [vmem:[%s931_s30 + $0x70] sm:$0xff] %vm502_vm5, %v491_v49  ;;  %v364_v52 = vadd.f32 %v922_v33, %v363_v50  ;;  %v665_v53 = vpop.f32.mrb[5].mxu0  ;;  %v429_v54 = vadd.f32 %v922_v33, %v428_v51  ;;  %v704_v55 = vpop.f32.mrb[5].mxu1 }
  0xf0   : > { %v479_v56 = vmax.f32 %v364_v52, 0.0  ;;  %v492_v57 = vmax.f32 %v429_v54, 0.0 }
  0xf1   : > { %v368_v58 = vpop.f32.mrb[6].mxu0  ;;  %v433_v59 = vpop.f32.mrb[6].mxu1 }
  0xf2   : > { %505 = vst.msk [vmem:[%s931_s30 + $0x10] sm:$0xff] %vm502_vm5, %v479_v56  ;;  %518 = vst.msk [vmem:[%s931_s30 + $0x78] sm:$0xff] %vm502_vm5, %v492_v57  ;;  %v369_v60 = vadd.f32 %v922_v33, %v368_v58  ;;  %v668_v61 = vpop.f32.mrb[7].mxu0  ;;  %v434_v62 = vadd.f32 %v922_v33, %v433_v59  ;;  %v707_v63 = vpop.f32.mrb[7].mxu1 }
  0xf4   : > { %v480_v0 = vmax.f32 %v369_v60, 0.0  ;;  %v493_v1 = vmax.f32 %v434_v62, 0.0 }
  0xf5   : > { %v373_v2 = vpop.f32.mrb[8].mxu0  ;;  %v438_v3 = vpop.f32.mrb[8].mxu1 }
  0xf6   : > { %506 = vst.msk [vmem:[%s931_s30 + $0x18] sm:$0xff] %vm502_vm5, %v480_v0  ;;  %519 = vst.msk [vmem:[%s931_s30 + $0x80] sm:$0xff] %vm502_vm5, %v493_v1  ;;  %v374_v4 = vadd.f32 %v922_v33, %v373_v2  ;;  %v671_v5 = vpop.f32.mrb[9].mxu0  ;;  %v439_v6 = vadd.f32 %v922_v33, %v438_v3  ;;  %v710_v7 = vpop.f32.mrb[9].mxu1 }
  0xf8   : > { %v481_v8 = vmax.f32 %v374_v4, 0.0  ;;  %v494_v9 = vmax.f32 %v439_v6, 0.0 }
  0xf9   : > { %v378_v10 = vpop.f32.mrb[10].mxu0  ;;  %v443_v11 = vpop.f32.mrb[10].mxu1 }
  0xfa   : > { %507 = vst.msk [vmem:[%s931_s30 + $0x20] sm:$0xff] %vm502_vm5, %v481_v8  ;;  %520 = vst.msk [vmem:[%s931_s30 + $0x88] sm:$0xff] %vm502_vm5, %v494_v9  ;;  %v379_v12 = vadd.f32 %v922_v33, %v378_v10  ;;  %v674_v13 = vpop.f32.mrb[11].mxu0  ;;  %v444_v14 = vadd.f32 %v922_v33, %v443_v11  ;;  %v713_v15 = vpop.f32.mrb[11].mxu1 }
  0xfc   : > { %v482_v16 = vmax.f32 %v379_v12, 0.0  ;;  %v495_v17 = vmax.f32 %v444_v14, 0.0 }
  0xfd   : > { %v383_v18 = vpop.f32.mrb[12].mxu0  ;;  %v448_v19 = vpop.f32.mrb[12].mxu1 }
  0xfe   : > { %508 = vst.msk [vmem:[%s931_s30 + $0x28] sm:$0xff] %vm502_vm5, %v482_v16  ;;  %521 = vst.msk [vmem:[%s931_s30 + $0x90] sm:$0xff] %vm502_vm5, %v495_v17  ;;  %v384_v20 = vadd.f32 %v922_v33, %v383_v18  ;;  %v677_v21 = vpop.f32.mrb[13].mxu0  ;;  %v449_v22 = vadd.f32 %v922_v33, %v448_v19  ;;  %v716_v23 = vpop.f32.mrb[13].mxu1 }
 0x100   : > { %v483_v24 = vmax.f32 %v384_v20, 0.0  ;;  %v496_v25 = vmax.f32 %v449_v22, 0.0 }
 0x101   : > { %v388_v26 = vpop.f32.mrb[14].mxu0  ;;  %v453_v27 = vpop.f32.mrb[14].mxu1 }
 0x102   : > { %509 = vst.msk [vmem:[%s931_s30 + $0x30] sm:$0xff] %vm502_vm5, %v483_v24  ;;  %522 = vst.msk [vmem:[%s931_s30 + $0x98] sm:$0xff] %vm502_vm5, %v496_v25  ;;  %v389_v28 = vadd.f32 %v922_v33, %v388_v26  ;;  %v680_v29 = vpop.f32.mrb[15].mxu0  ;;  %v454_v30 = vadd.f32 %v922_v33, %v453_v27  ;;  %v719_v31 = vpop.f32.mrb[15].mxu1 }
 0x104   : > { %v484_v32 = vmax.f32 %v389_v28, 0.0  ;;  %v497_v34 = vmax.f32 %v454_v30, 0.0 }
 0x105   : > { %v393_v35 = vpop.f32.mrb[16].mxu0  ;;  %v458_v36 = vpop.f32.mrb[16].mxu1 }
 0x106   : > { %510 = vst.msk [vmem:[%s931_s30 + $0x38] sm:$0xff] %vm502_vm5, %v484_v32  ;;  %523 = vst.msk [vmem:[%s931_s30 + $0xa0] sm:$0xff] %vm502_vm5, %v497_v34  ;;  %v394_v37 = vadd.f32 %v922_v33, %v393_v35  ;;  %v683_v38 = vpop.f32.mrb[17].mxu0  ;;  %v459_v39 = vadd.f32 %v922_v33, %v458_v36  ;;  %v722_v40 = vpop.f32.mrb[17].mxu1 }
 0x108   : > { %v485_v41 = vmax.f32 %v394_v37, 0.0  ;;  %v498_v42 = vmax.f32 %v459_v39, 0.0 }
 0x109   : > { %v398_v43 = vpop.f32.mrb[18].mxu0  ;;  %v463_v44 = vpop.f32.mrb[18].mxu1 }
 0x10a   : > { %511 = vst.msk [vmem:[%s931_s30 + $0x40] sm:$0xff] %vm502_vm5, %v485_v41  ;;  %524 = vst.msk [vmem:[%s931_s30 + $0xa8] sm:$0xff] %vm502_vm5, %v498_v42  ;;  %v399_v45 = vadd.f32 %v922_v33, %v398_v43  ;;  %v686_v46 = vpop.f32.mrb[19].mxu0  ;;  %v464_v47 = vadd.f32 %v922_v33, %v463_v44  ;;  %v725_v48 = vpop.f32.mrb[19].mxu1 }
 0x10c   : > { %v486_v49 = vmax.f32 %v399_v45, 0.0  ;;  %v499_v50 = vmax.f32 %v464_v47, 0.0 }
 0x10d   : > { %v403_v51 = vpop.f32.mrb[20].mxu0  ;;  %v468_v52 = vpop.f32.mrb[20].mxu1 }
 0x10e   : > { %512 = vst.msk [vmem:[%s931_s30 + $0x48] sm:$0xff] %vm502_vm5, %v486_v49  ;;  %525 = vst.msk [vmem:[%s931_s30 + $0xb0] sm:$0xff] %vm502_vm5, %v499_v50  ;;  %v404_v53 = vadd.f32 %v922_v33, %v403_v51  ;;  %v689_v54 = vpop.f32.mrb[21].mxu0  ;;  %v469_v55 = vadd.f32 %v922_v33, %v468_v52  ;;  %v728_v56 = vpop.f32.mrb[21].mxu1 }
 0x110   : > { %v487_v57 = vmax.f32 %v404_v53, 0.0  ;;  %v500_v58 = vmax.f32 %v469_v55, 0.0 }
 0x111   : > { %v408_v59 = vpop.f32.mrb[22].mxu0  ;;  %v473_v60 = vpop.f32.mrb[22].mxu1 }
 0x112   : > { %513 = vst.msk [vmem:[%s931_s30 + $0x50] sm:$0xff] %vm502_vm5, %v487_v57  ;;  %526 = vst.msk [vmem:[%s931_s30 + $0xb8] sm:$0xff] %vm502_vm5, %v500_v58  ;;  %v409_v61 = vadd.f32 %v922_v33, %v408_v59  ;;  %v692_v62 = vpop.f32.mrb[23].mxu0  ;;  %v474_v63 = vadd.f32 %v922_v33, %v473_v60  ;;  %v731_v0 = vpop.f32.mrb[23].mxu1 }
 0x114   : > { %v488_v1 = vmax.f32 %v409_v61, 0.0  ;;  %v501_v2 = vmax.f32 %v474_v63, 0.0 }
 0x115   : > { %v413_v3 = vpop.f32.mrb[24].mxu0 }
 0x116   : > { %514 = vst.msk [vmem:[%s931_s30 + $0x58] sm:$0xff] %vm502_vm5, %v488_v1  ;;  %v414_v4 = vadd.f32 %v922_v33, %v413_v3  ;;  %v695_v5 = vpop.f32.mrb[25].mxu0 }
 0x117   : > { %528 = vst.msk [vmem:[%s931_s30 + $0xc0] sm:$0xf] %vm527_vm6, %v501_v2 }
 0x118   : > { %v489_v6 = vmax.f32 %v414_v4, 0.0 }
 0x11a   : > { %515 = vst.msk [vmem:[%s931_s30 + $0x60] sm:$0xff] %vm502_vm5, %v489_v6 }
 0x11b PF: > { %s13_s12 = sadd.s32 1, %s762_s12  }
 0x11c   : > { %p10_p4 = scmp.ge.s32.totalorder %s13_s12, 4  }
 0x11e   :  { %12 = sbr.rel (!%p10_p4) target bundleno = 1 (0x1), region = 62 }

// kernel: ivae_forward.10
= control target key start
LH: loop header
LB: loop body
LE: loop exit
PB: predicated region body
PF: predicated region fallthrough
CT: control target
= control target key end

     0   :  { %s719_s12 = smov 0   ;;  %s910_s0 = inlined_call_operand.vmem [shape: f32[2,49,288], index: 0, kind: input, shape index: {}]   ;;  %s911_s1 = inlined_call_operand.vmem [shape: f32[288,32], index: 1, kind: input, shape index: {}]   ;;  %s912_s2 = inlined_call_operand.vmem [shape: f32[1,32], index: 2, kind: input, shape index: {}]   ;;  %s913_s3 = inlined_call_operand.vmem [shape: f32[2,49,32], index: 3, kind: output, shape index: {}]  }
   0x1 LB: > { %s527_s13 = sadd.s32 4294967295, %s694_s12   ;;  %p531_p0 = scmp.ge.s32.totalorder %s694_s12, 1  ;;  %s694_s12 = sphi %s719_s12, %s13_s12  }
   0x2   : > { %p137_p1 = scmp.lt.s32.totalorder %s694_s12, 3 }
   0x4   : > { %p138_p2 = pnand %p531_p0, %p137_p1 }
   0x5   : > { %v208_v0 = vld [vmem:[%s911_s1 + $0x80] sm:$0xff] (!%p138_p2)  ;;  %v209_v1 = vld [vmem:[%s911_s1 + $0x88] sm:$0xff] (!%p138_p2)  ;;  %p161_p3 = scmp.lt.s32.totalorder (!%p138_p2), %s527_s13, 1  ;;  %v210_v5 = vld [vmem:[%s911_s1 + $0x90] sm:$0xff] (!%p138_p2)  ;;  %v696_v7 = vmov (!%p138_p2), 0.0|0.0   ;;  %vm697_vm0 = vmmov (!%p138_p2), 0  }
   0x6   : > { %141 = sbr.rel (%p138_p2) target bundleno = 286 (0x11e), region = 32  ;;  %v192_v2 = vld [vmem:[%s911_s1] sm:$0xff] (!%p138_p2)  ;;  %v637_v3 = vpack.c.bf16 (!%p138_p2), %v209_v1, %v208_v0  ;;  %v193_v4 = vld [vmem:[%s911_s1 + $0x8] sm:$0xff] (!%p138_p2)  ;;  %v211_v6 = vld [vmem:[%s911_s1 + $0x98] sm:$0xff] (!%p138_p2)  ;;  %669 = vmatprep.subr.bf16.mxu1 (!%p138_p2), %v696_v7  ;;  %v698_v13 = vmov (!%p138_p2), 0.0   ;;  %vm235_vm1 = vcmask (!%p138_p2), 261120  }
   0x7   : > { %v639_v8 = vpack.c.bf16 (!%p138_p2), %v193_v4, %v192_v2  ;;  %v641_v9 = vpack.c.bf16 (!%p138_p2), %v211_v6, %v210_v5  ;;  %v194_v10 = vld [vmem:[%s911_s1 + $0x10] sm:$0xff] (!%p138_p2)  ;;  %v195_v11 = vld [vmem:[%s911_s1 + $0x18] sm:$0xff] (!%p138_p2)  ;;  %v212_v12 = vld [vmem:[%s911_s1 + $0xa0] sm:$0xff] (!%p138_p2)  ;;  %616 = vmatprep.mubr.msk.f32.mxu1 (!%p138_p2), %vm697_vm0, %v698_v13  ;;  %vm470_vm2 = vcmask (!%p138_p2), 253952  }
   0x8   : > { %638 = vmatprep.subr.bf16.mxu0 (!%p138_p2), %v637_v3  ;;  %v213_v14 = vld [vmem:[%s911_s1 + $0xa8] sm:$0xff] (!%p138_p2)  ;;  %v643_v15 = vpack.c.bf16 (!%p138_p2), %v195_v11, %v194_v10  ;;  %v196_v17 = vld [vmem:[%s911_s1 + $0x20] sm:$0xff] (!%p138_p2)  ;;  %v214_v19 = vld [vmem:[%s911_s1 + $0xb0] sm:$0xff] (!%p138_p2) }
   0x9   : > { %640 = vmatpush3.bf16.msra.mxu0 (!%p138_p2), %v639_v8  ;;  %v645_v16 = vpack.c.bf16 (!%p138_p2), %v213_v14, %v212_v12  ;;  %v197_v18 = vld [vmem:[%s911_s1 + $0x28] sm:$0xff] (!%p138_p2)  ;;  %v215_v20 = vld [vmem:[%s911_s1 + $0xb8] sm:$0xff] (!%p138_p2)  ;;  %v198_v23 = vld [vmem:[%s911_s1 + $0x30] sm:$0xff] (!%p138_p2) }
   0xa   : > { %642 = vmatprep.subr.bf16.mxu0 (!%p138_p2), %v641_v9  ;;  %v647_v21 = vpack.c.bf16 (!%p138_p2), %v197_v18, %v196_v17  ;;  %v649_v22 = vpack.c.bf16 (!%p138_p2), %v215_v20, %v214_v19  ;;  %v199_v24 = vld [vmem:[%s911_s1 + $0x38] sm:$0xff] (!%p138_p2)  ;;  %v216_v25 = vld [vmem:[%s911_s1 + $0xc0] sm:$0xff] (!%p138_p2)  ;;  %v217_v26 = vld [vmem:[%s911_s1 + $0xc8] sm:$0xff] (!%p138_p2) }
   0xb   : > { %v224_v27 = vld [vmem:[%s911_s1 + $0x100] sm:$0xff] (!%p138_p2)  ;;  %v225_v28 = vld [vmem:[%s911_s1 + $0x108] sm:$0xff] (!%p138_p2)  ;;  %v651_v30 = vpack.c.bf16 (!%p138_p2), %v199_v24, %v198_v23  ;;  %v226_v32 = vld [vmem:[%s911_s1 + $0x110] sm:$0xff] (!%p138_p2)  ;;  %v653_v34 = vpack.c.bf16 (!%p138_p2), %v217_v26, %v216_v25 }
   0xc   : > { %v670_v31 = vpack.c.bf16 (!%p138_p2), %v225_v28, %v224_v27  ;;  %v227_v33 = vld [vmem:[%s911_s1 + $0x118] sm:$0xff] (!%p138_p2)  ;;  %v200_v35 = vld [vmem:[%s911_s1 + $0x40] sm:$0xff] (!%p138_p2)  ;;  %v201_v36 = vld [vmem:[%s911_s1 + $0x48] sm:$0xff] (!%p138_p2) }
   0xd   : > { %s915_s13 = smov (!%p161_p3, %s527_s13), 1  ;;  %644 = vmatpush3.bf16.msra.mxu0 %v643_v15  ;;  %v218_v37 = vld [vmem:[%s911_s1 + $0xd0] sm:$0xff]  ;;  %v219_v38 = vld [vmem:[%s911_s1 + $0xd8] sm:$0xff]  ;;  %v673_v39 = vpack.c.bf16 %v227_v33, %v226_v32  ;;  %v655_v40 = vpack.c.bf16 %v201_v36, %v200_v35  ;;  %v220_v44 = vld [vmem:[%s911_s1 + $0xe0] sm:$0xff] }
   0xe   : > { %s675_s7 = smul.u32 168, %s915_s13  ;;  %646 = vmatprep.subr.bf16.mxu0 %v645_v16  ;;  %671 = vmatpush3.bf16.msra.mxu1 %v670_v31  ;;  %v657_v41 = vpack.c.bf16 %v219_v38, %v218_v37  ;;  %v202_v42 = vld [vmem:[%s911_s1 + $0x50] sm:$0xff]  ;;  %v203_v43 = vld [vmem:[%s911_s1 + $0x58] sm:$0xff]  ;;  %v221_v45 = vld [vmem:[%s911_s1 + $0xe8] sm:$0xff] }
   0xf   : > { %672 = vmatprep.subr.bf16.mxu1 %v696_v7  ;;  %v659_v47 = vpack.c.bf16 %v203_v43, %v202_v42  ;;  %v661_v48 = vpack.c.bf16 %v221_v45, %v220_v44  ;;  %v204_v49 = vld [vmem:[%s911_s1 + $0x60] sm:$0xff]  ;;  %v205_v50 = vld [vmem:[%s911_s1 + $0x68] sm:$0xff]  ;;  %v222_v51 = vld [vmem:[%s911_s1 + $0xf0] sm:$0xff]  ;;  %s676_s18 = smul.u32 56, %s915_s13 }
  0x10   : > { %s777_s20 = scalar_lea.vmem %s910_s0, %s675_s7  ;;  %v223_v52 = vld [vmem:[%s911_s1 + $0xf8] sm:$0xff]  ;;  %v663_v54 = vpack.c.bf16 %v205_v50, %v204_v49  ;;  %v206_v56 = vld [vmem:[%s911_s1 + $0x70] sm:$0xff]  ;;  %v534_v23 = vld [vmem:[%s912_s2] ss:$0 sm:$0xff] }
  0x11   : > { %v172_v29 = vld [vmem:[%s777_s20 + $0x8] sm:$0xff]  ;;  %648 = vmatpush3.bf16.msra.mxu0 %v647_v21  ;;  %v173_v46 = vld [vmem:[%s777_s20 + $0x10] sm:$0xff]  ;;  %v665_v55 = vpack.c.bf16 %v223_v52, %v222_v51  ;;  %v207_v57 = vld [vmem:[%s911_s1 + $0x78] sm:$0xff]  ;;  %s892_s21 = scalar_lea.vmem %s913_s3, %s676_s18 }
  0x12   : > { %321 = vmatprep.mubr.f32.mxu0 %v172_v29  ;;  %650 = vmatprep.subr.bf16.mxu0 %v649_v22  ;;  %v176_v53 = vld [vmem:[%s777_s20 + $0x28] sm:$0xff]  ;;  %v179_v58 = vld [vmem:[%s777_s20 + $0x40] sm:$0xff]  ;;  %v667_v59 = vpack.c.bf16 %v207_v57, %v206_v56  ;;  %v182_v60 = vld [vmem:[%s777_s20 + $0x58] sm:$0xff] }
  0x13   : > { %674 = vmatpush3.bf16.msra.mxu1 %v673_v39  ;;  %v171_v61 = vld [vmem:[%s777_s20] sm:$0xff]  ;;  %v185_v63 = vld [vmem:[%s777_s20 + $0x70] sm:$0xff]  ;;  %v174_v0 = vld [vmem:[%s777_s20 + $0x18] sm:$0xff] }
  0x14   : > { %v175_v62 = vld [vmem:[%s777_s20 + $0x20] sm:$0xff]  ;;  %v178_v1 = vld [vmem:[%s777_s20 + $0x38] sm:$0xff]  ;;  %v188_v2 = vld [vmem:[%s777_s20 + $0x88] sm:$0xff] }
  0x15   : > { %652 = vmatpush3.bf16.msra.mxu0 %v651_v30  ;;  %v177_v3 = vld [vmem:[%s777_s20 + $0x30] sm:$0xff]  ;;  %v191_v5 = vld [vmem:[%s777_s20 + $0xa0] sm:$0x1]  ;;  %v180_v6 = vld [vmem:[%s777_s20 + $0x48] sm:$0xff] }
  0x16   : > { %654 = vmatprep.subr.bf16.mxu0 %v653_v34  ;;  %617 = vmatmul.mubr.msk.f32.vlgmr.msra.gmra.mrb[0].mxu1 %vm235_vm1, %v173_v46  ;;  %v181_v4 = vld [vmem:[%s777_s20 + $0x50] sm:$0xff]  ;;  %v184_v7 = vld [vmem:[%s777_s20 + $0x68] sm:$0xff]  ;;  %v183_v8 = vld [vmem:[%s777_s20 + $0x60] sm:$0xff] }
  0x17   : > { %619 = vmatprep.mubr.msk.f32.mxu1 %vm697_vm0, %v698_v13  ;;  %v187_v9 = vld [vmem:[%s777_s20 + $0x80] sm:$0xff]  ;;  %v186_v10 = vld [vmem:[%s777_s20 + $0x78] sm:$0xff]  ;;  %v189_v12 = vld [vmem:[%s777_s20 + $0x90] sm:$0x1] }
  0x18   : > { %v190_v11 = vld [vmem:[%s777_s20 + $0x98] sm:$0x1] }
  0x19   : > { %656 = vmatpush3.bf16.msra.mxu0 %v655_v40 }
  0x1a   : > { %658 = vmatprep.subr.bf16.mxu0 %v657_v41  ;;  %620 = vmatmul.mubr.msk.f32.gmra.mrb[2].mxu1 %vm235_vm1, %v176_v53 }
  0x1b   : > { %622 = vmatprep.mubr.msk.f32.mxu1 %vm697_vm0, %v698_v13 }
  0x1d   : > { %660 = vmatpush3.bf16.msra.mxu0 %v659_v47 }
  0x1e   : > { %662 = vmatprep.subr.bf16.mxu0 %v661_v48  ;;  %623 = vmatmul.mubr.msk.f32.gmra.mrb[4].mxu1 %vm235_vm1, %v179_v58 }
  0x1f   : > { %625 = vmatprep.mubr.msk.f32.mxu1 %vm697_vm0, %v698_v13 }
  0x21   : > { %664 = vmatpush3.bf16.msra.mxu0 %v663_v54 }
  0x22   : > { %666 = vmatprep.subr.bf16.mxu0 %v665_v55  ;;  %626 = vmatmul.mubr.msk.f32.gmra.mrb[6].mxu1 %vm235_vm1, %v182_v60 }
  0x23   : > { %628 = vmatprep.mubr.msk.f32.mxu1 %vm697_vm0, %v698_v13 }
  0x25   : > { %668 = vmatpush3.bf16.msra.mxu0 %v667_v59 }
  0x26   : > { %629 = vmatmul.mubr.msk.f32.gmra.mrb[8].mxu1 %vm235_vm1, %v185_v63 }
  0x27   : > { %631 = vmatprep.mubr.msk.f32.mxu1 %vm697_vm0, %v698_v13 }
  0x28   : > { %322 = vmatmul.mubr.f32.vlgmr.msra.gmra.mrb[0].mxu0 %v171_v61 }
  0x29   : > { %326 = vmatprep.mubr.f32.mxu0 %v175_v62 }
  0x2a   : > { %632 = vmatmul.mubr.msk.f32.gmra.mrb[10].mxu1 %vm235_vm1, %v188_v2 }
  0x2b   : > { %634 = vmatprep.mubr.msk.f32.mxu1 %vm697_vm0, %v698_v13 }
  0x2c   : > { %327 = vmatmul.mubr.f32.gmra.mrb[2].mxu0 %v174_v0 }
  0x2d   : > { %331 = vmatprep.mubr.f32.mxu0 %v178_v1 }
  0x2e   : > { %635 = vmatmul.mubr.msk.f32.gmra.mrb[12].mxu1 %vm235_vm1, %v191_v5 }
  0x30   : > { %332 = vmatmul.mubr.f32.gmra.mrb[4].mxu0 %v177_v3 }
  0x31   : > { %336 = vmatprep.mubr.f32.mxu0 %v181_v4 }
  0x34   : > { %337 = vmatmul.mubr.f32.gmra.mrb[6].mxu0 %v180_v6 }
  0x35   : > { %341 = vmatprep.mubr.f32.mxu0 %v184_v7 }
  0x38   : > { %342 = vmatmul.mubr.f32.gmra.mrb[8].mxu0 %v183_v8 }
  0x39   : > { %346 = vmatprep.mubr.f32.mxu0 %v187_v9 }
  0x3c   : > { %347 = vmatmul.mubr.f32.gmra.mrb[10].mxu0 %v186_v10 }
  0x3d   : > { %351 = vmatprep.mubr.f32.mxu0 %v190_v11 }
  0x40   : > { %352 = vmatmul.mubr.f32.gmra.mrb[12].mxu0 %v189_v12 }
  0xe9   : > { %v423_v13 = vpop.f32.mrb[0].mxu1 }
  0xea   : > { %v618_v14 = vpop.f32.mrb[1].mxu1 }
  0xed   : > { %v428_v15 = vpop.f32.mrb[2].mxu1 }
  0xee   : > { %v621_v16 = vpop.f32.mrb[3].mxu1 }
  0xf1   : > { %v433_v17 = vpop.f32.mrb[4].mxu1 }
  0xf2   : > { %v624_v18 = vpop.f32.mrb[5].mxu1 }
  0xf5   : > { %v438_v19 = vpop.f32.mrb[6].mxu1 }
  0xf6   : > { %v627_v20 = vpop.f32.mrb[7].mxu1 }
  0xf9   : > { %v443_v25 = vpop.f32.mrb[8].mxu1 }
  0xfa   : > { %v630_v26 = vpop.f32.mrb[9].mxu1 }
  0xfb   : > { %v576_v21 = vpop.f32.mrb[0].mxu0 }
  0xfc   : > { %v577_v22 = vpop.f32.mrb[1].mxu0 }
  0xfd   : > { %v578_v24 = vadd.f32 %v577_v22, %v576_v21  ;;  %v448_v32 = vpop.f32.mrb[10].mxu1 }
  0xfe   : > { %v633_v33 = vpop.f32.mrb[11].mxu1 }
  0xff   : > { %v579_v27 = vpop.f32.mrb[2].mxu0  ;;  %v324_v28 = vadd.f32 %v578_v24, %v534_v23 }
 0x100   : > { %v580_v29 = vpop.f32.mrb[3].mxu0 }
 0x101   : > { %v424_v30 = vadd.f32 %v423_v13, %v324_v28  ;;  %v581_v31 = vadd.f32 %v580_v29, %v579_v27  ;;  %v453_v40 = vpop.f32.mrb[12].mxu1 }
 0x102   : > { %v636_v41 = vpop.f32.mrb[13].mxu1 }
 0x103   : > { %v457_v34 = vmax.f32 %v424_v30, 0.0  ;;  %v582_v35 = vpop.f32.mrb[4].mxu0  ;;  %v329_v36 = vadd.f32 %v581_v31, %v534_v23 }
 0x104   : > { %v583_v37 = vpop.f32.mrb[5].mxu0 }
 0x105   : > { %464 = vst.msk [vmem:[%s892_s21] sm:$0xff] %vm235_vm1, %v457_v34  ;;  %v429_v38 = vadd.f32 %v428_v15, %v329_v36  ;;  %v584_v39 = vadd.f32 %v583_v37, %v582_v35 }
 0x107   : > { %v458_v42 = vmax.f32 %v429_v38, 0.0  ;;  %v585_v43 = vpop.f32.mrb[6].mxu0  ;;  %v334_v44 = vadd.f32 %v584_v39, %v534_v23 }
 0x108   : > { %v586_v45 = vpop.f32.mrb[7].mxu0 }
 0x109   : > { %465 = vst.msk [vmem:[%s892_s21 + $0x8] sm:$0xff] %vm235_vm1, %v458_v42  ;;  %v434_v46 = vadd.f32 %v433_v17, %v334_v44  ;;  %v587_v47 = vadd.f32 %v586_v45, %v585_v43 }
 0x10b   : > { %v459_v48 = vmax.f32 %v434_v46, 0.0  ;;  %v588_v49 = vpop.f32.mrb[8].mxu0  ;;  %v339_v50 = vadd.f32 %v587_v47, %v534_v23 }
 0x10c   : > { %v589_v51 = vpop.f32.mrb[9].mxu0 }
 0x10d   : > { %466 = vst.msk [vmem:[%s892_s21 + $0x10] sm:$0xff] %vm235_vm1, %v459_v48  ;;  %v439_v52 = vadd.f32 %v438_v19, %v339_v50  ;;  %v590_v53 = vadd.f32 %v589_v51, %v588_v49 }
 0x10f   : > { %v460_v54 = vmax.f32 %v439_v52, 0.0  ;;  %v591_v55 = vpop.f32.mrb[10].mxu0  ;;  %v344_v56 = vadd.f32 %v590_v53, %v534_v23 }
 0x110   : > { %v592_v57 = vpop.f32.mrb[11].mxu0 }
 0x111   : > { %467 = vst.msk [vmem:[%s892_s21 + $0x18] sm:$0xff] %vm235_vm1, %v460_v54  ;;  %v444_v58 = vadd.f32 %v443_v25, %v344_v56  ;;  %v593_v59 = vadd.f32 %v592_v57, %v591_v55 }
 0x113   : > { %v461_v60 = vmax.f32 %v444_v58, 0.0  ;;  %v594_v61 = vpop.f32.mrb[12].mxu0  ;;  %v349_v62 = vadd.f32 %v593_v59, %v534_v23 }
 0x114   : > { %v595_v63 = vpop.f32.mrb[13].mxu0 }
 0x115   : > { %468 = vst.msk [vmem:[%s892_s21 + $0x20] sm:$0xff] %vm235_vm1, %v461_v60  ;;  %v449_v0 = vadd.f32 %v448_v32, %v349_v62  ;;  %v596_v1 = vadd.f32 %v595_v63, %v594_v61 }
 0x117   : > { %v462_v2 = vmax.f32 %v449_v0, 0.0  ;;  %v354_v3 = vadd.f32 %v596_v1, %v534_v23 }
 0x119   : > { %469 = vst.msk [vmem:[%s892_s21 + $0x28] sm:$0xff] %vm235_vm1, %v462_v2  ;;  %v454_v4 = vadd.f32 %v453_v40, %v354_v3 }
 0x11b   : > { %v463_v5 = vmax.f32 %v454_v4, 0.0 }
 0x11d   : > { %471 = vst.msk [vmem:[%s892_s21 + $0x30] sm:$0x1] %vm470_vm2, %v463_v5 }
 0x11e PF: > { %s13_s12 = sadd.s32 1, %s694_s12  }
 0x11f   : > { %p10_p4 = scmp.ge.s32.totalorder %s13_s12, 4  }
 0x121   :  { %12 = sbr.rel (!%p10_p4) target bundleno = 1 (0x1), region = 62 }

// kernel: ivae_forward.11
= control target key start
LH: loop header
LB: loop body
LE: loop exit
PB: predicated region body
PF: predicated region fallthrough
CT: control target
= control target key end

     0   :  { %s582_s12 = smov 0   ;;  %s726_s0 = inlined_call_operand.vmem [shape: f32[2,16,288], index: 0, kind: input, shape index: {}]   ;;  %s727_s1 = inlined_call_operand.vmem [shape: f32[288,32], index: 1, kind: input, shape index: {}]   ;;  %s728_s2 = inlined_call_operand.vmem [shape: f32[1,32], index: 2, kind: input, shape index: {}]   ;;  %s729_s3 = inlined_call_operand.vmem [shape: f32[2,16,32], index: 3, kind: output, shape index: {}]  }
   0x1 LB: > { %s436_s13 = sadd.s32 4294967295, %s560_s12   ;;  %p440_p0 = scmp.ge.s32.totalorder %s560_s12, 1  ;;  %s560_s12 = sphi %s582_s12, %s13_s12  }
   0x2   : > { %p137_p1 = scmp.lt.s32.totalorder %s560_s12, 3 }
   0x4   : > { %p138_p2 = pnand %p440_p0, %p137_p1 }
   0x5   : > { %v193_v0 = vld [vmem:[%s727_s1 + $0x80] sm:$0xff] (!%p138_p2)  ;;  %v194_v1 = vld [vmem:[%s727_s1 + $0x88] sm:$0xff] (!%p138_p2)  ;;  %p161_p3 = scmp.lt.s32.totalorder (!%p138_p2), %s436_s13, 1  ;;  %v195_v5 = vld [vmem:[%s727_s1 + $0x90] sm:$0xff] (!%p138_p2)  ;;  %vm220_vm0 = vcmask (!%p138_p2), 261120  }
   0x6   : > { %141 = sbr.rel (%p138_p2) target bundleno = 266 (0x10a), region = 32  ;;  %v177_v2 = vld [vmem:[%s727_s1] sm:$0xff] (!%p138_p2)  ;;  %v505_v3 = vpack.c.bf16 (!%p138_p2), %v194_v1, %v193_v0  ;;  %v178_v4 = vld [vmem:[%s727_s1 + $0x8] sm:$0xff] (!%p138_p2)  ;;  %v196_v6 = vld [vmem:[%s727_s1 + $0x98] sm:$0xff] (!%p138_p2) }
   0x7   : > { %v507_v7 = vpack.c.bf16 (!%p138_p2), %v178_v4, %v177_v2  ;;  %v509_v8 = vpack.c.bf16 (!%p138_p2), %v196_v6, %v195_v5  ;;  %v179_v9 = vld [vmem:[%s727_s1 + $0x10] sm:$0xff] (!%p138_p2)  ;;  %v180_v10 = vld [vmem:[%s727_s1 + $0x18] sm:$0xff] (!%p138_p2)  ;;  %v197_v11 = vld [vmem:[%s727_s1 + $0xa0] sm:$0xff] (!%p138_p2) }
   0x8   : > { %506 = vmatprep.subr.bf16.mxu0 (!%p138_p2), %v505_v3  ;;  %v198_v12 = vld [vmem:[%s727_s1 + $0xa8] sm:$0xff] (!%p138_p2)  ;;  %v511_v13 = vpack.c.bf16 (!%p138_p2), %v180_v10, %v179_v9  ;;  %v181_v15 = vld [vmem:[%s727_s1 + $0x20] sm:$0xff] (!%p138_p2)  ;;  %v199_v17 = vld [vmem:[%s727_s1 + $0xb0] sm:$0xff] (!%p138_p2) }
   0x9   : > { %508 = vmatpush3.bf16.msra.mxu0 (!%p138_p2), %v507_v7  ;;  %v513_v14 = vpack.c.bf16 (!%p138_p2), %v198_v12, %v197_v11  ;;  %v182_v16 = vld [vmem:[%s727_s1 + $0x28] sm:$0xff] (!%p138_p2)  ;;  %v200_v18 = vld [vmem:[%s727_s1 + $0xb8] sm:$0xff] (!%p138_p2)  ;;  %v183_v21 = vld [vmem:[%s727_s1 + $0x30] sm:$0xff] (!%p138_p2) }
   0xa   : > { %510 = vmatprep.subr.bf16.mxu0 (!%p138_p2), %v509_v8  ;;  %v515_v19 = vpack.c.bf16 (!%p138_p2), %v182_v16, %v181_v15  ;;  %v517_v20 = vpack.c.bf16 (!%p138_p2), %v200_v18, %v199_v17  ;;  %v184_v22 = vld [vmem:[%s727_s1 + $0x38] sm:$0xff] (!%p138_p2)  ;;  %v201_v23 = vld [vmem:[%s727_s1 + $0xc0] sm:$0xff] (!%p138_p2)  ;;  %v202_v24 = vld [vmem:[%s727_s1 + $0xc8] sm:$0xff] (!%p138_p2) }
   0xb   : > { %v209_v25 = vld [vmem:[%s727_s1 + $0x100] sm:$0xff] (!%p138_p2)  ;;  %v210_v26 = vld [vmem:[%s727_s1 + $0x108] sm:$0xff] (!%p138_p2)  ;;  %v519_v29 = vpack.c.bf16 (!%p138_p2), %v184_v22, %v183_v21  ;;  %v211_v30 = vld [vmem:[%s727_s1 + $0x110] sm:$0xff] (!%p138_p2)  ;;  %v521_v32 = vpack.c.bf16 (!%p138_p2), %v202_v24, %v201_v23 }
   0xc   : > { %v537_v27 = vpack.c.bf16 (!%p138_p2), %v210_v26, %v209_v25  ;;  %v212_v31 = vld [vmem:[%s727_s1 + $0x118] sm:$0xff] (!%p138_p2)  ;;  %v185_v33 = vld [vmem:[%s727_s1 + $0x40] sm:$0xff] (!%p138_p2)  ;;  %v186_v34 = vld [vmem:[%s727_s1 + $0x48] sm:$0xff] (!%p138_p2) }
   0xd   : > { %s731_s13 = smov (!%p161_p3, %s436_s13), 1  ;;  %512 = vmatpush3.bf16.msra.mxu0 %v511_v13  ;;  %v541_v35 = vpack.c.bf16 %v212_v31, %v211_v30  ;;  %v203_v37 = vld [vmem:[%s727_s1 + $0xd0] sm:$0xff]  ;;  %v204_v38 = vld [vmem:[%s727_s1 + $0xd8] sm:$0xff]  ;;  %v523_v39 = vpack.c.bf16 %v186_v34, %v185_v33  ;;  %v205_v43 = vld [vmem:[%s727_s1 + $0xe0] sm:$0xff] }
   0xe   : > { %s545_s7 = smul.u32 48, %s731_s13  ;;  %514 = vmatprep.subr.bf16.mxu0 %v513_v14  ;;  %538 = vmatprep.subr.bf16.mxu1 %v537_v27  ;;  %v525_v40 = vpack.c.bf16 %v204_v38, %v203_v37  ;;  %v187_v41 = vld [vmem:[%s727_s1 + $0x50] sm:$0xff]  ;;  %v188_v42 = vld [vmem:[%s727_s1 + $0x58] sm:$0xff]  ;;  %v206_v44 = vld [vmem:[%s727_s1 + $0xe8] sm:$0xff]  ;;  %s449_s18 = sshll.u32 %s731_s13, 4 }
   0xf   : > { %540 = vmatpush3.bf16.msra.mxu1 %v537_v27  ;;  %v527_v46 = vpack.c.bf16 %v188_v42, %v187_v41  ;;  %v529_v47 = vpack.c.bf16 %v206_v44, %v205_v43  ;;  %v189_v48 = vld [vmem:[%s727_s1 + $0x60] sm:$0xff]  ;;  %v190_v49 = vld [vmem:[%s727_s1 + $0x68] sm:$0xff]  ;;  %v207_v50 = vld [vmem:[%s727_s1 + $0xf0] sm:$0xff] }
  0x10   : > { %s638_s20 = scalar_lea.vmem %s726_s0, %s545_s7  ;;  %542 = vmatprep.subr.bf16.mxu1 %v541_v35  ;;  %v208_v51 = vld [vmem:[%s727_s1 + $0xf8] sm:$0xff]  ;;  %v531_v52 = vpack.c.bf16 %v190_v49, %v189_v48  ;;  %v191_v54 = vld [vmem:[%s727_s1 + $0x70] sm:$0xff]  ;;  %v444_v0 = vld [vmem:[%s728_s2] ss:$0 sm:$0xff] }
  0x11   : > { %v172_v28 = vld [vmem:[%s638_s20 + $0x8] sm:$0xff]  ;;  %516 = vmatpush3.bf16.msra.mxu0 %v515_v19  ;;  %v173_v36 = vld [vmem:[%s638_s20 + $0x10] sm:$0xff]  ;;  %v533_v53 = vpack.c.bf16 %v208_v51, %v207_v50  ;;  %v192_v55 = vld [vmem:[%s727_s1 + $0x78] sm:$0xff] }
  0x12   : > { %291 = vmatprep.mubr.f32.mxu0 %v172_v28  ;;  %518 = vmatprep.subr.bf16.mxu0 %v517_v20  ;;  %v176_v45 = vld [vmem:[%s638_s20 + $0x28] sm:$0xff]  ;;  %v535_v56 = vpack.c.bf16 %v192_v55, %v191_v54  ;;  %v171_v57 = vld [vmem:[%s638_s20] sm:$0xff]  ;;  %v174_v59 = vld [vmem:[%s638_s20 + $0x18] sm:$0xff] }
  0x13   : > { %502 = vmatprep.mubr.msk.f32.mxu1 %vm220_vm0, %v173_v36  ;;  %544 = vmatpush3.bf16.msra.mxu1 %v541_v35  ;;  %v175_v58 = vld [vmem:[%s638_s20 + $0x20] sm:$0xff]  ;;  %s170_s20 = scalar_lea.vmem %s729_s3, %s449_s18 }
  0x15   : > { %520 = vmatpush3.bf16.msra.mxu0 %v519_v29 }
  0x16   : > { %522 = vmatprep.subr.bf16.mxu0 %v521_v32  ;;  %503 = vmatmul.mubr.msk.f32.vlgmr.msra.gmra.mrb[0].mxu1 %vm220_vm0, %v176_v45 }
  0x19   : > { %524 = vmatpush3.bf16.msra.mxu0 %v523_v39 }
  0x1a   : > { %526 = vmatprep.subr.bf16.mxu0 %v525_v40 }
  0x1d   : > { %528 = vmatpush3.bf16.msra.mxu0 %v527_v46 }
  0x1e   : > { %530 = vmatprep.subr.bf16.mxu0 %v529_v47 }
  0x21   : > { %532 = vmatpush3.bf16.msra.mxu0 %v531_v52 }
  0x22   : > { %534 = vmatprep.subr.bf16.mxu0 %v533_v53 }
  0x25   : > { %536 = vmatpush3.bf16.msra.mxu0 %v535_v56 }
  0x28   : > { %292 = vmatmul.mubr.f32.vlgmr.msra.gmra.mrb[0].mxu0 %v171_v57 }
  0x29   : > { %296 = vmatprep.mubr.f32.mxu0 %v175_v58 }
  0x2c   : > { %297 = vmatmul.mubr.f32.gmra.mrb[2].mxu0 %v174_v59 }
  0xe9   : > { %v504_v60 = vpop.f32.mrb[0].mxu1 }
  0xea   : > { %v368_v61 = vpop.f32.mrb[1].mxu1 }
  0xfb   : > { %v482_v62 = vpop.f32.mrb[0].mxu0 }
  0xfc   : > { %v483_v63 = vpop.f32.mrb[1].mxu0 }
  0xfd   : > { %v484_v1 = vadd.f32 %v483_v63, %v482_v62 }
  0xff   : > { %v485_v2 = vpop.f32.mrb[2].mxu0  ;;  %v294_v3 = vadd.f32 %v484_v1, %v444_v0 }
 0x100   : > { %v486_v4 = vpop.f32.mrb[3].mxu0 }
 0x101   : > { %v487_v5 = vadd.f32 %v486_v4, %v485_v2  ;;  %v369_v6 = vadd.f32 %v368_v61, %v294_v3 }
 0x103   : > { %v299_v7 = vadd.f32 %v487_v5, %v444_v0  ;;  %v377_v8 = vmax.f32 %v369_v6, 0.0 }
 0x105   : > { %v374_v9 = vadd.f32 %v504_v60, %v299_v7  ;;  %379 = vst.msk [vmem:[%s170_s20] sm:$0xff] %vm220_vm0, %v377_v8 }
 0x107   : > { %v378_v10 = vmax.f32 %v374_v9, 0.0 }
 0x109   : > { %380 = vst.msk [vmem:[%s170_s20 + $0x8] sm:$0xff] %vm220_vm0, %v378_v10 }
 0x10a PF: > { %s13_s12 = sadd.s32 1, %s560_s12  }
 0x10b   : > { %p10_p4 = scmp.ge.s32.totalorder %s13_s12, 4  }
 0x10d   :  { %12 = sbr.rel (!%p10_p4) target bundleno = 1 (0x1), region = 62 }

// kernel: ivae_forward.12
= control target key start
LH: loop header
LB: loop body
LE: loop exit
PB: predicated region body
PF: predicated region fallthrough
CT: control target
= control target key end

     0   :  { %s2093_s0 = inlined_call_operand.vmem [shape: f32[2,512], index: 0, kind: input, shape index: {}]   ;;  %s2094_s1 = inlined_call_operand.vmem [shape: f32[2,1], index: 1, kind: input, shape index: {}]   ;;  %s2095_s2 = inlined_call_operand.vmem [shape: f32[2,1], index: 2, kind: input, shape index: {}]   ;;  %s2096_s3 = inlined_call_operand.vmem [shape: f32[2,10], index: 3, kind: input, shape index: {}]   ;;  %s2097_s4 = inlined_call_operand.vmem [shape: f32[1,128], index: 4, kind: input, shape index: {}]   ;;  %s2098_s5 = inlined_call_operand.vmem [shape: f32[1,128], index: 5, kind: input, shape index: {}]   ;;  %s2099_s6 = inlined_call_operand.vmem [shape: f32[1,128], index: 6, kind: input, shape index: {}]   ;;  %s2100_s7 = inlined_call_operand.vmem [shape: f32[128,128], index: 7, kind: input, shape index: {}]   ;;  %s2101_s8 = inlined_call_operand.vmem [shape: f32[1,128], index: 8, kind: input, shape index: {}]   ;;  %s2102_s9 = inlined_call_operand.vmem [shape: f32[512,128], index: 9, kind: input, shape index: {}]   ;;  %s2103_s10 = inlined_call_operand.vmem [shape: f32[128,128], index: 10, kind: input, shape index: {}]   ;;  %s2104_s11 = inlined_call_operand.vmem [shape: f32[1,128], index: 11, kind: input, shape index: {}]   ;;  %s2105_s12 = inlined_call_operand.vmem [shape: f32[128,128], index: 12, kind: input, shape index: {}]   ;;  %s2106_s13 = inlined_call_operand.vmem [shape: f32[1,128], index: 13, kind: input, shape index: {}]   ;;  %s2107_s14 = inlined_call_operand.vmem [shape: f32[128,10], index: 14, kind: input, shape index: {}]   ;;  %s2108_s15 = inlined_call_operand.vmem [shape: f32[1,10], index: 15, kind: input, shape index: {}]   ;;  %s2109_s16 = inlined_call_operand.vmem [shape: f32[128,10], index: 16, kind: input, shape index: {}]   ;;  %s2110_s17 = inlined_call_operand.vmem [shape: f32[1,10], index: 17, kind: input, shape index: {}]   ;;  %s2111_s18 = inlined_call_operand.hbm [shape: f32[2,10], index: 18, kind: output, shape index: {0}]   ;;  %s2112_s19 = inlined_call_operand.hbm [shape: f32[2,10], index: 19, kind: output, shape index: {1}]   ;;  %s2113_s20 = inlined_call_operand.vmem [shape: f32[2,10], index: 20, kind: output, shape index: {2}]  }
   0x1   :  { %2114 = sst [smem:[#allocation8_spill]] %s2093_s0 }
   0x2   :  { %2115 = sst [smem:[#allocation9_spill]] %s2094_s1 }
   0x3   :  { %2116 = sst [smem:[#allocation10_spill]] %s2095_s2 }
   0x4   :  { %2117 = sst [smem:[#allocation11_spill]] %s2096_s3 }
   0x5   :  { %2118 = sst [smem:[#allocation12_spill]] %s2097_s4 }
   0x6   :  { %26 = vsyncpa [#allocation3], 0  ;;  %s2119_s23 = sld [smem:[#allocation9_spill]]  ;;  %v1418_v1 = vmov 0   ;;  %v1419_v2 = vmov 0.0|0.0   ;;  %v101_v3 = vld [vmem:[%s2100_s7] sm:$0xff] }
   0x7   :  { %1366 = vset.pattern.permute.xlu0 %v1418_v1  ;;  %1175 = vmatprep.subr.bf16.mxu0 %v1419_v2  ;;  %v102_v4 = vld [vmem:[%s2100_s7 + $0x8] sm:$0xff]  ;;  %v103_v5 = vld [vmem:[%s2100_s7 + $0x10] sm:$0xff]  ;;  %v104_v7 = vld [vmem:[%s2100_s7 + $0x18] sm:$0xff]  ;;  %s2120_s0 = sld [smem:[#allocation10_spill]] }
   0x8   :  { %v1176_v6 = vpack.c.bf16 %v102_v4, %v101_v3  ;;  %1199 = vmatprep.subr.bf16.mxu1 %v1419_v2  ;;  %v1179_v9 = vpack.c.bf16 %v104_v7, %v103_v5  ;;  %v105_v10 = vld [vmem:[%s2100_s7 + $0x20] sm:$0xff]  ;;  %v106_v11 = vld [vmem:[%s2100_s7 + $0x28] sm:$0xff] }
   0xa   :  { %1177 = vmatpush3.bf16.msra.mxu0 %v1176_v6 }
   0xb   :  { %1178 = vmatprep.subr.bf16.mxu0 %v1419_v2 }
   0xc   :  { %v64_v0 = vld [vmem:[%s2119_s23] sm:$0x3] }
   0xd   :  { %68 = vperm.xlu0 %1366, %v64_v0   ;;  %v78_v8 = vld [vmem:[%s2120_s0] sm:$0x3] }
  0x11   :  { %82 = vperm.xlu0 %1366, %v78_v8  }
  0x12   :  { %27 = vsyncpa [#allocation5], 0  ;;  %1180 = vmatpush3.bf16.msra.mxu0 %v1179_v9  ;;  %v1182_v12 = vpack.c.bf16 %v106_v11, %v105_v10  ;;  %v107_v13 = vld [vmem:[%s2100_s7 + $0x30] sm:$0xff]  ;;  %v108_v14 = vld [vmem:[%s2100_s7 + $0x38] sm:$0xff]  ;;  %vm1420_vm0 = vmmov 0   ;;  %v1421_v15 = vmov 0.0  }
  0x13   :  { %1181 = vmatprep.subr.bf16.mxu0 %v1419_v2  ;;  %1032 = vmatprep.mubr.msk.f32.mxu0 %vm1420_vm0, %v1421_v15  ;;  %v1185_v16 = vpack.c.bf16 %v108_v14, %v107_v13  ;;  %v109_v17 = vld [vmem:[%s2100_s7 + $0x40] sm:$0xff]  ;;  %v110_v18 = vld [vmem:[%s2100_s7 + $0x48] sm:$0xff]  ;;  %v111_v23 = vld [vmem:[%s2100_s7 + $0x50] sm:$0xff]  ;;  %s2121_s29 = sld [smem:[#allocation12_spill]]  ;;  %s2122_s26 = sld [smem:[#allocation8_spill]]  ;;  %vm796_vm1 = vcmask 74752  }
  0x14   :  { %1067 = vmatprep.mubr.msk.f32.mxu1 %vm1420_vm0, %v1421_v15  ;;  %v260_v19 = vld [vmem:[%s2103_s10] sm:$0xff]  ;;  %v261_v20 = vld [vmem:[%s2103_s10 + $0x8] sm:$0xff]  ;;  %v1188_v22 = vpack.c.bf16 %v110_v18, %v109_v17  ;;  %v112_v24 = vld [vmem:[%s2100_s7 + $0x58] sm:$0xff] }
  0x15   :  { %v1200_v21 = vpack.c.bf16 %v261_v20, %v260_v19  ;;  %v262_v25 = vld [vmem:[%s2103_s10 + $0x10] sm:$0xff]  ;;  %v263_v26 = vld [vmem:[%s2103_s10 + $0x18] sm:$0xff]  ;;  %v1191_v28 = vpack.c.bf16 %v112_v24, %v111_v23  ;;  %v113_v29 = vld [vmem:[%s2100_s7 + $0x60] sm:$0xff] }
  0x16   :  { %1183 = vmatpush3.bf16.msra.mxu0 %v1182_v12  ;;  %v1203_v27 = vpack.c.bf16 %v263_v26, %v262_v25  ;;  %v114_v30 = vld [vmem:[%s2100_s7 + $0x68] sm:$0xff]  ;;  %v264_v31 = vld [vmem:[%s2103_s10 + $0x20] sm:$0xff]  ;;  %v115_v35 = vld [vmem:[%s2100_s7 + $0x70] sm:$0xff] }
  0x17   :  { %1184 = vmatprep.subr.bf16.mxu0 %v1419_v2  ;;  %1201 = vmatpush3.bf16.msra.mxu1 %v1200_v21  ;;  %v265_v32 = vld [vmem:[%s2103_s10 + $0x28] sm:$0xff]  ;;  %v1194_v34 = vpack.c.bf16 %v114_v30, %v113_v29  ;;  %v116_v36 = vld [vmem:[%s2100_s7 + $0x78] sm:$0xff]  ;;  %v266_v37 = vld [vmem:[%s2103_s10 + $0x30] sm:$0xff] }
  0x18   :  { %1202 = vmatprep.subr.bf16.mxu1 %v1419_v2  ;;  %v1206_v33 = vpack.c.bf16 %v265_v32, %v264_v31  ;;  %v267_v38 = vld [vmem:[%s2103_s10 + $0x38] sm:$0xff]  ;;  %v212_v39 = vld [vmem:[%s2102_s9 + $0x80] sm:$0xff]  ;;  %v213_v40 = vld [vmem:[%s2102_s9 + $0x88] sm:$0xff]  ;;  %v1197_v42 = vpack.c.bf16 %v116_v36, %v115_v35 }
  0x19   :  { %v1209_v41 = vpack.c.bf16 %v267_v38, %v266_v37  ;;  %v1223_v43 = vpack.c.bf16 %v213_v40, %v212_v39  ;;  %v268_v44 = vld [vmem:[%s2103_s10 + $0x40] sm:$0xff]  ;;  %v269_v45 = vld [vmem:[%s2103_s10 + $0x48] sm:$0xff]  ;;  %v270_v47 = vld [vmem:[%s2103_s10 + $0x50] sm:$0xff] }
  0x1a   :  { %1186 = vmatpush3.bf16.msra.mxu0 %v1185_v16  ;;  %v1212_v46 = vpack.c.bf16 %v269_v45, %v268_v44  ;;  %v271_v48 = vld [vmem:[%s2103_s10 + $0x58] sm:$0xff]  ;;  %v272_v50 = vld [vmem:[%s2103_s10 + $0x60] sm:$0xff]  ;;  %v273_v51 = vld [vmem:[%s2103_s10 + $0x68] sm:$0xff]  ;;  %v1422_v45 = vmov 1983009808  }
  0x1b   :  { %1187 = vmatprep.subr.bf16.mxu0 %v1419_v2  ;;  %1204 = vmatpush3.bf16.msra.mxu1 %v1203_v27  ;;  %v1215_v49 = vpack.c.bf16 %v271_v48, %v270_v47  ;;  %v1218_v52 = vpack.c.bf16 %v273_v51, %v272_v50  ;;  %v837_v54 = vld [vmem:[%s2121_s29] ss:$0 sm:$0xff]  ;;  %v197_v60 = vld [vmem:[%s2102_s9 + $0x8] sm:$0xff]  ;;  %v214_v62 = vld [vmem:[%s2102_s9 + $0x90] sm:$0xff]  ;;  %v351_v47 = vlaneseq  ;;  %s1424_s29 = smov [#allocation4]  }
  0x1c   :  { %1205 = vmatprep.subr.bf16.mxu1 %v1419_v2  ;;  %v838_v55 = vld [vmem:[%s2098_s5] ss:$0 sm:$0xff]  ;;  %v215_v63 = vld [vmem:[%s2102_s9 + $0x98] sm:$0xff]  ;;  %v198_v5 = vld [vmem:[%s2102_s9 + $0x10] sm:$0xff]  ;;  %s821_s30 = sshll.u32 %s1424_s29, 4  ;;  %s2053_s30 = int_to_ptr.vmem [resolvable:$true] %s821_s30 }
  0x1d   :  { %v196_v59 = vld [vmem:[%s2102_s9] sm:$0xff]  ;;  %v1227_v4 = vpack.c.bf16 %v215_v63, %v214_v62  ;;  %v199_v6 = vld [vmem:[%s2102_s9 + $0x18] sm:$0xff]  ;;  %v217_v8 = vld [vmem:[%s2102_s9 + $0xa8] sm:$0xff] }
  0x1e   :  { %1189 = vmatpush3.bf16.msra.mxu0 %v1188_v22  ;;  %v839_v61 = vld [vmem:[%s2099_s6] ss:$0 sm:$0xff]  ;;  %v1225_v1 = vpack.c.bf16 %v197_v60, %v196_v59  ;;  %v1229_v9 = vpack.c.bf16 %v199_v6, %v198_v5  ;;  %v201_v12 = vld [vmem:[%s2102_s9 + $0x28] sm:$0xff]  ;;  %v218_v13 = vld [vmem:[%s2102_s9 + $0xb0] sm:$0xff] }
  0x1f   :  { %1190 = vmatprep.subr.bf16.mxu0 %v1419_v2  ;;  %1207 = vmatpush3.bf16.msra.mxu1 %v1206_v33  ;;  %v216_v7 = vld [vmem:[%s2102_s9 + $0xa0] sm:$0xff]  ;;  %v219_v14 = vld [vmem:[%s2102_s9 + $0xb8] sm:$0xff]  ;;  %v202_v18 = vld [vmem:[%s2102_s9 + $0x30] sm:$0xff] }
  0x20   :  { %1208 = vmatprep.subr.bf16.mxu1 %v1419_v2  ;;  %v1231_v10 = vpack.c.bf16 %v217_v8, %v216_v7  ;;  %v200_v11 = vld [vmem:[%s2102_s9 + $0x20] sm:$0xff]  ;;  %v1235_v17 = vpack.c.bf16 %v219_v14, %v218_v13  ;;  %v203_v19 = vld [vmem:[%s2102_s9 + $0x38] sm:$0xff]  ;;  %v221_v21 = vld [vmem:[%s2102_s9 + $0xc8] sm:$0xff] }
  0x21   :  { %v1233_v16 = vpack.c.bf16 %v201_v12, %v200_v11  ;;  %v220_v20 = vld [vmem:[%s2102_s9 + $0xc0] sm:$0xff]  ;;  %v1237_v22 = vpack.c.bf16 %v203_v19, %v202_v18  ;;  %v205_v25 = vld [vmem:[%s2102_s9 + $0x48] sm:$0xff]  ;;  %v222_v26 = vld [vmem:[%s2102_s9 + $0xd0] sm:$0xff] }
  0x22   :  { %1192 = vmatpush3.bf16.msra.mxu0 %v1191_v28  ;;  %v1239_v23 = vpack.c.bf16 %v221_v21, %v220_v20  ;;  %v204_v24 = vld [vmem:[%s2102_s9 + $0x40] sm:$0xff]  ;;  %v223_v27 = vld [vmem:[%s2102_s9 + $0xd8] sm:$0xff]  ;;  %v206_v30 = vld [vmem:[%s2102_s9 + $0x50] sm:$0xff] }
  0x23   :  { %1193 = vmatprep.subr.bf16.mxu0 %v1419_v2  ;;  %1210 = vmatpush3.bf16.msra.mxu1 %v1209_v41  ;;  %v1241_v28 = vpack.c.bf16 %v205_v25, %v204_v24  ;;  %v1243_v29 = vpack.c.bf16 %v223_v27, %v222_v26  ;;  %v207_v31 = vld [vmem:[%s2102_s9 + $0x58] sm:$0xff]  ;;  %v224_v32 = vld [vmem:[%s2102_s9 + $0xe0] sm:$0xff]  ;;  %v225_v33 = vld [vmem:[%s2102_s9 + $0xe8] sm:$0xff] }
  0x24   :  { %1211 = vmatprep.subr.bf16.mxu1 %v1419_v2  ;;  %v1247_v35 = vpack.c.bf16 %v225_v33, %v224_v32  ;;  %v208_v36 = vld [vmem:[%s2102_s9 + $0x60] sm:$0xff]  ;;  %v209_v37 = vld [vmem:[%s2102_s9 + $0x68] sm:$0xff]  ;;  %v226_v38 = vld [vmem:[%s2102_s9 + $0xf0] sm:$0xff] }
  0x25   :  { %v227_v39 = vld [vmem:[%s2102_s9 + $0xf8] sm:$0xff]  ;;  %v1249_v40 = vpack.c.bf16 %v209_v37, %v208_v36  ;;  %v195_v51 = vld [vmem:[%s2122_s26] sm:$0xff]  ;;  %v230_v11 = vld [vmem:[%s2102_s9 + $0x110] sm:$0xff] }
  0x26   :  { %1195 = vmatpush3.bf16.msra.mxu0 %v1194_v34  ;;  %v1245_v34 = vpack.c.bf16 %v207_v31, %v206_v30  ;;  %v1251_v41 = vpack.c.bf16 %v227_v39, %v226_v38  ;;  %v347_v60 = vcombine.high %v195_v51, %v195_v51  ;;  %v840_v62 = vld [vmem:[%s2101_s8] ss:$0 sm:$0xff]  ;;  %v231_v12 = vld [vmem:[%s2102_s9 + $0x118] sm:$0xff]  ;;  %v249_v14 = vld [vmem:[%s2102_s9 + $0x1a8] sm:$0xff] }
  0x27   :  { %1196 = vmatprep.subr.bf16.mxu0 %v1419_v2  ;;  %1213 = vmatpush3.bf16.msra.mxu1 %v1212_v46  ;;  %v349_v46 = vunpack.c.l.s4 %v1422_v45  ;;  %v228_v63 = vld [vmem:[%s2102_s9 + $0x100] sm:$0xff]  ;;  %v233_v19 = vld [vmem:[%s2102_s9 + $0x128] sm:$0xff]  ;;  %v250_v20 = vld [vmem:[%s2102_s9 + $0x1b0] sm:$0xff] }
  0x28   :  { %1214 = vmatprep.subr.bf16.mxu1 %v1419_v2  ;;  %v248_v13 = vld [vmem:[%s2102_s9 + $0x1a0] sm:$0xff]  ;;  %v251_v21 = vld [vmem:[%s2102_s9 + $0x1b8] sm:$0xff]  ;;  %v234_v24 = vld [vmem:[%s2102_s9 + $0x130] sm:$0xff] }
  0x29   :  { %v350_v48 = vunpack.c.0.s8 %v349_v46  ;;  %v232_v18 = vld [vmem:[%s2102_s9 + $0x120] sm:$0xff]  ;;  %v235_v25 = vld [vmem:[%s2102_s9 + $0x138] sm:$0xff]  ;;  %v253_v27 = vld [vmem:[%s2102_s9 + $0x1c8] sm:$0xff] }
  0x2a   :  { %1198 = vmatpush3.bf16.msra.mxu0 %v1197_v42  ;;  %v210_v42 = vld [vmem:[%s2102_s9 + $0x70] sm:$0xff]  ;;  %v252_v26 = vld [vmem:[%s2102_s9 + $0x1c0] sm:$0xff]  ;;  %v237_v31 = vld [vmem:[%s2102_s9 + $0x148] sm:$0xff] }
  0x2b   :  { %1224 = vmatprep.subr.bf16.mxu0 %v1223_v43  ;;  %1216 = vmatpush3.bf16.msra.mxu1 %v1215_v49  ;;  %v211_v43 = vld [vmem:[%s2102_s9 + $0x78] sm:$0xff]  ;;  %v352_v49 = vshrl.u32 %v351_v47, 7  ;;  %v236_v30 = vld [vmem:[%s2102_s9 + $0x140] sm:$0xff]  ;;  %v254_v32 = vld [vmem:[%s2102_s9 + $0x1d0] sm:$0xff] }
  0x2c   :  { %1217 = vmatprep.subr.bf16.mxu1 %v1419_v2  ;;  %v1253_v44 = vpack.c.bf16 %v211_v43, %v210_v42  ;;  %v255_v33 = vld [vmem:[%s2102_s9 + $0x1d8] sm:$0xff]  ;;  %v238_v36 = vld [vmem:[%s2102_s9 + $0x150] sm:$0xff]  ;;  %v256_v38 = vld [vmem:[%s2102_s9 + $0x1e0] sm:$0xff] }
  0x2d   :  { %v353_v50 = vsub.s32 %v350_v48, %v352_v49  ;;  %v239_v37 = vld [vmem:[%s2102_s9 + $0x158] sm:$0xff]  ;;  %v257_v39 = vld [vmem:[%s2102_s9 + $0x1e8] sm:$0xff]  ;;  %v240_v42 = vld [vmem:[%s2102_s9 + $0x160] sm:$0xff] }
  0x2e   :  { %v241_v43 = vld [vmem:[%s2102_s9 + $0x168] sm:$0xff]  ;;  %v259_v45 = vld [vmem:[%s2102_s9 + $0x1f8] sm:$0xff]  ;;  %v242_v48 = vld [vmem:[%s2102_s9 + $0x170] sm:$0xff] }
  0x2f   :  { %1219 = vmatpush3.bf16.msra.mxu1 %v1218_v52  ;;  %v354_v52 = vrot.slane %v195_v51, %v353_v50  ;;  %v1281_v46 = vpack.c.bf16 %v241_v43, %v240_v42  ;;  %v243_v49 = vld [vmem:[%s2102_s9 + $0x178] sm:$0xff]  ;;  %v703_v43 = vld [vmem:[%s2109_s16] sm:$0xff] }
  0x30   :  { %1220 = vmatprep.subr.bf16.mxu1 %v1419_v2 }
  0x8c   :  { %v69_v53 = vpop.permute.xlu0 %68 }
  0x8d   :  { %v77_v57 = vmul.f32 %v837_v54, %v69_v53  ;;  %v274_v53 = vld [vmem:[%s2103_s10 + $0x70] sm:$0xff]  ;;  %v275_v54 = vld [vmem:[%s2103_s10 + $0x78] sm:$0xff] }
  0x90   :  { %v83_v56 = vpop.permute.xlu0 %82 }
  0x91   :  { %v91_v58 = vmul.f32 %v838_v55, %v83_v56  ;;  %v1221_v55 = vpack.c.bf16 %v275_v54, %v274_v53  ;;  %v362_v56 = vcombine.high %v354_v52, %v354_v52  ;;  %v516_v54 = vld [vmem:[%s2105_s12] sm:$0xff] }
  0x93   :  { %v92_v0 = vadd.f32 %v91_v58, %v77_v57  ;;  %1222 = vmatpush3.bf16.msra.mxu1 %v1221_v55  ;;  %v244_v57 = vld [vmem:[%s2102_s9 + $0x180] sm:$0xff]  ;;  %v245_v58 = vld [vmem:[%s2102_s9 + $0x188] sm:$0xff] }
  0x94   :  { %v1255_v59 = vpack.c.bf16 %v245_v58, %v244_v57  ;;  %v517_v55 = vld [vmem:[%s2105_s12 + $0x8] sm:$0xff]  ;;  %v519_v58 = vld [vmem:[%s2105_s12 + $0x18] sm:$0xff] }
  0x95   :  { %v100_v3 = vadd.f32 %v839_v61, %v92_v0  ;;  %v1769_v61 = vrot.slane %v347_v60, %v353_v50  ;;  %v229_v0 = vld [vmem:[%s2102_s9 + $0x108] sm:$0xff]  ;;  %v1285_v50 = vpack.c.bf16 %v243_v49, %v242_v48  ;;  %v1288_v57 = vpack.c.bf16 %v517_v55, %v516_v54  ;;  %v520_v60 = vld [vmem:[%s2105_s12 + $0x20] sm:$0xff]  ;;  %v705_v49 = vld [vmem:[%s2109_s16 + $0x10] sm:$0xff] }
  0x96   :  { %1256 = vmatprep.subr.bf16.mxu1 %v1255_v59  ;;  %v1257_v7 = vpack.c.bf16 %v229_v0, %v228_v63  ;;  %v522_v63 = vld [vmem:[%s2105_s12 + $0x30] sm:$0xff]  ;;  %v523_v0 = vld [vmem:[%s2105_s12 + $0x38] sm:$0xff] }
  0x97   :  { %1033 = vmatmul.mubr.f32.vlgmr.msra.gmra.mrb[0].mxu0 %v100_v3  ;;  %v246_v3 = vld [vmem:[%s2102_s9 + $0x190] sm:$0xff]  ;;  %v363_v8 = vcombine.high %v1769_v61, %v1769_v61 }
  0x98   :  { %1226 = vmatpush3.bf16.msra.mxu0 %v1225_v1  ;;  %432 = vmatprep.mubr.f32.mxu0 %v362_v56  ;;  %v518_v56 = vld [vmem:[%s2105_s12 + $0x10] sm:$0xff] }
  0x99   :  { %1228 = vmatprep.subr.bf16.mxu0 %v1227_v4  ;;  %v247_v4 = vld [vmem:[%s2102_s9 + $0x198] sm:$0xff]  ;;  %v1291_v59 = vpack.c.bf16 %v519_v58, %v518_v56  ;;  %v709_v55 = vld [vmem:[%s2109_s16 + $0x30] sm:$0xff]  ;;  %v712_v58 = vld [vmem:[%s2109_s16 + $0x48] sm:$0xff] }
  0x9c   :  { %1230 = vmatpush3.bf16.msra.mxu0 %v1229_v9 }
  0x9d   :  { %1232 = vmatprep.subr.bf16.mxu0 %v1231_v10  ;;  %v1259_v10 = vpack.c.bf16 %v247_v4, %v246_v3  ;;  %v524_v3 = vld [vmem:[%s2105_s12 + $0x40] sm:$0xff]  ;;  %v525_v4 = vld [vmem:[%s2105_s12 + $0x48] sm:$0xff] }
  0xa0   :  { %1234 = vmatpush3.bf16.msra.mxu0 %v1233_v16  ;;  %v1261_v16 = vpack.c.bf16 %v231_v12, %v230_v11  ;;  %v530_v12 = vld [vmem:[%s2105_s12 + $0x70] sm:$0xff] }
  0xa1   :  { %1236 = vmatprep.subr.bf16.mxu0 %v1235_v17  ;;  %v1263_v17 = vpack.c.bf16 %v249_v14, %v248_v13  ;;  %v531_v13 = vld [vmem:[%s2105_s12 + $0x78] sm:$0xff] }
  0xa2   :  { %v1309_v14 = vpack.c.bf16 %v531_v13, %v530_v12  ;;  %v843_v13 = vld [vmem:[%s2108_s15] ss:$0 sm:$0xff] }
  0xa4   :  { %1238 = vmatpush3.bf16.msra.mxu0 %v1237_v22  ;;  %v1265_v22 = vpack.c.bf16 %v233_v19, %v232_v18  ;;  %v612_v19 = vld [vmem:[%s2107_s14 + $0x10] sm:$0xff] }
  0xa5   :  { %1240 = vmatprep.subr.bf16.mxu0 %v1239_v23  ;;  %v1267_v23 = vpack.c.bf16 %v251_v21, %v250_v20  ;;  %v613_v20 = vld [vmem:[%s2107_s14 + $0x18] sm:$0xff] }
  0xa6   :  { %v1315_v21 = vpack.c.bf16 %v613_v20, %v612_v19 }
  0xa8   :  { %1242 = vmatpush3.bf16.msra.mxu0 %v1241_v28  ;;  %v1269_v28 = vpack.c.bf16 %v235_v25, %v234_v24  ;;  %v616_v25 = vld [vmem:[%s2107_s14 + $0x30] sm:$0xff] }
  0xa9   :  { %1244 = vmatprep.subr.bf16.mxu0 %v1243_v29  ;;  %v1271_v29 = vpack.c.bf16 %v253_v27, %v252_v26  ;;  %v617_v26 = vld [vmem:[%s2107_s14 + $0x38] sm:$0xff] }
  0xaa   :  { %v1321_v27 = vpack.c.bf16 %v617_v26, %v616_v25 }
  0xac   :  { %1246 = vmatpush3.bf16.msra.mxu0 %v1245_v34  ;;  %v1273_v34 = vpack.c.bf16 %v237_v31, %v236_v30  ;;  %v620_v31 = vld [vmem:[%s2107_s14 + $0x50] sm:$0xff] }
  0xad   :  { %1248 = vmatprep.subr.bf16.mxu0 %v1247_v35  ;;  %v1275_v35 = vpack.c.bf16 %v255_v33, %v254_v32  ;;  %v621_v32 = vld [vmem:[%s2107_s14 + $0x58] sm:$0xff] }
  0xae   :  { %v1327_v33 = vpack.c.bf16 %v621_v32, %v620_v31 }
  0xb0   :  { %1250 = vmatpush3.bf16.msra.mxu0 %v1249_v40  ;;  %v1277_v40 = vpack.c.bf16 %v239_v37, %v238_v36 }
  0xb1   :  { %1252 = vmatprep.subr.bf16.mxu0 %v1251_v41  ;;  %v1279_v41 = vpack.c.bf16 %v257_v39, %v256_v38 }
  0xb4   :  { %1254 = vmatpush3.bf16.msra.mxu0 %v1253_v44  ;;  %v258_v44 = vld [vmem:[%s2102_s9 + $0x1f0] sm:$0xff] }
  0xb5   :  { %1287 = vmatprep.subr.bf16.mxu0 %v1419_v2  ;;  %v1283_v47 = vpack.c.bf16 %v259_v45, %v258_v44  ;;  %v704_v44 = vld [vmem:[%s2109_s16 + $0x8] sm:$0xff]  ;;  %v841_v45 = vld [vmem:[%s2104_s11] ss:$0 sm:$0xff] }
  0xb7   :  { %433 = vmatmul.mubr.f32.vlgmr.msra.gmra.mrb[2].mxu0 %v354_v52 }
  0xb8   :  { %1102 = vmatprep.mubr.msk.f32.mxu0 %vm1420_vm0, %v1421_v15  ;;  %1289 = vmatpush3.bf16.msra.mxu0 %v1288_v57  ;;  %v711_v57 = vld [vmem:[%s2109_s16 + $0x40] sm:$0xff] }
  0xb9   :  { %1290 = vmatprep.subr.bf16.mxu0 %v1419_v2 }
  0xbc   :  { %1292 = vmatpush3.bf16.msra.mxu0 %v1291_v59  ;;  %v1348_v59 = vpack.c.bf16 %v712_v58, %v711_v57 }
  0xbd   :  { %1293 = vmatprep.subr.bf16.mxu0 %v1419_v2 }
 0x16a   :  { %v190_v1 = vpop.f32.mrb[0].mxu0 }
 0x16b   :  { %v191_v5 = vadd.f32 %v840_v62, %v190_v1  ;;  %v1034_v6 = vpop.f32.mrb[1].mxu0  ;;  %v1297_v1 = vpack.c.bf16 %v523_v0, %v522_v63  ;;  %v715_v63 = vld [vmem:[%s2109_s16 + $0x60] sm:$0xff]  ;;  %v716_v0 = vld [vmem:[%s2109_s16 + $0x68] sm:$0xff] }
 0x16c   :  { %v526_v6 = vld [vmem:[%s2105_s12 + $0x50] sm:$0xff] }
 0x16d   :  { %v194_v9 = vmax.f32 %v191_v5, 0.0  ;;  %v1300_v5 = vpack.c.bf16 %v525_v4, %v524_v3  ;;  %v624_v3 = vld [vmem:[%s2107_s14 + $0x70] sm:$0xff]  ;;  %v625_v4 = vld [vmem:[%s2107_s14 + $0x78] sm:$0xff] }
 0x16f   :  { %1068 = vmatmul.mubr.f32.vlgmr.msra.gmra.mrb[0].mxu1 %v194_v9  ;;  %v528_v9 = vld [vmem:[%s2105_s12 + $0x60] sm:$0xff] }
 0x170   :  { %1258 = vmatpush3.bf16.msra.mxu1 %v1257_v7  ;;  %502 = vmatprep.mubr.f32.mxu1 %v363_v8  ;;  %v527_v7 = vld [vmem:[%s2105_s12 + $0x58] sm:$0xff] }
 0x171   :  { %1260 = vmatprep.subr.bf16.mxu1 %v1259_v10  ;;  %v1303_v8 = vpack.c.bf16 %v527_v7, %v526_v6  ;;  %v529_v10 = vld [vmem:[%s2105_s12 + $0x68] sm:$0xff]  ;;  %v1333_v6 = vpack.c.bf16 %v625_v4, %v624_v3  ;;  %v718_v7 = vld [vmem:[%s2109_s16 + $0x78] sm:$0xff] }
 0x172   :  { %v1306_v11 = vpack.c.bf16 %v529_v10, %v528_v9 }
 0x174   :  { %1262 = vmatpush3.bf16.msra.mxu1 %v1261_v16  ;;  %v610_v16 = vld [vmem:[%s2107_s14] sm:$0xff] }
 0x175   :  { %1264 = vmatprep.subr.bf16.mxu1 %v1263_v17  ;;  %v611_v17 = vld [vmem:[%s2107_s14 + $0x8] sm:$0xff] }
 0x176   :  { %v1312_v18 = vpack.c.bf16 %v611_v17, %v610_v16 }
 0x178   :  { %1266 = vmatpush3.bf16.msra.mxu1 %v1265_v22  ;;  %v614_v22 = vld [vmem:[%s2107_s14 + $0x20] sm:$0xff] }
 0x179   :  { %1268 = vmatprep.subr.bf16.mxu1 %v1267_v23  ;;  %v615_v23 = vld [vmem:[%s2107_s14 + $0x28] sm:$0xff] }
 0x17a   :  { %v1318_v24 = vpack.c.bf16 %v615_v23, %v614_v22 }
 0x17c   :  { %1270 = vmatpush3.bf16.msra.mxu1 %v1269_v28  ;;  %v618_v28 = vld [vmem:[%s2107_s14 + $0x40] sm:$0xff] }
 0x17d   :  { %1272 = vmatprep.subr.bf16.mxu1 %v1271_v29  ;;  %v619_v29 = vld [vmem:[%s2107_s14 + $0x48] sm:$0xff] }
 0x17e   :  { %v1324_v30 = vpack.c.bf16 %v619_v29, %v618_v28 }
 0x180   :  { %1274 = vmatpush3.bf16.msra.mxu1 %v1273_v34  ;;  %v622_v34 = vld [vmem:[%s2107_s14 + $0x60] sm:$0xff] }
 0x181   :  { %1276 = vmatprep.subr.bf16.mxu1 %v1275_v35  ;;  %v623_v35 = vld [vmem:[%s2107_s14 + $0x68] sm:$0xff] }
 0x182   :  { %v1330_v36 = vpack.c.bf16 %v623_v35, %v622_v34 }
 0x184   :  { %1278 = vmatpush3.bf16.msra.mxu1 %v1277_v40 }
 0x185   :  { %1280 = vmatprep.subr.bf16.mxu1 %v1279_v41 }
 0x188   :  { %1282 = vmatpush3.bf16.msra.mxu1 %v1281_v46 }
 0x189   :  { %1284 = vmatprep.subr.bf16.mxu1 %v1283_v47  ;;  %v1336_v47 = vpack.c.bf16 %v704_v44, %v703_v43 }
 0x18a   :  { %v911_v51 = vpop.f32.mrb[2].mxu0 }
 0x18b   :  { %v912_v52 = vpop.f32.mrb[3].mxu0 }
 0x18c   :  { %1286 = vmatpush3.bf16.msra.mxu1 %v1285_v50  ;;  %v1870_v53 = vadd.f32 %v912_v52, %v911_v51  ;;  %v706_v50 = vld [vmem:[%s2109_s16 + $0x18] sm:$0xff]  ;;  %v707_v52 = vld [vmem:[%s2109_s16 + $0x20] sm:$0xff] }
 0x18d   :  { %1311 = vmatprep.subr.bf16.mxu1 %v1419_v2  ;;  %v1339_v51 = vpack.c.bf16 %v706_v50, %v705_v49 }
 0x18f   :  { %503 = vmatmul.mubr.f32.vlgmr.msra.gmra.mrb[2].mxu1 %v1769_v61  ;;  %v521_v61 = vld [vmem:[%s2105_s12 + $0x28] sm:$0xff] }
 0x190   :  { %1137 = vmatprep.mubr.msk.f32.mxu1 %vm1420_vm0, %v1421_v15  ;;  %v1294_v62 = vpack.c.bf16 %v521_v61, %v520_v60  ;;  %1313 = vmatpush3.bf16.msra.mxu1 %v1312_v18  ;;  %v713_v60 = vld [vmem:[%s2109_s16 + $0x50] sm:$0xff]  ;;  %v714_v61 = vld [vmem:[%s2109_s16 + $0x58] sm:$0xff] }
 0x191   :  { %1314 = vmatprep.subr.bf16.mxu1 %v1419_v2 }
 0x192   :  { %1295 = vmatpush3.bf16.msra.mxu0 %v1294_v62  ;;  %v1351_v62 = vpack.c.bf16 %v714_v61, %v713_v60 }
 0x193   :  { %1296 = vmatprep.subr.bf16.mxu0 %v1419_v2 }
 0x194   :  { %1316 = vmatpush3.bf16.msra.mxu1 %v1315_v21 }
 0x195   :  { %1317 = vmatprep.subr.bf16.mxu1 %v1419_v2 }
 0x196   :  { %1298 = vmatpush3.bf16.msra.mxu0 %v1297_v1  ;;  %v1354_v1 = vpack.c.bf16 %v716_v0, %v715_v63 }
 0x197   :  { %1299 = vmatprep.subr.bf16.mxu0 %v1419_v2 }
 0x198   :  { %1319 = vmatpush3.bf16.msra.mxu1 %v1318_v24 }
 0x199   :  { %1320 = vmatprep.subr.bf16.mxu1 %v1419_v2 }
 0x19a   :  { %1301 = vmatpush3.bf16.msra.mxu0 %v1300_v5  ;;  %v717_v5 = vld [vmem:[%s2109_s16 + $0x70] sm:$0xff] }
 0x19b   :  { %1302 = vmatprep.subr.bf16.mxu0 %v1419_v2 }
 0x19c   :  { %1322 = vmatpush3.bf16.msra.mxu1 %v1321_v27 }
 0x19d   :  { %1323 = vmatprep.subr.bf16.mxu1 %v1419_v2 }
 0x19e   :  { %1304 = vmatpush3.bf16.msra.mxu0 %v1303_v8  ;;  %v1357_v8 = vpack.c.bf16 %v718_v7, %v717_v5 }
 0x19f   :  { %1305 = vmatprep.subr.bf16.mxu0 %v1419_v2 }
 0x1a0   :  { %1325 = vmatpush3.bf16.msra.mxu1 %v1324_v30 }
 0x1a1   :  { %1326 = vmatprep.subr.bf16.mxu1 %v1419_v2 }
 0x1a2   :  { %1307 = vmatpush3.bf16.msra.mxu0 %v1306_v11 }
 0x1a3   :  { %1308 = vmatprep.subr.bf16.mxu0 %v1419_v2 }
 0x1a4   :  { %1328 = vmatpush3.bf16.msra.mxu1 %v1327_v33 }
 0x1a5   :  { %1329 = vmatprep.subr.bf16.mxu1 %v1419_v2 }
 0x1a6   :  { %1310 = vmatpush3.bf16.msra.mxu0 %v1309_v14  ;;  %v844_v14 = vld [vmem:[%s2110_s17] ss:$0 sm:$0xff] }
 0x1a7   :  { %1335 = vmatprep.subr.bf16.mxu0 %v1419_v2 }
 0x1a8   :  { %1331 = vmatpush3.bf16.msra.mxu1 %v1330_v36 }
 0x1a9   :  { %1332 = vmatprep.subr.bf16.mxu1 %v1419_v2 }
 0x1ac   :  { %1334 = vmatpush3.bf16.msra.mxu1 %v1333_v6 }
 0x242   :  { %v342_v37 = vpop.f32.mrb[0].mxu1 }
 0x243   :  { %v435_v38 = vadd.f32 %v1870_v53, %v342_v37  ;;  %v1069_v39 = vpop.f32.mrb[1].mxu1  ;;  %v708_v53 = vld [vmem:[%s2109_s16 + $0x28] sm:$0xff] }
 0x244   :  { %v1342_v54 = vpack.c.bf16 %v708_v53, %v707_v52 }
 0x262   :  { %v946_v40 = vpop.f32.mrb[2].mxu1 }
 0x263   :  { %v947_v41 = vpop.f32.mrb[3].mxu1 }
 0x264   :  { %v948_v42 = vadd.f32 %v947_v41, %v946_v40 }
 0x266   :  { %v505_v46 = vadd.f32 %v948_v42, %v435_v38 }
 0x268   :  { %v515_v48 = vadd.f32 %v841_v45, %v505_v46 }
 0x26a   :  { %1103 = vmatmul.mubr.f32.vlgmr.msra.gmra.mrb[4].mxu0 %v515_v48 }
 0x26b   :  { %1337 = vmatpush3.bf16.msra.mxu0 %v1336_v47  ;;  %1172 = vmatprep.mubr.msk.f32.mxu0 %vm1420_vm0, %v1421_v15  ;;  %v710_v15 = vld [vmem:[%s2109_s16 + $0x38] sm:$0xff]  ;;  %s1423_s16 = smov [#allocation2]  }
 0x26c   :  { %1338 = vmatprep.subr.bf16.mxu0 %v1419_v2  ;;  %v1345_v56 = vpack.c.bf16 %v710_v15, %v709_v55  ;;  %s811_s6 = sshll.u32 %s1423_s16, 4  ;;  %s812_s6 = int_to_ptr.vmem [resolvable:$true] %s811_s6 }
 0x26d   :  { %p1375_p1 = scmp.lt.s32.totalorder %s812_s6, %s812_s6 }
 0x26f   :  { %1340 = vmatpush3.bf16.msra.mxu0 %v1339_v51 }
 0x270   :  { %1341 = vmatprep.subr.bf16.mxu0 %v1419_v2 }
 0x273   :  { %1343 = vmatpush3.bf16.msra.mxu0 %v1342_v54 }
 0x274   :  { %1344 = vmatprep.subr.bf16.mxu0 %v1419_v2 }
 0x277   :  { %1346 = vmatpush3.bf16.msra.mxu0 %v1345_v56 }
 0x278   :  { %1347 = vmatprep.subr.bf16.mxu0 %v1419_v2 }
 0x27b   :  { %1349 = vmatpush3.bf16.msra.mxu0 %v1348_v59 }
 0x27c   :  { %1350 = vmatprep.subr.bf16.mxu0 %v1419_v2 }
 0x27f   :  { %1352 = vmatpush3.bf16.msra.mxu0 %v1351_v62 }
 0x280   :  { %1353 = vmatprep.subr.bf16.mxu0 %v1419_v2 }
 0x283   :  { %1355 = vmatpush3.bf16.msra.mxu0 %v1354_v1 }
 0x284   :  { %1356 = vmatprep.subr.bf16.mxu0 %v1419_v2  ;;  %v842_v2 = vld [vmem:[%s2106_s13] ss:$0 sm:$0xff]  ;;  %s1370_s13 = scalar_lea.vmem %s812_s6, 32 }
 0x285   :  { %p1371_p0 = scmp.ne.s32.totalorder %s812_s6, %s1370_s13  ;;  %p1376_p2 = scmp.lt.s32.totalorder %s1370_s13, %s1370_s13 }
 0x287   :  { %1358 = vmatpush3.bf16.msra.mxu0 %v1357_v8  ;;  %p1377_p3 = por %p1376_p2, %p1375_p1 }
 0x289   :  { %p1378_p4 = pnand %p1377_p3, %p1371_p0 }
 0x33d   :  { %v605_v9 = vpop.f32.mrb[4].mxu0 }
 0x33e   :  { %v606_v10 = vadd.f32 %v842_v2, %v605_v9  ;;  %v1104_v11 = vpop.f32.mrb[5].mxu0 }
 0x340   :  { %v609_v12 = vmax.f32 %v606_v10, 0.0 }
 0x342   :  { %1138 = vmatmul.mubr.f32.vlgmr.msra.gmra.mrb[4].mxu1 %v609_v12  ;;  %1173 = vmatmul.mubr.f32.vlgmr.msra.gmra.mrb[6].mxu0 %v609_v12 }
 0x415   :  { %v699_v16 = vpop.f32.mrb[4].mxu1  ;;  %v792_v17 = vpop.f32.mrb[6].mxu0 }
 0x416   :  { %v700_v18 = vadd.f32 %v843_v13, %v699_v16  ;;  %v793_v19 = vadd.f32 %v844_v14, %v792_v17  ;;  %v1139_v20 = vpop.f32.mrb[5].mxu1  ;;  %v1174_v21 = vpop.f32.mrb[7].mxu0 }
 0x418   :  { %v799_v22 = vmul.f32 1.442695, %v793_v19  ;;  %797 = vst.msk [vmem:[#allocation2] sm:$0x3] %vm796_vm1, %v700_v18  ;;  %798 = vst.msk [vmem:[#allocation4] sm:$0x3] %vm796_vm1, %v793_v19 }
 0x419   :  { %1381 = shalt.err (!%p1378_p4)
}
 0x41a   :  { %s1382_s7 = scalar_lea.hbm %s2111_s18, 32 }
 0x41b   :  { %p1383_p5 = scmp.ne.s32.totalorder %s2111_s18, %s1382_s7  ;;  %p1386_p6 = scmp.lt.u32.totalorder %s1382_s7, %s2111_s18 }
 0x41d   :  { %p1388_p7 = pnand %p1386_p6, %p1383_p5 }
 0x41f   :  { %1391 = shalt.err (!%p1388_p7)
}
 0x420   :  { %814 = dma.vmem_to_hbm [thread:$0]  %s812_s6, 32, %s2111_s18, [#allocation3]   ;;  %1368 = vpow2.f32 %v799_v22 }
 0x421   :  { %s1392_s9 = scalar_lea.vmem %s2053_s30, 32  ;;  %p1397_p9 = scmp.lt.s32.totalorder %s2053_s30, %s2053_s30 }
 0x422   :  { %p1393_p8 = scmp.ne.s32.totalorder %s2053_s30, %s1392_s9  ;;  %p1398_p10 = scmp.lt.s32.totalorder %s1392_s9, %s1392_s9 }
 0x424   :  { %p1399_p11 = por %p1398_p10, %p1397_p9 }
 0x426   :  { %p1400_p12 = pnand %p1399_p11, %p1393_p8 }
 0x428   :  { %1403 = shalt.err (!%p1400_p12)
}
 0x429   :  { %s1404_s11 = scalar_lea.hbm %s2112_s19, 32 }
 0x42a   :  { %p1405_p13 = scmp.ne.s32.totalorder %s2112_s19, %s1404_s11  ;;  %p1408_p0 = scmp.lt.u32.totalorder %s1404_s11, %s2112_s19 }
 0x42c   :  { %p1410_p1 = pnand %p1408_p0, %p1405_p13 }
 0x42e   :  { %1413 = shalt.err (!%p1410_p1)
}
 0x42f   :  { %824 = dma.vmem_to_hbm [thread:$0]  %s2053_s30, 32, %s2112_s19, [#allocation5]   ;;  %v1369_v24 = vpop.eup %1368 }
 0x430   :  { %s2123_s27 = sld [smem:[#allocation11_spill]] }
 0x436   :  { %v801_v23 = vld [vmem:[%s2123_s27] sm:$0x3] }
 0x437   :  { %v802_v25 = vmul.f32 %v1369_v24, %v801_v23 }
 0x439   :  { %v803_v26 = vadd.f32 %v802_v25, %v700_v18 }
 0x43b   :  { %804 = vst.msk [vmem:[%s2113_s20] sm:$0x3] %vm796_vm1, %v803_v26 }
 0x43c   :  { %1414 = dma.done.wait [#allocation3], 32  }
 0x43d   :  { %1415 = vsyncadd [#allocation3], 4294967264 }
 0x43e   :  { %1416 = dma.done.wait [#allocation5], 32  }
 0x43f   :  { %1417 = vsyncadd [#allocation5], 4294967264 }
 0x440   :  { %835 = vsyncpa [#allocation3], 1 }
 0x441   :  { %836 = vsyncpa [#allocation5], 1 }

// kernel: ivae_forward.13
= control target key start
LH: loop header
LB: loop body
LE: loop exit
PB: predicated region body
PF: predicated region fallthrough
CT: control target
= control target key end

     0   :  { %vm55_vm0 = vcmask 1041408   ;;  %vm1092_vm1 = vmmov 1   ;;  %v1093_v3 = vmov 0.0   ;;  %vm51_vm3 = vcmask 80896   ;;  %s1971_s1 = inlined_call_operand.vmem [shape: f32[10,512], index: 1, kind: input, shape index: {}]   ;;  %s1972_s0 = inlined_call_operand.vmem [shape: f32[2,10], index: 0, kind: input, shape index: {}]   ;;  %s1973_s3 = inlined_call_operand.vmem [shape: f32[512,512], index: 3, kind: input, shape index: {}]   ;;  %s1974_s2 = inlined_call_operand.vmem [shape: f32[1,512], index: 2, kind: input, shape index: {}]   ;;  %s1975_s4 = inlined_call_operand.vmem [shape: f32[1,512], index: 4, kind: input, shape index: {}]   ;;  %s1976_s5 = inlined_call_operand.vmem [shape: f32[2,512], index: 5, kind: output, shape index: {}]  }
   0x1   :  { %v22_v0 = vld [vmem:[%s1971_s1 + $0x8] sm:$0xff]  ;;  %vm1131_vm2 = vmpackc.low %vm55_vm0, %vm1092_vm1  ;;  %132 = vmatprep.mubr.f32.mxu0 %v1093_v3  ;;  %203 = vmatprep.mubr.f32.mxu1 %v1093_v3  ;;  %v21_v5 = vld [vmem:[%s1971_s1] sm:$0xff] }
   0x2   :  { %v26_v1 = vld [vmem:[%s1971_s1 + $0x28] sm:$0x3]  ;;  %v25_v6 = vld [vmem:[%s1971_s1 + $0x20] sm:$0x3]  ;;  %v24_v9 = vld [vmem:[%s1971_s1 + $0x18] sm:$0xff] }
   0x3   :  { %v813_v4 = vpack.c.bf16 %v26_v1, %v22_v0  ;;  %v816_v7 = vpack.c.bf16 %v25_v6, %v21_v5  ;;  %v20_v8 = vld [vmem:[%s1972_s0] sm:$0x3]  ;;  %v28_v10 = vld [vmem:[%s1971_s1 + $0x38] sm:$0x3]  ;;  %v23_v11 = vld [vmem:[%s1971_s1 + $0x10] sm:$0xff] }
   0x4   :  { %v819_v12 = vpack.c.bf16 %v28_v10, %v24_v9  ;;  %v27_v13 = vld [vmem:[%s1971_s1 + $0x30] sm:$0x3]  ;;  %v215_v14 = vld [vmem:[%s1973_s3 + $0x8] sm:$0xff]  ;;  %v217_v18 = vld [vmem:[%s1973_s3 + $0x18] sm:$0xff] }
   0x5   :  { %815 = vmatprep.subr.msk.bf16.mxu0 %vm1131_vm2, %v813_v4  ;;  %v219_v15 = vld [vmem:[%s1973_s3 + $0x28] sm:$0xff]  ;;  %v822_v16 = vpack.c.bf16 %v27_v13, %v23_v11  ;;  %v221_v19 = vld [vmem:[%s1973_s3 + $0x38] sm:$0xff]  ;;  %v214_v20 = vld [vmem:[%s1973_s3] sm:$0xff] }
   0x6   :  { %818 = vmatpush1.bf16.msk.msra.mxu0 %vm1131_vm2, %v816_v7  ;;  %v825_v17 = vpack.c.bf16 %v219_v15, %v215_v14  ;;  %821 = vmatprep.subr.msk.bf16.mxu1 %vm1131_vm2, %v819_v12  ;;  %v953_v21 = vpack.c.bf16 %v221_v19, %v217_v18  ;;  %v218_v22 = vld [vmem:[%s1973_s3 + $0x20] sm:$0xff]  ;;  %v216_v23 = vld [vmem:[%s1973_s3 + $0x10] sm:$0xff]  ;;  %v223_v27 = vld [vmem:[%s1973_s3 + $0x48] sm:$0xff] }
   0x7   :  { %v220_v24 = vld [vmem:[%s1973_s3 + $0x30] sm:$0xff]  ;;  %824 = vmatpush1.bf16.msk.msra.mxu1 %vm1131_vm2, %v822_v16  ;;  %v827_v25 = vpack.c.bf16 %v218_v22, %v214_v20  ;;  %v227_v28 = vld [vmem:[%s1973_s3 + $0x68] sm:$0xff]  ;;  %v225_v29 = vld [vmem:[%s1973_s3 + $0x58] sm:$0xff] }
   0x8   :  { %826 = vmatprep.subr.bf16.mxu0 %v825_v17  ;;  %v955_v26 = vpack.c.bf16 %v220_v24, %v216_v23  ;;  %954 = vmatprep.subr.bf16.mxu1 %v953_v21  ;;  %v829_v30 = vpack.c.bf16 %v227_v28, %v223_v27  ;;  %v229_v31 = vld [vmem:[%s1973_s3 + $0x78] sm:$0xff]  ;;  %v222_v32 = vld [vmem:[%s1973_s3 + $0x40] sm:$0xff]  ;;  %v224_v36 = vld [vmem:[%s1973_s3 + $0x50] sm:$0xff] }
   0x9   :  { %809 = vmatmul.mubr.msk.f32.vlgmr.msra.gmra.mrb[0].mxu0 %vm51_vm3, %v20_v8  ;;  %v226_v33 = vld [vmem:[%s1973_s3 + $0x60] sm:$0xff]  ;;  %v957_v34 = vpack.c.bf16 %v229_v31, %v225_v29  ;;  %v228_v37 = vld [vmem:[%s1973_s3 + $0x70] sm:$0xff]  ;;  %v231_v38 = vld [vmem:[%s1973_s3 + $0x88] sm:$0xff] }
   0xa   :  { %828 = vmatpush1.bf16.msra.mxu0 %v827_v25  ;;  %v831_v35 = vpack.c.bf16 %v226_v33, %v222_v32  ;;  %812 = vmatmul.mubr.msk.f32.vlgmr.msra.gmra.mrb[0].mxu1 %vm51_vm3, %v20_v8  ;;  %v235_v39 = vld [vmem:[%s1973_s3 + $0xa8] sm:$0xff]  ;;  %v233_v40 = vld [vmem:[%s1973_s3 + $0x98] sm:$0xff]  ;;  %v959_v42 = vpack.c.bf16 %v228_v37, %v224_v36  ;;  %v230_v44 = vld [vmem:[%s1973_s3 + $0x80] sm:$0xff] }
   0xb   :  { %830 = vmatprep.subr.bf16.mxu0 %v829_v30  ;;  %v237_v41 = vld [vmem:[%s1973_s3 + $0xb8] sm:$0xff]  ;;  %956 = vmatpush1.bf16.msra.mxu1 %v955_v26  ;;  %v833_v43 = vpack.c.bf16 %v235_v39, %v231_v38  ;;  %v234_v45 = vld [vmem:[%s1973_s3 + $0xa0] sm:$0xff]  ;;  %v232_v46 = vld [vmem:[%s1973_s3 + $0x90] sm:$0xff] }
   0xc   :  { %958 = vmatprep.subr.bf16.mxu1 %v957_v34  ;;  %v961_v47 = vpack.c.bf16 %v237_v41, %v233_v40  ;;  %v236_v48 = vld [vmem:[%s1973_s3 + $0xb0] sm:$0xff]  ;;  %v239_v49 = vld [vmem:[%s1973_s3 + $0xc8] sm:$0xff]  ;;  %v835_v51 = vpack.c.bf16 %v234_v45, %v230_v44  ;;  %v241_v52 = vld [vmem:[%s1973_s3 + $0xd8] sm:$0xff] }
   0xd   :  { %v243_v50 = vld [vmem:[%s1973_s3 + $0xe8] sm:$0xff]  ;;  %v245_v53 = vld [vmem:[%s1973_s3 + $0xf8] sm:$0xff]  ;;  %v238_v55 = vld [vmem:[%s1973_s3 + $0xc0] sm:$0xff]  ;;  %v963_v57 = vpack.c.bf16 %v236_v48, %v232_v46 }
   0xe   :  { %832 = vmatpush1.bf16.msra.mxu0 %v831_v35  ;;  %v837_v54 = vpack.c.bf16 %v243_v50, %v239_v49  ;;  %v242_v56 = vld [vmem:[%s1973_s3 + $0xe0] sm:$0xff]  ;;  %v247_v58 = vld [vmem:[%s1973_s3 + $0x108] sm:$0xff]  ;;  %v965_v60 = vpack.c.bf16 %v245_v53, %v241_v52  ;;  %v240_v61 = vld [vmem:[%s1973_s3 + $0xd0] sm:$0xff] }
   0xf   :  { %834 = vmatprep.subr.bf16.mxu0 %v833_v43  ;;  %960 = vmatpush1.bf16.msra.mxu1 %v959_v42  ;;  %v251_v59 = vld [vmem:[%s1973_s3 + $0x128] sm:$0xff]  ;;  %v244_v62 = vld [vmem:[%s1973_s3 + $0xf0] sm:$0xff]  ;;  %v839_v63 = vpack.c.bf16 %v242_v56, %v238_v55  ;;  %v249_v0 = vld [vmem:[%s1973_s3 + $0x118] sm:$0xff] }
  0x10   :  { %962 = vmatprep.subr.bf16.mxu1 %v961_v47  ;;  %v253_v1 = vld [vmem:[%s1973_s3 + $0x138] sm:$0xff]  ;;  %v841_v2 = vpack.c.bf16 %v251_v59, %v247_v58  ;;  %v246_v3 = vld [vmem:[%s1973_s3 + $0x100] sm:$0xff]  ;;  %v967_v5 = vpack.c.bf16 %v244_v62, %v240_v61  ;;  %v255_v6 = vld [vmem:[%s1973_s3 + $0x148] sm:$0xff] }
  0x11   :  { %v250_v4 = vld [vmem:[%s1973_s3 + $0x120] sm:$0xff]  ;;  %v259_v7 = vld [vmem:[%s1973_s3 + $0x168] sm:$0xff]  ;;  %v969_v8 = vpack.c.bf16 %v253_v1, %v249_v0  ;;  %v248_v9 = vld [vmem:[%s1973_s3 + $0x110] sm:$0xff] }
  0x12   :  { %836 = vmatpush1.bf16.msra.mxu0 %v835_v51  ;;  %v252_v10 = vld [vmem:[%s1973_s3 + $0x130] sm:$0xff]  ;;  %v843_v11 = vpack.c.bf16 %v250_v4, %v246_v3  ;;  %v257_v12 = vld [vmem:[%s1973_s3 + $0x158] sm:$0xff]  ;;  %v845_v14 = vpack.c.bf16 %v259_v7, %v255_v6  ;;  %v254_v15 = vld [vmem:[%s1973_s3 + $0x140] sm:$0xff] }
  0x13   :  { %838 = vmatprep.subr.bf16.mxu0 %v837_v54  ;;  %964 = vmatpush1.bf16.msra.mxu1 %v963_v57  ;;  %v261_v13 = vld [vmem:[%s1973_s3 + $0x178] sm:$0xff]  ;;  %v258_v16 = vld [vmem:[%s1973_s3 + $0x160] sm:$0xff]  ;;  %v971_v17 = vpack.c.bf16 %v252_v10, %v248_v9  ;;  %v263_v18 = vld [vmem:[%s1973_s3 + $0x188] sm:$0xff] }
  0x14   :  { %966 = vmatprep.subr.bf16.mxu1 %v965_v60  ;;  %v267_v19 = vld [vmem:[%s1973_s3 + $0x1a8] sm:$0xff]  ;;  %v973_v20 = vpack.c.bf16 %v261_v13, %v257_v12  ;;  %v256_v21 = vld [vmem:[%s1973_s3 + $0x150] sm:$0xff]  ;;  %v847_v23 = vpack.c.bf16 %v258_v16, %v254_v15  ;;  %v265_v24 = vld [vmem:[%s1973_s3 + $0x198] sm:$0xff] }
  0x15   :  { %v260_v22 = vld [vmem:[%s1973_s3 + $0x170] sm:$0xff]  ;;  %v269_v25 = vld [vmem:[%s1973_s3 + $0x1b8] sm:$0xff]  ;;  %v849_v26 = vpack.c.bf16 %v267_v19, %v263_v18  ;;  %v262_v27 = vld [vmem:[%s1973_s3 + $0x180] sm:$0xff] }
  0x16   :  { %840 = vmatpush1.bf16.msra.mxu0 %v839_v63  ;;  %v266_v28 = vld [vmem:[%s1973_s3 + $0x1a0] sm:$0xff]  ;;  %v975_v29 = vpack.c.bf16 %v260_v22, %v256_v21  ;;  %v271_v30 = vld [vmem:[%s1973_s3 + $0x1c8] sm:$0xff]  ;;  %v977_v32 = vpack.c.bf16 %v269_v25, %v265_v24  ;;  %v264_v33 = vld [vmem:[%s1973_s3 + $0x190] sm:$0xff] }
  0x17   :  { %842 = vmatprep.subr.bf16.mxu0 %v841_v2  ;;  %968 = vmatpush1.bf16.msra.mxu1 %v967_v5  ;;  %v275_v31 = vld [vmem:[%s1973_s3 + $0x1e8] sm:$0xff]  ;;  %v268_v34 = vld [vmem:[%s1973_s3 + $0x1b0] sm:$0xff]  ;;  %v851_v35 = vpack.c.bf16 %v266_v28, %v262_v27  ;;  %v273_v36 = vld [vmem:[%s1973_s3 + $0x1d8] sm:$0xff] }
  0x18   :  { %970 = vmatprep.subr.bf16.mxu1 %v969_v8  ;;  %v277_v37 = vld [vmem:[%s1973_s3 + $0x1f8] sm:$0xff]  ;;  %v853_v38 = vpack.c.bf16 %v275_v31, %v271_v30  ;;  %v270_v39 = vld [vmem:[%s1973_s3 + $0x1c0] sm:$0xff]  ;;  %v979_v41 = vpack.c.bf16 %v268_v34, %v264_v33  ;;  %v279_v42 = vld [vmem:[%s1973_s3 + $0x208] sm:$0xff] }
  0x19   :  { %v274_v40 = vld [vmem:[%s1973_s3 + $0x1e0] sm:$0xff]  ;;  %v283_v43 = vld [vmem:[%s1973_s3 + $0x228] sm:$0xff]  ;;  %v981_v44 = vpack.c.bf16 %v277_v37, %v273_v36  ;;  %v272_v45 = vld [vmem:[%s1973_s3 + $0x1d0] sm:$0xff] }
  0x1a   :  { %844 = vmatpush1.bf16.msra.mxu0 %v843_v11  ;;  %v276_v46 = vld [vmem:[%s1973_s3 + $0x1f0] sm:$0xff]  ;;  %v855_v47 = vpack.c.bf16 %v274_v40, %v270_v39  ;;  %v281_v48 = vld [vmem:[%s1973_s3 + $0x218] sm:$0xff]  ;;  %v857_v50 = vpack.c.bf16 %v283_v43, %v279_v42  ;;  %v278_v51 = vld [vmem:[%s1973_s3 + $0x200] sm:$0xff] }
  0x1b   :  { %846 = vmatprep.subr.bf16.mxu0 %v845_v14  ;;  %972 = vmatpush1.bf16.msra.mxu1 %v971_v17  ;;  %v285_v49 = vld [vmem:[%s1973_s3 + $0x238] sm:$0xff]  ;;  %v282_v52 = vld [vmem:[%s1973_s3 + $0x220] sm:$0xff]  ;;  %v983_v53 = vpack.c.bf16 %v276_v46, %v272_v45  ;;  %v287_v54 = vld [vmem:[%s1973_s3 + $0x248] sm:$0xff] }
  0x1c   :  { %974 = vmatprep.subr.bf16.mxu1 %v973_v20  ;;  %v291_v55 = vld [vmem:[%s1973_s3 + $0x268] sm:$0xff]  ;;  %v985_v56 = vpack.c.bf16 %v285_v49, %v281_v48  ;;  %v280_v57 = vld [vmem:[%s1973_s3 + $0x210] sm:$0xff]  ;;  %v859_v59 = vpack.c.bf16 %v282_v52, %v278_v51  ;;  %v289_v60 = vld [vmem:[%s1973_s3 + $0x258] sm:$0xff] }
  0x1d   :  { %v284_v58 = vld [vmem:[%s1973_s3 + $0x230] sm:$0xff]  ;;  %v293_v61 = vld [vmem:[%s1973_s3 + $0x278] sm:$0xff]  ;;  %v861_v62 = vpack.c.bf16 %v291_v55, %v287_v54  ;;  %v286_v63 = vld [vmem:[%s1973_s3 + $0x240] sm:$0xff] }
  0x1e   :  { %848 = vmatpush1.bf16.msra.mxu0 %v847_v23  ;;  %v290_v0 = vld [vmem:[%s1973_s3 + $0x260] sm:$0xff]  ;;  %v987_v1 = vpack.c.bf16 %v284_v58, %v280_v57  ;;  %v295_v2 = vld [vmem:[%s1973_s3 + $0x288] sm:$0xff]  ;;  %v989_v4 = vpack.c.bf16 %v293_v61, %v289_v60  ;;  %v288_v5 = vld [vmem:[%s1973_s3 + $0x250] sm:$0xff] }
  0x1f   :  { %850 = vmatprep.subr.bf16.mxu0 %v849_v26  ;;  %976 = vmatpush1.bf16.msra.mxu1 %v975_v29  ;;  %v299_v3 = vld [vmem:[%s1973_s3 + $0x2a8] sm:$0xff]  ;;  %v292_v6 = vld [vmem:[%s1973_s3 + $0x270] sm:$0xff]  ;;  %v863_v7 = vpack.c.bf16 %v290_v0, %v286_v63  ;;  %v297_v8 = vld [vmem:[%s1973_s3 + $0x298] sm:$0xff] }
  0x20   :  { %978 = vmatprep.subr.bf16.mxu1 %v977_v32  ;;  %v301_v9 = vld [vmem:[%s1973_s3 + $0x2b8] sm:$0xff]  ;;  %v865_v10 = vpack.c.bf16 %v299_v3, %v295_v2  ;;  %v294_v11 = vld [vmem:[%s1973_s3 + $0x280] sm:$0xff]  ;;  %v991_v13 = vpack.c.bf16 %v292_v6, %v288_v5  ;;  %v303_v14 = vld [vmem:[%s1973_s3 + $0x2c8] sm:$0xff] }
  0x21   :  { %v298_v12 = vld [vmem:[%s1973_s3 + $0x2a0] sm:$0xff]  ;;  %v307_v15 = vld [vmem:[%s1973_s3 + $0x2e8] sm:$0xff]  ;;  %v993_v16 = vpack.c.bf16 %v301_v9, %v297_v8  ;;  %v296_v17 = vld [vmem:[%s1973_s3 + $0x290] sm:$0xff] }
  0x22   :  { %852 = vmatpush1.bf16.msra.mxu0 %v851_v35  ;;  %v300_v18 = vld [vmem:[%s1973_s3 + $0x2b0] sm:$0xff]  ;;  %v867_v19 = vpack.c.bf16 %v298_v12, %v294_v11  ;;  %v305_v20 = vld [vmem:[%s1973_s3 + $0x2d8] sm:$0xff]  ;;  %v869_v22 = vpack.c.bf16 %v307_v15, %v303_v14  ;;  %v302_v23 = vld [vmem:[%s1973_s3 + $0x2c0] sm:$0xff] }
  0x23   :  { %854 = vmatprep.subr.bf16.mxu0 %v853_v38  ;;  %980 = vmatpush1.bf16.msra.mxu1 %v979_v41  ;;  %v309_v21 = vld [vmem:[%s1973_s3 + $0x2f8] sm:$0xff]  ;;  %v306_v24 = vld [vmem:[%s1973_s3 + $0x2e0] sm:$0xff]  ;;  %v995_v25 = vpack.c.bf16 %v300_v18, %v296_v17  ;;  %v311_v26 = vld [vmem:[%s1973_s3 + $0x308] sm:$0xff] }
  0x24   :  { %982 = vmatprep.subr.bf16.mxu1 %v981_v44  ;;  %v315_v27 = vld [vmem:[%s1973_s3 + $0x328] sm:$0xff]  ;;  %v997_v28 = vpack.c.bf16 %v309_v21, %v305_v20  ;;  %v304_v29 = vld [vmem:[%s1973_s3 + $0x2d0] sm:$0xff]  ;;  %v871_v31 = vpack.c.bf16 %v306_v24, %v302_v23  ;;  %v313_v32 = vld [vmem:[%s1973_s3 + $0x318] sm:$0xff]  ;;  %v31_v21 = vlaneseq }
  0x25   :  { %v308_v30 = vld [vmem:[%s1973_s3 + $0x2f0] sm:$0xff]  ;;  %v317_v33 = vld [vmem:[%s1973_s3 + $0x338] sm:$0xff]  ;;  %v873_v34 = vpack.c.bf16 %v315_v27, %v311_v26  ;;  %v310_v35 = vld [vmem:[%s1973_s3 + $0x300] sm:$0xff] }
  0x26   :  { %856 = vmatpush1.bf16.msra.mxu0 %v855_v47  ;;  %v314_v36 = vld [vmem:[%s1973_s3 + $0x320] sm:$0xff]  ;;  %v999_v37 = vpack.c.bf16 %v308_v30, %v304_v29  ;;  %v319_v38 = vld [vmem:[%s1973_s3 + $0x348] sm:$0xff]  ;;  %v1001_v40 = vpack.c.bf16 %v317_v33, %v313_v32  ;;  %v312_v41 = vld [vmem:[%s1973_s3 + $0x310] sm:$0xff] }
  0x27   :  { %858 = vmatprep.subr.bf16.mxu0 %v857_v50  ;;  %984 = vmatpush1.bf16.msra.mxu1 %v983_v53  ;;  %v323_v39 = vld [vmem:[%s1973_s3 + $0x368] sm:$0xff]  ;;  %v316_v42 = vld [vmem:[%s1973_s3 + $0x330] sm:$0xff]  ;;  %v875_v43 = vpack.c.bf16 %v314_v36, %v310_v35  ;;  %v321_v44 = vld [vmem:[%s1973_s3 + $0x358] sm:$0xff] }
  0x28   :  { %986 = vmatprep.subr.bf16.mxu1 %v985_v56  ;;  %v325_v45 = vld [vmem:[%s1973_s3 + $0x378] sm:$0xff]  ;;  %v877_v46 = vpack.c.bf16 %v323_v39, %v319_v38  ;;  %v318_v47 = vld [vmem:[%s1973_s3 + $0x340] sm:$0xff]  ;;  %v1003_v49 = vpack.c.bf16 %v316_v42, %v312_v41  ;;  %v327_v50 = vld [vmem:[%s1973_s3 + $0x388] sm:$0xff] }
  0x29   :  { %v322_v48 = vld [vmem:[%s1973_s3 + $0x360] sm:$0xff]  ;;  %v331_v51 = vld [vmem:[%s1973_s3 + $0x3a8] sm:$0xff]  ;;  %v1005_v52 = vpack.c.bf16 %v325_v45, %v321_v44  ;;  %v320_v53 = vld [vmem:[%s1973_s3 + $0x350] sm:$0xff] }
  0x2a   :  { %860 = vmatpush1.bf16.msra.mxu0 %v859_v59  ;;  %v324_v54 = vld [vmem:[%s1973_s3 + $0x370] sm:$0xff]  ;;  %v879_v55 = vpack.c.bf16 %v322_v48, %v318_v47  ;;  %v329_v56 = vld [vmem:[%s1973_s3 + $0x398] sm:$0xff]  ;;  %v881_v58 = vpack.c.bf16 %v331_v51, %v327_v50  ;;  %v326_v59 = vld [vmem:[%s1973_s3 + $0x380] sm:$0xff] }
  0x2b   :  { %862 = vmatprep.subr.bf16.mxu0 %v861_v62  ;;  %988 = vmatpush1.bf16.msra.mxu1 %v987_v1  ;;  %v333_v57 = vld [vmem:[%s1973_s3 + $0x3b8] sm:$0xff]  ;;  %v330_v60 = vld [vmem:[%s1973_s3 + $0x3a0] sm:$0xff]  ;;  %v1007_v61 = vpack.c.bf16 %v324_v54, %v320_v53  ;;  %v328_v63 = vld [vmem:[%s1973_s3 + $0x390] sm:$0xff] }
  0x2c   :  { %990 = vmatprep.subr.bf16.mxu1 %v989_v4  ;;  %v1009_v62 = vpack.c.bf16 %v333_v57, %v329_v56  ;;  %v332_v0 = vld [vmem:[%s1973_s3 + $0x3b0] sm:$0xff]  ;;  %v883_v1 = vpack.c.bf16 %v330_v60, %v326_v59  ;;  %v335_v3 = vld [vmem:[%s1973_s3 + $0x3c8] sm:$0xff]  ;;  %v337_v5 = vld [vmem:[%s1973_s3 + $0x3d8] sm:$0xff] }
  0x2d   :  { %v1011_v2 = vpack.c.bf16 %v332_v0, %v328_v63  ;;  %v339_v4 = vld [vmem:[%s1973_s3 + $0x3e8] sm:$0xff]  ;;  %v334_v8 = vld [vmem:[%s1973_s3 + $0x3c0] sm:$0xff]  ;;  %v336_v12 = vld [vmem:[%s1973_s3 + $0x3d0] sm:$0xff] }
  0x2e   :  { %864 = vmatpush1.bf16.msra.mxu0 %v863_v7  ;;  %v885_v6 = vpack.c.bf16 %v339_v4, %v335_v3  ;;  %v341_v7 = vld [vmem:[%s1973_s3 + $0x3f8] sm:$0xff]  ;;  %v338_v9 = vld [vmem:[%s1973_s3 + $0x3e0] sm:$0xff]  ;;  %v343_v15 = vld [vmem:[%s1973_s3 + $0x408] sm:$0xff] }
  0x2f   :  { %866 = vmatprep.subr.bf16.mxu0 %v865_v10  ;;  %992 = vmatpush1.bf16.msra.mxu1 %v991_v13  ;;  %v1013_v10 = vpack.c.bf16 %v341_v7, %v337_v5  ;;  %v887_v11 = vpack.c.bf16 %v338_v9, %v334_v8  ;;  %v340_v13 = vld [vmem:[%s1973_s3 + $0x3f0] sm:$0xff]  ;;  %v345_v17 = vld [vmem:[%s1973_s3 + $0x418] sm:$0xff]  ;;  %v1568_v24 = vld [vmem:[%s1974_s2] sm:$0xf] }
  0x30   :  { %994 = vmatprep.subr.bf16.mxu1 %v993_v16  ;;  %v1015_v14 = vpack.c.bf16 %v340_v13, %v336_v12  ;;  %v347_v16 = vld [vmem:[%s1973_s3 + $0x428] sm:$0xff]  ;;  %v342_v30 = vld [vmem:[%s1973_s3 + $0x400] sm:$0xff]  ;;  %v344_v35 = vld [vmem:[%s1973_s3 + $0x410] sm:$0xff] }
  0x31   :  { %v889_v18 = vpack.c.bf16 %v347_v16, %v343_v15  ;;  %v348_v36 = vld [vmem:[%s1973_s3 + $0x430] sm:$0xff]  ;;  %v355_v39 = vld [vmem:[%s1973_s3 + $0x468] sm:$0xff]  ;;  %v357_v41 = vld [vmem:[%s1973_s3 + $0x478] sm:$0xff] }
  0x32   :  { %868 = vmatpush1.bf16.msra.mxu0 %v867_v19  ;;  %v349_v19 = vld [vmem:[%s1973_s3 + $0x438] sm:$0xff]  ;;  %v350_v47 = vld [vmem:[%s1973_s3 + $0x440] sm:$0xff]  ;;  %v352_v53 = vld [vmem:[%s1973_s3 + $0x450] sm:$0xff] }
  0x33   :  { %870 = vmatprep.subr.bf16.mxu0 %v869_v22  ;;  %996 = vmatpush1.bf16.msra.mxu1 %v995_v25  ;;  %v1017_v20 = vpack.c.bf16 %v349_v19, %v345_v17  ;;  %v1562_v22 = vshrl.u32 %v31_v21, 7  ;;  %v354_v48 = vld [vmem:[%s1973_s3 + $0x460] sm:$0xff]  ;;  %v356_v54 = vld [vmem:[%s1973_s3 + $0x470] sm:$0xff]  ;;  %v363_v56 = vld [vmem:[%s1973_s3 + $0x4a8] sm:$0xff] }
  0x34   :  { %998 = vmatprep.subr.bf16.mxu1 %v997_v28  ;;  %v361_v57 = vld [vmem:[%s1973_s3 + $0x498] sm:$0xff]  ;;  %v895_v60 = vpack.c.bf16 %v354_v48, %v350_v47  ;;  %v362_v63 = vld [vmem:[%s1973_s3 + $0x4a0] sm:$0xff]  ;;  %v364_v3 = vld [vmem:[%s1973_s3 + $0x4b0] sm:$0xff] }
  0x35   :  { %v33_v23 = vsub.s32 0, %v1562_v22  ;;  %v37_v25 = vsub.s32 1, %v1562_v22  ;;  %v45_v26 = vsub.s32 3, %v1562_v22  ;;  %v367_v4 = vld [vmem:[%s1973_s3 + $0x4c8] sm:$0xff]  ;;  %v373_v7 = vld [vmem:[%s1973_s3 + $0x4f8] sm:$0xff]  ;;  %v372_v15 = vld [vmem:[%s1973_s3 + $0x4f0] sm:$0xff] }
  0x36   :  { %872 = vmatpush1.bf16.msra.mxu0 %v871_v31  ;;  %v346_v31 = vld [vmem:[%s1973_s3 + $0x420] sm:$0xff]  ;;  %v371_v5 = vld [vmem:[%s1973_s3 + $0x4e8] sm:$0xff]  ;;  %v381_v19 = vld [vmem:[%s1973_s3 + $0x538] sm:$0xff] }
  0x37   :  { %874 = vmatprep.subr.bf16.mxu0 %v873_v34  ;;  %1000 = vmatpush1.bf16.msra.mxu1 %v999_v37  ;;  %v34_v27 = vrot.slane %v1568_v24, %v33_v23  ;;  %v38_v28 = vrot.slane %v1568_v24, %v37_v25  ;;  %v46_v32 = vrot.slane %v1568_v24, %v45_v26  ;;  %v351_v37 = vld [vmem:[%s1973_s3 + $0x448] sm:$0xff]  ;;  %v393_v48 = vld [vmem:[%s1973_s3 + $0x598] sm:$0xff] }
  0x38   :  { %1002 = vmatprep.subr.bf16.mxu1 %v1001_v40  ;;  %v353_v40 = vld [vmem:[%s1973_s3 + $0x458] sm:$0xff]  ;;  %v891_v45 = vpack.c.bf16 %v346_v31, %v342_v30  ;;  %v893_v51 = vpack.c.bf16 %v355_v39, %v351_v37  ;;  %v901_v12 = vpack.c.bf16 %v371_v5, %v367_v4  ;;  %v375_v16 = vld [vmem:[%s1973_s3 + $0x508] sm:$0xff]  ;;  %v376_v31 = vld [vmem:[%s1973_s3 + $0x510] sm:$0xff] }
  0x39   :  { %v379_v17 = vld [vmem:[%s1973_s3 + $0x528] sm:$0xff]  ;;  %v382_v39 = vld [vmem:[%s1973_s3 + $0x540] sm:$0xff]  ;;  %v400_v4 = vld [vmem:[%s1973_s3 + $0x5d0] sm:$0xff] }
  0x3a   :  { %876 = vmatpush1.bf16.msra.mxu0 %v875_v43  ;;  %v395_v47 = vld [vmem:[%s1973_s3 + $0x5a8] sm:$0xff]  ;;  %v404_v5 = vld [vmem:[%s1973_s3 + $0x5f0] sm:$0xff] }
  0x3b   :  { %878 = vmatprep.subr.bf16.mxu0 %v877_v46  ;;  %1004 = vmatpush1.bf16.msra.mxu1 %v1003_v49  ;;  %v1019_v46 = vpack.c.bf16 %v348_v36, %v344_v35  ;;  %v385_v35 = vld [vmem:[%s1973_s3 + $0x558] sm:$0xff] }
  0x3c   :  { %1006 = vmatprep.subr.bf16.mxu1 %v1005_v52  ;;  %v1021_v52 = vpack.c.bf16 %v357_v41, %v353_v40  ;;  %v389_v36 = vld [vmem:[%s1973_s3 + $0x578] sm:$0xff]  ;;  %v386_v40 = vld [vmem:[%s1973_s3 + $0x560] sm:$0xff] }
  0x3e   :  { %880 = vmatpush1.bf16.msra.mxu0 %v879_v55  ;;  %v359_v55 = vld [vmem:[%s1973_s3 + $0x488] sm:$0xff] }
  0x3f   :  { %882 = vmatprep.subr.bf16.mxu0 %v881_v58  ;;  %1008 = vmatpush1.bf16.msra.mxu1 %v1007_v61  ;;  %v365_v58 = vld [vmem:[%s1973_s3 + $0x4b8] sm:$0xff]  ;;  %v1023_v61 = vpack.c.bf16 %v356_v54, %v352_v53  ;;  %v897_v0 = vpack.c.bf16 %v363_v56, %v359_v55  ;;  %v394_v53 = vld [vmem:[%s1973_s3 + $0x5a0] sm:$0xff]  ;;  %v392_v56 = vld [vmem:[%s1973_s3 + $0x590] sm:$0xff] }
  0x40   :  { %1010 = vmatprep.subr.bf16.mxu1 %v1009_v62  ;;  %v358_v62 = vld [vmem:[%s1973_s3 + $0x480] sm:$0xff] }
  0x41   :  { %v899_v8 = vpack.c.bf16 %v362_v63, %v358_v62 }
  0x42   :  { %884 = vmatpush1.bf16.msra.mxu0 %v883_v1  ;;  %v1025_v1 = vpack.c.bf16 %v365_v58, %v361_v57  ;;  %v396_v57 = vld [vmem:[%s1973_s3 + $0x5b0] sm:$0xff]  ;;  %v399_v58 = vld [vmem:[%s1973_s3 + $0x5c8] sm:$0xff] }
  0x43   :  { %1012 = vmatpush1.bf16.msra.mxu1 %v1011_v2  ;;  %886 = vmatprep.subr.bf16.mxu0 %v885_v6  ;;  %v360_v2 = vld [vmem:[%s1973_s3 + $0x490] sm:$0xff]  ;;  %v369_v6 = vld [vmem:[%s1973_s3 + $0x4d8] sm:$0xff]  ;;  %v1043_v63 = vpack.c.bf16 %v396_v57, %v392_v56 }
  0x44   :  { %1014 = vmatprep.subr.bf16.mxu1 %v1013_v10  ;;  %v1027_v9 = vpack.c.bf16 %v364_v3, %v360_v2  ;;  %v366_v10 = vld [vmem:[%s1973_s3 + $0x4c0] sm:$0xff]  ;;  %v1029_v13 = vpack.c.bf16 %v373_v7, %v369_v6  ;;  %v407_v6 = vld [vmem:[%s1973_s3 + $0x608] sm:$0xff] }
  0x45   :  { %v411_v7 = vld [vmem:[%s1973_s3 + $0x628] sm:$0xff] }
  0x46   :  { %888 = vmatpush1.bf16.msra.mxu0 %v887_v11  ;;  %v370_v11 = vld [vmem:[%s1973_s3 + $0x4e0] sm:$0xff] }
  0x47   :  { %1016 = vmatpush1.bf16.msra.mxu1 %v1015_v14  ;;  %890 = vmatprep.subr.bf16.mxu0 %v889_v18  ;;  %v368_v14 = vld [vmem:[%s1973_s3 + $0x4d0] sm:$0xff]  ;;  %v377_v18 = vld [vmem:[%s1973_s3 + $0x518] sm:$0xff] }
  0x48   :  { %1018 = vmatprep.subr.bf16.mxu1 %v1017_v20  ;;  %v903_v20 = vpack.c.bf16 %v370_v11, %v366_v10  ;;  %v1031_v21 = vpack.c.bf16 %v372_v15, %v368_v14  ;;  %v1033_v30 = vpack.c.bf16 %v381_v19, %v377_v18  ;;  %v1047_v11 = vpack.c.bf16 %v404_v5, %v400_v4  ;;  %v415_v18 = vld [vmem:[%s1973_s3 + $0x648] sm:$0xff] }
  0x49   :  { %v921_v14 = vpack.c.bf16 %v411_v7, %v407_v6  ;;  %v419_v19 = vld [vmem:[%s1973_s3 + $0x668] sm:$0xff]  ;;  %v440_v6 = vld [vmem:[%s1973_s3 + $0x710] sm:$0xff] }
  0x4a   :  { %v444_v7 = vld [vmem:[%s1973_s3 + $0x730] sm:$0xff] }
  0xdc   :  { %v134_v29 = vpop.f32.mrb[0].mxu0 }
  0xdd   :  { %v135_v33 = vadd.f32 %v134_v29, %v34_v27  ;;  %v136_v34 = vpop.f32.mrb[1].mxu0  ;;  %v1605_v42 = vpop.f32.mrb[0].mxu1  ;;  %v374_v27 = vld [vmem:[%s1973_s3 + $0x500] sm:$0xff]  ;;  %v905_v29 = vpack.c.bf16 %v379_v17, %v375_v16  ;;  %v408_v16 = vld [vmem:[%s1973_s3 + $0x610] sm:$0xff] }
  0xde   :  { %v137_v38 = vadd.f32 %v136_v34, %v38_v28  ;;  %v207_v43 = vpop.f32.mrb[1].mxu1  ;;  %v378_v28 = vld [vmem:[%s1973_s3 + $0x520] sm:$0xff]  ;;  %v387_v34 = vld [vmem:[%s1973_s3 + $0x568] sm:$0xff]  ;;  %v412_v17 = vld [vmem:[%s1973_s3 + $0x630] sm:$0xff] }
  0xdf   :  { %v208_v49 = vadd.f32 %v207_v43, %v46_v32  ;;  %v210_v50 = vmax.f32 %v135_v33, 0.0  ;;  %v380_v32 = vld [vmem:[%s1973_s3 + $0x530] sm:$0xff]  ;;  %v383_v33 = vld [vmem:[%s1973_s3 + $0x548] sm:$0xff]  ;;  %v907_v37 = vpack.c.bf16 %v378_v28, %v374_v27  ;;  %v1037_v43 = vpack.c.bf16 %v389_v36, %v385_v35 }
  0xe0   :  { %v211_v44 = vmax.f32 %v137_v38, 0.0  ;;  %v1035_v38 = vpack.c.bf16 %v380_v32, %v376_v31  ;;  %v909_v41 = vpack.c.bf16 %v387_v34, %v383_v33  ;;  %v1051_v28 = vpack.c.bf16 %v412_v17, %v408_v16  ;;  %v416_v33 = vld [vmem:[%s1973_s3 + $0x650] sm:$0xff]  ;;  %v423_v35 = vld [vmem:[%s1973_s3 + $0x688] sm:$0xff] }
  0xe1   :  { %v213_v59 = vmax.f32 %v208_v49, 0.0  ;;  %v397_v49 = vld [vmem:[%s1973_s3 + $0x5b8] sm:$0xff]  ;;  %v925_v31 = vpack.c.bf16 %v419_v19, %v415_v18  ;;  %v420_v34 = vld [vmem:[%s1973_s3 + $0x670] sm:$0xff]  ;;  %v427_v36 = vld [vmem:[%s1973_s3 + $0x6a8] sm:$0xff] }
  0xe2   :  { %556 = vmatprep.mubr.f32.mxu0 %v211_v44  ;;  %698 = vmatprep.mubr.f32.mxu1 %v211_v44  ;;  %v384_v44 = vld [vmem:[%s1973_s3 + $0x550] sm:$0xff]  ;;  %v1041_v55 = vpack.c.bf16 %v397_v49, %v393_v48  ;;  %v431_v48 = vld [vmem:[%s1973_s3 + $0x6c8] sm:$0xff] }
  0xe3   :  { %557 = vmatmul.mubr.f32.vlgmr.msra.gmra.mrb[2].mxu0 %v210_v50  ;;  %699 = vmatmul.mubr.f32.vlgmr.msra.gmra.mrb[2].mxu1 %v210_v50  ;;  %v911_v50 = vpack.c.bf16 %v386_v40, %v382_v39  ;;  %v1055_v40 = vpack.c.bf16 %v420_v34, %v416_v33  ;;  %v435_v49 = vld [vmem:[%s1973_s3 + $0x6e8] sm:$0xff]  ;;  %v448_v18 = vld [vmem:[%s1973_s3 + $0x750] sm:$0xff]  ;;  %v41_v33 = vsub.s32 2, %v1562_v22 }
  0xe4   :  { %892 = vmatpush1.bf16.msra.mxu0 %v891_v45  ;;  %1020 = vmatpush1.bf16.msra.mxu1 %v1019_v46  ;;  %v388_v45 = vld [vmem:[%s1973_s3 + $0x570] sm:$0xff]  ;;  %v391_v46 = vld [vmem:[%s1973_s3 + $0x588] sm:$0xff]  ;;  %v933_v56 = vpack.c.bf16 %v435_v49, %v431_v48  ;;  %v466_v49 = vld [vmem:[%s1973_s3 + $0x7e0] sm:$0xff] }
  0xe5   :  { %894 = vmatprep.subr.bf16.mxu0 %v893_v51  ;;  %1022 = vmatprep.subr.bf16.mxu1 %v1021_v52  ;;  %v1039_v51 = vpack.c.bf16 %v388_v45, %v384_v44  ;;  %v390_v52 = vld [vmem:[%s1973_s3 + $0x580] sm:$0xff]  ;;  %v913_v54 = vpack.c.bf16 %v395_v47, %v391_v46  ;;  %v929_v44 = vpack.c.bf16 %v427_v36, %v423_v35  ;;  %v424_v46 = vld [vmem:[%s1973_s3 + $0x690] sm:$0xff] }
  0xe6   :  { %627 = vmatprep.mubr.f32.mxu0 %v213_v59  ;;  %769 = vmatprep.mubr.f32.mxu1 %v213_v59  ;;  %v403_v59 = vld [vmem:[%s1973_s3 + $0x5e8] sm:$0xff]  ;;  %v915_v62 = vpack.c.bf16 %v394_v53, %v390_v52  ;;  %v428_v47 = vld [vmem:[%s1973_s3 + $0x6b0] sm:$0xff] }
  0xe7   :  { %v917_v2 = vpack.c.bf16 %v403_v59, %v399_v58  ;;  %v1059_v53 = vpack.c.bf16 %v428_v47, %v424_v46  ;;  %v432_v58 = vld [vmem:[%s1973_s3 + $0x6d0] sm:$0xff]  ;;  %v42_v46 = vrot.slane %v1568_v24, %v41_v33 }
  0xe8   :  { %896 = vmatpush1.bf16.msra.mxu0 %v895_v60  ;;  %1024 = vmatpush1.bf16.msra.mxu1 %v1023_v61  ;;  %v401_v60 = vld [vmem:[%s1973_s3 + $0x5d8] sm:$0xff]  ;;  %v436_v59 = vld [vmem:[%s1973_s3 + $0x6f0] sm:$0xff] }
  0xe9   :  { %898 = vmatprep.subr.bf16.mxu0 %v897_v0  ;;  %1026 = vmatprep.subr.bf16.mxu1 %v1025_v1  ;;  %v405_v61 = vld [vmem:[%s1973_s3 + $0x5f8] sm:$0xff]  ;;  %v398_v0 = vld [vmem:[%s1973_s3 + $0x5c0] sm:$0xff]  ;;  %v452_v19 = vld [vmem:[%s1973_s3 + $0x770] sm:$0xff] }
  0xea   :  { %v402_v1 = vld [vmem:[%s1973_s3 + $0x5e0] sm:$0xff]  ;;  %v1045_v3 = vpack.c.bf16 %v405_v61, %v401_v60  ;;  %v439_v60 = vld [vmem:[%s1973_s3 + $0x708] sm:$0xff]  ;;  %v456_v36 = vld [vmem:[%s1973_s3 + $0x790] sm:$0xff] }
  0xeb   :  { %v919_v10 = vpack.c.bf16 %v402_v1, %v398_v0  ;;  %v443_v61 = vld [vmem:[%s1973_s3 + $0x728] sm:$0xff]  ;;  %v1063_v1 = vpack.c.bf16 %v436_v59, %v432_v58 }
  0xec   :  { %900 = vmatpush1.bf16.msra.mxu0 %v899_v8  ;;  %1028 = vmatpush1.bf16.msra.mxu1 %v1027_v9  ;;  %v409_v8 = vld [vmem:[%s1973_s3 + $0x618] sm:$0xff]  ;;  %v937_v4 = vpack.c.bf16 %v443_v61, %v439_v60 }
  0xed   :  { %902 = vmatprep.subr.bf16.mxu0 %v901_v12  ;;  %1030 = vmatprep.subr.bf16.mxu1 %v1029_v13  ;;  %v413_v9 = vld [vmem:[%s1973_s3 + $0x638] sm:$0xff]  ;;  %v406_v12 = vld [vmem:[%s1973_s3 + $0x600] sm:$0xff] }
  0xee   :  { %v410_v13 = vld [vmem:[%s1973_s3 + $0x620] sm:$0xff]  ;;  %v1049_v15 = vpack.c.bf16 %v413_v9, %v409_v8  ;;  %v447_v8 = vld [vmem:[%s1973_s3 + $0x748] sm:$0xff] }
  0xef   :  { %v923_v27 = vpack.c.bf16 %v410_v13, %v406_v12  ;;  %v451_v9 = vld [vmem:[%s1973_s3 + $0x768] sm:$0xff]  ;;  %v1067_v13 = vpack.c.bf16 %v444_v7, %v440_v6 }
  0xf0   :  { %904 = vmatpush1.bf16.msra.mxu0 %v903_v20  ;;  %1032 = vmatpush1.bf16.msra.mxu1 %v1031_v21  ;;  %v417_v20 = vld [vmem:[%s1973_s3 + $0x658] sm:$0xff]  ;;  %v941_v16 = vpack.c.bf16 %v451_v9, %v447_v8 }
  0xf1   :  { %906 = vmatprep.subr.bf16.mxu0 %v905_v29  ;;  %1034 = vmatprep.subr.bf16.mxu1 %v1033_v30  ;;  %v421_v21 = vld [vmem:[%s1973_s3 + $0x678] sm:$0xff]  ;;  %v414_v29 = vld [vmem:[%s1973_s3 + $0x640] sm:$0xff] }
  0xf2   :  { %v418_v30 = vld [vmem:[%s1973_s3 + $0x660] sm:$0xff]  ;;  %v1053_v32 = vpack.c.bf16 %v421_v21, %v417_v20  ;;  %v455_v20 = vld [vmem:[%s1973_s3 + $0x788] sm:$0xff] }
  0xf3   :  { %v927_v39 = vpack.c.bf16 %v418_v30, %v414_v29  ;;  %v459_v21 = vld [vmem:[%s1973_s3 + $0x7a8] sm:$0xff]  ;;  %v1071_v30 = vpack.c.bf16 %v452_v19, %v448_v18 }
  0xf4   :  { %908 = vmatpush1.bf16.msra.mxu0 %v907_v37  ;;  %1036 = vmatpush1.bf16.msra.mxu1 %v1035_v38  ;;  %v425_v37 = vld [vmem:[%s1973_s3 + $0x698] sm:$0xff]  ;;  %v945_v34 = vpack.c.bf16 %v459_v21, %v455_v20 }
  0xf5   :  { %910 = vmatprep.subr.bf16.mxu0 %v909_v41  ;;  %1038 = vmatprep.subr.bf16.mxu1 %v1037_v43  ;;  %v429_v38 = vld [vmem:[%s1973_s3 + $0x6b8] sm:$0xff]  ;;  %v422_v41 = vld [vmem:[%s1973_s3 + $0x680] sm:$0xff] }
  0xf6   :  { %v426_v43 = vld [vmem:[%s1973_s3 + $0x6a0] sm:$0xff]  ;;  %v1057_v45 = vpack.c.bf16 %v429_v38, %v425_v37  ;;  %v460_v37 = vld [vmem:[%s1973_s3 + $0x7b0] sm:$0xff]  ;;  %v463_v38 = vld [vmem:[%s1973_s3 + $0x7c8] sm:$0xff] }
  0xf7   :  { %v931_v52 = vpack.c.bf16 %v426_v43, %v422_v41  ;;  %v469_v41 = vld [vmem:[%s1973_s3 + $0x7f8] sm:$0xff] }
  0xf8   :  { %912 = vmatpush1.bf16.msra.mxu0 %v911_v50  ;;  %1040 = vmatpush1.bf16.msra.mxu1 %v1039_v51  ;;  %v433_v50 = vld [vmem:[%s1973_s3 + $0x6d8] sm:$0xff] }
  0xf9   :  { %914 = vmatprep.subr.bf16.mxu0 %v913_v54  ;;  %1042 = vmatprep.subr.bf16.mxu1 %v1041_v55  ;;  %v437_v51 = vld [vmem:[%s1973_s3 + $0x6f8] sm:$0xff]  ;;  %v430_v54 = vld [vmem:[%s1973_s3 + $0x6c0] sm:$0xff] }
  0xfa   :  { %v434_v55 = vld [vmem:[%s1973_s3 + $0x6e0] sm:$0xff]  ;;  %v1061_v57 = vpack.c.bf16 %v437_v51, %v433_v50  ;;  %v464_v50 = vld [vmem:[%s1973_s3 + $0x7d0] sm:$0xff] }
  0xfb   :  { %v935_v0 = vpack.c.bf16 %v434_v55, %v430_v54  ;;  %v468_v51 = vld [vmem:[%s1973_s3 + $0x7f0] sm:$0xff]  ;;  %v470_v55 = vld [vmem:[%s1975_s4] sm:$0xf] }
  0xfc   :  { %916 = vmatpush1.bf16.msra.mxu0 %v915_v62  ;;  %1044 = vmatpush1.bf16.msra.mxu1 %v1043_v63  ;;  %v441_v62 = vld [vmem:[%s1973_s3 + $0x718] sm:$0xff]  ;;  %v1079_v24 = vpack.c.bf16 %v468_v51, %v464_v50  ;;  %v475_v58 = vrot.slane %v470_v55, %v33_v23  ;;  %v483_v59 = vrot.slane %v470_v55, %v41_v33 }
  0xfd   :  { %918 = vmatprep.subr.bf16.mxu0 %v917_v2  ;;  %1046 = vmatprep.subr.bf16.mxu1 %v1045_v3  ;;  %v445_v63 = vld [vmem:[%s1973_s3 + $0x738] sm:$0xff]  ;;  %v438_v2 = vld [vmem:[%s1973_s3 + $0x700] sm:$0xff]  ;;  %v487_v60 = vrot.slane %v470_v55, %v45_v26 }
  0xfe   :  { %v442_v3 = vld [vmem:[%s1973_s3 + $0x720] sm:$0xff]  ;;  %v1065_v5 = vpack.c.bf16 %v445_v63, %v441_v62 }
  0xff   :  { %v939_v12 = vpack.c.bf16 %v442_v3, %v438_v2 }
 0x100   :  { %920 = vmatpush1.bf16.msra.mxu0 %v919_v10  ;;  %1048 = vmatpush1.bf16.msra.mxu1 %v1047_v11  ;;  %v449_v10 = vld [vmem:[%s1973_s3 + $0x758] sm:$0xff] }
 0x101   :  { %922 = vmatprep.subr.bf16.mxu0 %v921_v14  ;;  %1050 = vmatprep.subr.bf16.mxu1 %v1049_v15  ;;  %v453_v11 = vld [vmem:[%s1973_s3 + $0x778] sm:$0xff]  ;;  %v446_v14 = vld [vmem:[%s1973_s3 + $0x740] sm:$0xff] }
 0x102   :  { %v450_v15 = vld [vmem:[%s1973_s3 + $0x760] sm:$0xff]  ;;  %v1069_v17 = vpack.c.bf16 %v453_v11, %v449_v10 }
 0x103   :  { %v943_v29 = vpack.c.bf16 %v450_v15, %v446_v14 }
 0x104   :  { %924 = vmatpush1.bf16.msra.mxu0 %v923_v27  ;;  %1052 = vmatpush1.bf16.msra.mxu1 %v1051_v28  ;;  %v457_v27 = vld [vmem:[%s1973_s3 + $0x798] sm:$0xff] }
 0x105   :  { %926 = vmatprep.subr.bf16.mxu0 %v925_v31  ;;  %1054 = vmatprep.subr.bf16.mxu1 %v1053_v32  ;;  %v461_v28 = vld [vmem:[%s1973_s3 + $0x7b8] sm:$0xff]  ;;  %v454_v31 = vld [vmem:[%s1973_s3 + $0x780] sm:$0xff] }
 0x106   :  { %v458_v32 = vld [vmem:[%s1973_s3 + $0x7a0] sm:$0xff]  ;;  %v1073_v35 = vpack.c.bf16 %v461_v28, %v457_v27 }
 0x107   :  { %v947_v43 = vpack.c.bf16 %v458_v32, %v454_v31 }
 0x108   :  { %928 = vmatpush1.bf16.msra.mxu0 %v927_v39  ;;  %1056 = vmatpush1.bf16.msra.mxu1 %v1055_v40  ;;  %v467_v39 = vld [vmem:[%s1973_s3 + $0x7e8] sm:$0xff]  ;;  %v465_v40 = vld [vmem:[%s1973_s3 + $0x7d8] sm:$0xff] }
 0x109   :  { %930 = vmatprep.subr.bf16.mxu0 %v929_v44  ;;  %1058 = vmatprep.subr.bf16.mxu1 %v1057_v45  ;;  %v1075_v44 = vpack.c.bf16 %v460_v37, %v456_v36  ;;  %v462_v45 = vld [vmem:[%s1973_s3 + $0x7c0] sm:$0xff]  ;;  %v949_v47 = vpack.c.bf16 %v467_v39, %v463_v38  ;;  %v1077_v48 = vpack.c.bf16 %v469_v41, %v465_v40 }
 0x10c   :  { %932 = vmatpush1.bf16.msra.mxu0 %v931_v52  ;;  %1060 = vmatpush1.bf16.msra.mxu1 %v1059_v53  ;;  %v951_v52 = vpack.c.bf16 %v466_v49, %v462_v45  ;;  %v206_v53 = vadd.f32 %v1605_v42, %v42_v46  ;;  %v479_v42 = vrot.slane %v470_v55, %v37_v25 }
 0x10d   :  { %934 = vmatprep.subr.bf16.mxu0 %v933_v56  ;;  %1062 = vmatprep.subr.bf16.mxu1 %v1061_v57  ;;  %v1094_v56 = vmov 1983009808  }
 0x10e   :  { %v212_v54 = vmax.f32 %v206_v53, 0.0  ;;  %v787_v57 = vunpack.c.l.s4 %v1094_v56 }
 0x110   :  { %936 = vmatpush1.bf16.msra.mxu0 %v935_v0  ;;  %1064 = vmatpush1.bf16.msra.mxu1 %v1063_v1  ;;  %v788_v63 = vunpack.c.0.s8 %v787_v57 }
 0x111   :  { %938 = vmatprep.subr.bf16.mxu0 %v937_v4  ;;  %1066 = vmatprep.subr.bf16.mxu1 %v1065_v5 }
 0x112   :  { %v791_v23 = vsub.s32 %v788_v63, %v1562_v22 }
 0x114   :  { %940 = vmatpush1.bf16.msra.mxu0 %v939_v12  ;;  %1068 = vmatpush1.bf16.msra.mxu1 %v1067_v13 }
 0x115   :  { %942 = vmatprep.subr.bf16.mxu0 %v941_v16  ;;  %1070 = vmatprep.subr.bf16.mxu1 %v1069_v17 }
 0x118   :  { %944 = vmatpush1.bf16.msra.mxu0 %v943_v29  ;;  %1072 = vmatpush1.bf16.msra.mxu1 %v1071_v30 }
 0x119   :  { %946 = vmatprep.subr.bf16.mxu0 %v945_v34  ;;  %1074 = vmatprep.subr.bf16.mxu1 %v1073_v35 }
 0x11c   :  { %948 = vmatpush1.bf16.msra.mxu0 %v947_v43  ;;  %1076 = vmatpush1.bf16.msra.mxu1 %v1075_v44 }
 0x11d   :  { %950 = vmatprep.subr.bf16.mxu0 %v949_v47  ;;  %1078 = vmatprep.subr.bf16.mxu1 %v1077_v48 }
 0x120   :  { %952 = vmatpush1.bf16.msra.mxu0 %v951_v52  ;;  %1080 = vmatpush1.bf16.msra.mxu1 %v1079_v24 }
 0x123   :  { %628 = vmatmul.mubr.f32.vlgmr.msra.gmra.mrb[2].mxu0 %v212_v54  ;;  %770 = vmatmul.mubr.f32.vlgmr.msra.gmra.mrb[2].mxu1 %v212_v54 }
 0x1f6   :  { %v629_v61 = vpop.f32.mrb[2].mxu0  ;;  %v771_v62 = vpop.f32.mrb[2].mxu1 }
 0x1f7   :  { %v1081_v0 = vadd.f32 %v629_v61, %v475_v58  ;;  %v1083_v1 = vadd.f32 %v771_v62, %v483_v59  ;;  %v631_v2 = vpop.f32.mrb[3].mxu0  ;;  %v773_v3 = vpop.f32.mrb[3].mxu1 }
 0x1f8   :  { %v1082_v4 = vadd.f32 %v631_v2, %v479_v42  ;;  %v1084_v5 = vadd.f32 %v773_v3, %v487_v60 }
 0x1f9   :  { %v776_v6 = vmax.f32 %v1081_v0, 0.0  ;;  %v778_v7 = vmax.f32 %v1083_v1, 0.0 }
 0x1fa   :  { %v777_v8 = vmax.f32 %v1082_v4, 0.0  ;;  %v779_v9 = vmax.f32 %v1084_v5, 0.0 }
 0x1fc   :  { %v784_v10 = vcombine.low %v776_v6, %v777_v8  ;;  %v785_v25 = vcombine.low %v778_v7, %v779_v9 }
 0x1fe   :  { %v792_v11 = vrot.slane %v784_v10, %v791_v23  ;;  %v799_v12 = vrot.slane %v785_v25, %v791_v23 }
 0x200   :  { %v800_v26 = vcombine.low %v792_v11, %v799_v12 }
 0x202   :  { %802 = vst [vmem:[%s1976_s5] sm:$0xff] %v800_v26 }

// kernel: ivae_forward.15
= control target key start
LH: loop header
LB: loop body
LE: loop exit
PB: predicated region body
PF: predicated region fallthrough
CT: control target
= control target key end

     0   :  { %s1146_s12 = smov 0   ;;  %s1583_s0 = inlined_call_operand.vmem [shape: f32[2,196,288], index: 0, kind: input, shape index: {}]   ;;  %s1584_s1 = inlined_call_operand.vmem [shape: f32[288,32], index: 1, kind: input, shape index: {}]   ;;  %s1585_s2 = inlined_call_operand.vmem [shape: f32[1,32], index: 2, kind: input, shape index: {}]   ;;  %s1586_s3 = inlined_call_operand.vmem [shape: f32[2,196,32], index: 3, kind: output, shape index: {}]  }
   0x1 LB: > { %s851_s13 = sadd.s32 4294967295, %s1121_s12   ;;  %p855_p0 = scmp.ge.s32.totalorder %s1121_s12, 1  ;;  %s1121_s12 = sphi %s1146_s12, %s13_s12  }
   0x2   : > { %p137_p1 = scmp.lt.s32.totalorder %s1121_s12, 3 }
   0x4   : > { %p138_p2 = pnand %p855_p0, %p137_p1 }
   0x5   : > { %v246_v0 = vld [vmem:[%s1584_s1] sm:$0xff] (!%p138_p2)  ;;  %v247_v1 = vld [vmem:[%s1584_s1 + $0x8] sm:$0xff] (!%p138_p2)  ;;  %v248_v2 = vld [vmem:[%s1584_s1 + $0x10] sm:$0xff] (!%p138_p2)  ;;  %p161_p3 = scmp.lt.s32.totalorder (!%p138_p2), %s851_s13, 1  ;;  %v1123_v3 = vmov (!%p138_p2), 0.0|0.0   ;;  %vm1124_vm0 = vmmov (!%p138_p2), 0  }
   0x6   : > { %141 = sbr.rel (%p138_p2) target bundleno = 386 (0x182), region = 32  ;;  %998 = vmatprep.subr.bf16.mxu1 (!%p138_p2), %v1123_v3  ;;  %v999_v4 = vpack.c.bf16 (!%p138_p2), %v247_v1, %v246_v0  ;;  %v249_v5 = vld [vmem:[%s1584_s1 + $0x18] sm:$0xff] (!%p138_p2)  ;;  %1046 = vmatprep.subr.bf16.mxu0 (!%p138_p2), %v1123_v3  ;;  %v1125_v6 = vmov (!%p138_p2), 0.0   ;;  %v250_v8 = vld [vmem:[%s1584_s1 + $0x20] sm:$0xff] (!%p138_p2)  ;;  %v251_v9 = vld [vmem:[%s1584_s1 + $0x28] sm:$0xff] (!%p138_p2)  ;;  %vm289_vm1 = vcmask (!%p138_p2), 261120  }
   0x7   : > { %923 = vmatprep.mubr.msk.f32.mxu0 (!%p138_p2), %vm1124_vm0, %v1125_v6  ;;  %v1002_v7 = vpack.c.bf16 (!%p138_p2), %v249_v5, %v248_v2  ;;  %v1005_v10 = vpack.c.bf16 (!%p138_p2), %v251_v9, %v250_v8  ;;  %v252_v11 = vld [vmem:[%s1584_s1 + $0x30] sm:$0xff] (!%p138_p2)  ;;  %v253_v12 = vld [vmem:[%s1584_s1 + $0x38] sm:$0xff] (!%p138_p2)  ;;  %v278_v13 = vld [vmem:[%s1584_s1 + $0x100] sm:$0xff] (!%p138_p2)  ;;  %vm794_vm2 = vcmask (!%p138_p2), 257024  }
   0x8   : > { %1000 = vmatpush1.bf16.msra.mxu1 (!%p138_p2), %v999_v4  ;;  %v279_v14 = vld [vmem:[%s1584_s1 + $0x108] sm:$0xff] (!%p138_p2)  ;;  %v1008_v15 = vpack.c.bf16 (!%p138_p2), %v253_v12, %v252_v11  ;;  %v280_v17 = vld [vmem:[%s1584_s1 + $0x110] sm:$0xff] (!%p138_p2)  ;;  %v281_v18 = vld [vmem:[%s1584_s1 + $0x118] sm:$0xff] (!%p138_p2) }
   0x9   : > { %1001 = vmatprep.subr.bf16.mxu1 (!%p138_p2), %v1123_v3  ;;  %v1047_v16 = vpack.c.bf16 (!%p138_p2), %v279_v14, %v278_v13  ;;  %v254_v19 = vld [vmem:[%s1584_s1 + $0x40] sm:$0xff] (!%p138_p2)  ;;  %v255_v20 = vld [vmem:[%s1584_s1 + $0x48] sm:$0xff] (!%p138_p2)  ;;  %v1050_v22 = vpack.c.bf16 (!%p138_p2), %v281_v18, %v280_v17  ;;  %v256_v24 = vld [vmem:[%s1584_s1 + $0x50] sm:$0xff] (!%p138_p2) }
   0xa   : > { %v1011_v23 = vpack.c.bf16 (!%p138_p2), %v255_v20, %v254_v19  ;;  %v257_v25 = vld [vmem:[%s1584_s1 + $0x58] sm:$0xff] (!%p138_p2)  ;;  %v258_v28 = vld [vmem:[%s1584_s1 + $0x60] sm:$0xff] (!%p138_p2)  ;;  %v259_v29 = vld [vmem:[%s1584_s1 + $0x68] sm:$0xff] (!%p138_p2) }
   0xb   : > { %1048 = vmatpush3.bf16.msra.mxu0 (!%p138_p2), %v1047_v16  ;;  %v1014_v27 = vpack.c.bf16 (!%p138_p2), %v257_v25, %v256_v24  ;;  %v1017_v31 = vpack.c.bf16 (!%p138_p2), %v259_v29, %v258_v28  ;;  %v260_v32 = vld [vmem:[%s1584_s1 + $0x70] sm:$0xff] (!%p138_p2)  ;;  %v261_v33 = vld [vmem:[%s1584_s1 + $0x78] sm:$0xff] (!%p138_p2)  ;;  %v262_v36 = vld [vmem:[%s1584_s1 + $0x80] sm:$0xff] (!%p138_p2) }
   0xc   : > { %1003 = vmatpush1.bf16.msra.mxu1 (!%p138_p2), %v1002_v7  ;;  %1049 = vmatprep.subr.bf16.mxu0 (!%p138_p2), %v1123_v3  ;;  %v1020_v35 = vpack.c.bf16 (!%p138_p2), %v261_v33, %v260_v32  ;;  %v263_v37 = vld [vmem:[%s1584_s1 + $0x88] sm:$0xff] (!%p138_p2)  ;;  %v264_v40 = vld [vmem:[%s1584_s1 + $0x90] sm:$0xff] (!%p138_p2)  ;;  %v265_v41 = vld [vmem:[%s1584_s1 + $0x98] sm:$0xff] (!%p138_p2) }
   0xd   : > { %s1588_s13 = smov (!%p161_p3, %s851_s13), 1  ;;  %1004 = vmatprep.subr.bf16.mxu1 %v1123_v3  ;;  %v1023_v39 = vpack.c.bf16 %v263_v37, %v262_v36  ;;  %v1026_v43 = vpack.c.bf16 %v265_v41, %v264_v40  ;;  %v266_v44 = vld [vmem:[%s1584_s1 + $0xa0] sm:$0xff]  ;;  %v267_v45 = vld [vmem:[%s1584_s1 + $0xa8] sm:$0xff]  ;;  %v268_v48 = vld [vmem:[%s1584_s1 + $0xb0] sm:$0xff] }
   0xe   : > { %s1102_s26 = smul.u32 600, %s1588_s13  ;;  %v1029_v47 = vpack.c.bf16 %v267_v45, %v266_v44  ;;  %v269_v49 = vld [vmem:[%s1584_s1 + $0xb8] sm:$0xff]  ;;  %v270_v52 = vld [vmem:[%s1584_s1 + $0xc0] sm:$0xff]  ;;  %v271_v53 = vld [vmem:[%s1584_s1 + $0xc8] sm:$0xff] }
   0xf   : > { %1051 = vmatpush3.bf16.msra.mxu0 %v1050_v22  ;;  %v1032_v51 = vpack.c.bf16 %v269_v49, %v268_v48  ;;  %v1035_v55 = vpack.c.bf16 %v271_v53, %v270_v52  ;;  %v272_v56 = vld [vmem:[%s1584_s1 + $0xd0] sm:$0xff]  ;;  %v273_v57 = vld [vmem:[%s1584_s1 + $0xd8] sm:$0xff]  ;;  %v274_v60 = vld [vmem:[%s1584_s1 + $0xe0] sm:$0xff]  ;;  %s1103_s18 = smul.u32 200, %s1588_s13 }
  0x10   : > { %s1190_s6 = scalar_lea.vmem %s1583_s0, %s1102_s26  ;;  %1006 = vmatpush1.bf16.msra.mxu1 %v1005_v10  ;;  %v1038_v59 = vpack.c.bf16 %v273_v57, %v272_v56  ;;  %v275_v61 = vld [vmem:[%s1584_s1 + $0xe8] sm:$0xff]  ;;  %v276_v0 = vld [vmem:[%s1584_s1 + $0xf0] sm:$0xff]  ;;  %v277_v1 = vld [vmem:[%s1584_s1 + $0xf8] sm:$0xff] }
  0x11   : > { %1007 = vmatprep.subr.bf16.mxu1 %v1123_v3  ;;  %v172_v21 = vld [vmem:[%s1190_s6 + $0x8] sm:$0xff]  ;;  %v173_v26 = vld [vmem:[%s1190_s6 + $0x10] sm:$0xff]  ;;  %v179_v34 = vld [vmem:[%s1190_s6 + $0x40] sm:$0xff]  ;;  %v1041_v63 = vpack.c.bf16 %v275_v61, %v274_v60  ;;  %v1044_v4 = vpack.c.bf16 %v277_v1, %v276_v0  ;;  %s1462_s21 = scalar_lea.vmem %s1586_s3, %s1103_s18 }
  0x12   : > { %429 = vmatprep.mubr.f32.mxu1 %v172_v21  ;;  %924 = vmatmul.mubr.msk.f32.vlgmr.msra.gmra.mrb[0].mxu0 %vm289_vm1, %v173_v26  ;;  %v176_v30 = vld [vmem:[%s1190_s6 + $0x28] sm:$0xff]  ;;  %v182_v38 = vld [vmem:[%s1190_s6 + $0x58] sm:$0xff]  ;;  %v185_v42 = vld [vmem:[%s1190_s6 + $0x70] sm:$0xff] }
  0x13   : > { %926 = vmatprep.mubr.msk.f32.mxu0 %vm1124_vm0, %v1125_v6  ;;  %v188_v46 = vld [vmem:[%s1190_s6 + $0x88] sm:$0xff]  ;;  %v191_v50 = vld [vmem:[%s1190_s6 + $0xa0] sm:$0xff]  ;;  %v194_v54 = vld [vmem:[%s1190_s6 + $0xb8] sm:$0xff] }
  0x14   : > { %1009 = vmatpush1.bf16.msra.mxu1 %v1008_v15  ;;  %v197_v58 = vld [vmem:[%s1190_s6 + $0xd0] sm:$0xff]  ;;  %v200_v62 = vld [vmem:[%s1190_s6 + $0xe8] sm:$0xff]  ;;  %v203_v2 = vld [vmem:[%s1190_s6 + $0x100] sm:$0xff] }
  0x15   : > { %1010 = vmatprep.subr.bf16.mxu1 %v1123_v3  ;;  %v206_v5 = vld [vmem:[%s1190_s6 + $0x118] sm:$0xff]  ;;  %v171_v7 = vld [vmem:[%s1190_s6] sm:$0xff]  ;;  %v209_v9 = vld [vmem:[%s1190_s6 + $0x130] sm:$0xff] }
  0x16   : > { %927 = vmatmul.mubr.msk.f32.gmra.mrb[2].mxu0 %vm289_vm1, %v176_v30  ;;  %v175_v8 = vld [vmem:[%s1190_s6 + $0x20] sm:$0xff]  ;;  %v178_v10 = vld [vmem:[%s1190_s6 + $0x38] sm:$0xff]  ;;  %v212_v11 = vld [vmem:[%s1190_s6 + $0x148] sm:$0xff] }
  0x17   : > { %929 = vmatprep.mubr.msk.f32.mxu0 %vm1124_vm0, %v1125_v6  ;;  %v177_v12 = vld [vmem:[%s1190_s6 + $0x30] sm:$0xff]  ;;  %v215_v14 = vld [vmem:[%s1190_s6 + $0x160] sm:$0xff]  ;;  %v180_v15 = vld [vmem:[%s1190_s6 + $0x48] sm:$0xff] }
  0x18   : > { %1012 = vmatpush1.bf16.msra.mxu1 %v1011_v23  ;;  %v181_v13 = vld [vmem:[%s1190_s6 + $0x50] sm:$0xff]  ;;  %v184_v16 = vld [vmem:[%s1190_s6 + $0x68] sm:$0xff]  ;;  %v218_v17 = vld [vmem:[%s1190_s6 + $0x178] sm:$0xff] }
  0x19   : > { %1013 = vmatprep.subr.bf16.mxu1 %v1123_v3  ;;  %v183_v18 = vld [vmem:[%s1190_s6 + $0x60] sm:$0xff]  ;;  %v221_v20 = vld [vmem:[%s1190_s6 + $0x190] sm:$0xff]  ;;  %v186_v21 = vld [vmem:[%s1190_s6 + $0x78] sm:$0xff] }
  0x1a   : > { %930 = vmatmul.mubr.msk.f32.gmra.mrb[4].mxu0 %vm289_vm1, %v179_v34  ;;  %v187_v19 = vld [vmem:[%s1190_s6 + $0x80] sm:$0xff]  ;;  %v190_v22 = vld [vmem:[%s1190_s6 + $0x98] sm:$0xff]  ;;  %v224_v23 = vld [vmem:[%s1190_s6 + $0x1a8] sm:$0xff] }
  0x1b   : > { %932 = vmatprep.mubr.msk.f32.mxu0 %vm1124_vm0, %v1125_v6  ;;  %v189_v24 = vld [vmem:[%s1190_s6 + $0x90] sm:$0xff]  ;;  %v227_v26 = vld [vmem:[%s1190_s6 + $0x1c0] sm:$0xff]  ;;  %v196_v28 = vld [vmem:[%s1190_s6 + $0xc8] sm:$0xff] }
  0x1c   : > { %1015 = vmatpush1.bf16.msra.mxu1 %v1014_v27  ;;  %v193_v25 = vld [vmem:[%s1190_s6 + $0xb0] sm:$0xff]  ;;  %v192_v27 = vld [vmem:[%s1190_s6 + $0xa8] sm:$0xff]  ;;  %v230_v29 = vld [vmem:[%s1190_s6 + $0x1d8] sm:$0xff] }
  0x1d   : > { %1016 = vmatprep.subr.bf16.mxu1 %v1123_v3  ;;  %v195_v30 = vld [vmem:[%s1190_s6 + $0xc0] sm:$0xff]  ;;  %v233_v32 = vld [vmem:[%s1190_s6 + $0x1f0] sm:$0xff]  ;;  %v198_v33 = vld [vmem:[%s1190_s6 + $0xd8] sm:$0xff] }
  0x1e   : > { %933 = vmatmul.mubr.msk.f32.gmra.mrb[6].mxu0 %vm289_vm1, %v182_v38  ;;  %v202_v34 = vld [vmem:[%s1190_s6 + $0xf8] sm:$0xff]  ;;  %v201_v36 = vld [vmem:[%s1190_s6 + $0xf0] sm:$0xff]  ;;  %v239_v38 = vld [vmem:[%s1190_s6 + $0x220] sm:$0xff] }
  0x1f   : > { %935 = vmatprep.mubr.msk.f32.mxu0 %vm1124_vm0, %v1125_v6  ;;  %v205_v37 = vld [vmem:[%s1190_s6 + $0x110] sm:$0xff]  ;;  %v208_v40 = vld [vmem:[%s1190_s6 + $0x128] sm:$0xff]  ;;  %v242_v41 = vld [vmem:[%s1190_s6 + $0x238] sm:$0xff] }
  0x20   : > { %1018 = vmatpush1.bf16.msra.mxu1 %v1017_v31  ;;  %v199_v31 = vld [vmem:[%s1190_s6 + $0xe0] sm:$0xff]  ;;  %v245_v44 = vld [vmem:[%s1190_s6 + $0x250] sm:$0xf]  ;;  %v210_v45 = vld [vmem:[%s1190_s6 + $0x138] sm:$0xff] }
  0x21   : > { %1019 = vmatprep.subr.bf16.mxu1 %v1123_v3  ;;  %v217_v48 = vld [vmem:[%s1190_s6 + $0x170] sm:$0xff]  ;;  %v220_v49 = vld [vmem:[%s1190_s6 + $0x188] sm:$0xff]  ;;  %v222_v52 = vld [vmem:[%s1190_s6 + $0x198] sm:$0xff] }
  0x22   : > { %936 = vmatmul.mubr.msk.f32.gmra.mrb[8].mxu0 %vm289_vm1, %v185_v42  ;;  %v207_v42 = vld [vmem:[%s1190_s6 + $0x120] sm:$0xff]  ;;  %v226_v53 = vld [vmem:[%s1190_s6 + $0x1b8] sm:$0xff]  ;;  %v228_v56 = vld [vmem:[%s1190_s6 + $0x1c8] sm:$0xff] }
  0x23   : > { %938 = vmatprep.mubr.msk.f32.mxu0 %vm1124_vm0, %v1125_v6  ;;  %v232_v57 = vld [vmem:[%s1190_s6 + $0x1e8] sm:$0xff]  ;;  %v234_v60 = vld [vmem:[%s1190_s6 + $0x1f8] sm:$0xff] }
  0x24   : > { %1021 = vmatpush1.bf16.msra.mxu1 %v1020_v35  ;;  %v236_v35 = vld [vmem:[%s1190_s6 + $0x208] sm:$0xff]  ;;  %v238_v61 = vld [vmem:[%s1190_s6 + $0x218] sm:$0xff] }
  0x25   : > { %1022 = vmatprep.subr.bf16.mxu1 %v1123_v3  ;;  %v240_v0 = vld [vmem:[%s1190_s6 + $0x228] sm:$0xff] }
  0x26   : > { %939 = vmatmul.mubr.msk.f32.gmra.mrb[10].mxu0 %vm289_vm1, %v188_v46  ;;  %v214_v46 = vld [vmem:[%s1190_s6 + $0x158] sm:$0xff]  ;;  %v244_v1 = vld [vmem:[%s1190_s6 + $0x248] sm:$0xf] }
  0x27   : > { %941 = vmatprep.mubr.msk.f32.mxu0 %vm1124_vm0, %v1125_v6 }
  0x28   : > { %1024 = vmatpush1.bf16.msra.mxu1 %v1023_v39  ;;  %v204_v39 = vld [vmem:[%s1190_s6 + $0x108] sm:$0xff] }
  0x29   : > { %1025 = vmatprep.subr.bf16.mxu1 %v1123_v3 }
  0x2a   : > { %942 = vmatmul.mubr.msk.f32.gmra.mrb[12].mxu0 %vm289_vm1, %v191_v50  ;;  %v219_v50 = vld [vmem:[%s1190_s6 + $0x180] sm:$0xff] }
  0x2b   : > { %944 = vmatprep.mubr.msk.f32.mxu0 %vm1124_vm0, %v1125_v6 }
  0x2c   : > { %1027 = vmatpush1.bf16.msra.mxu1 %v1026_v43  ;;  %v211_v43 = vld [vmem:[%s1190_s6 + $0x140] sm:$0xff] }
  0x2d   : > { %1028 = vmatprep.subr.bf16.mxu1 %v1123_v3 }
  0x2e   : > { %945 = vmatmul.mubr.msk.f32.gmra.mrb[14].mxu0 %vm289_vm1, %v194_v54  ;;  %v225_v54 = vld [vmem:[%s1190_s6 + $0x1b0] sm:$0xff] }
  0x2f   : > { %947 = vmatprep.mubr.msk.f32.mxu0 %vm1124_vm0, %v1125_v6 }
  0x30   : > { %1030 = vmatpush1.bf16.msra.mxu1 %v1029_v47  ;;  %v213_v47 = vld [vmem:[%s1190_s6 + $0x150] sm:$0xff] }
  0x31   : > { %1031 = vmatprep.subr.bf16.mxu1 %v1123_v3 }
  0x32   : > { %948 = vmatmul.mubr.msk.f32.gmra.mrb[16].mxu0 %vm289_vm1, %v197_v58  ;;  %v231_v58 = vld [vmem:[%s1190_s6 + $0x1e0] sm:$0xff] }
  0x33   : > { %950 = vmatprep.mubr.msk.f32.mxu0 %vm1124_vm0, %v1125_v6 }
  0x34   : > { %1033 = vmatpush1.bf16.msra.mxu1 %v1032_v51  ;;  %v223_v51 = vld [vmem:[%s1190_s6 + $0x1a0] sm:$0xff] }
  0x35   : > { %1034 = vmatprep.subr.bf16.mxu1 %v1123_v3 }
  0x36   : > { %951 = vmatmul.mubr.msk.f32.gmra.mrb[18].mxu0 %vm289_vm1, %v200_v62  ;;  %v237_v62 = vld [vmem:[%s1190_s6 + $0x210] sm:$0xff] }
  0x37   : > { %953 = vmatprep.mubr.msk.f32.mxu0 %vm1124_vm0, %v1125_v6 }
  0x38   : > { %1036 = vmatpush1.bf16.msra.mxu1 %v1035_v55  ;;  %v229_v55 = vld [vmem:[%s1190_s6 + $0x1d0] sm:$0xff] }
  0x39   : > { %1037 = vmatprep.subr.bf16.mxu1 %v1123_v3 }
  0x3a   : > { %954 = vmatmul.mubr.msk.f32.gmra.mrb[20].mxu0 %vm289_vm1, %v203_v2  ;;  %v243_v2 = vld [vmem:[%s1190_s6 + $0x240] sm:$0xf] }
  0x3b   : > { %956 = vmatprep.mubr.msk.f32.mxu0 %vm1124_vm0, %v1125_v6 }
  0x3c   : > { %1039 = vmatpush1.bf16.msra.mxu1 %v1038_v59  ;;  %v235_v59 = vld [vmem:[%s1190_s6 + $0x200] sm:$0xff] }
  0x3d   : > { %1040 = vmatprep.subr.bf16.mxu1 %v1123_v3 }
  0x3e   : > { %957 = vmatmul.mubr.msk.f32.gmra.mrb[22].mxu0 %vm289_vm1, %v206_v5 }
  0x3f   : > { %959 = vmatprep.mubr.msk.f32.mxu0 %vm1124_vm0, %v1125_v6 }
  0x40   : > { %1042 = vmatpush1.bf16.msra.mxu1 %v1041_v63  ;;  %v241_v63 = vld [vmem:[%s1190_s6 + $0x230] sm:$0xff] }
  0x41   : > { %1043 = vmatprep.subr.bf16.mxu1 %v1123_v3  ;;  %v174_v3 = vld [vmem:[%s1190_s6 + $0x18] sm:$0xff] }
  0x42   : > { %960 = vmatmul.mubr.msk.f32.gmra.mrb[24].mxu0 %vm289_vm1, %v209_v9 }
  0x43   : > { %962 = vmatprep.mubr.msk.f32.mxu0 %vm1124_vm0, %v1125_v6 }
  0x44   : > { %1045 = vmatpush1.bf16.msra.mxu1 %v1044_v4 }
  0x46   : > { %963 = vmatmul.mubr.msk.f32.gmra.mrb[26].mxu0 %vm289_vm1, %v212_v11 }
  0x47   : > { %430 = vmatmul.mubr.f32.vlgmr.msra.gmra.mrb[0].mxu1 %v171_v7  ;;  %965 = vmatprep.mubr.msk.f32.mxu0 %vm1124_vm0, %v1125_v6 }
  0x48   : > { %434 = vmatprep.mubr.f32.mxu1 %v175_v8 }
  0x4a   : > { %966 = vmatmul.mubr.msk.f32.gmra.mrb[28].mxu0 %vm289_vm1, %v215_v14 }
  0x4b   : > { %435 = vmatmul.mubr.f32.gmra.mrb[2].mxu1 %v174_v3  ;;  %968 = vmatprep.mubr.msk.f32.mxu0 %vm1124_vm0, %v1125_v6 }
  0x4c   : > { %439 = vmatprep.mubr.f32.mxu1 %v178_v10 }
  0x4e   : > { %969 = vmatmul.mubr.msk.f32.gmra.mrb[30].mxu0 %vm289_vm1, %v218_v17 }
  0x4f   : > { %440 = vmatmul.mubr.f32.gmra.mrb[4].mxu1 %v177_v12  ;;  %971 = vmatprep.mubr.msk.f32.mxu0 %vm1124_vm0, %v1125_v6 }
  0x50   : > { %444 = vmatprep.mubr.f32.mxu1 %v181_v13 }
  0x52   : > { %972 = vmatmul.mubr.msk.f32.gmra.mrb[32].mxu0 %vm289_vm1, %v221_v20 }
  0x53   : > { %445 = vmatmul.mubr.f32.gmra.mrb[6].mxu1 %v180_v15  ;;  %974 = vmatprep.mubr.msk.f32.mxu0 %vm1124_vm0, %v1125_v6 }
  0x54   : > { %449 = vmatprep.mubr.f32.mxu1 %v184_v16 }
  0x56   : > { %975 = vmatmul.mubr.msk.f32.gmra.mrb[34].mxu0 %vm289_vm1, %v224_v23 }
  0x57   : > { %450 = vmatmul.mubr.f32.gmra.mrb[8].mxu1 %v183_v18  ;;  %977 = vmatprep.mubr.msk.f32.mxu0 %vm1124_vm0, %v1125_v6 }
  0x58   : > { %454 = vmatprep.mubr.f32.mxu1 %v187_v19 }
  0x5a   : > { %978 = vmatmul.mubr.msk.f32.gmra.mrb[36].mxu0 %vm289_vm1, %v227_v26  ;;  %v1451_v26 = vld [vmem:[%s1585_s2] ss:$0 sm:$0xff] }
  0x5b   : > { %455 = vmatmul.mubr.f32.gmra.mrb[10].mxu1 %v186_v21  ;;  %980 = vmatprep.mubr.msk.f32.mxu0 %vm1124_vm0, %v1125_v6 }
  0x5c   : > { %459 = vmatprep.mubr.f32.mxu1 %v190_v22 }
  0x5e   : > { %981 = vmatmul.mubr.msk.f32.gmra.mrb[38].mxu0 %vm289_vm1, %v230_v29 }
  0x5f   : > { %460 = vmatmul.mubr.f32.gmra.mrb[12].mxu1 %v189_v24  ;;  %983 = vmatprep.mubr.msk.f32.mxu0 %vm1124_vm0, %v1125_v6 }
  0x60   : > { %464 = vmatprep.mubr.f32.mxu1 %v193_v25 }
  0x62   : > { %984 = vmatmul.mubr.msk.f32.gmra.mrb[40].mxu0 %vm289_vm1, %v233_v32 }
  0x63   : > { %465 = vmatmul.mubr.f32.gmra.mrb[14].mxu1 %v192_v27  ;;  %986 = vmatprep.mubr.msk.f32.mxu0 %vm1124_vm0, %v1125_v6 }
  0x64   : > { %469 = vmatprep.mubr.f32.mxu1 %v196_v28 }
  0x66   : > { %987 = vmatmul.mubr.msk.f32.gmra.mrb[42].mxu0 %vm289_vm1, %v236_v35 }
  0x67   : > { %470 = vmatmul.mubr.f32.gmra.mrb[16].mxu1 %v195_v30  ;;  %989 = vmatprep.mubr.msk.f32.mxu0 %vm1124_vm0, %v1125_v6 }
  0x68   : > { %474 = vmatprep.mubr.f32.mxu1 %v199_v31 }
  0x6a   : > { %990 = vmatmul.mubr.msk.f32.gmra.mrb[44].mxu0 %vm289_vm1, %v239_v38 }
  0x6b   : > { %475 = vmatmul.mubr.f32.gmra.mrb[18].mxu1 %v198_v33  ;;  %992 = vmatprep.mubr.msk.f32.mxu0 %vm1124_vm0, %v1125_v6 }
  0x6c   : > { %479 = vmatprep.mubr.f32.mxu1 %v202_v34 }
  0x6e   : > { %993 = vmatmul.mubr.msk.f32.gmra.mrb[46].mxu0 %vm289_vm1, %v242_v41 }
  0x6f   : > { %480 = vmatmul.mubr.f32.gmra.mrb[20].mxu1 %v201_v36  ;;  %995 = vmatprep.mubr.msk.f32.mxu0 %vm1124_vm0, %v1125_v6  ;;  %v216_v6 = vld [vmem:[%s1190_s6 + $0x168] sm:$0xff] }
  0x70   : > { %484 = vmatprep.mubr.f32.mxu1 %v205_v37 }
  0x72   : > { %996 = vmatmul.mubr.msk.f32.gmra.mrb[48].mxu0 %vm289_vm1, %v245_v44 }
  0x73   : > { %485 = vmatmul.mubr.f32.gmra.mrb[22].mxu1 %v204_v39 }
  0x74   : > { %489 = vmatprep.mubr.f32.mxu1 %v208_v40 }
  0x77   : > { %490 = vmatmul.mubr.f32.gmra.mrb[24].mxu1 %v207_v42 }
  0x78   : > { %494 = vmatprep.mubr.f32.mxu1 %v211_v43 }
  0x7b   : > { %495 = vmatmul.mubr.f32.gmra.mrb[26].mxu1 %v210_v45 }
  0x7c   : > { %499 = vmatprep.mubr.f32.mxu1 %v214_v46 }
  0x7f   : > { %500 = vmatmul.mubr.f32.gmra.mrb[28].mxu1 %v213_v47 }
  0x80   : > { %504 = vmatprep.mubr.f32.mxu1 %v217_v48 }
  0x83   : > { %505 = vmatmul.mubr.f32.gmra.mrb[30].mxu1 %v216_v6 }
  0x84   : > { %509 = vmatprep.mubr.f32.mxu1 %v220_v49 }
  0x87   : > { %510 = vmatmul.mubr.f32.gmra.mrb[32].mxu1 %v219_v50 }
  0x88   : > { %514 = vmatprep.mubr.f32.mxu1 %v223_v51 }
  0x8b   : > { %515 = vmatmul.mubr.f32.gmra.mrb[34].mxu1 %v222_v52 }
  0x8c   : > { %519 = vmatprep.mubr.f32.mxu1 %v226_v53 }
  0x8f   : > { %520 = vmatmul.mubr.f32.gmra.mrb[36].mxu1 %v225_v54 }
  0x90   : > { %524 = vmatprep.mubr.f32.mxu1 %v229_v55 }
  0x93   : > { %525 = vmatmul.mubr.f32.gmra.mrb[38].mxu1 %v228_v56 }
  0x94   : > { %529 = vmatprep.mubr.f32.mxu1 %v232_v57 }
  0x97   : > { %530 = vmatmul.mubr.f32.gmra.mrb[40].mxu1 %v231_v58 }
  0x98   : > { %534 = vmatprep.mubr.f32.mxu1 %v235_v59 }
  0x9b   : > { %535 = vmatmul.mubr.f32.gmra.mrb[42].mxu1 %v234_v60 }
  0x9c   : > { %539 = vmatprep.mubr.f32.mxu1 %v238_v61 }
  0x9f   : > { %540 = vmatmul.mubr.f32.gmra.mrb[44].mxu1 %v237_v62 }
  0xa0   : > { %544 = vmatprep.mubr.f32.mxu1 %v241_v63 }
  0xa3   : > { %545 = vmatmul.mubr.f32.gmra.mrb[46].mxu1 %v240_v0 }
  0xa4   : > { %549 = vmatprep.mubr.f32.mxu1 %v244_v1 }
  0xa7   : > { %550 = vmatmul.mubr.f32.gmra.mrb[48].mxu1 %v243_v2 }
  0xe5   : > { %v621_v4 = vpop.f32.mrb[0].mxu0 }
  0xe6   : > { %v925_v5 = vpop.f32.mrb[1].mxu0 }
  0xe9   : > { %v626_v7 = vpop.f32.mrb[2].mxu0 }
  0xea   : > { %v928_v8 = vpop.f32.mrb[3].mxu0 }
  0xed   : > { %v631_v9 = vpop.f32.mrb[4].mxu0 }
  0xee   : > { %v931_v3 = vpop.f32.mrb[5].mxu0 }
  0xf1   : > { %v636_v10 = vpop.f32.mrb[6].mxu0 }
  0xf2   : > { %v934_v11 = vpop.f32.mrb[7].mxu0 }
  0xf5   : > { %v641_v12 = vpop.f32.mrb[8].mxu0 }
  0xf6   : > { %v937_v13 = vpop.f32.mrb[9].mxu0 }
  0xf9   : > { %v646_v14 = vpop.f32.mrb[10].mxu0 }
  0xfa   : > { %v940_v15 = vpop.f32.mrb[11].mxu0 }
  0xfd   : > { %v1438_v16 = vpop.f32.mrb[12].mxu0 }
  0xfe   : > { %v943_v17 = vpop.f32.mrb[13].mxu0 }
 0x101   : > { %v1440_v18 = vpop.f32.mrb[14].mxu0 }
 0x102   : > { %v946_v19 = vpop.f32.mrb[15].mxu0 }
 0x105   : > { %v1442_v20 = vpop.f32.mrb[16].mxu0 }
 0x106   : > { %v949_v21 = vpop.f32.mrb[17].mxu0 }
 0x109   : > { %v1444_v22 = vpop.f32.mrb[18].mxu0 }
 0x10a   : > { %v952_v23 = vpop.f32.mrb[19].mxu0 }
 0x10d   : > { %v1446_v24 = vpop.f32.mrb[20].mxu0 }
 0x10e   : > { %v955_v25 = vpop.f32.mrb[21].mxu0 }
 0x111   : > { %v1453_v27 = vpop.f32.mrb[22].mxu0 }
 0x112   : > { %v958_v28 = vpop.f32.mrb[23].mxu0 }
 0x115   : > { %v1457_v32 = vpop.f32.mrb[24].mxu0 }
 0x116   : > { %v961_v34 = vpop.f32.mrb[25].mxu0 }
 0x119   : > { %v1465_v39 = vpop.f32.mrb[26].mxu0 }
 0x11a   : > { %v431_v29 = vpop.f32.mrb[0].mxu1  ;;  %v964_v41 = vpop.f32.mrb[27].mxu0 }
 0x11b   : > { %v432_v30 = vadd.f32 %v1451_v26, %v431_v29  ;;  %v433_v31 = vpop.f32.mrb[1].mxu1 }
 0x11d   : > { %v622_v33 = vadd.f32 %v621_v4, %v432_v30  ;;  %v1470_v46 = vpop.f32.mrb[28].mxu0 }
 0x11e   : > { %v436_v35 = vpop.f32.mrb[2].mxu1  ;;  %v967_v48 = vpop.f32.mrb[29].mxu0 }
 0x11f   : > { %v745_v36 = vmax.f32 %v622_v33, 0.0  ;;  %v437_v37 = vadd.f32 %v1451_v26, %v436_v35  ;;  %v438_v38 = vpop.f32.mrb[3].mxu1 }
 0x121   : > { %770 = vst.msk [vmem:[%s1462_s21] sm:$0xff] %vm289_vm1, %v745_v36  ;;  %v627_v40 = vadd.f32 %v626_v7, %v437_v37  ;;  %v1475_v52 = vpop.f32.mrb[30].mxu0 }
 0x122   : > { %v441_v42 = vpop.f32.mrb[4].mxu1  ;;  %v970_v54 = vpop.f32.mrb[31].mxu0 }
 0x123   : > { %v746_v43 = vmax.f32 %v627_v40, 0.0  ;;  %v442_v44 = vadd.f32 %v1451_v26, %v441_v42  ;;  %v443_v45 = vpop.f32.mrb[5].mxu1 }
 0x125   : > { %771 = vst.msk [vmem:[%s1462_s21 + $0x8] sm:$0xff] %vm289_vm1, %v746_v43  ;;  %v632_v47 = vadd.f32 %v631_v9, %v442_v44  ;;  %v1480_v59 = vpop.f32.mrb[32].mxu0 }
 0x126   : > { %v446_v6 = vpop.f32.mrb[6].mxu1  ;;  %v973_v61 = vpop.f32.mrb[33].mxu0 }
 0x127   : > { %v747_v49 = vmax.f32 %v632_v47, 0.0  ;;  %v447_v50 = vadd.f32 %v1451_v26, %v446_v6  ;;  %v448_v51 = vpop.f32.mrb[7].mxu1 }
 0x129   : > { %772 = vst.msk [vmem:[%s1462_s21 + $0x10] sm:$0xff] %vm289_vm1, %v747_v49  ;;  %v637_v53 = vadd.f32 %v636_v10, %v447_v50  ;;  %v1485_v2 = vpop.f32.mrb[34].mxu0 }
 0x12a   : > { %v451_v55 = vpop.f32.mrb[8].mxu1  ;;  %v976_v5 = vpop.f32.mrb[35].mxu0 }
 0x12b   : > { %v748_v56 = vmax.f32 %v637_v53, 0.0  ;;  %v452_v57 = vadd.f32 %v1451_v26, %v451_v55  ;;  %v453_v58 = vpop.f32.mrb[9].mxu1 }
 0x12d   : > { %773 = vst.msk [vmem:[%s1462_s21 + $0x18] sm:$0xff] %vm289_vm1, %v748_v56  ;;  %v642_v60 = vadd.f32 %v641_v12, %v452_v57  ;;  %v1490_v10 = vpop.f32.mrb[36].mxu0 }
 0x12e   : > { %v456_v62 = vpop.f32.mrb[10].mxu1  ;;  %v979_v12 = vpop.f32.mrb[37].mxu0 }
 0x12f   : > { %v749_v63 = vmax.f32 %v642_v60, 0.0  ;;  %v457_v0 = vadd.f32 %v1451_v26, %v456_v62  ;;  %v458_v1 = vpop.f32.mrb[11].mxu1 }
 0x131   : > { %774 = vst.msk [vmem:[%s1462_s21 + $0x20] sm:$0xff] %vm289_vm1, %v749_v63  ;;  %v647_v4 = vadd.f32 %v646_v14, %v457_v0  ;;  %v1496_v14 = vpop.f32.mrb[38].mxu0 }
 0x132   : > { %v461_v7 = vpop.f32.mrb[12].mxu1  ;;  %v982_v23 = vpop.f32.mrb[39].mxu0 }
 0x133   : > { %v750_v8 = vmax.f32 %v647_v4, 0.0  ;;  %v462_v9 = vadd.f32 %v1451_v26, %v461_v7  ;;  %v463_v3 = vpop.f32.mrb[13].mxu1 }
 0x135   : > { %775 = vst.msk [vmem:[%s1462_s21 + $0x28] sm:$0xff] %vm289_vm1, %v750_v8  ;;  %v652_v11 = vadd.f32 %v1438_v16, %v462_v9  ;;  %v1502_v16 = vpop.f32.mrb[40].mxu0 }
 0x136   : > { %v466_v13 = vpop.f32.mrb[14].mxu1  ;;  %v985_v33 = vpop.f32.mrb[41].mxu0 }
 0x137   : > { %v751_v15 = vmax.f32 %v652_v11, 0.0  ;;  %v467_v17 = vadd.f32 %v1451_v26, %v466_v13  ;;  %v468_v19 = vpop.f32.mrb[15].mxu1 }
 0x139   : > { %776 = vst.msk [vmem:[%s1462_s21 + $0x30] sm:$0xff] %vm289_vm1, %v751_v15  ;;  %v657_v21 = vadd.f32 %v1440_v18, %v467_v17  ;;  %v1508_v18 = vpop.f32.mrb[42].mxu0 }
 0x13a   : > { %v471_v25 = vpop.f32.mrb[16].mxu1  ;;  %v988_v40 = vpop.f32.mrb[43].mxu0 }
 0x13b   : > { %v752_v28 = vmax.f32 %v657_v21, 0.0  ;;  %v472_v29 = vadd.f32 %v1451_v26, %v471_v25  ;;  %v473_v30 = vpop.f32.mrb[17].mxu1 }
 0x13d   : > { %777 = vst.msk [vmem:[%s1462_s21 + $0x38] sm:$0xff] %vm289_vm1, %v752_v28  ;;  %v662_v31 = vadd.f32 %v1442_v20, %v472_v29  ;;  %v1514_v20 = vpop.f32.mrb[44].mxu0 }
 0x13e   : > { %v476_v34 = vpop.f32.mrb[18].mxu1  ;;  %v991_v47 = vpop.f32.mrb[45].mxu0 }
 0x13f   : > { %v753_v35 = vmax.f32 %v662_v31, 0.0  ;;  %v477_v36 = vadd.f32 %v1451_v26, %v476_v34  ;;  %v478_v37 = vpop.f32.mrb[19].mxu1 }
 0x141   : > { %778 = vst.msk [vmem:[%s1462_s21 + $0x40] sm:$0xff] %vm289_vm1, %v753_v35  ;;  %v667_v38 = vadd.f32 %v1444_v22, %v477_v36  ;;  %v1520_v22 = vpop.f32.mrb[46].mxu0 }
 0x142   : > { %v481_v41 = vpop.f32.mrb[20].mxu1  ;;  %v994_v53 = vpop.f32.mrb[47].mxu0 }
 0x143   : > { %v754_v42 = vmax.f32 %v667_v38, 0.0  ;;  %v482_v43 = vadd.f32 %v1451_v26, %v481_v41  ;;  %v483_v44 = vpop.f32.mrb[21].mxu1 }
 0x145   : > { %779 = vst.msk [vmem:[%s1462_s21 + $0x48] sm:$0xff] %vm289_vm1, %v754_v42  ;;  %v672_v45 = vadd.f32 %v1446_v24, %v482_v43  ;;  %v1526_v57 = vpop.f32.mrb[48].mxu0 }
 0x146   : > { %v486_v48 = vpop.f32.mrb[22].mxu1  ;;  %v997_v60 = vpop.f32.mrb[49].mxu0 }
 0x147   : > { %v755_v6 = vmax.f32 %v672_v45, 0.0  ;;  %v487_v49 = vadd.f32 %v1451_v26, %v486_v48  ;;  %v488_v50 = vpop.f32.mrb[23].mxu1 }
 0x149   : > { %780 = vst.msk [vmem:[%s1462_s21 + $0x50] sm:$0xff] %vm289_vm1, %v755_v6  ;;  %v677_v51 = vadd.f32 %v1453_v27, %v487_v49 }
 0x14a   : > { %v491_v54 = vpop.f32.mrb[24].mxu1 }
 0x14b   : > { %v756_v55 = vmax.f32 %v677_v51, 0.0  ;;  %v492_v56 = vadd.f32 %v1451_v26, %v491_v54  ;;  %v493_v24 = vpop.f32.mrb[25].mxu1 }
 0x14d   : > { %781 = vst.msk [vmem:[%s1462_s21 + $0x58] sm:$0xff] %vm289_vm1, %v756_v55  ;;  %v682_v58 = vadd.f32 %v1457_v32, %v492_v56 }
 0x14e   : > { %v496_v61 = vpop.f32.mrb[26].mxu1 }
 0x14f   : > { %v757_v62 = vmax.f32 %v682_v58, 0.0  ;;  %v497_v63 = vadd.f32 %v1451_v26, %v496_v61  ;;  %v498_v27 = vpop.f32.mrb[27].mxu1 }
 0x151   : > { %782 = vst.msk [vmem:[%s1462_s21 + $0x60] sm:$0xff] %vm289_vm1, %v757_v62  ;;  %v687_v0 = vadd.f32 %v1465_v39, %v497_v63 }
 0x152   : > { %v501_v1 = vpop.f32.mrb[28].mxu1 }
 0x153   : > { %v758_v4 = vmax.f32 %v687_v0, 0.0  ;;  %v502_v5 = vadd.f32 %v1451_v26, %v501_v1  ;;  %v503_v7 = vpop.f32.mrb[29].mxu1 }
 0x155   : > { %783 = vst.msk [vmem:[%s1462_s21 + $0x68] sm:$0xff] %vm289_vm1, %v758_v4  ;;  %v692_v32 = vadd.f32 %v1470_v46, %v502_v5 }
 0x156   : > { %v506_v8 = vpop.f32.mrb[30].mxu1 }
 0x157   : > { %v759_v9 = vmax.f32 %v692_v32, 0.0  ;;  %v507_v3 = vadd.f32 %v1451_v26, %v506_v8  ;;  %v508_v11 = vpop.f32.mrb[31].mxu1 }
 0x159   : > { %784 = vst.msk [vmem:[%s1462_s21 + $0x70] sm:$0xff] %vm289_vm1, %v759_v9  ;;  %v697_v39 = vadd.f32 %v1475_v52, %v507_v3 }
 0x15a   : > { %v511_v12 = vpop.f32.mrb[32].mxu1 }
 0x15b   : > { %v760_v13 = vmax.f32 %v697_v39, 0.0  ;;  %v512_v15 = vadd.f32 %v1451_v26, %v511_v12  ;;  %v513_v17 = vpop.f32.mrb[33].mxu1 }
 0x15d   : > { %785 = vst.msk [vmem:[%s1462_s21 + $0x78] sm:$0xff] %vm289_vm1, %v760_v13  ;;  %v702_v46 = vadd.f32 %v1480_v59, %v512_v15 }
 0x15e   : > { %v516_v19 = vpop.f32.mrb[34].mxu1 }
 0x15f   : > { %v761_v21 = vmax.f32 %v702_v46, 0.0  ;;  %v517_v23 = vadd.f32 %v1451_v26, %v516_v19  ;;  %v518_v25 = vpop.f32.mrb[35].mxu1 }
 0x161   : > { %786 = vst.msk [vmem:[%s1462_s21 + $0x80] sm:$0xff] %vm289_vm1, %v761_v21  ;;  %v707_v52 = vadd.f32 %v1485_v2, %v517_v23 }
 0x162   : > { %v521_v28 = vpop.f32.mrb[36].mxu1 }
 0x163   : > { %v762_v29 = vmax.f32 %v707_v52, 0.0  ;;  %v522_v30 = vadd.f32 %v1451_v26, %v521_v28  ;;  %v523_v31 = vpop.f32.mrb[37].mxu1 }
 0x165   : > { %787 = vst.msk [vmem:[%s1462_s21 + $0x88] sm:$0xff] %vm289_vm1, %v762_v29  ;;  %v712_v59 = vadd.f32 %v1490_v10, %v522_v30 }
 0x166   : > { %v526_v33 = vpop.f32.mrb[38].mxu1 }
 0x167   : > { %v763_v34 = vmax.f32 %v712_v59, 0.0  ;;  %v527_v35 = vadd.f32 %v1451_v26, %v526_v33  ;;  %v528_v36 = vpop.f32.mrb[39].mxu1 }
 0x169   : > { %788 = vst.msk [vmem:[%s1462_s21 + $0x90] sm:$0xff] %vm289_vm1, %v763_v34  ;;  %v717_v2 = vadd.f32 %v1496_v14, %v527_v35 }
 0x16a   : > { %v531_v37 = vpop.f32.mrb[40].mxu1 }
 0x16b   : > { %v764_v38 = vmax.f32 %v717_v2, 0.0  ;;  %v532_v40 = vadd.f32 %v1451_v26, %v531_v37  ;;  %v533_v41 = vpop.f32.mrb[41].mxu1 }
 0x16d   : > { %789 = vst.msk [vmem:[%s1462_s21 + $0x98] sm:$0xff] %vm289_vm1, %v764_v38  ;;  %v722_v10 = vadd.f32 %v1502_v16, %v532_v40 }
 0x16e   : > { %v536_v42 = vpop.f32.mrb[42].mxu1 }
 0x16f   : > { %v765_v43 = vmax.f32 %v722_v10, 0.0  ;;  %v537_v44 = vadd.f32 %v1451_v26, %v536_v42  ;;  %v538_v45 = vpop.f32.mrb[43].mxu1 }
 0x171   : > { %790 = vst.msk [vmem:[%s1462_s21 + $0xa0] sm:$0xff] %vm289_vm1, %v765_v43  ;;  %v727_v14 = vadd.f32 %v1508_v18, %v537_v44 }
 0x172   : > { %v541_v47 = vpop.f32.mrb[44].mxu1 }
 0x173   : > { %v766_v48 = vmax.f32 %v727_v14, 0.0  ;;  %v542_v6 = vadd.f32 %v1451_v26, %v541_v47  ;;  %v543_v49 = vpop.f32.mrb[45].mxu1 }
 0x175   : > { %791 = vst.msk [vmem:[%s1462_s21 + $0xa8] sm:$0xff] %vm289_vm1, %v766_v48  ;;  %v732_v16 = vadd.f32 %v1514_v20, %v542_v6 }
 0x176   : > { %v546_v50 = vpop.f32.mrb[46].mxu1 }
 0x177   : > { %v767_v51 = vmax.f32 %v732_v16, 0.0  ;;  %v547_v53 = vadd.f32 %v1451_v26, %v546_v50  ;;  %v548_v54 = vpop.f32.mrb[47].mxu1 }
 0x179   : > { %792 = vst.msk [vmem:[%s1462_s21 + $0xb0] sm:$0xff] %vm289_vm1, %v767_v51  ;;  %v737_v18 = vadd.f32 %v1520_v22, %v547_v53 }
 0x17a   : > { %v551_v55 = vpop.f32.mrb[48].mxu1 }
 0x17b   : > { %v768_v56 = vmax.f32 %v737_v18, 0.0  ;;  %v552_v24 = vadd.f32 %v1451_v26, %v551_v55  ;;  %v553_v58 = vpop.f32.mrb[49].mxu1 }
 0x17d   : > { %793 = vst.msk [vmem:[%s1462_s21 + $0xb8] sm:$0xff] %vm289_vm1, %v768_v56  ;;  %v742_v60 = vadd.f32 %v1526_v57, %v552_v24 }
 0x17f   : > { %v769_v20 = vmax.f32 %v742_v60, 0.0 }
 0x181   : > { %795 = vst.msk [vmem:[%s1462_s21 + $0xc0] sm:$0xf] %vm794_vm2, %v769_v20 }
 0x182 PF: > { %s13_s12 = sadd.s32 1, %s1121_s12  }
 0x183   : > { %p10_p4 = scmp.ge.s32.totalorder %s13_s12, 4  }
 0x185   :  { %12 = sbr.rel (!%p10_p4) target bundleno = 1 (0x1), region = 62 }

// kernel: ivae_forward.16
= control target key start
LH: loop header
LB: loop body
LE: loop exit
PB: predicated region body
PF: predicated region fallthrough
CT: control target
= control target key end

     0   :  { %s2560_s12 = smov 0   ;;  %s3626_s0 = inlined_call_operand.vmem [shape: f32[2,784,288], index: 0, kind: input, shape index: {}]   ;;  %s3627_s1 = inlined_call_operand.vmem [shape: f32[288,3], index: 1, kind: input, shape index: {}]   ;;  %s3628_s2 = inlined_call_operand.vmem [shape: f32[1,3], index: 2, kind: input, shape index: {}]   ;;  %s3629_s3 = inlined_call_operand.vmem [shape: f32[2,784,3], index: 3, kind: output, shape index: {}]  }
   0x1 LB: > { %s2067_s13 = sadd.s32 4294967295, %s2537_s12   ;;  %p2071_p0 = scmp.ge.s32.totalorder %s2537_s12, 1  ;;  %s2537_s12 = sphi %s2560_s12, %s13_s12  }
   0x2   : > { %p137_p1 = scmp.lt.s32.totalorder %s2537_s12, 3 }
   0x4   : > { %p138_p2 = pnand %p2071_p0, %p137_p1 }
   0x5   : > { %v465_v0 = vld [vmem:[%s3627_s1] sm:$0xff] (!%p138_p2)  ;;  %v466_v1 = vld [vmem:[%s3627_s1 + $0x8] sm:$0xff] (!%p138_p2)  ;;  %v467_v2 = vld [vmem:[%s3627_s1 + $0x10] sm:$0xff] (!%p138_p2)  ;;  %p161_p3 = scmp.lt.s32.totalorder (!%p138_p2), %s2067_s13, 1  ;;  %v2539_v3 = vmov (!%p138_p2), 0.0|0.0   ;;  %vm508_vm0 = vcmask (!%p138_p2), 261120  }
   0x6   : > { %141 = sbr.rel (%p138_p2) target bundleno = 580 (0x244), region = 32  ;;  %2432 = vmatprep.subr.bf16.mxu0 (!%p138_p2), %v2539_v3  ;;  %2488 = vmatprep.subr.bf16.mxu1 (!%p138_p2), %v2539_v3  ;;  %v2433_v4 = vpack.c.bf16 (!%p138_p2), %v466_v1, %v465_v0  ;;  %v468_v5 = vld [vmem:[%s3627_s1 + $0x18] sm:$0xff] (!%p138_p2)  ;;  %v469_v7 = vld [vmem:[%s3627_s1 + $0x20] sm:$0xff] (!%p138_p2)  ;;  %v470_v8 = vld [vmem:[%s3627_s1 + $0x28] sm:$0xff] (!%p138_p2)  ;;  %vm1913_vm1 = vcmask (!%p138_p2), 23552  }
   0x7   : > { %v2436_v6 = vpack.c.bf16 (!%p138_p2), %v468_v5, %v467_v2  ;;  %v2439_v9 = vpack.c.bf16 (!%p138_p2), %v470_v8, %v469_v7  ;;  %v471_v10 = vld [vmem:[%s3627_s1 + $0x30] sm:$0xff] (!%p138_p2)  ;;  %v472_v11 = vld [vmem:[%s3627_s1 + $0x38] sm:$0xff] (!%p138_p2)  ;;  %v473_v15 = vld [vmem:[%s3627_s1 + $0x40] sm:$0xff] (!%p138_p2) }
   0x8   : > { %2434 = vmatpush1.bf16.msra.mxu0 (!%p138_p2), %v2433_v4  ;;  %2504 = vmatpush1.bf16.msra.mxu1 (!%p138_p2), %v2433_v4  ;;  %v2442_v13 = vpack.c.bf16 (!%p138_p2), %v472_v11, %v471_v10  ;;  %v474_v16 = vld [vmem:[%s3627_s1 + $0x48] sm:$0xff] (!%p138_p2)  ;;  %v475_v18 = vld [vmem:[%s3627_s1 + $0x50] sm:$0xff] (!%p138_p2)  ;;  %v476_v19 = vld [vmem:[%s3627_s1 + $0x58] sm:$0xff] (!%p138_p2) }
   0x9   : > { %2435 = vmatprep.subr.bf16.mxu0 (!%p138_p2), %v2539_v3  ;;  %2489 = vmatprep.subr.bf16.mxu1 (!%p138_p2), %v2539_v3  ;;  %v2445_v17 = vpack.c.bf16 (!%p138_p2), %v474_v16, %v473_v15  ;;  %v2448_v20 = vpack.c.bf16 (!%p138_p2), %v476_v19, %v475_v18  ;;  %v477_v21 = vld [vmem:[%s3627_s1 + $0x60] sm:$0xff] (!%p138_p2)  ;;  %v478_v22 = vld [vmem:[%s3627_s1 + $0x68] sm:$0xff] (!%p138_p2)  ;;  %v479_v24 = vld [vmem:[%s3627_s1 + $0x70] sm:$0xff] (!%p138_p2) }
   0xa   : > { %v2451_v23 = vpack.c.bf16 (!%p138_p2), %v478_v22, %v477_v21  ;;  %v480_v25 = vld [vmem:[%s3627_s1 + $0x78] sm:$0xff] (!%p138_p2)  ;;  %v481_v27 = vld [vmem:[%s3627_s1 + $0x80] sm:$0xff] (!%p138_p2)  ;;  %v482_v28 = vld [vmem:[%s3627_s1 + $0x88] sm:$0xff] (!%p138_p2) }
   0xb   : > { %v2454_v26 = vpack.c.bf16 (!%p138_p2), %v480_v25, %v479_v24  ;;  %v2457_v29 = vpack.c.bf16 (!%p138_p2), %v482_v28, %v481_v27  ;;  %v483_v30 = vld [vmem:[%s3627_s1 + $0x90] sm:$0xff] (!%p138_p2)  ;;  %v484_v31 = vld [vmem:[%s3627_s1 + $0x98] sm:$0xff] (!%p138_p2)  ;;  %v485_v33 = vld [vmem:[%s3627_s1 + $0xa0] sm:$0xff] (!%p138_p2) }
   0xc   : > { %2437 = vmatpush1.bf16.msra.mxu0 (!%p138_p2), %v2436_v6  ;;  %2505 = vmatpush1.bf16.msra.mxu1 (!%p138_p2), %v2436_v6  ;;  %v2460_v32 = vpack.c.bf16 (!%p138_p2), %v484_v31, %v483_v30  ;;  %v486_v34 = vld [vmem:[%s3627_s1 + $0xa8] sm:$0xff] (!%p138_p2)  ;;  %v487_v36 = vld [vmem:[%s3627_s1 + $0xb0] sm:$0xff] (!%p138_p2)  ;;  %v488_v37 = vld [vmem:[%s3627_s1 + $0xb8] sm:$0xff] (!%p138_p2) }
   0xd   : > { %s3631_s13 = smov (!%p161_p3, %s2067_s13), 1  ;;  %2438 = vmatprep.subr.bf16.mxu0 %v2539_v3  ;;  %2490 = vmatprep.subr.bf16.mxu1 %v2539_v3  ;;  %v2463_v35 = vpack.c.bf16 %v486_v34, %v485_v33  ;;  %v2466_v38 = vpack.c.bf16 %v488_v37, %v487_v36  ;;  %v489_v39 = vld [vmem:[%s3627_s1 + $0xc0] sm:$0xff]  ;;  %v490_v40 = vld [vmem:[%s3627_s1 + $0xc8] sm:$0xff]  ;;  %v491_v42 = vld [vmem:[%s3627_s1 + $0xd0] sm:$0xff] }
   0xe   : > { %s2520_s26 = smul.u32 2352, %s3631_s13  ;;  %v2469_v41 = vpack.c.bf16 %v490_v40, %v489_v39  ;;  %v492_v43 = vld [vmem:[%s3627_s1 + $0xd8] sm:$0xff]  ;;  %v493_v45 = vld [vmem:[%s3627_s1 + $0xe0] sm:$0xff]  ;;  %v494_v46 = vld [vmem:[%s3627_s1 + $0xe8] sm:$0xff] }
   0xf   : > { %v2472_v44 = vpack.c.bf16 %v492_v43, %v491_v42  ;;  %v2475_v47 = vpack.c.bf16 %v494_v46, %v493_v45  ;;  %v495_v48 = vld [vmem:[%s3627_s1 + $0xf0] sm:$0xff]  ;;  %v496_v49 = vld [vmem:[%s3627_s1 + $0xf8] sm:$0xff]  ;;  %v497_v50 = vld [vmem:[%s3627_s1 + $0x100] sm:$0xff] }
  0x10   : > { %s2596_s29 = scalar_lea.vmem %s3626_s0, %s2520_s26  ;;  %2440 = vmatpush1.bf16.msra.mxu0 %v2439_v9  ;;  %2506 = vmatpush1.bf16.msra.mxu1 %v2439_v9  ;;  %v498_v51 = vld [vmem:[%s3627_s1 + $0x108] sm:$0xff]  ;;  %v2478_v52 = vpack.c.bf16 %v496_v49, %v495_v48  ;;  %v499_v54 = vld [vmem:[%s3627_s1 + $0x110] sm:$0xff]  ;;  %v500_v55 = vld [vmem:[%s3627_s1 + $0x118] sm:$0xff] }
  0x11   : > { %v172_v12 = vld [vmem:[%s2596_s29 + $0x8] sm:$0xff]  ;;  %v394_v14 = vld [vmem:[%s2596_s29 + $0x6f8] sm:$0xff]  ;;  %2441 = vmatprep.subr.bf16.mxu0 %v2539_v3  ;;  %2491 = vmatprep.subr.bf16.mxu1 %v2539_v3  ;;  %v2480_v53 = vpack.c.bf16 %v498_v51, %v497_v50  ;;  %v171_v56 = vld [vmem:[%s2596_s29] sm:$0xff]  ;;  %v2484_v60 = vpack.c.bf16 %v500_v55, %v499_v54 }
  0x12   : > { %867 = vmatprep.mubr.f32.mxu0 %v172_v12  ;;  %1237 = vmatprep.mubr.f32.mxu1 %v394_v14  ;;  %v393_v57 = vld [vmem:[%s2596_s29 + $0x6f0] sm:$0xff]  ;;  %v175_v58 = vld [vmem:[%s2596_s29 + $0x20] sm:$0xff]  ;;  %v174_v61 = vld [vmem:[%s2596_s29 + $0x18] sm:$0xff] }
  0x13   : > { %v397_v59 = vld [vmem:[%s2596_s29 + $0x710] sm:$0xff]  ;;  %v396_v62 = vld [vmem:[%s2596_s29 + $0x708] sm:$0xff]  ;;  %v178_v63 = vld [vmem:[%s2596_s29 + $0x38] sm:$0xff] }
  0x14   : > { %2443 = vmatpush1.bf16.msra.mxu0 %v2442_v13  ;;  %2507 = vmatpush1.bf16.msra.mxu1 %v2442_v13  ;;  %v400_v0 = vld [vmem:[%s2596_s29 + $0x728] sm:$0xff]  ;;  %v177_v1 = vld [vmem:[%s2596_s29 + $0x30] sm:$0xff]  ;;  %v399_v2 = vld [vmem:[%s2596_s29 + $0x720] sm:$0xff] }
  0x15   : > { %2444 = vmatprep.subr.bf16.mxu0 %v2539_v3  ;;  %2492 = vmatprep.subr.bf16.mxu1 %v2539_v3  ;;  %v403_v4 = vld [vmem:[%s2596_s29 + $0x740] sm:$0xff]  ;;  %v180_v5 = vld [vmem:[%s2596_s29 + $0x48] sm:$0xff]  ;;  %v402_v6 = vld [vmem:[%s2596_s29 + $0x738] sm:$0xff] }
  0x16   : > { %v184_v7 = vld [vmem:[%s2596_s29 + $0x68] sm:$0xff]  ;;  %v406_v8 = vld [vmem:[%s2596_s29 + $0x758] sm:$0xff]  ;;  %v183_v9 = vld [vmem:[%s2596_s29 + $0x60] sm:$0xff] }
  0x17   : > { %v405_v10 = vld [vmem:[%s2596_s29 + $0x750] sm:$0xff]  ;;  %v187_v11 = vld [vmem:[%s2596_s29 + $0x80] sm:$0xff]  ;;  %v186_v13 = vld [vmem:[%s2596_s29 + $0x78] sm:$0xff] }
  0x18   : > { %2446 = vmatpush1.bf16.msra.mxu0 %v2445_v17  ;;  %2508 = vmatpush1.bf16.msra.mxu1 %v2445_v17  ;;  %v409_v12 = vld [vmem:[%s2596_s29 + $0x770] sm:$0xff]  ;;  %v408_v14 = vld [vmem:[%s2596_s29 + $0x768] sm:$0xff]  ;;  %v190_v15 = vld [vmem:[%s2596_s29 + $0x98] sm:$0xff] }
  0x19   : > { %2447 = vmatprep.subr.bf16.mxu0 %v2539_v3  ;;  %2493 = vmatprep.subr.bf16.mxu1 %v2539_v3  ;;  %v412_v16 = vld [vmem:[%s2596_s29 + $0x788] sm:$0xff]  ;;  %v189_v17 = vld [vmem:[%s2596_s29 + $0x90] sm:$0xff]  ;;  %v411_v18 = vld [vmem:[%s2596_s29 + $0x780] sm:$0xff] }
  0x1a   : > { %v193_v19 = vld [vmem:[%s2596_s29 + $0xb0] sm:$0xff]  ;;  %v192_v21 = vld [vmem:[%s2596_s29 + $0xa8] sm:$0xff]  ;;  %v414_v22 = vld [vmem:[%s2596_s29 + $0x798] sm:$0xff] }
  0x1b   : > { %v418_v24 = vld [vmem:[%s2596_s29 + $0x7b8] sm:$0xff]  ;;  %v195_v25 = vld [vmem:[%s2596_s29 + $0xc0] sm:$0xff]  ;;  %v421_v28 = vld [vmem:[%s2596_s29 + $0x7d0] sm:$0xff] }
  0x1c   : > { %2449 = vmatpush1.bf16.msra.mxu0 %v2448_v20  ;;  %2509 = vmatpush1.bf16.msra.mxu1 %v2448_v20  ;;  %v415_v20 = vld [vmem:[%s2596_s29 + $0x7a0] sm:$0xff]  ;;  %v420_v30 = vld [vmem:[%s2596_s29 + $0x7c8] sm:$0xff]  ;;  %v202_v31 = vld [vmem:[%s2596_s29 + $0xf8] sm:$0xff] }
  0x1d   : > { %2450 = vmatprep.subr.bf16.mxu0 %v2539_v3  ;;  %2494 = vmatprep.subr.bf16.mxu1 %v2539_v3  ;;  %v199_v27 = vld [vmem:[%s2596_s29 + $0xe0] sm:$0xff]  ;;  %v201_v33 = vld [vmem:[%s2596_s29 + $0xf0] sm:$0xff]  ;;  %v204_v37 = vld [vmem:[%s2596_s29 + $0x108] sm:$0xff] }
  0x1e   : > { %v423_v34 = vld [vmem:[%s2596_s29 + $0x7e0] sm:$0xff]  ;;  %v208_v39 = vld [vmem:[%s2596_s29 + $0x128] sm:$0xff]  ;;  %v430_v40 = vld [vmem:[%s2596_s29 + $0x818] sm:$0xff] }
  0x1f   : > { %v427_v36 = vld [vmem:[%s2596_s29 + $0x800] sm:$0xff]  ;;  %v429_v42 = vld [vmem:[%s2596_s29 + $0x810] sm:$0xff]  ;;  %v210_v45 = vld [vmem:[%s2596_s29 + $0x138] sm:$0xff] }
  0x20   : > { %2452 = vmatpush1.bf16.msra.mxu0 %v2451_v23  ;;  %2510 = vmatpush1.bf16.msra.mxu1 %v2451_v23  ;;  %v196_v23 = vld [vmem:[%s2596_s29 + $0xc8] sm:$0xff]  ;;  %v211_v43 = vld [vmem:[%s2596_s29 + $0x140] sm:$0xff]  ;;  %v213_v49 = vld [vmem:[%s2596_s29 + $0x150] sm:$0xff] }
  0x21   : > { %2453 = vmatprep.subr.bf16.mxu0 %v2539_v3  ;;  %2495 = vmatprep.subr.bf16.mxu1 %v2539_v3  ;;  %v432_v46 = vld [vmem:[%s2596_s29 + $0x828] sm:$0xff]  ;;  %v435_v50 = vld [vmem:[%s2596_s29 + $0x840] sm:$0xff]  ;;  %v217_v51 = vld [vmem:[%s2596_s29 + $0x170] sm:$0xff] }
  0x22   : > { %v436_v48 = vld [vmem:[%s2596_s29 + $0x848] sm:$0xff]  ;;  %v438_v54 = vld [vmem:[%s2596_s29 + $0x858] sm:$0xff] }
  0x23   : > { %v220_v55 = vld [vmem:[%s2596_s29 + $0x188] sm:$0xff] }
  0x24   : > { %2455 = vmatpush1.bf16.msra.mxu0 %v2454_v26  ;;  %2511 = vmatpush1.bf16.msra.mxu1 %v2454_v26  ;;  %v417_v26 = vld [vmem:[%s2596_s29 + $0x7b0] sm:$0xff] }
  0x25   : > { %2456 = vmatprep.subr.bf16.mxu0 %v2539_v3  ;;  %2496 = vmatprep.subr.bf16.mxu1 %v2539_v3 }
  0x28   : > { %2458 = vmatpush1.bf16.msra.mxu0 %v2457_v29  ;;  %2512 = vmatpush1.bf16.msra.mxu1 %v2457_v29  ;;  %v198_v29 = vld [vmem:[%s2596_s29 + $0xd8] sm:$0xff] }
  0x29   : > { %2459 = vmatprep.subr.bf16.mxu0 %v2539_v3  ;;  %2497 = vmatprep.subr.bf16.mxu1 %v2539_v3 }
  0x2c   : > { %2461 = vmatpush1.bf16.msra.mxu0 %v2460_v32  ;;  %2513 = vmatpush1.bf16.msra.mxu1 %v2460_v32  ;;  %v424_v32 = vld [vmem:[%s2596_s29 + $0x7e8] sm:$0xff] }
  0x2d   : > { %2462 = vmatprep.subr.bf16.mxu0 %v2539_v3  ;;  %2498 = vmatprep.subr.bf16.mxu1 %v2539_v3 }
  0x30   : > { %2464 = vmatpush1.bf16.msra.mxu0 %v2463_v35  ;;  %2514 = vmatpush1.bf16.msra.mxu1 %v2463_v35  ;;  %v205_v35 = vld [vmem:[%s2596_s29 + $0x110] sm:$0xff] }
  0x31   : > { %2465 = vmatprep.subr.bf16.mxu0 %v2539_v3  ;;  %2499 = vmatprep.subr.bf16.mxu1 %v2539_v3 }
  0x34   : > { %2467 = vmatpush1.bf16.msra.mxu0 %v2466_v38  ;;  %2515 = vmatpush1.bf16.msra.mxu1 %v2466_v38  ;;  %v426_v38 = vld [vmem:[%s2596_s29 + $0x7f8] sm:$0xff] }
  0x35   : > { %2468 = vmatprep.subr.bf16.mxu0 %v2539_v3  ;;  %2500 = vmatprep.subr.bf16.mxu1 %v2539_v3 }
  0x38   : > { %2470 = vmatpush1.bf16.msra.mxu0 %v2469_v41  ;;  %2516 = vmatpush1.bf16.msra.mxu1 %v2469_v41  ;;  %v207_v41 = vld [vmem:[%s2596_s29 + $0x120] sm:$0xff] }
  0x39   : > { %2471 = vmatprep.subr.bf16.mxu0 %v2539_v3  ;;  %2501 = vmatprep.subr.bf16.mxu1 %v2539_v3 }
  0x3c   : > { %2473 = vmatpush1.bf16.msra.mxu0 %v2472_v44  ;;  %2517 = vmatpush1.bf16.msra.mxu1 %v2472_v44  ;;  %v433_v44 = vld [vmem:[%s2596_s29 + $0x830] sm:$0xff] }
  0x3d   : > { %2474 = vmatprep.subr.bf16.mxu0 %v2539_v3  ;;  %2502 = vmatprep.subr.bf16.mxu1 %v2539_v3 }
  0x40   : > { %2476 = vmatpush1.bf16.msra.mxu0 %v2475_v47  ;;  %2518 = vmatpush1.bf16.msra.mxu1 %v2475_v47  ;;  %v214_v47 = vld [vmem:[%s2596_s29 + $0x158] sm:$0xff] }
  0x41   : > { %2477 = vmatprep.subr.bf16.mxu0 %v2539_v3  ;;  %2503 = vmatprep.subr.bf16.mxu1 %v2539_v3  ;;  %v181_v3 = vld [vmem:[%s2596_s29 + $0x50] sm:$0xff] }
  0x44   : > { %2479 = vmatpush1.bf16.msra.mxu0 %v2478_v52  ;;  %2519 = vmatpush1.bf16.msra.mxu1 %v2478_v52  ;;  %v439_v52 = vld [vmem:[%s2596_s29 + $0x860] sm:$0xff] }
  0x45   : > { %2481 = vmatprep.subr.bf16.mxu1 %v2480_v53 }
  0x47   : > { %868 = vmatmul.mubr.f32.vlgmr.msra.gmra.mrb[0].mxu0 %v171_v56  ;;  %1238 = vmatmul.mubr.f32.vlgmr.msra.gmra.mrb[0].mxu1 %v393_v57  ;;  %v442_v56 = vld [vmem:[%s2596_s29 + $0x878] sm:$0xff]  ;;  %v219_v57 = vld [vmem:[%s2596_s29 + $0x180] sm:$0xff] }
  0x48   : > { %872 = vmatprep.mubr.f32.mxu0 %v175_v58  ;;  %1242 = vmatprep.mubr.f32.mxu1 %v397_v59  ;;  %v441_v58 = vld [vmem:[%s2596_s29 + $0x870] sm:$0xff]  ;;  %v223_v59 = vld [vmem:[%s2596_s29 + $0x1a0] sm:$0xff] }
  0x49   : > { %2483 = vmatpush3.bf16.msra.mxu1 %v2480_v53  ;;  %v216_v53 = vld [vmem:[%s2596_s29 + $0x168] sm:$0xff] }
  0x4a   : > { %2485 = vmatprep.subr.bf16.mxu1 %v2484_v60 }
  0x4b   : > { %873 = vmatmul.mubr.f32.gmra.mrb[2].mxu0 %v174_v61  ;;  %1243 = vmatmul.mubr.f32.gmra.mrb[2].mxu1 %v396_v62  ;;  %v222_v61 = vld [vmem:[%s2596_s29 + $0x198] sm:$0xff]  ;;  %v444_v62 = vld [vmem:[%s2596_s29 + $0x888] sm:$0xff] }
  0x4c   : > { %877 = vmatprep.mubr.f32.mxu0 %v178_v63  ;;  %1247 = vmatprep.mubr.f32.mxu1 %v400_v0  ;;  %v226_v63 = vld [vmem:[%s2596_s29 + $0x1b8] sm:$0xff]  ;;  %v448_v0 = vld [vmem:[%s2596_s29 + $0x8a8] sm:$0xff] }
  0x4d   : > { %2487 = vmatpush3.bf16.msra.mxu1 %v2484_v60  ;;  %v445_v60 = vld [vmem:[%s2596_s29 + $0x890] sm:$0xff] }
  0x4f   : > { %878 = vmatmul.mubr.f32.gmra.mrb[4].mxu0 %v177_v1  ;;  %1248 = vmatmul.mubr.f32.gmra.mrb[4].mxu1 %v399_v2  ;;  %v225_v1 = vld [vmem:[%s2596_s29 + $0x1b0] sm:$0xff]  ;;  %v447_v2 = vld [vmem:[%s2596_s29 + $0x8a0] sm:$0xff] }
  0x50   : > { %882 = vmatprep.mubr.f32.mxu0 %v181_v3  ;;  %1252 = vmatprep.mubr.f32.mxu1 %v403_v4  ;;  %v229_v3 = vld [vmem:[%s2596_s29 + $0x1d0] sm:$0xff]  ;;  %v451_v4 = vld [vmem:[%s2596_s29 + $0x8c0] sm:$0xff] }
  0x53   : > { %883 = vmatmul.mubr.f32.gmra.mrb[6].mxu0 %v180_v5  ;;  %1253 = vmatmul.mubr.f32.gmra.mrb[6].mxu1 %v402_v6  ;;  %v228_v5 = vld [vmem:[%s2596_s29 + $0x1c8] sm:$0xff]  ;;  %v450_v6 = vld [vmem:[%s2596_s29 + $0x8b8] sm:$0xff] }
  0x54   : > { %887 = vmatprep.mubr.f32.mxu0 %v184_v7  ;;  %1257 = vmatprep.mubr.f32.mxu1 %v406_v8  ;;  %v232_v7 = vld [vmem:[%s2596_s29 + $0x1e8] sm:$0xff]  ;;  %v454_v8 = vld [vmem:[%s2596_s29 + $0x8d8] sm:$0xff] }
  0x57   : > { %888 = vmatmul.mubr.f32.gmra.mrb[8].mxu0 %v183_v9  ;;  %1258 = vmatmul.mubr.f32.gmra.mrb[8].mxu1 %v405_v10  ;;  %v231_v9 = vld [vmem:[%s2596_s29 + $0x1e0] sm:$0xff]  ;;  %v453_v10 = vld [vmem:[%s2596_s29 + $0x8d0] sm:$0xff] }
  0x58   : > { %892 = vmatprep.mubr.f32.mxu0 %v187_v11  ;;  %1262 = vmatprep.mubr.f32.mxu1 %v409_v12  ;;  %v235_v11 = vld [vmem:[%s2596_s29 + $0x200] sm:$0xff]  ;;  %v457_v12 = vld [vmem:[%s2596_s29 + $0x8f0] sm:$0xff] }
  0x5b   : > { %893 = vmatmul.mubr.f32.gmra.mrb[10].mxu0 %v186_v13  ;;  %1263 = vmatmul.mubr.f32.gmra.mrb[10].mxu1 %v408_v14  ;;  %v234_v13 = vld [vmem:[%s2596_s29 + $0x1f8] sm:$0xff]  ;;  %v456_v14 = vld [vmem:[%s2596_s29 + $0x8e8] sm:$0xff] }
  0x5c   : > { %897 = vmatprep.mubr.f32.mxu0 %v190_v15  ;;  %1267 = vmatprep.mubr.f32.mxu1 %v412_v16  ;;  %v238_v15 = vld [vmem:[%s2596_s29 + $0x218] sm:$0xff]  ;;  %v460_v16 = vld [vmem:[%s2596_s29 + $0x908] sm:$0xff] }
  0x5f   : > { %898 = vmatmul.mubr.f32.gmra.mrb[12].mxu0 %v189_v17  ;;  %1268 = vmatmul.mubr.f32.gmra.mrb[12].mxu1 %v411_v18  ;;  %v237_v17 = vld [vmem:[%s2596_s29 + $0x210] sm:$0xff]  ;;  %v459_v18 = vld [vmem:[%s2596_s29 + $0x900] sm:$0xff] }
  0x60   : > { %902 = vmatprep.mubr.f32.mxu0 %v193_v19  ;;  %1272 = vmatprep.mubr.f32.mxu1 %v415_v20  ;;  %v241_v19 = vld [vmem:[%s2596_s29 + $0x230] sm:$0xff]  ;;  %v463_v20 = vld [vmem:[%s2596_s29 + $0x920] sm:$0xff] }
  0x63   : > { %903 = vmatmul.mubr.f32.gmra.mrb[14].mxu0 %v192_v21  ;;  %1273 = vmatmul.mubr.f32.gmra.mrb[14].mxu1 %v414_v22  ;;  %v240_v21 = vld [vmem:[%s2596_s29 + $0x228] sm:$0xff]  ;;  %v462_v22 = vld [vmem:[%s2596_s29 + $0x918] sm:$0xff] }
  0x64   : > { %907 = vmatprep.mubr.f32.mxu0 %v196_v23  ;;  %1277 = vmatprep.mubr.f32.mxu1 %v418_v24  ;;  %v244_v23 = vld [vmem:[%s2596_s29 + $0x248] sm:$0xff]  ;;  %v173_v24 = vld [vmem:[%s2596_s29 + $0x10] sm:$0xff] }
  0x67   : > { %908 = vmatmul.mubr.f32.gmra.mrb[16].mxu0 %v195_v25  ;;  %1278 = vmatmul.mubr.f32.gmra.mrb[16].mxu1 %v417_v26  ;;  %v243_v25 = vld [vmem:[%s2596_s29 + $0x240] sm:$0xff]  ;;  %v176_v26 = vld [vmem:[%s2596_s29 + $0x28] sm:$0xff] }
  0x68   : > { %912 = vmatprep.mubr.f32.mxu0 %v199_v27  ;;  %1282 = vmatprep.mubr.f32.mxu1 %v421_v28  ;;  %v247_v27 = vld [vmem:[%s2596_s29 + $0x260] sm:$0xff] }
  0x69   : > { %v179_v28 = vld [vmem:[%s2596_s29 + $0x40] sm:$0xff] }
  0x6b   : > { %913 = vmatmul.mubr.f32.gmra.mrb[18].mxu0 %v198_v29  ;;  %1283 = vmatmul.mubr.f32.gmra.mrb[18].mxu1 %v420_v30  ;;  %v246_v29 = vld [vmem:[%s2596_s29 + $0x258] sm:$0xff] }
  0x6c   : > { %917 = vmatprep.mubr.f32.mxu0 %v202_v31  ;;  %1287 = vmatprep.mubr.f32.mxu1 %v424_v32  ;;  %v182_v30 = vld [vmem:[%s2596_s29 + $0x58] sm:$0xff]  ;;  %v185_v32 = vld [vmem:[%s2596_s29 + $0x70] sm:$0xff] }
  0x6d   : > { %v250_v31 = vld [vmem:[%s2596_s29 + $0x278] sm:$0xff] }
  0x6f   : > { %918 = vmatmul.mubr.f32.gmra.mrb[20].mxu0 %v201_v33  ;;  %1288 = vmatmul.mubr.f32.gmra.mrb[20].mxu1 %v423_v34  ;;  %v249_v33 = vld [vmem:[%s2596_s29 + $0x270] sm:$0xff]  ;;  %v188_v34 = vld [vmem:[%s2596_s29 + $0x88] sm:$0xff] }
  0x70   : > { %922 = vmatprep.mubr.f32.mxu0 %v205_v35  ;;  %1292 = vmatprep.mubr.f32.mxu1 %v427_v36  ;;  %v253_v35 = vld [vmem:[%s2596_s29 + $0x290] sm:$0xff]  ;;  %v191_v36 = vld [vmem:[%s2596_s29 + $0xa0] sm:$0xff] }
  0x73   : > { %923 = vmatmul.mubr.f32.gmra.mrb[22].mxu0 %v204_v37  ;;  %1293 = vmatmul.mubr.f32.gmra.mrb[22].mxu1 %v426_v38  ;;  %v252_v37 = vld [vmem:[%s2596_s29 + $0x288] sm:$0xff]  ;;  %v194_v38 = vld [vmem:[%s2596_s29 + $0xb8] sm:$0xff] }
  0x74   : > { %927 = vmatprep.mubr.f32.mxu0 %v208_v39  ;;  %1297 = vmatprep.mubr.f32.mxu1 %v430_v40  ;;  %v256_v39 = vld [vmem:[%s2596_s29 + $0x2a8] sm:$0xff]  ;;  %v197_v40 = vld [vmem:[%s2596_s29 + $0xd0] sm:$0xff] }
  0x77   : > { %928 = vmatmul.mubr.f32.gmra.mrb[24].mxu0 %v207_v41  ;;  %1298 = vmatmul.mubr.f32.gmra.mrb[24].mxu1 %v429_v42  ;;  %v255_v41 = vld [vmem:[%s2596_s29 + $0x2a0] sm:$0xff]  ;;  %v200_v42 = vld [vmem:[%s2596_s29 + $0xe8] sm:$0xff] }
  0x78   : > { %932 = vmatprep.mubr.f32.mxu0 %v211_v43  ;;  %1302 = vmatprep.mubr.f32.mxu1 %v433_v44  ;;  %v259_v43 = vld [vmem:[%s2596_s29 + $0x2c0] sm:$0xff] }
  0x79   : > { %v203_v44 = vld [vmem:[%s2596_s29 + $0x100] sm:$0xff] }
  0x7b   : > { %933 = vmatmul.mubr.f32.gmra.mrb[26].mxu0 %v210_v45  ;;  %1303 = vmatmul.mubr.f32.gmra.mrb[26].mxu1 %v432_v46  ;;  %v258_v45 = vld [vmem:[%s2596_s29 + $0x2b8] sm:$0xff] }
  0x7c   : > { %937 = vmatprep.mubr.f32.mxu0 %v214_v47  ;;  %1307 = vmatprep.mubr.f32.mxu1 %v436_v48  ;;  %v206_v46 = vld [vmem:[%s2596_s29 + $0x118] sm:$0xff]  ;;  %v209_v48 = vld [vmem:[%s2596_s29 + $0x130] sm:$0xff] }
  0x7d   : > { %v262_v47 = vld [vmem:[%s2596_s29 + $0x2d8] sm:$0xff] }
  0x7f   : > { %938 = vmatmul.mubr.f32.gmra.mrb[28].mxu0 %v213_v49  ;;  %1308 = vmatmul.mubr.f32.gmra.mrb[28].mxu1 %v435_v50  ;;  %v261_v49 = vld [vmem:[%s2596_s29 + $0x2d0] sm:$0xff]  ;;  %v212_v50 = vld [vmem:[%s2596_s29 + $0x148] sm:$0xff] }
  0x80   : > { %942 = vmatprep.mubr.f32.mxu0 %v217_v51  ;;  %1312 = vmatprep.mubr.f32.mxu1 %v439_v52  ;;  %v265_v51 = vld [vmem:[%s2596_s29 + $0x2f0] sm:$0xff]  ;;  %v215_v52 = vld [vmem:[%s2596_s29 + $0x160] sm:$0xff] }
  0x83   : > { %943 = vmatmul.mubr.f32.gmra.mrb[30].mxu0 %v216_v53  ;;  %1313 = vmatmul.mubr.f32.gmra.mrb[30].mxu1 %v438_v54  ;;  %v264_v53 = vld [vmem:[%s2596_s29 + $0x2e8] sm:$0xff]  ;;  %v218_v54 = vld [vmem:[%s2596_s29 + $0x178] sm:$0xff] }
  0x84   : > { %947 = vmatprep.mubr.f32.mxu0 %v220_v55  ;;  %1317 = vmatprep.mubr.f32.mxu1 %v442_v56  ;;  %v268_v55 = vld [vmem:[%s2596_s29 + $0x308] sm:$0xff]  ;;  %v221_v56 = vld [vmem:[%s2596_s29 + $0x190] sm:$0xff] }
  0x87   : > { %948 = vmatmul.mubr.f32.gmra.mrb[32].mxu0 %v219_v57  ;;  %1318 = vmatmul.mubr.f32.gmra.mrb[32].mxu1 %v441_v58  ;;  %v267_v57 = vld [vmem:[%s2596_s29 + $0x300] sm:$0xff]  ;;  %v224_v58 = vld [vmem:[%s2596_s29 + $0x1a8] sm:$0xff] }
  0x88   : > { %952 = vmatprep.mubr.f32.mxu0 %v223_v59  ;;  %1322 = vmatprep.mubr.f32.mxu1 %v445_v60  ;;  %v271_v59 = vld [vmem:[%s2596_s29 + $0x320] sm:$0xff] }
  0x89   : > { %v227_v60 = vld [vmem:[%s2596_s29 + $0x1c0] sm:$0xff] }
  0x8b   : > { %953 = vmatmul.mubr.f32.gmra.mrb[34].mxu0 %v222_v61  ;;  %1323 = vmatmul.mubr.f32.gmra.mrb[34].mxu1 %v444_v62  ;;  %v270_v61 = vld [vmem:[%s2596_s29 + $0x318] sm:$0xff] }
  0x8c   : > { %957 = vmatprep.mubr.f32.mxu0 %v226_v63  ;;  %1327 = vmatprep.mubr.f32.mxu1 %v448_v0  ;;  %v230_v62 = vld [vmem:[%s2596_s29 + $0x1d8] sm:$0xff]  ;;  %v233_v0 = vld [vmem:[%s2596_s29 + $0x1f0] sm:$0xff] }
  0x8d   : > { %v274_v63 = vld [vmem:[%s2596_s29 + $0x338] sm:$0xff] }
  0x8f   : > { %958 = vmatmul.mubr.f32.gmra.mrb[36].mxu0 %v225_v1  ;;  %1328 = vmatmul.mubr.f32.gmra.mrb[36].mxu1 %v447_v2  ;;  %v273_v1 = vld [vmem:[%s2596_s29 + $0x330] sm:$0xff]  ;;  %v236_v2 = vld [vmem:[%s2596_s29 + $0x208] sm:$0xff] }
  0x90   : > { %962 = vmatprep.mubr.f32.mxu0 %v229_v3  ;;  %1332 = vmatprep.mubr.f32.mxu1 %v451_v4  ;;  %v277_v3 = vld [vmem:[%s2596_s29 + $0x350] sm:$0xff]  ;;  %v239_v4 = vld [vmem:[%s2596_s29 + $0x220] sm:$0xff] }
  0x93   : > { %963 = vmatmul.mubr.f32.gmra.mrb[38].mxu0 %v228_v5  ;;  %1333 = vmatmul.mubr.f32.gmra.mrb[38].mxu1 %v450_v6  ;;  %v276_v5 = vld [vmem:[%s2596_s29 + $0x348] sm:$0xff]  ;;  %v242_v6 = vld [vmem:[%s2596_s29 + $0x238] sm:$0xff] }
  0x94   : > { %967 = vmatprep.mubr.f32.mxu0 %v232_v7  ;;  %1337 = vmatprep.mubr.f32.mxu1 %v454_v8  ;;  %v280_v7 = vld [vmem:[%s2596_s29 + $0x368] sm:$0xff]  ;;  %v245_v8 = vld [vmem:[%s2596_s29 + $0x250] sm:$0xff] }
  0x97   : > { %968 = vmatmul.mubr.f32.gmra.mrb[40].mxu0 %v231_v9  ;;  %1338 = vmatmul.mubr.f32.gmra.mrb[40].mxu1 %v453_v10  ;;  %v279_v9 = vld [vmem:[%s2596_s29 + $0x360] sm:$0xff]  ;;  %v248_v10 = vld [vmem:[%s2596_s29 + $0x268] sm:$0xff] }
  0x98   : > { %972 = vmatprep.mubr.f32.mxu0 %v235_v11  ;;  %1342 = vmatprep.mubr.f32.mxu1 %v457_v12  ;;  %v283_v11 = vld [vmem:[%s2596_s29 + $0x380] sm:$0xff] }
  0x99   : > { %v251_v12 = vld [vmem:[%s2596_s29 + $0x280] sm:$0xff] }
  0x9b   : > { %973 = vmatmul.mubr.f32.gmra.mrb[42].mxu0 %v234_v13  ;;  %1343 = vmatmul.mubr.f32.gmra.mrb[42].mxu1 %v456_v14  ;;  %v282_v13 = vld [vmem:[%s2596_s29 + $0x378] sm:$0xff] }
  0x9c   : > { %977 = vmatprep.mubr.f32.mxu0 %v238_v15  ;;  %1347 = vmatprep.mubr.f32.mxu1 %v460_v16  ;;  %v254_v14 = vld [vmem:[%s2596_s29 + $0x298] sm:$0xff]  ;;  %v257_v16 = vld [vmem:[%s2596_s29 + $0x2b0] sm:$0xff] }
  0x9d   : > { %v286_v15 = vld [vmem:[%s2596_s29 + $0x398] sm:$0xff] }
  0x9f   : > { %978 = vmatmul.mubr.f32.gmra.mrb[44].mxu0 %v237_v17  ;;  %1348 = vmatmul.mubr.f32.gmra.mrb[44].mxu1 %v459_v18  ;;  %v285_v17 = vld [vmem:[%s2596_s29 + $0x390] sm:$0xff]  ;;  %v260_v18 = vld [vmem:[%s2596_s29 + $0x2c8] sm:$0xff] }
  0xa0   : > { %982 = vmatprep.mubr.f32.mxu0 %v241_v19  ;;  %1352 = vmatprep.mubr.f32.mxu1 %v463_v20  ;;  %v289_v19 = vld [vmem:[%s2596_s29 + $0x3b0] sm:$0xff]  ;;  %v263_v20 = vld [vmem:[%s2596_s29 + $0x2e0] sm:$0xff] }
  0xa3   : > { %983 = vmatmul.mubr.f32.gmra.mrb[46].mxu0 %v240_v21  ;;  %1353 = vmatmul.mubr.f32.gmra.mrb[46].mxu1 %v462_v22  ;;  %v288_v21 = vld [vmem:[%s2596_s29 + $0x3a8] sm:$0xff]  ;;  %v266_v22 = vld [vmem:[%s2596_s29 + $0x2f8] sm:$0xff] }
  0xa4   : > { %987 = vmatprep.mubr.f32.mxu0 %v244_v23  ;;  %2285 = vmatprep.mubr.msk.f32.mxu1 %vm508_vm0, %v173_v24  ;;  %v292_v23 = vld [vmem:[%s2596_s29 + $0x3c8] sm:$0xff]  ;;  %v269_v24 = vld [vmem:[%s2596_s29 + $0x310] sm:$0xff] }
  0xa7   : > { %988 = vmatmul.mubr.f32.gmra.mrb[48].mxu0 %v243_v25  ;;  %2286 = vmatmul.mubr.msk.f32.vlgmr.msra.gmra.mrb[48].mxu1 %vm508_vm0, %v176_v26  ;;  %v291_v25 = vld [vmem:[%s2596_s29 + $0x3c0] sm:$0xff]  ;;  %v272_v26 = vld [vmem:[%s2596_s29 + $0x328] sm:$0xff] }
  0xa8   : > { %992 = vmatprep.mubr.f32.mxu0 %v247_v27  ;;  %2288 = vmatprep.mubr.msk.f32.mxu1 %vm508_vm0, %v179_v28  ;;  %v295_v27 = vld [vmem:[%s2596_s29 + $0x3e0] sm:$0xff] }
  0xa9   : > { %v275_v28 = vld [vmem:[%s2596_s29 + $0x340] sm:$0xff] }
  0xab   : > { %993 = vmatmul.mubr.f32.gmra.mrb[50].mxu0 %v246_v29  ;;  %2289 = vmatmul.mubr.msk.f32.gmra.mrb[50].mxu1 %vm508_vm0, %v182_v30  ;;  %v294_v29 = vld [vmem:[%s2596_s29 + $0x3d8] sm:$0xff] }
  0xac   : > { %997 = vmatprep.mubr.f32.mxu0 %v250_v31  ;;  %2291 = vmatprep.mubr.msk.f32.mxu1 %vm508_vm0, %v185_v32  ;;  %v278_v30 = vld [vmem:[%s2596_s29 + $0x358] sm:$0xff]  ;;  %v281_v32 = vld [vmem:[%s2596_s29 + $0x370] sm:$0xff] }
  0xad   : > { %v298_v31 = vld [vmem:[%s2596_s29 + $0x3f8] sm:$0xff] }
  0xaf   : > { %998 = vmatmul.mubr.f32.gmra.mrb[52].mxu0 %v249_v33  ;;  %2292 = vmatmul.mubr.msk.f32.gmra.mrb[52].mxu1 %vm508_vm0, %v188_v34  ;;  %v297_v33 = vld [vmem:[%s2596_s29 + $0x3f0] sm:$0xff]  ;;  %v284_v34 = vld [vmem:[%s2596_s29 + $0x388] sm:$0xff] }
  0xb0   : > { %1002 = vmatprep.mubr.f32.mxu0 %v253_v35  ;;  %2294 = vmatprep.mubr.msk.f32.mxu1 %vm508_vm0, %v191_v36  ;;  %v301_v35 = vld [vmem:[%s2596_s29 + $0x410] sm:$0xff]  ;;  %v287_v36 = vld [vmem:[%s2596_s29 + $0x3a0] sm:$0xff] }
  0xb3   : > { %1003 = vmatmul.mubr.f32.gmra.mrb[54].mxu0 %v252_v37  ;;  %2295 = vmatmul.mubr.msk.f32.gmra.mrb[54].mxu1 %vm508_vm0, %v194_v38  ;;  %v300_v37 = vld [vmem:[%s2596_s29 + $0x408] sm:$0xff]  ;;  %v290_v38 = vld [vmem:[%s2596_s29 + $0x3b8] sm:$0xff] }
  0xb4   : > { %1007 = vmatprep.mubr.f32.mxu0 %v256_v39  ;;  %2297 = vmatprep.mubr.msk.f32.mxu1 %vm508_vm0, %v197_v40  ;;  %v304_v39 = vld [vmem:[%s2596_s29 + $0x428] sm:$0xff]  ;;  %v293_v40 = vld [vmem:[%s2596_s29 + $0x3d0] sm:$0xff] }
  0xb7   : > { %1008 = vmatmul.mubr.f32.gmra.mrb[56].mxu0 %v255_v41  ;;  %2298 = vmatmul.mubr.msk.f32.gmra.mrb[56].mxu1 %vm508_vm0, %v200_v42  ;;  %v303_v41 = vld [vmem:[%s2596_s29 + $0x420] sm:$0xff]  ;;  %v296_v42 = vld [vmem:[%s2596_s29 + $0x3e8] sm:$0xff] }
  0xb8   : > { %1012 = vmatprep.mubr.f32.mxu0 %v259_v43  ;;  %2300 = vmatprep.mubr.msk.f32.mxu1 %vm508_vm0, %v203_v44  ;;  %v307_v43 = vld [vmem:[%s2596_s29 + $0x440] sm:$0xff] }
  0xb9   : > { %v299_v44 = vld [vmem:[%s2596_s29 + $0x400] sm:$0xff] }
  0xbb   : > { %1013 = vmatmul.mubr.f32.gmra.mrb[58].mxu0 %v258_v45  ;;  %2301 = vmatmul.mubr.msk.f32.gmra.mrb[58].mxu1 %vm508_vm0, %v206_v46  ;;  %v306_v45 = vld [vmem:[%s2596_s29 + $0x438] sm:$0xff] }
  0xbc   : > { %1017 = vmatprep.mubr.f32.mxu0 %v262_v47  ;;  %2303 = vmatprep.mubr.msk.f32.mxu1 %vm508_vm0, %v209_v48  ;;  %v302_v46 = vld [vmem:[%s2596_s29 + $0x418] sm:$0xff]  ;;  %v305_v48 = vld [vmem:[%s2596_s29 + $0x430] sm:$0xff] }
  0xbd   : > { %v310_v47 = vld [vmem:[%s2596_s29 + $0x458] sm:$0xff] }
  0xbf   : > { %1018 = vmatmul.mubr.f32.gmra.mrb[60].mxu0 %v261_v49  ;;  %2304 = vmatmul.mubr.msk.f32.gmra.mrb[60].mxu1 %vm508_vm0, %v212_v50  ;;  %v309_v49 = vld [vmem:[%s2596_s29 + $0x450] sm:$0xff]  ;;  %v308_v50 = vld [vmem:[%s2596_s29 + $0x448] sm:$0xff] }
  0xc0   : > { %1022 = vmatprep.mubr.f32.mxu0 %v265_v51  ;;  %2306 = vmatprep.mubr.msk.f32.mxu1 %vm508_vm0, %v215_v52  ;;  %v313_v51 = vld [vmem:[%s2596_s29 + $0x470] sm:$0xff]  ;;  %v311_v52 = vld [vmem:[%s2596_s29 + $0x460] sm:$0xff] }
  0xc3   : > { %1023 = vmatmul.mubr.f32.gmra.mrb[62].mxu0 %v264_v53  ;;  %2307 = vmatmul.mubr.msk.f32.gmra.mrb[62].mxu1 %vm508_vm0, %v218_v54  ;;  %v312_v53 = vld [vmem:[%s2596_s29 + $0x468] sm:$0xff]  ;;  %v314_v54 = vld [vmem:[%s2596_s29 + $0x478] sm:$0xff] }
  0xc4   : > { %1027 = vmatprep.mubr.f32.mxu0 %v268_v55  ;;  %2309 = vmatprep.mubr.msk.f32.mxu1 %vm508_vm0, %v221_v56  ;;  %v316_v55 = vld [vmem:[%s2596_s29 + $0x488] sm:$0xff]  ;;  %v317_v56 = vld [vmem:[%s2596_s29 + $0x490] sm:$0xff] }
  0xc7   : > { %1028 = vmatmul.mubr.f32.gmra.mrb[64].mxu0 %v267_v57  ;;  %2310 = vmatmul.mubr.msk.f32.gmra.mrb[64].mxu1 %vm508_vm0, %v224_v58  ;;  %v315_v57 = vld [vmem:[%s2596_s29 + $0x480] sm:$0xff]  ;;  %v320_v58 = vld [vmem:[%s2596_s29 + $0x4a8] sm:$0xff] }
  0xc8   : > { %1032 = vmatprep.mubr.f32.mxu0 %v271_v59  ;;  %2312 = vmatprep.mubr.msk.f32.mxu1 %vm508_vm0, %v227_v60  ;;  %v319_v59 = vld [vmem:[%s2596_s29 + $0x4a0] sm:$0xff] }
  0xc9   : > { %v323_v60 = vld [vmem:[%s2596_s29 + $0x4c0] sm:$0xff] }
  0xcb   : > { %1033 = vmatmul.mubr.f32.gmra.mrb[66].mxu0 %v270_v61  ;;  %2313 = vmatmul.mubr.msk.f32.gmra.mrb[66].mxu1 %vm508_vm0, %v230_v62  ;;  %v318_v61 = vld [vmem:[%s2596_s29 + $0x498] sm:$0xff] }
  0xcc   : > { %1037 = vmatprep.mubr.f32.mxu0 %v274_v63  ;;  %2315 = vmatprep.mubr.msk.f32.mxu1 %vm508_vm0, %v233_v0  ;;  %v326_v62 = vld [vmem:[%s2596_s29 + $0x4d8] sm:$0xff]  ;;  %v329_v0 = vld [vmem:[%s2596_s29 + $0x4f0] sm:$0xff] }
  0xcd   : > { %v322_v63 = vld [vmem:[%s2596_s29 + $0x4b8] sm:$0xff] }
  0xcf   : > { %1038 = vmatmul.mubr.f32.gmra.mrb[68].mxu0 %v273_v1  ;;  %2316 = vmatmul.mubr.msk.f32.gmra.mrb[68].mxu1 %vm508_vm0, %v236_v2  ;;  %v321_v1 = vld [vmem:[%s2596_s29 + $0x4b0] sm:$0xff]  ;;  %v332_v2 = vld [vmem:[%s2596_s29 + $0x508] sm:$0xff] }
  0xd0   : > { %1042 = vmatprep.mubr.f32.mxu0 %v277_v3  ;;  %2318 = vmatprep.mubr.msk.f32.mxu1 %vm508_vm0, %v239_v4  ;;  %v325_v3 = vld [vmem:[%s2596_s29 + $0x4d0] sm:$0xff]  ;;  %v335_v4 = vld [vmem:[%s2596_s29 + $0x520] sm:$0xff] }
  0xd3   : > { %1043 = vmatmul.mubr.f32.gmra.mrb[70].mxu0 %v276_v5  ;;  %2319 = vmatmul.mubr.msk.f32.gmra.mrb[70].mxu1 %vm508_vm0, %v242_v6  ;;  %v324_v5 = vld [vmem:[%s2596_s29 + $0x4c8] sm:$0xff]  ;;  %v338_v6 = vld [vmem:[%s2596_s29 + $0x538] sm:$0xff] }
  0xd4   : > { %1047 = vmatprep.mubr.f32.mxu0 %v280_v7  ;;  %2321 = vmatprep.mubr.msk.f32.mxu1 %vm508_vm0, %v245_v8  ;;  %v328_v7 = vld [vmem:[%s2596_s29 + $0x4e8] sm:$0xff]  ;;  %v341_v8 = vld [vmem:[%s2596_s29 + $0x550] sm:$0xff] }
  0xd7   : > { %1048 = vmatmul.mubr.f32.gmra.mrb[72].mxu0 %v279_v9  ;;  %2322 = vmatmul.mubr.msk.f32.gmra.mrb[72].mxu1 %vm508_vm0, %v248_v10  ;;  %v327_v9 = vld [vmem:[%s2596_s29 + $0x4e0] sm:$0xff]  ;;  %v344_v10 = vld [vmem:[%s2596_s29 + $0x568] sm:$0xff] }
  0xd8   : > { %1052 = vmatprep.mubr.f32.mxu0 %v283_v11  ;;  %2324 = vmatprep.mubr.msk.f32.mxu1 %vm508_vm0, %v251_v12  ;;  %v331_v11 = vld [vmem:[%s2596_s29 + $0x500] sm:$0xff] }
  0xd9   : > { %v347_v12 = vld [vmem:[%s2596_s29 + $0x580] sm:$0xff] }
  0xdb   : > { %1053 = vmatmul.mubr.f32.gmra.mrb[74].mxu0 %v282_v13  ;;  %2325 = vmatmul.mubr.msk.f32.gmra.mrb[74].mxu1 %vm508_vm0, %v254_v14  ;;  %v330_v13 = vld [vmem:[%s2596_s29 + $0x4f8] sm:$0xff] }
  0xdc   : > { %1057 = vmatprep.mubr.f32.mxu0 %v286_v15  ;;  %2327 = vmatprep.mubr.msk.f32.mxu1 %vm508_vm0, %v257_v16  ;;  %v350_v14 = vld [vmem:[%s2596_s29 + $0x598] sm:$0xff]  ;;  %v353_v16 = vld [vmem:[%s2596_s29 + $0x5b0] sm:$0xff] }
  0xdd   : > { %v334_v15 = vld [vmem:[%s2596_s29 + $0x518] sm:$0xff] }
  0xdf   : > { %1058 = vmatmul.mubr.f32.gmra.mrb[76].mxu0 %v285_v17  ;;  %2328 = vmatmul.mubr.msk.f32.gmra.mrb[76].mxu1 %vm508_vm0, %v260_v18 }
  0xe0   : > { %1062 = vmatprep.mubr.f32.mxu0 %v289_v19  ;;  %2330 = vmatprep.mubr.msk.f32.mxu1 %vm508_vm0, %v263_v20 }
  0xe3   : > { %1063 = vmatmul.mubr.f32.gmra.mrb[78].mxu0 %v288_v21  ;;  %2331 = vmatmul.mubr.msk.f32.gmra.mrb[78].mxu1 %vm508_vm0, %v266_v22  ;;  %v333_v21 = vld [vmem:[%s2596_s29 + $0x510] sm:$0xff]  ;;  %v356_v22 = vld [vmem:[%s2596_s29 + $0x5c8] sm:$0xff] }
  0xe4   : > { %1067 = vmatprep.mubr.f32.mxu0 %v292_v23  ;;  %2333 = vmatprep.mubr.msk.f32.mxu1 %vm508_vm0, %v269_v24  ;;  %v337_v23 = vld [vmem:[%s2596_s29 + $0x530] sm:$0xff]  ;;  %v359_v24 = vld [vmem:[%s2596_s29 + $0x5e0] sm:$0xff] }
  0xe7   : > { %1068 = vmatmul.mubr.f32.gmra.mrb[80].mxu0 %v291_v25  ;;  %2334 = vmatmul.mubr.msk.f32.gmra.mrb[80].mxu1 %vm508_vm0, %v272_v26 }
  0xe8   : > { %1072 = vmatprep.mubr.f32.mxu0 %v295_v27  ;;  %2336 = vmatprep.mubr.msk.f32.mxu1 %vm508_vm0, %v275_v28 }
  0xeb   : > { %1073 = vmatmul.mubr.f32.gmra.mrb[82].mxu0 %v294_v29  ;;  %2337 = vmatmul.mubr.msk.f32.gmra.mrb[82].mxu1 %vm508_vm0, %v278_v30  ;;  %v336_v29 = vld [vmem:[%s2596_s29 + $0x528] sm:$0xff]  ;;  %v362_v30 = vld [vmem:[%s2596_s29 + $0x5f8] sm:$0xff] }
  0xec   : > { %1077 = vmatprep.mubr.f32.mxu0 %v298_v31  ;;  %2339 = vmatprep.mubr.msk.f32.mxu1 %vm508_vm0, %v281_v32  ;;  %v340_v31 = vld [vmem:[%s2596_s29 + $0x548] sm:$0xff]  ;;  %v365_v32 = vld [vmem:[%s2596_s29 + $0x610] sm:$0xff] }
  0xef   : > { %1078 = vmatmul.mubr.f32.gmra.mrb[84].mxu0 %v297_v33  ;;  %2340 = vmatmul.mubr.msk.f32.gmra.mrb[84].mxu1 %vm508_vm0, %v284_v34 }
  0xf0   : > { %1082 = vmatprep.mubr.f32.mxu0 %v301_v35  ;;  %2342 = vmatprep.mubr.msk.f32.mxu1 %vm508_vm0, %v287_v36 }
  0xf3   : > { %1083 = vmatmul.mubr.f32.gmra.mrb[86].mxu0 %v300_v37  ;;  %2343 = vmatmul.mubr.msk.f32.gmra.mrb[86].mxu1 %vm508_vm0, %v290_v38  ;;  %v339_v37 = vld [vmem:[%s2596_s29 + $0x540] sm:$0xff]  ;;  %v368_v38 = vld [vmem:[%s2596_s29 + $0x628] sm:$0xff] }
  0xf4   : > { %1087 = vmatprep.mubr.f32.mxu0 %v304_v39  ;;  %2345 = vmatprep.mubr.msk.f32.mxu1 %vm508_vm0, %v293_v40  ;;  %v343_v39 = vld [vmem:[%s2596_s29 + $0x560] sm:$0xff] }
  0xf5   : > { %v371_v40 = vld [vmem:[%s2596_s29 + $0x640] sm:$0xff] }
  0xf7   : > { %1088 = vmatmul.mubr.f32.gmra.mrb[88].mxu0 %v303_v41  ;;  %2346 = vmatmul.mubr.msk.f32.gmra.mrb[88].mxu1 %vm508_vm0, %v296_v42 }
  0xf8   : > { %1092 = vmatprep.mubr.f32.mxu0 %v307_v43  ;;  %2348 = vmatprep.mubr.msk.f32.mxu1 %vm508_vm0, %v299_v44 }
  0xfb   : > { %1093 = vmatmul.mubr.f32.gmra.mrb[90].mxu0 %v306_v45  ;;  %2349 = vmatmul.mubr.msk.f32.gmra.mrb[90].mxu1 %vm508_vm0, %v302_v46  ;;  %v342_v45 = vld [vmem:[%s2596_s29 + $0x558] sm:$0xff] }
  0xfc   : > { %1097 = vmatprep.mubr.f32.mxu0 %v310_v47  ;;  %2351 = vmatprep.mubr.msk.f32.mxu1 %vm508_vm0, %v305_v48  ;;  %v374_v46 = vld [vmem:[%s2596_s29 + $0x658] sm:$0xff]  ;;  %v377_v48 = vld [vmem:[%s2596_s29 + $0x670] sm:$0xff] }
  0xfd   : > { %v346_v47 = vld [vmem:[%s2596_s29 + $0x578] sm:$0xff] }
  0xff   : > { %1098 = vmatmul.mubr.f32.gmra.mrb[92].mxu0 %v309_v49  ;;  %2352 = vmatmul.mubr.msk.f32.gmra.mrb[92].mxu1 %vm508_vm0, %v308_v50 }
 0x100   : > { %1102 = vmatprep.mubr.f32.mxu0 %v313_v51  ;;  %2354 = vmatprep.mubr.msk.f32.mxu1 %vm508_vm0, %v311_v52 }
 0x103   : > { %1103 = vmatmul.mubr.f32.gmra.mrb[94].mxu0 %v312_v53  ;;  %2355 = vmatmul.mubr.msk.f32.gmra.mrb[94].mxu1 %vm508_vm0, %v314_v54  ;;  %v345_v53 = vld [vmem:[%s2596_s29 + $0x570] sm:$0xff]  ;;  %v380_v54 = vld [vmem:[%s2596_s29 + $0x688] sm:$0xff] }
 0x104   : > { %1107 = vmatprep.mubr.f32.mxu0 %v316_v55  ;;  %2357 = vmatprep.mubr.msk.f32.mxu1 %vm508_vm0, %v317_v56  ;;  %v349_v55 = vld [vmem:[%s2596_s29 + $0x590] sm:$0xff]  ;;  %v383_v56 = vld [vmem:[%s2596_s29 + $0x6a0] sm:$0xff] }
 0x107   : > { %1108 = vmatmul.mubr.f32.gmra.mrb[96].mxu0 %v315_v57  ;;  %2358 = vmatmul.mubr.msk.f32.gmra.mrb[96].mxu1 %vm508_vm0, %v320_v58 }
 0x108   : > { %1112 = vmatprep.mubr.f32.mxu0 %v319_v59  ;;  %2360 = vmatprep.mubr.msk.f32.mxu1 %vm508_vm0, %v323_v60 }
 0x10b   : > { %1113 = vmatmul.mubr.f32.gmra.mrb[98].mxu0 %v318_v61  ;;  %2361 = vmatmul.mubr.msk.f32.gmra.mrb[98].mxu1 %vm508_vm0, %v326_v62  ;;  %v348_v61 = vld [vmem:[%s2596_s29 + $0x588] sm:$0xff]  ;;  %v386_v62 = vld [vmem:[%s2596_s29 + $0x6b8] sm:$0xff] }
 0x10c   : > { %1117 = vmatprep.mubr.f32.mxu0 %v322_v63  ;;  %2363 = vmatprep.mubr.msk.f32.mxu1 %vm508_vm0, %v329_v0  ;;  %v352_v63 = vld [vmem:[%s2596_s29 + $0x5a8] sm:$0xff]  ;;  %v389_v0 = vld [vmem:[%s2596_s29 + $0x6d0] sm:$0xff] }
 0x10f   : > { %1118 = vmatmul.mubr.f32.gmra.mrb[100].mxu0 %v321_v1  ;;  %2364 = vmatmul.mubr.msk.f32.gmra.mrb[100].mxu1 %vm508_vm0, %v332_v2 }
 0x110   : > { %1122 = vmatprep.mubr.f32.mxu0 %v325_v3  ;;  %2366 = vmatprep.mubr.msk.f32.mxu1 %vm508_vm0, %v335_v4 }
 0x113   : > { %1123 = vmatmul.mubr.f32.gmra.mrb[102].mxu0 %v324_v5  ;;  %2367 = vmatmul.mubr.msk.f32.gmra.mrb[102].mxu1 %vm508_vm0, %v338_v6  ;;  %v351_v5 = vld [vmem:[%s2596_s29 + $0x5a0] sm:$0xff]  ;;  %v392_v6 = vld [vmem:[%s2596_s29 + $0x6e8] sm:$0xff] }
 0x114   : > { %1127 = vmatprep.mubr.f32.mxu0 %v328_v7  ;;  %2369 = vmatprep.mubr.msk.f32.mxu1 %vm508_vm0, %v341_v8  ;;  %v355_v7 = vld [vmem:[%s2596_s29 + $0x5c0] sm:$0xff] }
 0x115   : > { %v395_v8 = vld [vmem:[%s2596_s29 + $0x700] sm:$0xff] }
 0x117   : > { %1128 = vmatmul.mubr.f32.gmra.mrb[104].mxu0 %v327_v9  ;;  %2370 = vmatmul.mubr.msk.f32.gmra.mrb[104].mxu1 %vm508_vm0, %v344_v10 }
 0x118   : > { %1132 = vmatprep.mubr.f32.mxu0 %v331_v11  ;;  %2372 = vmatprep.mubr.msk.f32.mxu1 %vm508_vm0, %v347_v12 }
 0x11a   : > { %v2993_v17 = vpop.f32.mrb[0].mxu0  ;;  %v2995_v18 = vpop.f32.mrb[0].mxu1 }
 0x11b   : > { %v871_v19 = vpop.f32.mrb[1].mxu0  ;;  %1133 = vmatmul.mubr.f32.gmra.mrb[106].mxu0 %v330_v13  ;;  %2373 = vmatmul.mubr.msk.f32.gmra.mrb[106].mxu1 %vm508_vm0, %v350_v14  ;;  %v1241_v20 = vpop.f32.mrb[1].mxu1  ;;  %v354_v13 = vld [vmem:[%s2596_s29 + $0x5b8] sm:$0xff] }
 0x11c   : > { %1137 = vmatprep.mubr.f32.mxu0 %v334_v15  ;;  %2375 = vmatprep.mubr.msk.f32.mxu1 %vm508_vm0, %v353_v16  ;;  %v398_v14 = vld [vmem:[%s2596_s29 + $0x718] sm:$0xff]  ;;  %v401_v16 = vld [vmem:[%s2596_s29 + $0x730] sm:$0xff] }
 0x11d   : > { %v358_v15 = vld [vmem:[%s2596_s29 + $0x5d8] sm:$0xff] }
 0x11e   : > { %v3003_v25 = vpop.f32.mrb[2].mxu0  ;;  %v3005_v26 = vpop.f32.mrb[2].mxu1 }
 0x11f   : > { %v876_v27 = vpop.f32.mrb[3].mxu0  ;;  %1138 = vmatmul.mubr.f32.gmra.mrb[108].mxu0 %v333_v21  ;;  %2376 = vmatmul.mubr.msk.f32.gmra.mrb[108].mxu1 %vm508_vm0, %v356_v22  ;;  %v1246_v28 = vpop.f32.mrb[3].mxu1 }
 0x120   : > { %1142 = vmatprep.mubr.f32.mxu0 %v337_v23  ;;  %2378 = vmatprep.mubr.msk.f32.mxu1 %vm508_vm0, %v359_v24  ;;  %v357_v23 = vld [vmem:[%s2596_s29 + $0x5d0] sm:$0xff]  ;;  %v404_v24 = vld [vmem:[%s2596_s29 + $0x748] sm:$0xff]  ;;  %v407_v28 = vld [vmem:[%s2596_s29 + $0x760] sm:$0xff] }
 0x121   : > { %v361_v27 = vld [vmem:[%s2596_s29 + $0x5f0] sm:$0xff] }
 0x122   : > { %v3013_v33 = vpop.f32.mrb[4].mxu0  ;;  %v3015_v34 = vpop.f32.mrb[4].mxu1 }
 0x123   : > { %v881_v35 = vpop.f32.mrb[5].mxu0  ;;  %1143 = vmatmul.mubr.f32.gmra.mrb[110].mxu0 %v336_v29  ;;  %2379 = vmatmul.mubr.msk.f32.gmra.mrb[110].mxu1 %vm508_vm0, %v362_v30  ;;  %v1251_v36 = vpop.f32.mrb[5].mxu1 }
 0x124   : > { %1147 = vmatprep.mubr.f32.mxu0 %v340_v31  ;;  %2381 = vmatprep.mubr.msk.f32.mxu1 %vm508_vm0, %v365_v32  ;;  %v360_v35 = vld [vmem:[%s2596_s29 + $0x5e8] sm:$0xff]  ;;  %v410_v36 = vld [vmem:[%s2596_s29 + $0x778] sm:$0xff] }
 0x126   : > { %v3023_v41 = vpop.f32.mrb[6].mxu0  ;;  %v3025_v42 = vpop.f32.mrb[6].mxu1 }
 0x127   : > { %v886_v43 = vpop.f32.mrb[7].mxu0  ;;  %1148 = vmatmul.mubr.f32.gmra.mrb[112].mxu0 %v339_v37  ;;  %2382 = vmatmul.mubr.msk.f32.gmra.mrb[112].mxu1 %vm508_vm0, %v368_v38  ;;  %v1256_v44 = vpop.f32.mrb[7].mxu1  ;;  %v364_v37 = vld [vmem:[%s2596_s29 + $0x608] sm:$0xff]  ;;  %v413_v38 = vld [vmem:[%s2596_s29 + $0x790] sm:$0xff] }
 0x128   : > { %1152 = vmatprep.mubr.f32.mxu0 %v343_v39  ;;  %2384 = vmatprep.mubr.msk.f32.mxu1 %vm508_vm0, %v371_v40 }
 0x12a   : > { %v3033_v49 = vpop.f32.mrb[8].mxu0  ;;  %v3035_v50 = vpop.f32.mrb[8].mxu1 }
 0x12b   : > { %v891_v51 = vpop.f32.mrb[9].mxu0  ;;  %1153 = vmatmul.mubr.f32.gmra.mrb[114].mxu0 %v342_v45  ;;  %2385 = vmatmul.mubr.msk.f32.gmra.mrb[114].mxu1 %vm508_vm0, %v374_v46  ;;  %v1261_v52 = vpop.f32.mrb[9].mxu1  ;;  %v363_v45 = vld [vmem:[%s2596_s29 + $0x600] sm:$0xff]  ;;  %v416_v46 = vld [vmem:[%s2596_s29 + $0x7a8] sm:$0xff] }
 0x12c   : > { %1157 = vmatprep.mubr.f32.mxu0 %v346_v47  ;;  %2387 = vmatprep.mubr.msk.f32.mxu1 %vm508_vm0, %v377_v48  ;;  %v367_v47 = vld [vmem:[%s2596_s29 + $0x620] sm:$0xff] }
 0x12d   : > { %v419_v48 = vld [vmem:[%s2596_s29 + $0x7c0] sm:$0xff] }
 0x12e   : > { %v3043_v57 = vpop.f32.mrb[10].mxu0  ;;  %v3045_v58 = vpop.f32.mrb[10].mxu1 }
 0x12f   : > { %v896_v59 = vpop.f32.mrb[11].mxu0  ;;  %1158 = vmatmul.mubr.f32.gmra.mrb[116].mxu0 %v345_v53  ;;  %2388 = vmatmul.mubr.msk.f32.gmra.mrb[116].mxu1 %vm508_vm0, %v380_v54  ;;  %v1266_v60 = vpop.f32.mrb[11].mxu1 }
 0x130   : > { %1162 = vmatprep.mubr.f32.mxu0 %v349_v55  ;;  %2390 = vmatprep.mubr.msk.f32.mxu1 %vm508_vm0, %v383_v56  ;;  %v366_v55 = vld [vmem:[%s2596_s29 + $0x618] sm:$0xff]  ;;  %v425_v60 = vld [vmem:[%s2596_s29 + $0x7f0] sm:$0xff] }
 0x131   : > { %v422_v56 = vld [vmem:[%s2596_s29 + $0x7d8] sm:$0xff] }
 0x132   : > { %v3053_v1 = vpop.f32.mrb[12].mxu0  ;;  %v3055_v2 = vpop.f32.mrb[12].mxu1  ;;  %v370_v59 = vld [vmem:[%s2596_s29 + $0x638] sm:$0xff] }
 0x133   : > { %v901_v3 = vpop.f32.mrb[13].mxu0  ;;  %1163 = vmatmul.mubr.f32.gmra.mrb[118].mxu0 %v348_v61  ;;  %2391 = vmatmul.mubr.msk.f32.gmra.mrb[118].mxu1 %vm508_vm0, %v386_v62  ;;  %v1271_v4 = vpop.f32.mrb[13].mxu1 }
 0x134   : > { %1167 = vmatprep.mubr.f32.mxu0 %v352_v63  ;;  %2393 = vmatprep.mubr.msk.f32.mxu1 %vm508_vm0, %v389_v0  ;;  %v369_v3 = vld [vmem:[%s2596_s29 + $0x630] sm:$0xff]  ;;  %v428_v4 = vld [vmem:[%s2596_s29 + $0x808] sm:$0xff] }
 0x136   : > { %v3063_v9 = vpop.f32.mrb[14].mxu0  ;;  %v3065_v10 = vpop.f32.mrb[14].mxu1 }
 0x137   : > { %v906_v11 = vpop.f32.mrb[15].mxu0  ;;  %1168 = vmatmul.mubr.f32.gmra.mrb[120].mxu0 %v351_v5  ;;  %2394 = vmatmul.mubr.msk.f32.gmra.mrb[120].mxu1 %vm508_vm0, %v392_v6  ;;  %v1276_v12 = vpop.f32.mrb[15].mxu1  ;;  %v373_v5 = vld [vmem:[%s2596_s29 + $0x650] sm:$0xff]  ;;  %v431_v6 = vld [vmem:[%s2596_s29 + $0x820] sm:$0xff] }
 0x138   : > { %1172 = vmatprep.mubr.f32.mxu0 %v355_v7  ;;  %2396 = vmatprep.mubr.msk.f32.mxu1 %vm508_vm0, %v395_v8 }
 0x13a   : > { %v3073_v19 = vpop.f32.mrb[16].mxu0  ;;  %v3075_v20 = vpop.f32.mrb[16].mxu1 }
 0x13b   : > { %v911_v21 = vpop.f32.mrb[17].mxu0  ;;  %1173 = vmatmul.mubr.f32.gmra.mrb[122].mxu0 %v354_v13  ;;  %2397 = vmatmul.mubr.msk.f32.gmra.mrb[122].mxu1 %vm508_vm0, %v398_v14  ;;  %v1281_v22 = vpop.f32.mrb[17].mxu1  ;;  %v372_v13 = vld [vmem:[%s2596_s29 + $0x648] sm:$0xff]  ;;  %v434_v14 = vld [vmem:[%s2596_s29 + $0x838] sm:$0xff] }
 0x13c   : > { %1177 = vmatprep.mubr.f32.mxu0 %v358_v15  ;;  %2399 = vmatprep.mubr.msk.f32.mxu1 %vm508_vm0, %v401_v16  ;;  %v376_v15 = vld [vmem:[%s2596_s29 + $0x668] sm:$0xff]  ;;  %v437_v16 = vld [vmem:[%s2596_s29 + $0x850] sm:$0xff] }
 0x13e   : > { %v3083_v29 = vpop.f32.mrb[18].mxu0  ;;  %v3085_v30 = vpop.f32.mrb[18].mxu1 }
 0x13f   : > { %v916_v31 = vpop.f32.mrb[19].mxu0  ;;  %1178 = vmatmul.mubr.f32.gmra.mrb[124].mxu0 %v357_v23  ;;  %2400 = vmatmul.mubr.msk.f32.gmra.mrb[124].mxu1 %vm508_vm0, %v404_v24  ;;  %v1286_v32 = vpop.f32.mrb[19].mxu1 }
 0x140   : > { %1182 = vmatprep.mubr.f32.mxu0 %v361_v27  ;;  %2402 = vmatprep.mubr.msk.f32.mxu1 %vm508_vm0, %v407_v28  ;;  %v375_v27 = vld [vmem:[%s2596_s29 + $0x660] sm:$0xff]  ;;  %v440_v28 = vld [vmem:[%s2596_s29 + $0x868] sm:$0xff] }
 0x141   : > { %v379_v31 = vld [vmem:[%s2596_s29 + $0x680] sm:$0xff] }
 0x142   : > { %v3093_v39 = vpop.f32.mrb[20].mxu0  ;;  %v3095_v40 = vpop.f32.mrb[20].mxu1  ;;  %v443_v32 = vld [vmem:[%s2596_s29 + $0x880] sm:$0xff] }
 0x143   : > { %v921_v43 = vpop.f32.mrb[21].mxu0  ;;  %1183 = vmatmul.mubr.f32.gmra.mrb[126].mxu0 %v360_v35  ;;  %2403 = vmatmul.mubr.msk.f32.gmra.mrb[126].mxu1 %vm508_vm0, %v410_v36  ;;  %v1291_v44 = vpop.f32.mrb[21].mxu1 }
 0x144   : > { %1187 = vmatprep.mubr.f32.mxu0 %v364_v37  ;;  %2405 = vmatprep.mubr.msk.f32.mxu1 %vm508_vm0, %v413_v38  ;;  %v378_v43 = vld [vmem:[%s2596_s29 + $0x678] sm:$0xff] }
 0x145   : > { %v446_v44 = vld [vmem:[%s2596_s29 + $0x898] sm:$0xff] }
 0x146   : > { %v3103_v51 = vpop.f32.mrb[22].mxu0  ;;  %v3105_v52 = vpop.f32.mrb[22].mxu1 }
 0x147   : > { %v926_v53 = vpop.f32.mrb[23].mxu0  ;;  %1188 = vmatmul.mubr.f32.gmra.mrb[128].mxu0 %v363_v45  ;;  %2406 = vmatmul.mubr.msk.f32.gmra.mrb[128].mxu1 %vm508_vm0, %v416_v46  ;;  %v1296_v54 = vpop.f32.mrb[23].mxu1  ;;  %v382_v45 = vld [vmem:[%s2596_s29 + $0x698] sm:$0xff]  ;;  %v449_v46 = vld [vmem:[%s2596_s29 + $0x8b0] sm:$0xff] }
 0x148   : > { %1192 = vmatprep.mubr.f32.mxu0 %v367_v47  ;;  %2408 = vmatprep.mubr.msk.f32.mxu1 %vm508_vm0, %v419_v48 }
 0x14a   : > { %v3113_v61 = vpop.f32.mrb[24].mxu0  ;;  %v3115_v62 = vpop.f32.mrb[24].mxu1 }
 0x14b   : > { %v931_v63 = vpop.f32.mrb[25].mxu0  ;;  %1193 = vmatmul.mubr.f32.gmra.mrb[130].mxu0 %v366_v55  ;;  %2409 = vmatmul.mubr.msk.f32.gmra.mrb[130].mxu1 %vm508_vm0, %v422_v56  ;;  %v1301_v0 = vpop.f32.mrb[25].mxu1  ;;  %v381_v55 = vld [vmem:[%s2596_s29 + $0x690] sm:$0xff]  ;;  %v452_v56 = vld [vmem:[%s2596_s29 + $0x8c8] sm:$0xff] }
 0x14c   : > { %1197 = vmatprep.mubr.f32.mxu0 %v370_v59  ;;  %2411 = vmatprep.mubr.msk.f32.mxu1 %vm508_vm0, %v425_v60  ;;  %v385_v59 = vld [vmem:[%s2596_s29 + $0x6b0] sm:$0xff]  ;;  %v455_v60 = vld [vmem:[%s2596_s29 + $0x8e0] sm:$0xff] }
 0x14e   : > { %v3123_v7 = vpop.f32.mrb[26].mxu0  ;;  %v3125_v8 = vpop.f32.mrb[26].mxu1 }
 0x14f   : > { %v936_v11 = vpop.f32.mrb[27].mxu0  ;;  %1198 = vmatmul.mubr.f32.gmra.mrb[132].mxu0 %v369_v3  ;;  %2412 = vmatmul.mubr.msk.f32.gmra.mrb[132].mxu1 %vm508_vm0, %v428_v4  ;;  %v1306_v12 = vpop.f32.mrb[27].mxu1 }
 0x150   : > { %1202 = vmatprep.mubr.f32.mxu0 %v373_v5  ;;  %2414 = vmatprep.mubr.msk.f32.mxu1 %vm508_vm0, %v431_v6  ;;  %v384_v5 = vld [vmem:[%s2596_s29 + $0x6a8] sm:$0xff]  ;;  %v458_v6 = vld [vmem:[%s2596_s29 + $0x8f8] sm:$0xff]  ;;  %v461_v12 = vld [vmem:[%s2596_s29 + $0x910] sm:$0xff] }
 0x151   : > { %v388_v11 = vld [vmem:[%s2596_s29 + $0x6c8] sm:$0xff] }
 0x152   : > { %v3133_v21 = vpop.f32.mrb[28].mxu0  ;;  %v3135_v22 = vpop.f32.mrb[28].mxu1 }
 0x153   : > { %v941_v23 = vpop.f32.mrb[29].mxu0  ;;  %1203 = vmatmul.mubr.f32.gmra.mrb[134].mxu0 %v372_v13  ;;  %2415 = vmatmul.mubr.msk.f32.gmra.mrb[134].mxu1 %vm508_vm0, %v434_v14  ;;  %v1311_v24 = vpop.f32.mrb[29].mxu1 }
 0x154   : > { %1207 = vmatprep.mubr.f32.mxu0 %v376_v15  ;;  %2417 = vmatprep.mubr.msk.f32.mxu1 %vm508_vm0, %v437_v16  ;;  %v387_v23 = vld [vmem:[%s2596_s29 + $0x6c0] sm:$0xff]  ;;  %v464_v24 = vld [vmem:[%s2596_s29 + $0x928] sm:$0xff] }
 0x156   : > { %v3143_v35 = vpop.f32.mrb[30].mxu0  ;;  %v3145_v36 = vpop.f32.mrb[30].mxu1 }
 0x157   : > { %v946_v37 = vpop.f32.mrb[31].mxu0  ;;  %1208 = vmatmul.mubr.f32.gmra.mrb[136].mxu0 %v375_v27  ;;  %2418 = vmatmul.mubr.msk.f32.gmra.mrb[136].mxu1 %vm508_vm0, %v440_v28  ;;  %v1316_v38 = vpop.f32.mrb[31].mxu1  ;;  %v391_v27 = vld [vmem:[%s2596_s29 + $0x6e0] sm:$0xff] }
 0x158   : > { %1212 = vmatprep.mubr.f32.mxu0 %v379_v31  ;;  %2420 = vmatprep.mubr.msk.f32.mxu1 %vm508_vm0, %v443_v32  ;;  %v390_v38 = vld [vmem:[%s2596_s29 + $0x6d8] sm:$0xff]  ;;  %s2521_s29 = smul.u32 784, %s3631_s13 }
 0x15a   : > { %v3153_v47 = vpop.f32.mrb[32].mxu0  ;;  %v3155_v48 = vpop.f32.mrb[32].mxu1  ;;  %s3219_s21 = scalar_lea.vmem %s3629_s3, %s2521_s29 }
 0x15b   : > { %v951_v53 = vpop.f32.mrb[33].mxu0  ;;  %1213 = vmatmul.mubr.f32.gmra.mrb[138].mxu0 %v378_v43  ;;  %2421 = vmatmul.mubr.msk.f32.gmra.mrb[138].mxu1 %vm508_vm0, %v446_v44  ;;  %v1321_v54 = vpop.f32.mrb[33].mxu1 }
 0x15c   : > { %1217 = vmatprep.mubr.f32.mxu0 %v382_v45  ;;  %2423 = vmatprep.mubr.msk.f32.mxu1 %vm508_vm0, %v449_v46 }
 0x15e   : > { %v3163_v63 = vpop.f32.mrb[34].mxu0  ;;  %v3165_v0 = vpop.f32.mrb[34].mxu1 }
 0x15f   : > { %v956_v3 = vpop.f32.mrb[35].mxu0  ;;  %1218 = vmatmul.mubr.f32.gmra.mrb[140].mxu0 %v381_v55  ;;  %2424 = vmatmul.mubr.msk.f32.gmra.mrb[140].mxu1 %vm508_vm0, %v452_v56  ;;  %v1326_v4 = vpop.f32.mrb[35].mxu1 }
 0x160   : > { %1222 = vmatprep.mubr.f32.mxu0 %v385_v59  ;;  %2426 = vmatprep.mubr.msk.f32.mxu1 %vm508_vm0, %v455_v60 }
 0x162   : > { %v3173_v13 = vpop.f32.mrb[36].mxu0  ;;  %v3175_v14 = vpop.f32.mrb[36].mxu1 }
 0x163   : > { %v961_v15 = vpop.f32.mrb[37].mxu0  ;;  %1223 = vmatmul.mubr.f32.gmra.mrb[142].mxu0 %v384_v5  ;;  %2427 = vmatmul.mubr.msk.f32.gmra.mrb[142].mxu1 %vm508_vm0, %v458_v6  ;;  %v1331_v16 = vpop.f32.mrb[37].mxu1 }
 0x164   : > { %1227 = vmatprep.mubr.f32.mxu0 %v388_v11  ;;  %2429 = vmatprep.mubr.msk.f32.mxu1 %vm508_vm0, %v461_v12  ;;  %v3208_v11 = vld [vmem:[%s3628_s2] ss:$0 sm:$0xff] }
 0x165   : > { %v875_v16 = vadd.f32 %v3208_v11, %v3003_v25 }
 0x166   : > { %v3182_v28 = vpop.f32.mrb[38].mxu0  ;;  %v3184_v31 = vpop.f32.mrb[38].mxu1 }
 0x167   : > { %v966_v32 = vpop.f32.mrb[39].mxu0  ;;  %1228 = vmatmul.mubr.f32.gmra.mrb[144].mxu0 %v387_v23  ;;  %2430 = vmatmul.mubr.msk.f32.gmra.mrb[144].mxu1 %vm508_vm0, %v464_v24  ;;  %v1336_v37 = vpop.f32.mrb[39].mxu1  ;;  %v870_v23 = vadd.f32 %v3208_v11, %v2993_v17  ;;  %v885_v17 = vadd.f32 %v3208_v11, %v3023_v41  ;;  %v890_v41 = vadd.f32 %v3208_v11, %v3033_v49 }
 0x168   : > { %1232 = vmatprep.mubr.f32.mxu0 %v391_v27 }
 0x16a   : > { %v3188_v43 = vpop.f32.mrb[40].mxu0  ;;  %v3190_v44 = vpop.f32.mrb[40].mxu1 }
 0x16b   : > { %v971_v45 = vpop.f32.mrb[41].mxu0  ;;  %1233 = vmatmul.mubr.f32.gmra.mrb[146].mxu0 %v390_v38  ;;  %v1341_v46 = vpop.f32.mrb[41].mxu1 }
 0x16c   : > { %v880_v45 = vadd.f32 %v3208_v11, %v3013_v33 }
 0x16e   : > { %v3192_v53 = vpop.f32.mrb[42].mxu0  ;;  %v3194_v54 = vpop.f32.mrb[42].mxu1 }
 0x16f   : > { %v976_v55 = vpop.f32.mrb[43].mxu0  ;;  %v1346_v56 = vpop.f32.mrb[43].mxu1 }
 0x172   : > { %v3196_v59 = vpop.f32.mrb[44].mxu0  ;;  %v3198_v60 = vpop.f32.mrb[44].mxu1 }
 0x173   : > { %v981_v3 = vpop.f32.mrb[45].mxu0  ;;  %v1351_v4 = vpop.f32.mrb[45].mxu1 }
 0x176   : > { %v3200_v5 = vpop.f32.mrb[46].mxu0  ;;  %v3202_v6 = vpop.f32.mrb[46].mxu1 }
 0x177   : > { %v986_v12 = vpop.f32.mrb[47].mxu0  ;;  %v1356_v15 = vpop.f32.mrb[47].mxu1 }
 0x178   : > { %v895_v15 = vadd.f32 %v3208_v11, %v3043_v57  ;;  %v900_v57 = vadd.f32 %v3208_v11, %v3053_v1 }
 0x17a   : > { %v3214_v24 = vpop.f32.mrb[48].mxu0  ;;  %v2287_v27 = vpop.f32.mrb[48].mxu1 }
 0x17b   : > { %v1430_v32 = vadd.f32 %v2287_v27, %v875_v16  ;;  %v991_v37 = vpop.f32.mrb[49].mxu0  ;;  %v1424_v38 = vpop.f32.mrb[49].mxu1 }
 0x17c   : > { %v1425_v25 = vadd.f32 %v1424_v38, %v870_v23  ;;  %v905_v38 = vadd.f32 %v3208_v11, %v3063_v9  ;;  %v910_v9 = vadd.f32 %v3208_v11, %v3073_v19 }
 0x17d   : > { %1915 = vst.msk [vmem:[%s3219_s21 + $0x8] sm:$0xff] %vm1913_vm1, %v1430_v32 }
 0x17e   : > { %1914 = vst.msk [vmem:[%s3219_s21] sm:$0xff] %vm1913_vm1, %v1425_v25  ;;  %v3229_v46 = vpop.f32.mrb[50].mxu0  ;;  %v2290_v55 = vpop.f32.mrb[50].mxu1 }
 0x17f   : > { %v1440_v56 = vadd.f32 %v2290_v55, %v885_v17  ;;  %v996_v3 = vpop.f32.mrb[51].mxu0  ;;  %v1434_v4 = vpop.f32.mrb[51].mxu1 }
 0x180   : > { %v1435_v12 = vadd.f32 %v1434_v4, %v880_v45  ;;  %v915_v3 = vadd.f32 %v3208_v11, %v3083_v29  ;;  %v920_v29 = vadd.f32 %v3208_v11, %v3093_v39 }
 0x181   : > { %1917 = vst.msk [vmem:[%s3219_s21 + $0x18] sm:$0xff] %vm1913_vm1, %v1440_v56 }
 0x182   : > { %1916 = vst.msk [vmem:[%s3219_s21 + $0x10] sm:$0xff] %vm1913_vm1, %v1435_v12  ;;  %v3239_v33 = vpop.f32.mrb[52].mxu0  ;;  %v2293_v16 = vpop.f32.mrb[52].mxu1 }
 0x183   : > { %v1450_v23 = vadd.f32 %v2293_v16, %v895_v15  ;;  %v1001_v27 = vpop.f32.mrb[53].mxu0  ;;  %v1444_v32 = vpop.f32.mrb[53].mxu1 }
 0x184   : > { %v1445_v37 = vadd.f32 %v1444_v32, %v890_v41 }
 0x185   : > { %1919 = vst.msk [vmem:[%s3219_s21 + $0x28] sm:$0xff] %vm1913_vm1, %v1450_v23  ;;  %v925_v23 = vadd.f32 %v3208_v11, %v3103_v51  ;;  %v930_v51 = vadd.f32 %v3208_v11, %v3113_v61 }
 0x186   : > { %1918 = vst.msk [vmem:[%s3219_s21 + $0x20] sm:$0xff] %vm1913_vm1, %v1445_v37  ;;  %v3249_v49 = vpop.f32.mrb[54].mxu0  ;;  %v2296_v25 = vpop.f32.mrb[54].mxu1 }
 0x187   : > { %v1460_v17 = vadd.f32 %v2296_v25, %v905_v38  ;;  %v1006_v45 = vpop.f32.mrb[55].mxu0  ;;  %v1454_v55 = vpop.f32.mrb[55].mxu1  ;;  %v935_v25 = vadd.f32 %v3208_v11, %v3123_v7  ;;  %v940_v7 = vadd.f32 %v3208_v11, %v3133_v21 }
 0x188   : > { %v1455_v56 = vadd.f32 %v1454_v55, %v900_v57 }
 0x189   : > { %1921 = vst.msk [vmem:[%s3219_s21 + $0x38] sm:$0xff] %vm1913_vm1, %v1460_v17 }
 0x18a   : > { %1920 = vst.msk [vmem:[%s3219_s21 + $0x30] sm:$0xff] %vm1913_vm1, %v1455_v56  ;;  %v3259_v1 = vpop.f32.mrb[56].mxu0  ;;  %v2299_v4 = vpop.f32.mrb[56].mxu1 }
 0x18b   : > { %v1470_v12 = vadd.f32 %v2299_v4, %v915_v3  ;;  %v1011_v15 = vpop.f32.mrb[57].mxu0  ;;  %v1464_v41 = vpop.f32.mrb[57].mxu1 }
 0x18c   : > { %v1465_v16 = vadd.f32 %v1464_v41, %v910_v9  ;;  %v945_v9 = vadd.f32 %v3208_v11, %v3143_v35  ;;  %v950_v35 = vadd.f32 %v3208_v11, %v3153_v47 }
 0x18d   : > { %1923 = vst.msk [vmem:[%s3219_s21 + $0x48] sm:$0xff] %vm1913_vm1, %v1470_v12 }
 0x18e   : > { %1922 = vst.msk [vmem:[%s3219_s21 + $0x40] sm:$0xff] %vm1913_vm1, %v1465_v16  ;;  %v3269_v19 = vpop.f32.mrb[58].mxu0  ;;  %v2302_v27 = vpop.f32.mrb[58].mxu1 }
 0x18f   : > { %v1480_v32 = vadd.f32 %v2302_v27, %v925_v23  ;;  %v1016_v37 = vpop.f32.mrb[59].mxu0  ;;  %v1474_v38 = vpop.f32.mrb[59].mxu1  ;;  %v955_v23 = vadd.f32 %v3208_v11, %v3163_v63  ;;  %v960_v63 = vadd.f32 %v3208_v11, %v3173_v13 }
 0x190   : > { %v1475_v57 = vadd.f32 %v1474_v38, %v920_v29 }
 0x191   : > { %1925 = vst.msk [vmem:[%s3219_s21 + $0x58] sm:$0xff] %vm1913_vm1, %v1480_v32 }
 0x192   : > { %1924 = vst.msk [vmem:[%s3219_s21 + $0x50] sm:$0xff] %vm1913_vm1, %v1475_v57  ;;  %v3279_v39 = vpop.f32.mrb[60].mxu0  ;;  %v2305_v17 = vpop.f32.mrb[60].mxu1  ;;  %v965_v57 = vadd.f32 %v3208_v11, %v3182_v28  ;;  %v970_v28 = vadd.f32 %v3208_v11, %v3188_v43 }
 0x193   : > { %v1490_v45 = vadd.f32 %v2305_v17, %v935_v25  ;;  %v1021_v55 = vpop.f32.mrb[61].mxu0  ;;  %v1484_v56 = vpop.f32.mrb[61].mxu1 }
 0x194   : > { %v1485_v3 = vadd.f32 %v1484_v56, %v930_v51  ;;  %v975_v56 = vadd.f32 %v3208_v11, %v3192_v53  ;;  %v980_v53 = vadd.f32 %v3208_v11, %v3196_v59 }
 0x195   : > { %1927 = vst.msk [vmem:[%s3219_s21 + $0x68] sm:$0xff] %vm1913_vm1, %v1490_v45 }
 0x196   : > { %1926 = vst.msk [vmem:[%s3219_s21 + $0x60] sm:$0xff] %vm1913_vm1, %v1485_v3  ;;  %v3289_v61 = vpop.f32.mrb[62].mxu0  ;;  %v2308_v4 = vpop.f32.mrb[62].mxu1 }
 0x197   : > { %v1500_v12 = vadd.f32 %v2308_v4, %v945_v9  ;;  %v1026_v15 = vpop.f32.mrb[63].mxu0  ;;  %v1494_v41 = vpop.f32.mrb[63].mxu1 }
 0x198   : > { %v1495_v16 = vadd.f32 %v1494_v41, %v940_v7  ;;  %v985_v15 = vadd.f32 %v3208_v11, %v3200_v5  ;;  %v990_v5 = vadd.f32 %v3208_v11, %v3214_v24 }
 0x199   : > { %1929 = vst.msk [vmem:[%s3219_s21 + $0x78] sm:$0xff] %vm1913_vm1, %v1500_v12 }
 0x19a   : > { %1928 = vst.msk [vmem:[%s3219_s21 + $0x70] sm:$0xff] %vm1913_vm1, %v1495_v16  ;;  %v3299_v21 = vpop.f32.mrb[64].mxu0  ;;  %v2311_v29 = vpop.f32.mrb[64].mxu1 }
 0x19b   : > { %v1510_v27 = vadd.f32 %v2311_v29, %v955_v23  ;;  %v1031_v32 = vpop.f32.mrb[65].mxu0  ;;  %v1504_v37 = vpop.f32.mrb[65].mxu1 }
 0x19c   : > { %v1505_v38 = vadd.f32 %v1504_v37, %v950_v35 }
 0x19d   : > { %1931 = vst.msk [vmem:[%s3219_s21 + $0x88] sm:$0xff] %vm1913_vm1, %v1510_v27  ;;  %v995_v27 = vadd.f32 %v3208_v11, %v3229_v46  ;;  %v1000_v46 = vadd.f32 %v3208_v11, %v3239_v33 }
 0x19e   : > { %1930 = vst.msk [vmem:[%s3219_s21 + $0x80] sm:$0xff] %vm1913_vm1, %v1505_v38  ;;  %v3309_v47 = vpop.f32.mrb[66].mxu0  ;;  %v2314_v25 = vpop.f32.mrb[66].mxu1 }
 0x19f   : > { %v1520_v51 = vadd.f32 %v2314_v25, %v965_v57  ;;  %v1036_v17 = vpop.f32.mrb[67].mxu0  ;;  %v1514_v45 = vpop.f32.mrb[67].mxu1  ;;  %v1005_v25 = vadd.f32 %v3208_v11, %v3249_v49  ;;  %v1010_v49 = vadd.f32 %v3208_v11, %v3259_v1 }
 0x1a0   : > { %v1515_v55 = vadd.f32 %v1514_v45, %v960_v63 }
 0x1a1   : > { %1933 = vst.msk [vmem:[%s3219_s21 + $0x98] sm:$0xff] %vm1913_vm1, %v1520_v51 }
 0x1a2   : > { %1932 = vst.msk [vmem:[%s3219_s21 + $0x90] sm:$0xff] %vm1913_vm1, %v1515_v55  ;;  %v3319_v13 = vpop.f32.mrb[68].mxu0  ;;  %v2317_v3 = vpop.f32.mrb[68].mxu1 }
 0x1a3   : > { %v1530_v9 = vadd.f32 %v2317_v3, %v975_v56  ;;  %v1041_v7 = vpop.f32.mrb[69].mxu0  ;;  %v1524_v4 = vpop.f32.mrb[69].mxu1 }
 0x1a4   : > { %v1525_v12 = vadd.f32 %v1524_v4, %v970_v28  ;;  %v1015_v28 = vadd.f32 %v3208_v11, %v3269_v19  ;;  %v1020_v19 = vadd.f32 %v3208_v11, %v3279_v39 }
 0x1a5   : > { %1935 = vst.msk [vmem:[%s3219_s21 + $0xa8] sm:$0xff] %vm1913_vm1, %v1530_v9 }
 0x1a6   : > { %1934 = vst.msk [vmem:[%s3219_s21 + $0xa0] sm:$0xff] %vm1913_vm1, %v1525_v12  ;;  %v1044_v43 = vpop.f32.mrb[70].mxu0  ;;  %v2320_v41 = vpop.f32.mrb[70].mxu1 }
 0x1a7   : > { %v1540_v16 = vadd.f32 %v2320_v41, %v985_v15  ;;  %v1046_v23 = vpop.f32.mrb[71].mxu0  ;;  %v1534_v35 = vpop.f32.mrb[71].mxu1  ;;  %v1025_v15 = vadd.f32 %v3208_v11, %v3289_v61  ;;  %v1030_v61 = vadd.f32 %v3208_v11, %v3299_v21 }
 0x1a8   : > { %v1535_v29 = vadd.f32 %v1534_v35, %v980_v53 }
 0x1a9   : > { %1937 = vst.msk [vmem:[%s3219_s21 + $0xb8] sm:$0xff] %vm1913_vm1, %v1540_v16 }
 0x1aa   : > { %1936 = vst.msk [vmem:[%s3219_s21 + $0xb0] sm:$0xff] %vm1913_vm1, %v1535_v29  ;;  %v1049_v59 = vpop.f32.mrb[72].mxu0  ;;  %v2323_v32 = vpop.f32.mrb[72].mxu1  ;;  %v1035_v29 = vadd.f32 %v3208_v11, %v3309_v47  ;;  %v1040_v47 = vadd.f32 %v3208_v11, %v3319_v13 }
 0x1ab   : > { %v1550_v37 = vadd.f32 %v2323_v32, %v995_v27  ;;  %v1051_v38 = vpop.f32.mrb[73].mxu0  ;;  %v1544_v57 = vpop.f32.mrb[73].mxu1 }
 0x1ac   : > { %v1545_v63 = vadd.f32 %v1544_v57, %v990_v5  ;;  %v1045_v57 = vadd.f32 %v3208_v11, %v1044_v43  ;;  %v1050_v43 = vadd.f32 %v3208_v11, %v1049_v59 }
 0x1ad   : > { %1939 = vst.msk [vmem:[%s3219_s21 + $0xc8] sm:$0xff] %vm1913_vm1, %v1550_v37 }
 0x1ae   : > { %1938 = vst.msk [vmem:[%s3219_s21 + $0xc0] sm:$0xff] %vm1913_vm1, %v1545_v63  ;;  %v1054_v24 = vpop.f32.mrb[74].mxu0  ;;  %v2326_v51 = vpop.f32.mrb[74].mxu1 }
 0x1af   : > { %v1560_v17 = vadd.f32 %v2326_v51, %v1005_v25  ;;  %v1056_v45 = vpop.f32.mrb[75].mxu0  ;;  %v1554_v55 = vpop.f32.mrb[75].mxu1 }
 0x1b0   : > { %v1555_v56 = vadd.f32 %v1554_v55, %v1000_v46  ;;  %v1055_v45 = vadd.f32 %v3208_v11, %v1054_v24 }
 0x1b1   : > { %1941 = vst.msk [vmem:[%s3219_s21 + $0xd8] sm:$0xff] %vm1913_vm1, %v1560_v17 }
 0x1b2   : > { %1940 = vst.msk [vmem:[%s3219_s21 + $0xd0] sm:$0xff] %vm1913_vm1, %v1555_v56  ;;  %v1059_v33 = vpop.f32.mrb[76].mxu0  ;;  %v2329_v3 = vpop.f32.mrb[76].mxu1 }
 0x1b3   : > { %v1570_v9 = vadd.f32 %v2329_v3, %v1015_v28  ;;  %v1061_v7 = vpop.f32.mrb[77].mxu0  ;;  %v1564_v4 = vpop.f32.mrb[77].mxu1  ;;  %v1060_v24 = vadd.f32 %v3208_v11, %v1059_v33 }
 0x1b4   : > { %v1565_v12 = vadd.f32 %v1564_v4, %v1010_v49 }
 0x1b5   : > { %1943 = vst.msk [vmem:[%s3219_s21 + $0xe8] sm:$0xff] %vm1913_vm1, %v1570_v9 }
 0x1b6   : > { %1942 = vst.msk [vmem:[%s3219_s21 + $0xe0] sm:$0xff] %vm1913_vm1, %v1565_v12  ;;  %v1064_v1 = vpop.f32.mrb[78].mxu0  ;;  %v2332_v53 = vpop.f32.mrb[78].mxu1 }
 0x1b7   : > { %v1580_v41 = vadd.f32 %v2332_v53, %v1025_v15  ;;  %v1066_v16 = vpop.f32.mrb[79].mxu0  ;;  %v1574_v23 = vpop.f32.mrb[79].mxu1  ;;  %v1065_v9 = vadd.f32 %v3208_v11, %v1064_v1 }
 0x1b8   : > { %v1575_v35 = vadd.f32 %v1574_v23, %v1020_v19 }
 0x1b9   : > { %1945 = vst.msk [vmem:[%s3219_s21 + $0xf8] sm:$0xff] %vm1913_vm1, %v1580_v41 }
 0x1ba   : > { %1944 = vst.msk [vmem:[%s3219_s21 + $0xf0] sm:$0xff] %vm1913_vm1, %v1575_v35  ;;  %v1069_v39 = vpop.f32.mrb[80].mxu0  ;;  %v2335_v27 = vpop.f32.mrb[80].mxu1 }
 0x1bb   : > { %v1590_v5 = vadd.f32 %v2335_v27, %v1035_v29  ;;  %v1071_v32 = vpop.f32.mrb[81].mxu0  ;;  %v1584_v37 = vpop.f32.mrb[81].mxu1  ;;  %v1070_v1 = vadd.f32 %v3208_v11, %v1069_v39 }
 0x1bc   : > { %v1585_v38 = vadd.f32 %v1584_v37, %v1030_v61 }
 0x1bd   : > { %1947 = vst.msk [vmem:[%s3219_s21 + $0x108] sm:$0xff] %vm1913_vm1, %v1590_v5 }
 0x1be   : > { %1946 = vst.msk [vmem:[%s3219_s21 + $0x100] sm:$0xff] %vm1913_vm1, %v1585_v38  ;;  %v1074_v21 = vpop.f32.mrb[82].mxu0  ;;  %v2338_v63 = vpop.f32.mrb[82].mxu1 }
 0x1bf   : > { %v1600_v25 = vadd.f32 %v2338_v63, %v1045_v57  ;;  %v1076_v46 = vpop.f32.mrb[83].mxu0  ;;  %v1594_v51 = vpop.f32.mrb[83].mxu1  ;;  %v1075_v53 = vadd.f32 %v3208_v11, %v1074_v21 }
 0x1c0   : > { %v1595_v17 = vadd.f32 %v1594_v51, %v1040_v47 }
 0x1c1   : > { %1949 = vst.msk [vmem:[%s3219_s21 + $0x118] sm:$0xff] %vm1913_vm1, %v1600_v25 }
 0x1c2   : > { %1948 = vst.msk [vmem:[%s3219_s21 + $0x110] sm:$0xff] %vm1913_vm1, %v1595_v17  ;;  %v1079_v55 = vpop.f32.mrb[84].mxu0  ;;  %v2341_v13 = vpop.f32.mrb[84].mxu1 }
 0x1c3   : > { %v1610_v56 = vadd.f32 %v2341_v13, %v1055_v45  ;;  %v1081_v28 = vpop.f32.mrb[85].mxu0  ;;  %v1604_v49 = vpop.f32.mrb[85].mxu1  ;;  %v1080_v27 = vadd.f32 %v3208_v11, %v1079_v55 }
 0x1c4   : > { %v1605_v3 = vadd.f32 %v1604_v49, %v1050_v43 }
 0x1c5   : > { %1951 = vst.msk [vmem:[%s3219_s21 + $0x128] sm:$0xff] %vm1913_vm1, %v1610_v56 }
 0x1c6   : > { %1950 = vst.msk [vmem:[%s3219_s21 + $0x120] sm:$0xff] %vm1913_vm1, %v1605_v3  ;;  %v1084_v7 = vpop.f32.mrb[86].mxu0  ;;  %v2344_v59 = vpop.f32.mrb[86].mxu1 }
 0x1c7   : > { %v1620_v4 = vadd.f32 %v2344_v59, %v1065_v9  ;;  %v1086_v12 = vpop.f32.mrb[87].mxu0  ;;  %v1614_v15 = vpop.f32.mrb[87].mxu1  ;;  %v1085_v61 = vadd.f32 %v3208_v11, %v1084_v7 }
 0x1c8   : > { %v1615_v19 = vadd.f32 %v1614_v15, %v1060_v24 }
 0x1c9   : > { %1953 = vst.msk [vmem:[%s3219_s21 + $0x138] sm:$0xff] %vm1913_vm1, %v1620_v4 }
 0x1ca   : > { %1952 = vst.msk [vmem:[%s3219_s21 + $0x130] sm:$0xff] %vm1913_vm1, %v1615_v19  ;;  %v1089_v41 = vpop.f32.mrb[88].mxu0  ;;  %v2347_v33 = vpop.f32.mrb[88].mxu1 }
 0x1cb   : > { %v1630_v16 = vadd.f32 %v2347_v33, %v1075_v53  ;;  %v1091_v23 = vpop.f32.mrb[89].mxu0  ;;  %v1624_v35 = vpop.f32.mrb[89].mxu1  ;;  %v1090_v21 = vadd.f32 %v3208_v11, %v1089_v41 }
 0x1cc   : > { %v1625_v29 = vadd.f32 %v1624_v35, %v1070_v1 }
 0x1cd   : > { %1955 = vst.msk [vmem:[%s3219_s21 + $0x148] sm:$0xff] %vm1913_vm1, %v1630_v16 }
 0x1ce   : > { %1954 = vst.msk [vmem:[%s3219_s21 + $0x140] sm:$0xff] %vm1913_vm1, %v1625_v29  ;;  %v1094_v5 = vpop.f32.mrb[90].mxu0  ;;  %v2350_v39 = vpop.f32.mrb[90].mxu1 }
 0x1cf   : > { %v1640_v32 = vadd.f32 %v2350_v39, %v1085_v61  ;;  %v1096_v37 = vpop.f32.mrb[91].mxu0  ;;  %v1634_v38 = vpop.f32.mrb[91].mxu1  ;;  %v1095_v47 = vadd.f32 %v3208_v11, %v1094_v5 }
 0x1d0   : > { %v1635_v57 = vadd.f32 %v1634_v38, %v1080_v27 }
 0x1d1   : > { %1957 = vst.msk [vmem:[%s3219_s21 + $0x158] sm:$0xff] %vm1913_vm1, %v1640_v32 }
 0x1d2   : > { %1956 = vst.msk [vmem:[%s3219_s21 + $0x150] sm:$0xff] %vm1913_vm1, %v1635_v57  ;;  %v1099_v63 = vpop.f32.mrb[92].mxu0  ;;  %v2353_v25 = vpop.f32.mrb[92].mxu1 }
 0x1d3   : > { %v1650_v46 = vadd.f32 %v2353_v25, %v1095_v47  ;;  %v1101_v51 = vpop.f32.mrb[93].mxu0  ;;  %v1644_v17 = vpop.f32.mrb[93].mxu1  ;;  %v1100_v43 = vadd.f32 %v3208_v11, %v1099_v63 }
 0x1d4   : > { %v1645_v45 = vadd.f32 %v1644_v17, %v1090_v21 }
 0x1d5   : > { %1959 = vst.msk [vmem:[%s3219_s21 + $0x168] sm:$0xff] %vm1913_vm1, %v1650_v46 }
 0x1d6   : > { %1958 = vst.msk [vmem:[%s3219_s21 + $0x160] sm:$0xff] %vm1913_vm1, %v1645_v45  ;;  %v1104_v55 = vpop.f32.mrb[94].mxu0  ;;  %v2356_v13 = vpop.f32.mrb[94].mxu1 }
 0x1d7   : > { %v1105_v56 = vadd.f32 %v3208_v11, %v1104_v55  ;;  %v1106_v28 = vpop.f32.mrb[95].mxu0  ;;  %v1654_v49 = vpop.f32.mrb[95].mxu1 }
 0x1d8   : > { %v1655_v3 = vadd.f32 %v1654_v49, %v1100_v43 }
 0x1d9   : > { %v1660_v9 = vadd.f32 %v2356_v13, %v1105_v56 }
 0x1da   : > { %1960 = vst.msk [vmem:[%s3219_s21 + $0x170] sm:$0xff] %vm1913_vm1, %v1655_v3  ;;  %v1109_v24 = vpop.f32.mrb[96].mxu0  ;;  %v2359_v7 = vpop.f32.mrb[96].mxu1 }
 0x1db   : > { %1961 = vst.msk [vmem:[%s3219_s21 + $0x178] sm:$0xff] %vm1913_vm1, %v1660_v9  ;;  %v1110_v59 = vadd.f32 %v3208_v11, %v1109_v24  ;;  %v1111_v4 = vpop.f32.mrb[97].mxu0  ;;  %v1664_v12 = vpop.f32.mrb[97].mxu1 }
 0x1dd   : > { %v1665_v15 = vadd.f32 %v1664_v12, %v1110_v59 }
 0x1de   : > { %v1114_v19 = vpop.f32.mrb[98].mxu0  ;;  %v2362_v53 = vpop.f32.mrb[98].mxu1 }
 0x1df   : > { %1962 = vst.msk [vmem:[%s3219_s21 + $0x180] sm:$0xff] %vm1913_vm1, %v1665_v15  ;;  %v1115_v1 = vadd.f32 %v3208_v11, %v1114_v19  ;;  %v1116_v41 = vpop.f32.mrb[99].mxu0  ;;  %v1674_v33 = vpop.f32.mrb[99].mxu1 }
 0x1e1   : > { %v1670_v16 = vadd.f32 %v2359_v7, %v1115_v1 }
 0x1e2   : > { %v1119_v23 = vpop.f32.mrb[100].mxu0  ;;  %v2365_v35 = vpop.f32.mrb[100].mxu1 }
 0x1e3   : > { %1963 = vst.msk [vmem:[%s3219_s21 + $0x188] sm:$0xff] %vm1913_vm1, %v1670_v16  ;;  %v1120_v29 = vadd.f32 %v3208_v11, %v1119_v23  ;;  %v1121_v61 = vpop.f32.mrb[101].mxu0  ;;  %v1684_v27 = vpop.f32.mrb[101].mxu1 }
 0x1e5   : > { %v1675_v5 = vadd.f32 %v1674_v33, %v1120_v29 }
 0x1e6   : > { %v1124_v39 = vpop.f32.mrb[102].mxu0  ;;  %v2368_v32 = vpop.f32.mrb[102].mxu1 }
 0x1e7   : > { %1964 = vst.msk [vmem:[%s3219_s21 + $0x190] sm:$0xff] %vm1913_vm1, %v1675_v5  ;;  %v1125_v37 = vadd.f32 %v3208_v11, %v1124_v39  ;;  %v1126_v38 = vpop.f32.mrb[103].mxu0  ;;  %v1694_v57 = vpop.f32.mrb[103].mxu1 }
 0x1e9   : > { %v1680_v47 = vadd.f32 %v2362_v53, %v1125_v37 }
 0x1ea   : > { %v1129_v21 = vpop.f32.mrb[104].mxu0  ;;  %v2371_v63 = vpop.f32.mrb[104].mxu1 }
 0x1eb   : > { %1965 = vst.msk [vmem:[%s3219_s21 + $0x198] sm:$0xff] %vm1913_vm1, %v1680_v47  ;;  %v1130_v25 = vadd.f32 %v3208_v11, %v1129_v21  ;;  %v1131_v46 = vpop.f32.mrb[105].mxu0  ;;  %v1704_v51 = vpop.f32.mrb[105].mxu1 }
 0x1ed   : > { %v1685_v17 = vadd.f32 %v1684_v27, %v1130_v25 }
 0x1ee   : > { %v1134_v45 = vpop.f32.mrb[106].mxu0  ;;  %v2374_v43 = vpop.f32.mrb[106].mxu1 }
 0x1ef   : > { %1966 = vst.msk [vmem:[%s3219_s21 + $0x1a0] sm:$0xff] %vm1913_vm1, %v1685_v17  ;;  %v1135_v55 = vadd.f32 %v3208_v11, %v1134_v45  ;;  %v1136_v13 = vpop.f32.mrb[107].mxu0  ;;  %v1714_v56 = vpop.f32.mrb[107].mxu1 }
 0x1f1   : > { %v1690_v28 = vadd.f32 %v2365_v35, %v1135_v55 }
 0x1f2   : > { %v1139_v49 = vpop.f32.mrb[108].mxu0  ;;  %v2377_v3 = vpop.f32.mrb[108].mxu1 }
 0x1f3   : > { %1967 = vst.msk [vmem:[%s3219_s21 + $0x1a8] sm:$0xff] %vm1913_vm1, %v1690_v28  ;;  %v1140_v9 = vadd.f32 %v3208_v11, %v1139_v49  ;;  %v1141_v24 = vpop.f32.mrb[109].mxu0  ;;  %v1724_v7 = vpop.f32.mrb[109].mxu1 }
 0x1f5   : > { %v1695_v59 = vadd.f32 %v1694_v57, %v1140_v9 }
 0x1f6   : > { %v1144_v4 = vpop.f32.mrb[110].mxu0  ;;  %v3435_v12 = vpop.f32.mrb[110].mxu1 }
 0x1f7   : > { %1968 = vst.msk [vmem:[%s3219_s21 + $0x1b0] sm:$0xff] %vm1913_vm1, %v1695_v59  ;;  %v1145_v15 = vadd.f32 %v3208_v11, %v1144_v4  ;;  %v1146_v19 = vpop.f32.mrb[111].mxu0  ;;  %v1734_v53 = vpop.f32.mrb[111].mxu1  ;;  %v1245_v59 = vadd.f32 %v3208_v11, %v3005_v26 }
 0x1f9   : > { %v1700_v1 = vadd.f32 %v2368_v32, %v1145_v15  ;;  %v1240_v15 = vadd.f32 %v3208_v11, %v2995_v18  ;;  %v1250_v18 = vadd.f32 %v3208_v11, %v3015_v34  ;;  %v1260_v34 = vadd.f32 %v3208_v11, %v3035_v50 }
 0x1fa   : > { %v1149_v41 = vpop.f32.mrb[112].mxu0  ;;  %v3440_v33 = vpop.f32.mrb[112].mxu1  ;;  %v1270_v50 = vadd.f32 %v3208_v11, %v3055_v2  ;;  %v1280_v2 = vadd.f32 %v3208_v11, %v3075_v20  ;;  %v1290_v20 = vadd.f32 %v3208_v11, %v3095_v40  ;;  %v1300_v40 = vadd.f32 %v3208_v11, %v3115_v62 }
 0x1fb   : > { %1969 = vst.msk [vmem:[%s3219_s21 + $0x1b8] sm:$0xff] %vm1913_vm1, %v1700_v1  ;;  %v1150_v16 = vadd.f32 %v3208_v11, %v1149_v41  ;;  %v1151_v23 = vpop.f32.mrb[113].mxu0  ;;  %v3445_v35 = vpop.f32.mrb[113].mxu1  ;;  %v1310_v62 = vadd.f32 %v3208_v11, %v3135_v22  ;;  %v1320_v22 = vadd.f32 %v3208_v11, %v3155_v48  ;;  %v1330_v48 = vadd.f32 %v3208_v11, %v3175_v14 }
 0x1fc   : > { %v1340_v14 = vadd.f32 %v3208_v11, %v3190_v44 }
 0x1fd   : > { %v1705_v29 = vadd.f32 %v1704_v51, %v1150_v16 }
 0x1fe   : > { %v1154_v61 = vpop.f32.mrb[114].mxu0  ;;  %v3447_v27 = vpop.f32.mrb[114].mxu1 }
 0x1ff   : > { %1970 = vst.msk [vmem:[%s3219_s21 + $0x1c0] sm:$0xff] %vm1913_vm1, %v1705_v29  ;;  %v1155_v5 = vadd.f32 %v3208_v11, %v1154_v61  ;;  %v1156_v39 = vpop.f32.mrb[115].mxu0  ;;  %v3452_v32 = vpop.f32.mrb[115].mxu1  ;;  %v1255_v61 = vadd.f32 %v3208_v11, %v3025_v42 }
 0x201   : > { %v1710_v37 = vadd.f32 %v2371_v63, %v1155_v5 }
 0x202   : > { %v1159_v38 = vpop.f32.mrb[116].mxu0  ;;  %v3454_v57 = vpop.f32.mrb[116].mxu1 }
 0x203   : > { %1971 = vst.msk [vmem:[%s3219_s21 + $0x1c8] sm:$0xff] %vm1913_vm1, %v1710_v37  ;;  %v1160_v47 = vadd.f32 %v3208_v11, %v1159_v38  ;;  %v1161_v21 = vpop.f32.mrb[117].mxu0  ;;  %v3459_v25 = vpop.f32.mrb[117].mxu1 }
 0x205   : > { %v1715_v46 = vadd.f32 %v1714_v56, %v1160_v47 }
 0x206   : > { %v1164_v51 = vpop.f32.mrb[118].mxu0  ;;  %v3461_v17 = vpop.f32.mrb[118].mxu1 }
 0x207   : > { %1972 = vst.msk [vmem:[%s3219_s21 + $0x1d0] sm:$0xff] %vm1913_vm1, %v1715_v46  ;;  %v1165_v63 = vadd.f32 %v3208_v11, %v1164_v51  ;;  %v1166_v45 = vpop.f32.mrb[119].mxu0  ;;  %v3466_v55 = vpop.f32.mrb[119].mxu1 }
 0x209   : > { %v1720_v13 = vadd.f32 %v2374_v43, %v1165_v63 }
 0x20a   : > { %v1169_v28 = vpop.f32.mrb[120].mxu0  ;;  %v3468_v49 = vpop.f32.mrb[120].mxu1 }
 0x20b   : > { %1973 = vst.msk [vmem:[%s3219_s21 + $0x1d8] sm:$0xff] %vm1913_vm1, %v1720_v13  ;;  %v1170_v9 = vadd.f32 %v3208_v11, %v1169_v28  ;;  %v1171_v56 = vpop.f32.mrb[121].mxu0  ;;  %v3473_v24 = vpop.f32.mrb[121].mxu1 }
 0x20d   : > { %v1725_v4 = vadd.f32 %v1724_v7, %v1170_v9 }
 0x20e   : > { %v1174_v43 = vpop.f32.mrb[122].mxu0  ;;  %v2398_v19 = vpop.f32.mrb[122].mxu1 }
 0x20f   : > { %1974 = vst.msk [vmem:[%s3219_s21 + $0x1e0] sm:$0xff] %vm1913_vm1, %v1725_v4  ;;  %v1175_v1 = vadd.f32 %v3208_v11, %v1174_v43  ;;  %v1800_v41 = vadd.f32 %v2398_v19, %v1245_v59  ;;  %v1176_v16 = vpop.f32.mrb[123].mxu0  ;;  %v1794_v23 = vpop.f32.mrb[123].mxu1 }
 0x210   : > { %v1795_v29 = vadd.f32 %v1794_v23, %v1240_v15 }
 0x211   : > { %v1730_v26 = vadd.f32 %v2377_v3, %v1175_v1  ;;  %1989 = vst.msk [vmem:[%s3219_s21 + $0x258] sm:$0xff] %vm1913_vm1, %v1800_v41  ;;  %v1265_v3 = vadd.f32 %v3208_v11, %v3045_v58 }
 0x212   : > { %1988 = vst.msk [vmem:[%s3219_s21 + $0x250] sm:$0xff] %vm1913_vm1, %v1795_v29  ;;  %v1179_v7 = vpop.f32.mrb[124].mxu0  ;;  %v2401_v5 = vpop.f32.mrb[124].mxu1 }
 0x213   : > { %1975 = vst.msk [vmem:[%s3219_s21 + $0x1e8] sm:$0xff] %vm1913_vm1, %v1730_v26  ;;  %v1180_v39 = vadd.f32 %v3208_v11, %v1179_v7  ;;  %v1810_v37 = vadd.f32 %v2401_v5, %v1255_v61  ;;  %v1181_v38 = vpop.f32.mrb[125].mxu0  ;;  %v1804_v47 = vpop.f32.mrb[125].mxu1 }
 0x214   : > { %v1805_v42 = vadd.f32 %v1804_v47, %v1250_v18 }
 0x215   : > { %v1735_v21 = vadd.f32 %v1734_v53, %v1180_v39  ;;  %1991 = vst.msk [vmem:[%s3219_s21 + $0x268] sm:$0xff] %vm1913_vm1, %v1810_v37  ;;  %v1275_v53 = vadd.f32 %v3208_v11, %v3065_v10 }
 0x216   : > { %1990 = vst.msk [vmem:[%s3219_s21 + $0x260] sm:$0xff] %vm1913_vm1, %v1805_v42  ;;  %v1184_v46 = vpop.f32.mrb[126].mxu0  ;;  %v2404_v51 = vpop.f32.mrb[126].mxu1 }
 0x217   : > { %1976 = vst.msk [vmem:[%s3219_s21 + $0x1f0] sm:$0xff] %vm1913_vm1, %v1735_v21  ;;  %v1185_v63 = vadd.f32 %v3208_v11, %v1184_v46  ;;  %v1820_v45 = vadd.f32 %v2404_v51, %v1265_v3  ;;  %v1186_v13 = vpop.f32.mrb[127].mxu0  ;;  %v1814_v28 = vpop.f32.mrb[127].mxu1 }
 0x218   : > { %v1815_v58 = vadd.f32 %v1814_v28, %v1260_v34 }
 0x219   : > { %v1740_v9 = vadd.f32 %v3435_v12, %v1185_v63  ;;  %1993 = vst.msk [vmem:[%s3219_s21 + $0x278] sm:$0xff] %vm1913_vm1, %v1820_v45  ;;  %v1285_v12 = vadd.f32 %v3208_v11, %v3085_v30 }
 0x21a   : > { %1992 = vst.msk [vmem:[%s3219_s21 + $0x270] sm:$0xff] %vm1913_vm1, %v1815_v58  ;;  %v1189_v56 = vpop.f32.mrb[128].mxu0  ;;  %v2407_v59 = vpop.f32.mrb[128].mxu1 }
 0x21b   : > { %1977 = vst.msk [vmem:[%s3219_s21 + $0x1f8] sm:$0xff] %vm1913_vm1, %v1740_v9  ;;  %v1190_v4 = vadd.f32 %v3208_v11, %v1189_v56  ;;  %v1830_v15 = vadd.f32 %v2407_v59, %v1275_v53  ;;  %v1191_v43 = vpop.f32.mrb[129].mxu0  ;;  %v1824_v10 = vpop.f32.mrb[129].mxu1 }
 0x21c   : > { %v1825_v19 = vadd.f32 %v1824_v10, %v1270_v50 }
 0x21d   : > { %v1745_v1 = vadd.f32 %v3445_v35, %v1190_v4  ;;  %1995 = vst.msk [vmem:[%s3219_s21 + $0x288] sm:$0xff] %vm1913_vm1, %v1830_v15  ;;  %v1295_v35 = vadd.f32 %v3208_v11, %v3105_v52 }
 0x21e   : > { %1994 = vst.msk [vmem:[%s3219_s21 + $0x280] sm:$0xff] %vm1913_vm1, %v1825_v19  ;;  %v1194_v41 = vpop.f32.mrb[130].mxu0  ;;  %v2410_v16 = vpop.f32.mrb[130].mxu1 }
 0x21f   : > { %1978 = vst.msk [vmem:[%s3219_s21 + $0x200] sm:$0xff] %vm1913_vm1, %v1745_v1  ;;  %v1195_v23 = vadd.f32 %v3208_v11, %v1194_v41  ;;  %v1840_v29 = vadd.f32 %v2410_v16, %v1285_v12  ;;  %v1196_v61 = vpop.f32.mrb[131].mxu0  ;;  %v1834_v30 = vpop.f32.mrb[131].mxu1 }
 0x220   : > { %v1835_v26 = vadd.f32 %v1834_v30, %v1280_v2 }
 0x221   : > { %v1750_v18 = vadd.f32 %v3440_v33, %v1195_v23  ;;  %1997 = vst.msk [vmem:[%s3219_s21 + $0x298] sm:$0xff] %vm1913_vm1, %v1840_v29  ;;  %v1305_v33 = vadd.f32 %v3208_v11, %v3125_v8 }
 0x222   : > { %1996 = vst.msk [vmem:[%s3219_s21 + $0x290] sm:$0xff] %vm1913_vm1, %v1835_v26  ;;  %v1199_v7 = vpop.f32.mrb[132].mxu0  ;;  %v2413_v5 = vpop.f32.mrb[132].mxu1 }
 0x223   : > { %1979 = vst.msk [vmem:[%s3219_s21 + $0x208] sm:$0xff] %vm1913_vm1, %v1750_v18  ;;  %v1200_v39 = vadd.f32 %v3208_v11, %v1199_v7  ;;  %v1850_v37 = vadd.f32 %v2413_v5, %v1295_v35  ;;  %v1201_v38 = vpop.f32.mrb[133].mxu0  ;;  %v1844_v52 = vpop.f32.mrb[133].mxu1  ;;  %v1355_v7 = vadd.f32 %v3208_v11, %v3202_v6  ;;  %v1350_v5 = vadd.f32 %v3208_v11, %v3198_v60 }
 0x224   : > { %v1845_v47 = vadd.f32 %v1844_v52, %v1290_v20 }
 0x225   : > { %v1755_v42 = vadd.f32 %v3452_v32, %v1200_v39  ;;  %1999 = vst.msk [vmem:[%s3219_s21 + $0x2a8] sm:$0xff] %vm1913_vm1, %v1850_v37  ;;  %v1315_v32 = vadd.f32 %v3208_v11, %v3145_v36 }
 0x226   : > { %1998 = vst.msk [vmem:[%s3219_s21 + $0x2a0] sm:$0xff] %vm1913_vm1, %v1845_v47  ;;  %v1204_v3 = vpop.f32.mrb[134].mxu0  ;;  %v2416_v21 = vpop.f32.mrb[134].mxu1 }
 0x227   : > { %1980 = vst.msk [vmem:[%s3219_s21 + $0x210] sm:$0xff] %vm1913_vm1, %v1755_v42  ;;  %v1205_v34 = vadd.f32 %v3208_v11, %v1204_v3  ;;  %v1860_v46 = vadd.f32 %v2416_v21, %v1305_v33  ;;  %v1206_v51 = vpop.f32.mrb[135].mxu0  ;;  %v1854_v8 = vpop.f32.mrb[135].mxu1 }
 0x228   : > { %v1855_v63 = vadd.f32 %v1854_v8, %v1300_v40 }
 0x229   : > { %v1760_v45 = vadd.f32 %v3447_v27, %v1205_v34  ;;  %2001 = vst.msk [vmem:[%s3219_s21 + $0x2b8] sm:$0xff] %vm1913_vm1, %v1860_v46  ;;  %v1325_v27 = vadd.f32 %v3208_v11, %v3165_v0 }
 0x22a   : > { %2000 = vst.msk [vmem:[%s3219_s21 + $0x2b0] sm:$0xff] %vm1913_vm1, %v1855_v63  ;;  %v1209_v13 = vpop.f32.mrb[136].mxu0  ;;  %v2419_v28 = vpop.f32.mrb[136].mxu1 }
 0x22b   : > { %1981 = vst.msk [vmem:[%s3219_s21 + $0x218] sm:$0xff] %vm1913_vm1, %v1760_v45  ;;  %v1210_v58 = vadd.f32 %v3208_v11, %v1209_v13  ;;  %v1870_v53 = vadd.f32 %v2419_v28, %v1315_v32  ;;  %v1211_v9 = vpop.f32.mrb[137].mxu0  ;;  %v1864_v36 = vpop.f32.mrb[137].mxu1 }
 0x22c   : > { %v1865_v50 = vadd.f32 %v1864_v36, %v1310_v62 }
 0x22d   : > { %v1765_v56 = vadd.f32 %v3459_v25, %v1210_v58  ;;  %2003 = vst.msk [vmem:[%s3219_s21 + $0x2c8] sm:$0xff] %vm1913_vm1, %v1870_v53  ;;  %v1335_v25 = vadd.f32 %v3208_v11, %v3184_v31 }
 0x22e   : > { %2002 = vst.msk [vmem:[%s3219_s21 + $0x2c0] sm:$0xff] %vm1913_vm1, %v1865_v50  ;;  %v1214_v59 = vpop.f32.mrb[138].mxu0  ;;  %v2422_v4 = vpop.f32.mrb[138].mxu1 }
 0x22f   : > { %1982 = vst.msk [vmem:[%s3219_s21 + $0x220] sm:$0xff] %vm1913_vm1, %v1765_v56  ;;  %v1215_v15 = vadd.f32 %v3208_v11, %v1214_v59  ;;  %v1880_v43 = vadd.f32 %v2422_v4, %v1325_v27  ;;  %v1216_v10 = vpop.f32.mrb[139].mxu0  ;;  %v1874_v0 = vpop.f32.mrb[139].mxu1 }
 0x230   : > { %v1875_v19 = vadd.f32 %v1874_v0, %v1320_v22 }
 0x231   : > { %v1770_v12 = vadd.f32 %v3454_v57, %v1215_v15  ;;  %2005 = vst.msk [vmem:[%s3219_s21 + $0x2d8] sm:$0xff] %vm1913_vm1, %v1880_v43  ;;  %v1345_v57 = vadd.f32 %v3208_v11, %v3194_v54 }
 0x232   : > { %2004 = vst.msk [vmem:[%s3219_s21 + $0x2d0] sm:$0xff] %vm1913_vm1, %v1875_v19  ;;  %v1219_v1 = vpop.f32.mrb[140].mxu0  ;;  %v2425_v2 = vpop.f32.mrb[140].mxu1 }
 0x233   : > { %1983 = vst.msk [vmem:[%s3219_s21 + $0x228] sm:$0xff] %vm1913_vm1, %v1770_v12  ;;  %v1220_v41 = vadd.f32 %v3208_v11, %v1219_v1  ;;  %v1890_v16 = vadd.f32 %v2425_v2, %v1335_v25  ;;  %v1221_v23 = vpop.f32.mrb[141].mxu0  ;;  %v1884_v31 = vpop.f32.mrb[141].mxu1 }
 0x234   : > { %v1885_v29 = vadd.f32 %v1884_v31, %v1330_v48 }
 0x235   : > { %v1775_v61 = vadd.f32 %v3466_v55, %v1220_v41  ;;  %2007 = vst.msk [vmem:[%s3219_s21 + $0x2e8] sm:$0xff] %vm1913_vm1, %v1890_v16 }
 0x236   : > { %2006 = vst.msk [vmem:[%s3219_s21 + $0x2e0] sm:$0xff] %vm1913_vm1, %v1885_v29  ;;  %v1224_v30 = vpop.f32.mrb[142].mxu0  ;;  %v2428_v26 = vpop.f32.mrb[142].mxu1 }
 0x237   : > { %1984 = vst.msk [vmem:[%s3219_s21 + $0x230] sm:$0xff] %vm1913_vm1, %v1775_v61  ;;  %v1225_v35 = vadd.f32 %v3208_v11, %v1224_v30  ;;  %v1900_v18 = vadd.f32 %v2428_v26, %v1345_v57  ;;  %v1226_v20 = vpop.f32.mrb[143].mxu0  ;;  %v1894_v54 = vpop.f32.mrb[143].mxu1 }
 0x238   : > { %v1895_v55 = vadd.f32 %v1894_v54, %v1340_v14 }
 0x239   : > { %v1780_v44 = vadd.f32 %v3461_v17, %v1225_v35  ;;  %2009 = vst.msk [vmem:[%s3219_s21 + $0x2f8] sm:$0xff] %vm1913_vm1, %v1900_v18 }
 0x23a   : > { %2008 = vst.msk [vmem:[%s3219_s21 + $0x2f0] sm:$0xff] %vm1913_vm1, %v1895_v55  ;;  %v1229_v39 = vpop.f32.mrb[144].mxu0  ;;  %v2431_v37 = vpop.f32.mrb[144].mxu1 }
 0x23b   : > { %1985 = vst.msk [vmem:[%s3219_s21 + $0x238] sm:$0xff] %vm1913_vm1, %v1780_v44  ;;  %v1230_v38 = vadd.f32 %v3208_v11, %v1229_v39  ;;  %v1910_v52 = vadd.f32 %v2431_v37, %v1355_v7  ;;  %v1231_v47 = vpop.f32.mrb[145].mxu0  ;;  %v1904_v6 = vpop.f32.mrb[145].mxu1 }
 0x23c   : > { %v1905_v33 = vadd.f32 %v1904_v6, %v1350_v5 }
 0x23d   : > { %v1785_v17 = vadd.f32 %v3473_v24, %v1230_v38  ;;  %2011 = vst.msk [vmem:[%s3219_s21 + $0x308] sm:$0xff] %vm1913_vm1, %v1910_v52 }
 0x23e   : > { %2010 = vst.msk [vmem:[%s3219_s21 + $0x300] sm:$0xff] %vm1913_vm1, %v1905_v33  ;;  %v1234_v60 = vpop.f32.mrb[146].mxu0 }
 0x23f   : > { %1986 = vst.msk [vmem:[%s3219_s21 + $0x240] sm:$0xff] %vm1913_vm1, %v1785_v17  ;;  %v1235_v42 = vadd.f32 %v3208_v11, %v1234_v60  ;;  %v1236_v40 = vpop.f32.mrb[147].mxu0 }
 0x241   : > { %v1790_v3 = vadd.f32 %v3468_v49, %v1235_v42 }
 0x243   : > { %1987 = vst.msk [vmem:[%s3219_s21 + $0x248] sm:$0xff] %vm1913_vm1, %v1790_v3 }
 0x244 PF: > { %s13_s12 = sadd.s32 1, %s2537_s12  }
 0x245   : > { %p10_p4 = scmp.ge.s32.totalorder %s13_s12, 4  }
 0x247   :  { %12 = sbr.rel (!%p10_p4) target bundleno = 1 (0x1), region = 62 }

// kernel: ivae_forward.17
= control target key start
LH: loop header
LB: loop body
LE: loop exit
PB: predicated region body
PF: predicated region fallthrough
CT: control target
= control target key end

     0   :  { %18 = vsyncpa [#allocation3], 0  ;;  %v679_v1 = vmov 0   ;;  %v680_v2 = vmov 0.0|0.0   ;;  %s972_s0 = inlined_call_operand.vmem [shape: f32[2,1], index: 0, kind: input, shape index: {}]   ;;  %s973_s1 = inlined_call_operand.vmem [shape: f32[2,1], index: 1, kind: input, shape index: {}]   ;;  %s974_s2 = inlined_call_operand.vmem [shape: f32[1,128], index: 2, kind: input, shape index: {}]   ;;  %s975_s3 = inlined_call_operand.vmem [shape: f32[1,128], index: 3, kind: input, shape index: {}]   ;;  %s976_s4 = inlined_call_operand.vmem [shape: f32[1,128], index: 4, kind: input, shape index: {}]   ;;  %s977_s5 = inlined_call_operand.vmem [shape: f32[128,128], index: 5, kind: input, shape index: {}]   ;;  %s978_s6 = inlined_call_operand.vmem [shape: f32[1,128], index: 6, kind: input, shape index: {}]   ;;  %s979_s7 = inlined_call_operand.vmem [shape: f32[128,10], index: 7, kind: input, shape index: {}]   ;;  %s980_s8 = inlined_call_operand.vmem [shape: f32[1,10], index: 8, kind: input, shape index: {}]   ;;  %s981_s9 = inlined_call_operand.vmem [shape: f32[128,10], index: 9, kind: input, shape index: {}]   ;;  %s982_s10 = inlined_call_operand.vmem [shape: f32[1,10], index: 10, kind: input, shape index: {}]   ;;  %s983_s11 = inlined_call_operand.hbm [shape: f32[2,10], index: 11, kind: output, shape index: {0}]   ;;  %s984_s12 = inlined_call_operand.hbm [shape: f32[2,10], index: 12, kind: output, shape index: {1}]  }
   0x1   :  { %v42_v0 = vld [vmem:[%s972_s0] sm:$0x3]  ;;  %630 = vset.pattern.permute.xlu0 %v679_v1  ;;  %552 = vmatprep.subr.bf16.mxu0 %v680_v2  ;;  %v80_v4 = vld [vmem:[%s977_s5 + $0x8] sm:$0xff]  ;;  %v81_v5 = vld [vmem:[%s977_s5 + $0x10] sm:$0xff] }
   0x2   :  { %v79_v3 = vld [vmem:[%s977_s5] sm:$0xff]  ;;  %46 = vperm.xlu0 %630, %v42_v0   ;;  %v82_v7 = vld [vmem:[%s977_s5 + $0x18] sm:$0xff]  ;;  %576 = vmatprep.subr.bf16.mxu1 %v680_v2  ;;  %v84_v11 = vld [vmem:[%s977_s5 + $0x28] sm:$0xff] }
   0x3   :  { %v553_v6 = vpack.c.bf16 %v80_v4, %v79_v3  ;;  %v56_v8 = vld [vmem:[%s973_s1] sm:$0x3]  ;;  %v556_v9 = vpack.c.bf16 %v82_v7, %v81_v5 }
   0x4   :  { %v83_v10 = vld [vmem:[%s977_s5 + $0x20] sm:$0xff] }
   0x5   :  { %554 = vmatpush3.bf16.msra.mxu0 %v553_v6 }
   0x6   :  { %555 = vmatprep.subr.bf16.mxu0 %v680_v2  ;;  %60 = vperm.xlu0 %630, %v56_v8  }
   0x7   :  { %19 = vsyncpa [#allocation5], 0  ;;  %v559_v12 = vpack.c.bf16 %v84_v11, %v83_v10  ;;  %v85_v13 = vld [vmem:[%s977_s5 + $0x30] sm:$0xff]  ;;  %v86_v14 = vld [vmem:[%s977_s5 + $0x38] sm:$0xff]  ;;  %vm681_vm0 = vmmov 0   ;;  %v682_v15 = vmov 0.0  }
   0x8   :  { %479 = vmatprep.mubr.msk.f32.mxu0 %vm681_vm0, %v682_v15  ;;  %514 = vmatprep.mubr.msk.f32.mxu1 %vm681_vm0, %v682_v15  ;;  %v562_v16 = vpack.c.bf16 %v86_v14, %v85_v13  ;;  %v173_v17 = vld [vmem:[%s979_s7] sm:$0xff]  ;;  %v174_v18 = vld [vmem:[%s979_s7 + $0x8] sm:$0xff]  ;;  %v175_v22 = vld [vmem:[%s979_s7 + $0x10] sm:$0xff]  ;;  %s684_s24 = smov [#allocation4]   ;;  %vm266_vm1 = vcmask 74752  }
   0x9   :  { %557 = vmatpush3.bf16.msra.mxu0 %v556_v9  ;;  %v87_v19 = vld [vmem:[%s977_s5 + $0x40] sm:$0xff]  ;;  %v88_v20 = vld [vmem:[%s977_s5 + $0x48] sm:$0xff]  ;;  %v577_v21 = vpack.c.bf16 %v174_v18, %v173_v17  ;;  %v176_v23 = vld [vmem:[%s979_s7 + $0x18] sm:$0xff]  ;;  %s378_s25 = sshll.u32 %s684_s24, 4  ;;  %s379_s25 = int_to_ptr.vmem [resolvable:$true] %s378_s25 }
   0xa   :  { %558 = vmatprep.subr.bf16.mxu0 %v680_v2  ;;  %v580_v24 = vpack.c.bf16 %v176_v23, %v175_v22  ;;  %v565_v25 = vpack.c.bf16 %v88_v20, %v87_v19  ;;  %v89_v26 = vld [vmem:[%s977_s5 + $0x50] sm:$0xff]  ;;  %v90_v27 = vld [vmem:[%s977_s5 + $0x58] sm:$0xff]  ;;  %v177_v28 = vld [vmem:[%s979_s7 + $0x20] sm:$0xff] }
   0xb   :  { %578 = vmatpush3.bf16.msra.mxu1 %v577_v21  ;;  %v178_v29 = vld [vmem:[%s979_s7 + $0x28] sm:$0xff]  ;;  %v568_v31 = vpack.c.bf16 %v90_v27, %v89_v26  ;;  %v91_v32 = vld [vmem:[%s977_s5 + $0x60] sm:$0xff]  ;;  %v179_v34 = vld [vmem:[%s979_s7 + $0x30] sm:$0xff] }
   0xc   :  { %579 = vmatprep.subr.bf16.mxu1 %v680_v2  ;;  %v583_v30 = vpack.c.bf16 %v178_v29, %v177_v28  ;;  %v92_v33 = vld [vmem:[%s977_s5 + $0x68] sm:$0xff]  ;;  %v180_v35 = vld [vmem:[%s979_s7 + $0x38] sm:$0xff]  ;;  %v93_v38 = vld [vmem:[%s977_s5 + $0x70] sm:$0xff] }
   0xd   :  { %560 = vmatpush3.bf16.msra.mxu0 %v559_v12  ;;  %v586_v36 = vpack.c.bf16 %v180_v35, %v179_v34  ;;  %v571_v37 = vpack.c.bf16 %v92_v33, %v91_v32  ;;  %v94_v39 = vld [vmem:[%s977_s5 + $0x78] sm:$0xff]  ;;  %v181_v40 = vld [vmem:[%s979_s7 + $0x40] sm:$0xff]  ;;  %v182_v41 = vld [vmem:[%s979_s7 + $0x48] sm:$0xff] }
   0xe   :  { %561 = vmatprep.subr.bf16.mxu0 %v680_v2  ;;  %v589_v42 = vpack.c.bf16 %v182_v41, %v181_v40  ;;  %v574_v43 = vpack.c.bf16 %v94_v39, %v93_v38  ;;  %v183_v44 = vld [vmem:[%s979_s7 + $0x50] sm:$0xff]  ;;  %v184_v45 = vld [vmem:[%s979_s7 + $0x58] sm:$0xff]  ;;  %v185_v47 = vld [vmem:[%s979_s7 + $0x60] sm:$0xff] }
   0xf   :  { %581 = vmatpush3.bf16.msra.mxu1 %v580_v24  ;;  %v592_v46 = vpack.c.bf16 %v184_v45, %v183_v44  ;;  %v186_v48 = vld [vmem:[%s979_s7 + $0x68] sm:$0xff]  ;;  %v390_v51 = vld [vmem:[%s974_s2] ss:$0 sm:$0xff]  ;;  %v270_v62 = vld [vmem:[%s981_s9 + $0x10] sm:$0xff] }
  0x10   :  { %582 = vmatprep.subr.bf16.mxu1 %v680_v2  ;;  %v595_v49 = vpack.c.bf16 %v186_v48, %v185_v47  ;;  %v391_v52 = vld [vmem:[%s975_s3] ss:$0 sm:$0xff]  ;;  %v269_v57 = vld [vmem:[%s981_s9 + $0x8] sm:$0xff]  ;;  %v271_v63 = vld [vmem:[%s981_s9 + $0x18] sm:$0xff] }
  0x11   :  { %563 = vmatpush3.bf16.msra.mxu0 %v562_v16  ;;  %v268_v56 = vld [vmem:[%s981_s9] sm:$0xff]  ;;  %v604_v0 = vpack.c.bf16 %v271_v63, %v270_v62  ;;  %v273_v3 = vld [vmem:[%s981_s9 + $0x28] sm:$0xff]  ;;  %v274_v5 = vld [vmem:[%s981_s9 + $0x30] sm:$0xff] }
  0x12   :  { %564 = vmatprep.subr.bf16.mxu0 %v680_v2  ;;  %v392_v58 = vld [vmem:[%s976_s4] ss:$0 sm:$0xff]  ;;  %v601_v60 = vpack.c.bf16 %v269_v57, %v268_v56  ;;  %v275_v6 = vld [vmem:[%s981_s9 + $0x38] sm:$0xff]  ;;  %v277_v9 = vld [vmem:[%s981_s9 + $0x48] sm:$0xff] }
  0x13   :  { %584 = vmatpush3.bf16.msra.mxu1 %v583_v30  ;;  %v272_v1 = vld [vmem:[%s981_s9 + $0x20] sm:$0xff]  ;;  %v610_v7 = vpack.c.bf16 %v275_v6, %v274_v5  ;;  %v278_v11 = vld [vmem:[%s981_s9 + $0x50] sm:$0xff]  ;;  %v279_v12 = vld [vmem:[%s981_s9 + $0x58] sm:$0xff] }
  0x14   :  { %585 = vmatprep.subr.bf16.mxu1 %v680_v2  ;;  %v607_v4 = vpack.c.bf16 %v273_v3, %v272_v1  ;;  %v276_v8 = vld [vmem:[%s981_s9 + $0x40] sm:$0xff]  ;;  %v616_v13 = vpack.c.bf16 %v279_v12, %v278_v11  ;;  %v187_v17 = vld [vmem:[%s979_s7 + $0x70] sm:$0xff]  ;;  %v188_v18 = vld [vmem:[%s979_s7 + $0x78] sm:$0xff] }
  0x15   :  { %566 = vmatpush3.bf16.msra.mxu0 %v565_v25  ;;  %v613_v10 = vpack.c.bf16 %v277_v9, %v276_v8  ;;  %v280_v14 = vld [vmem:[%s981_s9 + $0x60] sm:$0xff]  ;;  %v282_v19 = vld [vmem:[%s981_s9 + $0x70] sm:$0xff]  ;;  %v598_v20 = vpack.c.bf16 %v188_v18, %v187_v17  ;;  %v283_v21 = vld [vmem:[%s981_s9 + $0x78] sm:$0xff] }
  0x16   :  { %567 = vmatprep.subr.bf16.mxu0 %v680_v2  ;;  %v622_v22 = vpack.c.bf16 %v283_v21, %v282_v19  ;;  %v394_v27 = vld [vmem:[%s980_s8] ss:$0 sm:$0xff] }
  0x17   :  { %587 = vmatpush3.bf16.msra.mxu1 %v586_v36  ;;  %v395_v28 = vld [vmem:[%s982_s10] ss:$0 sm:$0xff] }
  0x18   :  { %588 = vmatprep.subr.bf16.mxu1 %v680_v2 }
  0x19   :  { %569 = vmatpush3.bf16.msra.mxu0 %v568_v31 }
  0x1a   :  { %570 = vmatprep.subr.bf16.mxu0 %v680_v2 }
  0x1b   :  { %590 = vmatpush3.bf16.msra.mxu1 %v589_v42 }
  0x1c   :  { %591 = vmatprep.subr.bf16.mxu1 %v680_v2 }
  0x1d   :  { %572 = vmatpush3.bf16.msra.mxu0 %v571_v37 }
  0x1e   :  { %573 = vmatprep.subr.bf16.mxu0 %v680_v2 }
  0x1f   :  { %593 = vmatpush3.bf16.msra.mxu1 %v592_v46 }
  0x20   :  { %594 = vmatprep.subr.bf16.mxu1 %v680_v2 }
  0x21   :  { %575 = vmatpush3.bf16.msra.mxu0 %v574_v43 }
  0x22   :  { %600 = vmatprep.subr.bf16.mxu0 %v680_v2 }
  0x23   :  { %596 = vmatpush3.bf16.msra.mxu1 %v595_v49 }
  0x24   :  { %597 = vmatprep.subr.bf16.mxu1 %v680_v2 }
  0x27   :  { %599 = vmatpush3.bf16.msra.mxu1 %v598_v20 }
  0x81   :  { %v47_v50 = vpop.permute.xlu0 %46 }
  0x82   :  { %v55_v54 = vmul.f32 %v390_v51, %v47_v50 }
  0x85   :  { %v61_v53 = vpop.permute.xlu0 %60 }
  0x86   :  { %v69_v55 = vmul.f32 %v391_v52, %v61_v53 }
  0x88   :  { %v70_v59 = vadd.f32 %v69_v55, %v55_v54 }
  0x8a   :  { %v78_v61 = vadd.f32 %v392_v58, %v70_v59 }
  0x8c   :  { %480 = vmatmul.mubr.f32.vlgmr.msra.gmra.mrb[0].mxu0 %v78_v61 }
  0x8d   :  { %602 = vmatpush3.bf16.msra.mxu0 %v601_v60  ;;  %549 = vmatprep.mubr.msk.f32.mxu0 %vm681_vm0, %v682_v15  ;;  %v281_v15 = vld [vmem:[%s981_s9 + $0x68] sm:$0xff]  ;;  %s683_s9 = smov [#allocation2]  }
  0x8e   :  { %603 = vmatprep.subr.bf16.mxu0 %v680_v2  ;;  %v619_v16 = vpack.c.bf16 %v281_v15, %v280_v14  ;;  %s368_s23 = sshll.u32 %s683_s9, 4  ;;  %s369_s23 = int_to_ptr.vmem [resolvable:$true] %s368_s23 }
  0x8f   :  { %p636_p1 = scmp.lt.s32.totalorder %s369_s23, %s369_s23 }
  0x91   :  { %605 = vmatpush3.bf16.msra.mxu0 %v604_v0 }
  0x92   :  { %606 = vmatprep.subr.bf16.mxu0 %v680_v2 }
  0x95   :  { %608 = vmatpush3.bf16.msra.mxu0 %v607_v4 }
  0x96   :  { %609 = vmatprep.subr.bf16.mxu0 %v680_v2 }
  0x99   :  { %611 = vmatpush3.bf16.msra.mxu0 %v610_v7 }
  0x9a   :  { %612 = vmatprep.subr.bf16.mxu0 %v680_v2 }
  0x9d   :  { %614 = vmatpush3.bf16.msra.mxu0 %v613_v10 }
  0x9e   :  { %615 = vmatprep.subr.bf16.mxu0 %v680_v2 }
  0xa1   :  { %617 = vmatpush3.bf16.msra.mxu0 %v616_v13 }
  0xa2   :  { %618 = vmatprep.subr.bf16.mxu0 %v680_v2 }
  0xa5   :  { %620 = vmatpush3.bf16.msra.mxu0 %v619_v16 }
  0xa6   :  { %621 = vmatprep.subr.bf16.mxu0 %v680_v2  ;;  %v393_v2 = vld [vmem:[%s978_s6] ss:$0 sm:$0xff]  ;;  %s631_s6 = scalar_lea.vmem %s369_s23, 32 }
  0xa7   :  { %p632_p0 = scmp.ne.s32.totalorder %s369_s23, %s631_s6  ;;  %p637_p2 = scmp.lt.s32.totalorder %s631_s6, %s631_s6 }
  0xa9   :  { %623 = vmatpush3.bf16.msra.mxu0 %v622_v22  ;;  %p638_p3 = por %p637_p2, %p636_p1 }
  0xab   :  { %p639_p4 = pnand %p638_p3, %p632_p0 }
 0x15f   :  { %v168_v23 = vpop.f32.mrb[0].mxu0 }
 0x160   :  { %v169_v24 = vadd.f32 %v393_v2, %v168_v23  ;;  %v481_v25 = vpop.f32.mrb[1].mxu0 }
 0x162   :  { %v172_v26 = vmax.f32 %v169_v24, 0.0 }
 0x164   :  { %515 = vmatmul.mubr.f32.vlgmr.msra.gmra.mrb[0].mxu1 %v172_v26  ;;  %550 = vmatmul.mubr.f32.vlgmr.msra.gmra.mrb[2].mxu0 %v172_v26 }
 0x237   :  { %v262_v29 = vpop.f32.mrb[0].mxu1  ;;  %v357_v30 = vpop.f32.mrb[2].mxu0 }
 0x238   :  { %v263_v31 = vadd.f32 %v394_v27, %v262_v29  ;;  %v358_v32 = vadd.f32 %v395_v28, %v357_v30  ;;  %v516_v33 = vpop.f32.mrb[1].mxu1  ;;  %v551_v34 = vpop.f32.mrb[3].mxu0 }
 0x23a   :  { %267 = vst.msk [vmem:[#allocation2] sm:$0x3] %vm266_vm1, %v263_v31  ;;  %361 = vst.msk [vmem:[#allocation4] sm:$0x3] %vm266_vm1, %v358_v32 }
 0x23b   :  { %642 = shalt.err (!%p639_p4)
}
 0x23c   :  { %s643_s26 = scalar_lea.hbm %s983_s11, 32 }
 0x23d   :  { %p644_p5 = scmp.ne.s32.totalorder %s983_s11, %s643_s26  ;;  %p647_p6 = scmp.lt.u32.totalorder %s643_s26, %s983_s11 }
 0x23f   :  { %p649_p7 = pnand %p647_p6, %p644_p5 }
 0x241   :  { %652 = shalt.err (!%p649_p7)
}
 0x242   :  { %371 = dma.vmem_to_hbm [thread:$0]  %s369_s23, 32, %s983_s11, [#allocation3]  }
 0x243   :  { %s653_s14 = scalar_lea.vmem %s379_s25, 32  ;;  %p658_p9 = scmp.lt.s32.totalorder %s379_s25, %s379_s25 }
 0x244   :  { %p654_p8 = scmp.ne.s32.totalorder %s379_s25, %s653_s14  ;;  %p659_p10 = scmp.lt.s32.totalorder %s653_s14, %s653_s14 }
 0x246   :  { %p660_p11 = por %p659_p10, %p658_p9 }
 0x248   :  { %p661_p12 = pnand %p660_p11, %p654_p8 }
 0x24a   :  { %664 = shalt.err (!%p661_p12)
}
 0x24b   :  { %s665_s15 = scalar_lea.hbm %s984_s12, 32 }
 0x24c   :  { %p666_p13 = scmp.ne.s32.totalorder %s984_s12, %s665_s15  ;;  %p669_p0 = scmp.lt.u32.totalorder %s665_s15, %s984_s12 }
 0x24e   :  { %p671_p1 = pnand %p669_p0, %p666_p13 }
 0x250   :  { %674 = shalt.err (!%p671_p1)
}
 0x251   :  { %381 = dma.vmem_to_hbm [thread:$0]  %s379_s25, 32, %s984_s12, [#allocation5]  }
 0x252   :  { %675 = dma.done.wait [#allocation3], 32  }
 0x253   :  { %676 = vsyncadd [#allocation3], 4294967264 }
 0x254   :  { %677 = dma.done.wait [#allocation5], 32  }
 0x255   :  { %678 = vsyncadd [#allocation5], 4294967264 }
 0x256   :  { %388 = vsyncpa [#allocation3], 1 }
 0x257   :  { %389 = vsyncpa [#allocation5], 1 }

</bundles_post_ra>
